<compile_context>
chip_gen: v6e
topology: v6e:2x2x1
jax: 0.10.0
libtpu: 0.0.40
codegen_flags: <defaults>
</compile_context>

<pallas_src>
import numpy as np

import jax
import jax.numpy as jnp
from jax.experimental import pallas as pl
from jax.experimental.pallas import tpu as pltpu

_BASE = 4            # fixed 4x4 spatial base grid after folding
_LANES = 128         # lane width; every folded channel dim is padded to this
_OUT_LANES = _LANES  # final conv output channels padded to a full lane width
_NB_MAX = 32         # max images per grid step (multiple of 16)


def _round_up(v, m):
    return ((v + m - 1) // m) * m


def _leaky_relu(x, slope=0.2):
    return jnp.where(x >= 0, x, jnp.float32(slope) * x)


# ----------------------------------------------------------------------------
# Fused kernel: 3 folded block-convs (+LeakyReLU) + final full contraction
# ----------------------------------------------------------------------------
def _fused_discriminator_kernel(x_ref, w0_ref, b0_ref, w1_ref, b1_ref,
                                w2_ref, b2_ref, w3_ref, b3_ref,
                                o_ref, xp_ref, a1_ref, a2_ref, ht_ref):
    nb = x_ref.shape[2]
    m = _BASE * _BASE * nb

    def zero_ring(ref):
        # Zero only the 1-wide padding ring (20 of 36 positions), in bf16.
        k = ref.shape[-1]
        z_row = jnp.zeros((1, _BASE + 2, nb, k), ref.dtype)
        z_col = jnp.zeros((_BASE, 1, nb, k), ref.dtype)
        ref[0:1, :, :, :] = z_row
        ref[_BASE + 1:_BASE + 2, :, :, :] = z_row
        ref[1:_BASE + 1, 0:1, :, :] = z_col
        ref[1:_BASE + 1, _BASE + 1:_BASE + 2, :, :] = z_col

    # Re-zeroed every step (megacore-safe; interiors are rewritten below).
    zero_ring(xp_ref)
    zero_ring(a1_ref)
    zero_ring(a2_ref)

    # Input block arrives unpadded & bf16; copy into the ring-padded scratch.
    xp_ref[1:_BASE + 1, 1:_BASE + 1, :, :] = x_ref[...]

    def folded_conv(src_ref, w_ref, b_ref):
        # One long-K im2col matmul: 9 lane-aligned tap slices concatenated
        # along K; weight was pre-reshaped to (9*Kin, Kout) offline.
        kin = src_ref.shape[-1]
        taps = [src_ref[dh:dh + _BASE, dw:dw + _BASE, :, :].reshape(m, kin)
                for dh in range(3) for dw in range(3)]
        col = jnp.concatenate(taps, axis=-1)                    # (m, 9*Kin) bf16
        y = jnp.dot(col, w_ref[...], preferred_element_type=jnp.float32)
        return _leaky_relu(y + b_ref[...])                      # f32

    # --- layer 0 ---
    h = folded_conv(xp_ref, w0_ref, b0_ref)                     # (m, K1p)
    a1_ref[1:_BASE + 1, 1:_BASE + 1, :, :] = (
        h.astype(jnp.bfloat16).reshape(_BASE, _BASE, nb, h.shape[-1]))

    # --- layer 1 ---
    h = folded_conv(a1_ref, w1_ref, b1_ref)                     # (m, K2p)
    a2_ref[1:_BASE + 1, 1:_BASE + 1, :, :] = (
        h.astype(jnp.bfloat16).reshape(_BASE, _BASE, nb, h.shape[-1]))

    # --- layer 2 ---
    h = folded_conv(a2_ref, w2_ref, b2_ref)                     # (m, C2p)
    c2 = h.shape[-1]

    # --- output layer: k=4 s=1 p=0 on the 4x4 map == full contraction.
    # Rearrange (hb, wb, n)-ordered rows into a per-image lane-major slab
    # (nb, 16*C2p) with 16 aligned VMEM stores, then ONE matmul.
    h = h.astype(jnp.bfloat16)
    for p in range(_BASE * _BASE):
        ht_ref[:, p * c2:(p + 1) * c2] = h[p * nb:(p + 1) * nb, :]
    o_ref[...] = (jnp.dot(ht_ref[...], w3_ref[...],
                          preferred_element_type=jnp.float32) + b3_ref[...])


def _fused_forward(x_folded, prepared, nb):
    """x_folded: (4, 4, n_pad, K0p) bf16. Returns (n_pad, 128) f32."""
    n_pad, k0p = x_folded.shape[2], x_folded.shape[3]
    assert n_pad % nb == 0
    w0, b0 = prepared["w0"], prepared["b0"]
    w1, b1 = prepared["w1"], prepared["b1"]
    w2, b2 = prepared["w2"], prepared["b2"]
    w3, b3 = prepared["w3"], prepared["b3"]
    assert w0.shape[0] == 9 * k0p
    k1p = w0.shape[1]   # a1 channels (layer-0 Kout, lane-padded)
    k2p = w1.shape[1]   # a2 channels (layer-1 Kout, lane-padded)
    c2p = w2.shape[1]   # layer-2 Kout, lane-padded

    def full(a):
        return pl.BlockSpec(a.shape, lambda g: (0,) * a.ndim)

    return pl.pallas_call(
        _fused_discriminator_kernel,
        out_shape=jax.ShapeDtypeStruct((n_pad, _OUT_LANES), jnp.float32),
        grid=(n_pad // nb,),
        in_specs=[
            pl.BlockSpec((_BASE, _BASE, nb, k0p), lambda g: (0, 0, g, 0)),
            full(w0), full(b0), full(w1), full(b1),
            full(w2), full(b2), full(w3), full(b3),
        ],
        out_specs=pl.BlockSpec((nb, _OUT_LANES), lambda g: (g, 0)),
        scratch_shapes=[
            pltpu.VMEM((_BASE + 2, _BASE + 2, nb, k0p), jnp.bfloat16),  # x + ring
            pltpu.VMEM((_BASE + 2, _BASE + 2, nb, k1p), jnp.bfloat16),  # act1 + ring
            pltpu.VMEM((_BASE + 2, _BASE + 2, nb, k2p), jnp.bfloat16),  # act2 + ring
            pltpu.VMEM((nb, _BASE * _BASE * c2p), jnp.bfloat16),        # head im2col
        ],
        compiler_params=pltpu.CompilerParams(
            dimension_semantics=("parallel",)),
    )(x_folded, w0, b0, w1, b1, w2, b2, w3, b3)


# ----------------------------------------------------------------------------
# Parameters: PyTorch-style init + one-time folded layout preparation
# ----------------------------------------------------------------------------
def init_params(key, nc, ndf):
    ks = jax.random.split(key, 8)

    def conv_init(kw_, kb_, cout, cin, k):
        fan_in = cin * k * k
        bound = 1.0 / np.sqrt(fan_in)
        w = jax.random.uniform(kw_, (cout, cin, k, k), jnp.float32, -bound, bound)
        b = jax.random.uniform(kb_, (cout,), jnp.float32, -bound, bound)
        return w, b

    return {
        "input_layer": conv_init(ks[0], ks[1], ndf, nc, 4),
        "layer1": conv_init(ks[2], ks[3], ndf * 2, ndf, 4),
        "layer2": conv_init(ks[4], ks[5], ndf * 4, ndf * 2, 4),
        "output_layer": conv_init(ks[6], ks[7], 1, ndf * 4, 4),
    }


def _fold_conv_weight(w_oihw, bias, f):
    """Fold a k=4/s=2/p=1 conv (input fold f, output fold f//2) into a
    stride-1 3x3 conv over 4x4 spatial blocks with space-to-depth channels."""
    w = np.asarray(w_oihw, np.float32)
    b = np.asarray(bias, np.float32)
    cout, cin = w.shape[0], w.shape[1]
    g = f // 2
    wf = np.zeros((3, 3, f * f * cin, g * g * cout), np.float32)
    for i in range(g):           # output sub-row within a fold-g block
        for j in range(g):       # output sub-col
            for kh in range(4):
                for kw in range(4):
                    rh = 2 * i + kh - 1        # input row offset (padded coords)
                    rw = 2 * j + kw - 1
                    dbh, ri = rh // f + 1, rh % f
                    dbw, rj = rw // f + 1, rw % f
                    ci0 = (ri * f + rj) * cin
                    co0 = (i * g + j) * cout
                    wf[dbh, dbw, ci0:ci0 + cin, co0:co0 + cout] = w[:, :, kh, kw].T
    bf = np.tile(b, g * g)
    return wf, bf


def prepare_params(params):
    """One-time, forward-invariant layout transform (hoisted out of forward).

    Every folded Kin/Kout is zero-padded to a multiple of 128 lanes so that all
    in-kernel tap slices / concatenations / stores are lane-aligned, and each
    folded weight is pre-reshaped to the (9*Kin_pad, Kout_pad) im2col layout."""
    prepared = {}
    for name, idx, f in (("input_layer", 0, 8), ("layer1", 1, 4), ("layer2", 2, 2)):
        w, b = params[name]
        wf, bf = _fold_conv_weight(w, b, f)              # (3,3,Kin,Kout), (Kout,)
        kin, kout = wf.shape[2], wf.shape[3]
        kin_p, kout_p = _round_up(kin, _LANES), _round_up(kout, _LANES)
        wfp = np.zeros((3, 3, kin_p, kout_p), np.float32)
        wfp[:, :, :kin, :kout] = wf
        bfp = np.zeros((kout_p,), np.float32)
        bfp[:kout] = bf
        prepared[f"w{idx}"] = jnp.asarray(wfp.reshape(9 * kin_p, kout_p),
                                          jnp.bfloat16)
        prepared[f"b{idx}"] = jnp.asarray(bfp.reshape(1, -1), jnp.float32)

    # Output layer: single (16*C2p, 128) matmul weight (only column 0 is real).
    w3, b3 = params["output_layer"]
    w3 = np.asarray(w3, np.float32)          # (1, 4ndf, 4, 4)
    b3 = np.asarray(b3, np.float32)
    cout3, cin3 = w3.shape[0], w3.shape[1]
    c2p = prepared["w2"].shape[1]
    w3big = np.zeros((_BASE * _BASE * c2p, _OUT_LANES), np.float32)
    for p in range(_BASE * _BASE):
        w3big[p * c2p:p * c2p + cin3, :cout3] = w3[:, :, p // _BASE, p % _BASE].T
    b3p = np.zeros((1, _OUT_LANES), np.float32)
    b3p[0, :cout3] = b3
    prepared["w3"] = jnp.asarray(w3big, jnp.bfloat16)
    prepared["b3"] = jnp.asarray(b3p, jnp.float32)
    return prepared


# ----------------------------------------------------------------------------
# Forward
# ----------------------------------------------------------------------------
def discriminator_forward(prepared, x_nchw):
    n, c, hgt, wid = x_nchw.shape
    assert hgt == 32 and wid == 32, "this Discriminator expects 32x32 inputs"
    f0 = 8
    k0 = f0 * f0 * c
    k0p = prepared["w0"].shape[0] // 9
    # NCHW -> NHWC -> space-to-depth by 8 onto the 4x4 base grid; bf16;
    # channel-pad to the lane-aligned folded width (unpadded spatially: the
    # zero ring is added inside the kernel's VMEM scratch).
    x = jnp.transpose(x_nchw, (0, 2, 3, 1)).astype(jnp.float32)
    x = x.reshape(n, _BASE, f0, _BASE, f0, c)
    x = x.transpose(0, 1, 3, 2, 4, 5).reshape(n, _BASE, _BASE, k0)
    x = x.astype(jnp.bfloat16)
    x = jnp.pad(x, ((0, 0), (0, 0), (0, 0), (0, k0p - k0)))
    # Batch tile: big enough to fill the MXU, multiple of 16 for bf16 packing.
    nb = min(_NB_MAX, _round_up(max(n, 1), 16))
    n_pad = _round_up(n, nb)
    x = jnp.pad(x, ((0, n_pad - n), (0, 0), (0, 0), (0, 0)))
    x = jnp.transpose(x, (1, 2, 0, 3))                     # (4, 4, n_pad, K0p)

    out = _fused_forward(x, prepared, nb)                  # (n_pad, 128) f32
    return out[:n, :1].reshape(n, 1, 1, 1)                 # NCHW (N,1,1,1)


if __name__ == "__main__":
    key = jax.random.PRNGKey(0)
    k_params, k_input = jax.random.split(key)

    N, nc, ndf, H, W = 2, 3, 8, 32, 32
    params = init_params(k_params, nc, ndf)
    prepared = prepare_params(params)
    x = jax.random.normal(k_input, (N, nc, H, W), jnp.float32)

    fwd = jax.jit(discriminator_forward)
    out = fwd(prepared, x)
    jax.block_until_ready(out)

    assert out.shape == (N, 1, 1, 1), out.shape
    assert out.dtype == jnp.float32

    # Reference: f32 lax conv with bf16-rounded operands (same rounding points
    # as the kernel: activations/weights bf16 at each conv, f32 accumulation,
    # bias + LeakyReLU in f32).
    def ref_forward(params, x_nchw):
        def conv(t, w, b, stride, pad):
            t = t.astype(jnp.bfloat16).astype(jnp.float32)
            w = w.astype(jnp.bfloat16).astype(jnp.float32)
            y = jax.lax.conv_general_dilated(
                t, w, window_strides=(stride, stride),
                padding=((pad, pad), (pad, pad)),
                dimension_numbers=("NCHW", "OIHW", "NCHW"))
            return y + b.reshape(1, -1, 1, 1)

        def lrelu(t):
            return jnp.where(t >= 0, t, 0.2 * t)

        w, b = params["input_layer"];  h = lrelu(conv(x_nchw, w, b, 2, 1))
        w, b = params["layer1"];       h = lrelu(conv(h, w, b, 2, 1))
        w, b = params["layer2"];       h = lrelu(conv(h, w, b, 2, 1))
        w, b = params["output_layer"]; h = conv(h, w, b, 1, 0)
        return h

    ref = ref_forward(params, x)
    max_err = float(jnp.max(jnp.abs(out - ref)))
    assert jnp.allclose(out, ref, atol=5e-3, rtol=5e-3), max_err

    print("KERNEL_OK")
</pallas_src>

<mosaic_0001>
module attributes {stable_mosaic.version = 11 : i64} {
  func.func @_fused_discriminator_kernel(%arg0: i32, %arg1: memref<4x4x16x256xbf16, #tpu.memory_space<vmem>>, %arg2: memref<2304x128xbf16, #tpu.memory_space<vmem>>, %arg3: memref<1x128xf32, #tpu.memory_space<vmem>>, %arg4: memref<1152x128xbf16, #tpu.memory_space<vmem>>, %arg5: memref<1x128xf32, #tpu.memory_space<vmem>>, %arg6: memref<1152x128xbf16, #tpu.memory_space<vmem>>, %arg7: memref<1x128xf32, #tpu.memory_space<vmem>>, %arg8: memref<2048x128xbf16, #tpu.memory_space<vmem>>, %arg9: memref<1x128xf32, #tpu.memory_space<vmem>>, %arg10: memref<16x128xf32, #tpu.memory_space<vmem>>, %arg11: memref<6x6x16x256xbf16, #tpu.memory_space<vmem>>, %arg12: memref<6x6x16x128xbf16, #tpu.memory_space<vmem>>, %arg13: memref<6x6x16x128xbf16, #tpu.memory_space<vmem>>, %arg14: memref<16x2048xbf16, #tpu.memory_space<vmem>>) attributes {dimension_semantics = [#tpu.dimension_semantics<parallel>], iteration_bounds = array<i64: 1>, scalar_prefetch = 0 : i64, scratch_operands = 4 : i64, tpu.core_type = #tpu.core_type<tc>, window_params = [{transform_indices = @transform_0, window_bounds = array<i64: 4, 4, 16, 256>}, {pipeline_mode = #tpu.pipeline_mode<synchronous>, transform_indices = @transform_1, window_bounds = array<i64: 2304, 128>}, {pipeline_mode = #tpu.pipeline_mode<synchronous>, transform_indices = @transform_2, window_bounds = array<i64: 1, 128>}, {pipeline_mode = #tpu.pipeline_mode<synchronous>, transform_indices = @transform_3, window_bounds = array<i64: 1152, 128>}, {pipeline_mode = #tpu.pipeline_mode<synchronous>, transform_indices = @transform_4, window_bounds = array<i64: 1, 128>}, {pipeline_mode = #tpu.pipeline_mode<synchronous>, transform_indices = @transform_5, window_bounds = array<i64: 1152, 128>}, {pipeline_mode = #tpu.pipeline_mode<synchronous>, transform_indices = @transform_6, window_bounds = array<i64: 1, 128>}, {pipeline_mode = #tpu.pipeline_mode<synchronous>, transform_indices = @transform_7, window_bounds = array<i64: 2048, 128>}, {pipeline_mode = #tpu.pipeline_mode<synchronous>, transform_indices = @transform_8, window_bounds = array<i64: 1, 128>}, {transform_indices = @transform_9, window_bounds = array<i64: 16, 128>}]} {
    %cst = arith.constant 0.000000e+00 : bf16
    %0 = vector.broadcast %cst : bf16 to vector<1x6x16x256xbf16>
    %cst_0 = arith.constant 0.000000e+00 : bf16
    %1 = vector.broadcast %cst_0 : bf16 to vector<4x1x16x256xbf16>
    %c0 = arith.constant 0 : index
    %c0_1 = arith.constant 0 : index
    %c0_2 = arith.constant 0 : index
    %c0_3 = arith.constant 0 : index
    %2 = vector.load %arg11[%c0, %c0_1, %c0_2, %c0_3] : memref<6x6x16x256xbf16, #tpu.memory_space<vmem>>, vector<1x6x16x256xbf16>
    tpu.vector_store %arg11[%c0, %c0_1, %c0_2, %c0_3], %0 {strides = array<i32>} : memref<6x6x16x256xbf16, #tpu.memory_space<vmem>>, vector<1x6x16x256xbf16>,
    %c5 = arith.constant 5 : index
    %c0_4 = arith.constant 0 : index
    %c0_5 = arith.constant 0 : index
    %c0_6 = arith.constant 0 : index
    %3 = vector.load %arg11[%c5, %c0_4, %c0_5, %c0_6] : memref<6x6x16x256xbf16, #tpu.memory_space<vmem>>, vector<1x6x16x256xbf16>
    tpu.vector_store %arg11[%c5, %c0_4, %c0_5, %c0_6], %0 {strides = array<i32>} : memref<6x6x16x256xbf16, #tpu.memory_space<vmem>>, vector<1x6x16x256xbf16>,
    %c1 = arith.constant 1 : index
    %c0_7 = arith.constant 0 : index
    %c0_8 = arith.constant 0 : index
    %c0_9 = arith.constant 0 : index
    %4 = vector.load %arg11[%c1, %c0_7, %c0_8, %c0_9] : memref<6x6x16x256xbf16, #tpu.memory_space<vmem>>, vector<4x1x16x256xbf16>
    tpu.vector_store %arg11[%c1, %c0_7, %c0_8, %c0_9], %1 {strides = array<i32>} : memref<6x6x16x256xbf16, #tpu.memory_space<vmem>>, vector<4x1x16x256xbf16>,
    %c1_10 = arith.constant 1 : index
    %c5_11 = arith.constant 5 : index
    %c0_12 = arith.constant 0 : index
    %c0_13 = arith.constant 0 : index
    %5 = vector.load %arg11[%c1_10, %c5_11, %c0_12, %c0_13] : memref<6x6x16x256xbf16, #tpu.memory_space<vmem>>, vector<4x1x16x256xbf16>
    tpu.vector_store %arg11[%c1_10, %c5_11, %c0_12, %c0_13], %1 {strides = array<i32>} : memref<6x6x16x256xbf16, #tpu.memory_space<vmem>>, vector<4x1x16x256xbf16>,
    %cst_14 = arith.constant 0.000000e+00 : bf16
    %6 = vector.broadcast %cst_14 : bf16 to vector<1x6x16x128xbf16>
    %cst_15 = arith.constant 0.000000e+00 : bf16
    %7 = vector.broadcast %cst_15 : bf16 to vector<4x1x16x128xbf16>
    %c0_16 = arith.constant 0 : index
    %c0_17 = arith.constant 0 : index
    %c0_18 = arith.constant 0 : index
    %c0_19 = arith.constant 0 : index
    %8 = vector.load %arg12[%c0_16, %c0_17, %c0_18, %c0_19] : memref<6x6x16x128xbf16, #tpu.memory_space<vmem>>, vector<1x6x16x128xbf16>
    tpu.vector_store %arg12[%c0_16, %c0_17, %c0_18, %c0_19], %6 {strides = array<i32>} : memref<6x6x16x128xbf16, #tpu.memory_space<vmem>>, vector<1x6x16x128xbf16>,
    %c5_20 = arith.constant 5 : index
    %c0_21 = arith.constant 0 : index
    %c0_22 = arith.constant 0 : index
    %c0_23 = arith.constant 0 : index
    %9 = vector.load %arg12[%c5_20, %c0_21, %c0_22, %c0_23] : memref<6x6x16x128xbf16, #tpu.memory_space<vmem>>, vector<1x6x16x128xbf16>
    tpu.vector_store %arg12[%c5_20, %c0_21, %c0_22, %c0_23], %6 {strides = array<i32>} : memref<6x6x16x128xbf16, #tpu.memory_space<vmem>>, vector<1x6x16x128xbf16>,
    %c1_24 = arith.constant 1 : index
    %c0_25 = arith.constant 0 : index
    %c0_26 = arith.constant 0 : index
    %c0_27 = arith.constant 0 : index
    %10 = vector.load %arg12[%c1_24, %c0_25, %c0_26, %c0_27] : memref<6x6x16x128xbf16, #tpu.memory_space<vmem>>, vector<4x1x16x128xbf16>
    tpu.vector_store %arg12[%c1_24, %c0_25, %c0_26, %c0_27], %7 {strides = array<i32>} : memref<6x6x16x128xbf16, #tpu.memory_space<vmem>>, vector<4x1x16x128xbf16>,
    %c1_28 = arith.constant 1 : index
    %c5_29 = arith.constant 5 : index
    %c0_30 = arith.constant 0 : index
    %c0_31 = arith.constant 0 : index
    %11 = vector.load %arg12[%c1_28, %c5_29, %c0_30, %c0_31] : memref<6x6x16x128xbf16, #tpu.memory_space<vmem>>, vector<4x1x16x128xbf16>
    tpu.vector_store %arg12[%c1_28, %c5_29, %c0_30, %c0_31], %7 {strides = array<i32>} : memref<6x6x16x128xbf16, #tpu.memory_space<vmem>>, vector<4x1x16x128xbf16>,
    %cst_32 = arith.constant 0.000000e+00 : bf16
    %12 = vector.broadcast %cst_32 : bf16 to vector<1x6x16x128xbf16>
    %cst_33 = arith.constant 0.000000e+00 : bf16
    %13 = vector.broadcast %cst_33 : bf16 to vector<4x1x16x128xbf16>
    %c0_34 = arith.constant 0 : index
    %c0_35 = arith.constant 0 : index
    %c0_36 = arith.constant 0 : index
    %c0_37 = arith.constant 0 : index
    %14 = vector.load %arg13[%c0_34, %c0_35, %c0_36, %c0_37] : memref<6x6x16x128xbf16, #tpu.memory_space<vmem>>, vector<1x6x16x128xbf16>
    tpu.vector_store %arg13[%c0_34, %c0_35, %c0_36, %c0_37], %12 {strides = array<i32>} : memref<6x6x16x128xbf16, #tpu.memory_space<vmem>>, vector<1x6x16x128xbf16>,
    %c5_38 = arith.constant 5 : index
    %c0_39 = arith.constant 0 : index
    %c0_40 = arith.constant 0 : index
    %c0_41 = arith.constant 0 : index
    %15 = vector.load %arg13[%c5_38, %c0_39, %c0_40, %c0_41] : memref<6x6x16x128xbf16, #tpu.memory_space<vmem>>, vector<1x6x16x128xbf16>
    tpu.vector_store %arg13[%c5_38, %c0_39, %c0_40, %c0_41], %12 {strides = array<i32>} : memref<6x6x16x128xbf16, #tpu.memory_space<vmem>>, vector<1x6x16x128xbf16>,
    %c1_42 = arith.constant 1 : index
    %c0_43 = arith.constant 0 : index
    %c0_44 = arith.constant 0 : index
    %c0_45 = arith.constant 0 : index
    %16 = vector.load %arg13[%c1_42, %c0_43, %c0_44, %c0_45] : memref<6x6x16x128xbf16, #tpu.memory_space<vmem>>, vector<4x1x16x128xbf16>
    tpu.vector_store %arg13[%c1_42, %c0_43, %c0_44, %c0_45], %13 {strides = array<i32>} : memref<6x6x16x128xbf16, #tpu.memory_space<vmem>>, vector<4x1x16x128xbf16>,
    %c1_46 = arith.constant 1 : index
    %c5_47 = arith.constant 5 : index
    %c0_48 = arith.constant 0 : index
    %c0_49 = arith.constant 0 : index
    %17 = vector.load %arg13[%c1_46, %c5_47, %c0_48, %c0_49] : memref<6x6x16x128xbf16, #tpu.memory_space<vmem>>, vector<4x1x16x128xbf16>
    tpu.vector_store %arg13[%c1_46, %c5_47, %c0_48, %c0_49], %13 {strides = array<i32>} : memref<6x6x16x128xbf16, #tpu.memory_space<vmem>>, vector<4x1x16x128xbf16>,
    %c0_50 = arith.constant 0 : index
    %c0_51 = arith.constant 0 : index
    %c0_52 = arith.constant 0 : index
    %c0_53 = arith.constant 0 : index
    %18 = vector.load %arg1[%c0_50, %c0_51, %c0_52, %c0_53] : memref<4x4x16x256xbf16, #tpu.memory_space<vmem>>, vector<4x4x16x256xbf16>
    %c1_54 = arith.constant 1 : index
    %c1_55 = arith.constant 1 : index
    %c0_56 = arith.constant 0 : index
    %c0_57 = arith.constant 0 : index
    %19 = vector.load %arg11[%c1_54, %c1_55, %c0_56, %c0_57] : memref<6x6x16x256xbf16, #tpu.memory_space<vmem>>, vector<4x4x16x256xbf16>
    tpu.vector_store %arg11[%c1_54, %c1_55, %c0_56, %c0_57], %18 {strides = array<i32>} : memref<6x6x16x256xbf16, #tpu.memory_space<vmem>>, vector<4x4x16x256xbf16>,
    %c0_58 = arith.constant 0 : index
    %c0_59 = arith.constant 0 : index
    %c0_60 = arith.constant 0 : index
    %c0_61 = arith.constant 0 : index
    %20 = vector.load %arg11[%c0_58, %c0_59, %c0_60, %c0_61] : memref<6x6x16x256xbf16, #tpu.memory_space<vmem>>, vector<4x4x16x256xbf16>
    %21 = vector.shape_cast %20 : vector<4x4x16x256xbf16> to vector<256x256xbf16>
    %c0_62 = arith.constant 0 : index
    %c1_63 = arith.constant 1 : index
    %c0_64 = arith.constant 0 : index
    %c0_65 = arith.constant 0 : index
    %22 = vector.load %arg11[%c0_62, %c1_63, %c0_64, %c0_65] : memref<6x6x16x256xbf16, #tpu.memory_space<vmem>>, vector<4x4x16x256xbf16>
    %23 = vector.shape_cast %22 : vector<4x4x16x256xbf16> to vector<256x256xbf16>
    %c0_66 = arith.constant 0 : index
    %c2 = arith.constant 2 : index
    %c0_67 = arith.constant 0 : index
    %c0_68 = arith.constant 0 : index
    %24 = vector.load %arg11[%c0_66, %c2, %c0_67, %c0_68] : memref<6x6x16x256xbf16, #tpu.memory_space<vmem>>, vector<4x4x16x256xbf16>
    %25 = vector.shape_cast %24 : vector<4x4x16x256xbf16> to vector<256x256xbf16>
    %c1_69 = arith.constant 1 : index
    %c0_70 = arith.constant 0 : index
    %c0_71 = arith.constant 0 : index
    %c0_72 = arith.constant 0 : index
    %26 = vector.load %arg11[%c1_69, %c0_70, %c0_71, %c0_72] : memref<6x6x16x256xbf16, #tpu.memory_space<vmem>>, vector<4x4x16x256xbf16>
    %27 = vector.shape_cast %26 : vector<4x4x16x256xbf16> to vector<256x256xbf16>
    %c1_73 = arith.constant 1 : index
    %c1_74 = arith.constant 1 : index
    %c0_75 = arith.constant 0 : index
    %c0_76 = arith.constant 0 : index
    %28 = vector.load %arg11[%c1_73, %c1_74, %c0_75, %c0_76] : memref<6x6x16x256xbf16, #tpu.memory_space<vmem>>, vector<4x4x16x256xbf16>
    %29 = vector.shape_cast %28 : vector<4x4x16x256xbf16> to vector<256x256xbf16>
    %c1_77 = arith.constant 1 : index
    %c2_78 = arith.constant 2 : index
    %c0_79 = arith.constant 0 : index
    %c0_80 = arith.constant 0 : index
    %30 = vector.load %arg11[%c1_77, %c2_78, %c0_79, %c0_80] : memref<6x6x16x256xbf16, #tpu.memory_space<vmem>>, vector<4x4x16x256xbf16>
    %31 = vector.shape_cast %30 : vector<4x4x16x256xbf16> to vector<256x256xbf16>
    %c2_81 = arith.constant 2 : index
    %c0_82 = arith.constant 0 : index
    %c0_83 = arith.constant 0 : index
    %c0_84 = arith.constant 0 : index
    %32 = vector.load %arg11[%c2_81, %c0_82, %c0_83, %c0_84] : memref<6x6x16x256xbf16, #tpu.memory_space<vmem>>, vector<4x4x16x256xbf16>
    %33 = vector.shape_cast %32 : vector<4x4x16x256xbf16> to vector<256x256xbf16>
    %c2_85 = arith.constant 2 : index
    %c1_86 = arith.constant 1 : index
    %c0_87 = arith.constant 0 : index
    %c0_88 = arith.constant 0 : index
    %34 = vector.load %arg11[%c2_85, %c1_86, %c0_87, %c0_88] : memref<6x6x16x256xbf16, #tpu.memory_space<vmem>>, vector<4x4x16x256xbf16>
    %35 = vector.shape_cast %34 : vector<4x4x16x256xbf16> to vector<256x256xbf16>
    %c2_89 = arith.constant 2 : index
    %c2_90 = arith.constant 2 : index
    %c0_91 = arith.constant 0 : index
    %c0_92 = arith.constant 0 : index
    %36 = vector.load %arg11[%c2_89, %c2_90, %c0_91, %c0_92] : memref<6x6x16x256xbf16, #tpu.memory_space<vmem>>, vector<4x4x16x256xbf16>
    %37 = vector.shape_cast %36 : vector<4x4x16x256xbf16> to vector<256x256xbf16>
    %38 = tpu.concatenate %21, %23, %25, %27, %29, %31, %33, %35, %37 in 1 : vector<256x256xbf16>, vector<256x256xbf16>, vector<256x256xbf16>, vector<256x256xbf16>, vector<256x256xbf16>, vector<256x256xbf16>, vector<256x256xbf16>, vector<256x256xbf16>, vector<256x256xbf16> -> vector<256x2304xbf16>
    %c0_93 = arith.constant 0 : index
    %c0_94 = arith.constant 0 : index
    %39 = vector.load %arg2[%c0_93, %c0_94] : memref<2304x128xbf16, #tpu.memory_space<vmem>>, vector<2304x128xbf16>
    %cst_95 = arith.constant dense<0.000000e+00> : vector<256x128xf32>
    %40 = tpu.matmul %38, %39, %cst_95 {dimension_numbers = #tpu.dot_dimension_numbers<[1], [0], [0], [1], [0, 0, 1, 1], [], []>} : vector<256x2304xbf16>, vector<2304x128xbf16>, vector<256x128xf32> -> vector<256x128xf32>
    %c0_96 = arith.constant 0 : index
    %c0_97 = arith.constant 0 : index
    %41 = vector.load %arg3[%c0_96, %c0_97] : memref<1x128xf32, #tpu.memory_space<vmem>>, vector<1x128xf32>
    %42 = vector.broadcast %41 : vector<1x128xf32> to vector<256x128xf32>
    %43 = arith.addf %40, %42 : vector<256x128xf32>
    %cst_98 = arith.constant 0.000000e+00 : f32
    %44 = vector.broadcast %cst_98 : f32 to vector<256x128xf32>
    %45 = arith.cmpf oge, %43, %44 : vector<256x128xf32>
    %cst_99 = arith.constant 2.000000e-01 : f32
    %46 = vector.broadcast %cst_99 : f32 to vector<256x128xf32>
    %47 = arith.mulf %46, %43 : vector<256x128xf32>
    %48 = arith.select %45, %43, %47 : vector<256x128xi1>, vector<256x128xf32>
    %49 = arith.truncf %48 : vector<256x128xf32> to vector<256x128xbf16>
    %50 = vector.shape_cast %49 : vector<256x128xbf16> to vector<4x4x16x128xbf16>
    %c1_100 = arith.constant 1 : index
    %c1_101 = arith.constant 1 : index
    %c0_102 = arith.constant 0 : index
    %c0_103 = arith.constant 0 : index
    %51 = vector.load %arg12[%c1_100, %c1_101, %c0_102, %c0_103] : memref<6x6x16x128xbf16, #tpu.memory_space<vmem>>, vector<4x4x16x128xbf16>
    tpu.vector_store %arg12[%c1_100, %c1_101, %c0_102, %c0_103], %50 {strides = array<i32>} : memref<6x6x16x128xbf16, #tpu.memory_space<vmem>>, vector<4x4x16x128xbf16>,
    %c0_104 = arith.constant 0 : index
    %c0_105 = arith.constant 0 : index
    %c0_106 = arith.constant 0 : index
    %c0_107 = arith.constant 0 : index
    %52 = vector.load %arg12[%c0_104, %c0_105, %c0_106, %c0_107] : memref<6x6x16x128xbf16, #tpu.memory_space<vmem>>, vector<4x4x16x128xbf16>
    %53 = vector.shape_cast %52 : vector<4x4x16x128xbf16> to vector<256x128xbf16>
    %c0_108 = arith.constant 0 : index
    %c1_109 = arith.constant 1 : index
    %c0_110 = arith.constant 0 : index
    %c0_111 = arith.constant 0 : index
    %54 = vector.load %arg12[%c0_108, %c1_109, %c0_110, %c0_111] : memref<6x6x16x128xbf16, #tpu.memory_space<vmem>>, vector<4x4x16x128xbf16>
    %55 = vector.shape_cast %54 : vector<4x4x16x128xbf16> to vector<256x128xbf16>
    %c0_112 = arith.constant 0 : index
    %c2_113 = arith.constant 2 : index
    %c0_114 = arith.constant 0 : index
    %c0_115 = arith.constant 0 : index
    %56 = vector.load %arg12[%c0_112, %c2_113, %c0_114, %c0_115] : memref<6x6x16x128xbf16, #tpu.memory_space<vmem>>, vector<4x4x16x128xbf16>
    %57 = vector.shape_cast %56 : vector<4x4x16x128xbf16> to vector<256x128xbf16>
    %c1_116 = arith.constant 1 : index
    %c0_117 = arith.constant 0 : index
    %c0_118 = arith.constant 0 : index
    %c0_119 = arith.constant 0 : index
    %58 = vector.load %arg12[%c1_116, %c0_117, %c0_118, %c0_119] : memref<6x6x16x128xbf16, #tpu.memory_space<vmem>>, vector<4x4x16x128xbf16>
    %59 = vector.shape_cast %58 : vector<4x4x16x128xbf16> to vector<256x128xbf16>
    %c1_120 = arith.constant 1 : index
    %c1_121 = arith.constant 1 : index
    %c0_122 = arith.constant 0 : index
    %c0_123 = arith.constant 0 : index
    %60 = vector.load %arg12[%c1_120, %c1_121, %c0_122, %c0_123] : memref<6x6x16x128xbf16, #tpu.memory_space<vmem>>, vector<4x4x16x128xbf16>
    %61 = vector.shape_cast %60 : vector<4x4x16x128xbf16> to vector<256x128xbf16>
    %c1_124 = arith.constant 1 : index
    %c2_125 = arith.constant 2 : index
    %c0_126 = arith.constant 0 : index
    %c0_127 = arith.constant 0 : index
    %62 = vector.load %arg12[%c1_124, %c2_125, %c0_126, %c0_127] : memref<6x6x16x128xbf16, #tpu.memory_space<vmem>>, vector<4x4x16x128xbf16>
    %63 = vector.shape_cast %62 : vector<4x4x16x128xbf16> to vector<256x128xbf16>
    %c2_128 = arith.constant 2 : index
    %c0_129 = arith.constant 0 : index
    %c0_130 = arith.constant 0 : index
    %c0_131 = arith.constant 0 : index
    %64 = vector.load %arg12[%c2_128, %c0_129, %c0_130, %c0_131] : memref<6x6x16x128xbf16, #tpu.memory_space<vmem>>, vector<4x4x16x128xbf16>
    %65 = vector.shape_cast %64 : vector<4x4x16x128xbf16> to vector<256x128xbf16>
    %c2_132 = arith.constant 2 : index
    %c1_133 = arith.constant 1 : index
    %c0_134 = arith.constant 0 : index
    %c0_135 = arith.constant 0 : index
    %66 = vector.load %arg12[%c2_132, %c1_133, %c0_134, %c0_135] : memref<6x6x16x128xbf16, #tpu.memory_space<vmem>>, vector<4x4x16x128xbf16>
    %67 = vector.shape_cast %66 : vector<4x4x16x128xbf16> to vector<256x128xbf16>
    %c2_136 = arith.constant 2 : index
    %c2_137 = arith.constant 2 : index
    %c0_138 = arith.constant 0 : index
    %c0_139 = arith.constant 0 : index
    %68 = vector.load %arg12[%c2_136, %c2_137, %c0_138, %c0_139] : memref<6x6x16x128xbf16, #tpu.memory_space<vmem>>, vector<4x4x16x128xbf16>
    %69 = vector.shape_cast %68 : vector<4x4x16x128xbf16> to vector<256x128xbf16>
    %70 = tpu.concatenate %53, %55, %57, %59, %61, %63, %65, %67, %69 in 1 : vector<256x128xbf16>, vector<256x128xbf16>, vector<256x128xbf16>, vector<256x128xbf16>, vector<256x128xbf16>, vector<256x128xbf16>, vector<256x128xbf16>, vector<256x128xbf16>, vector<256x128xbf16> -> vector<256x1152xbf16>
    %c0_140 = arith.constant 0 : index
    %c0_141 = arith.constant 0 : index
    %71 = vector.load %arg4[%c0_140, %c0_141] : memref<1152x128xbf16, #tpu.memory_space<vmem>>, vector<1152x128xbf16>
    %cst_142 = arith.constant dense<0.000000e+00> : vector<256x128xf32>
    %72 = tpu.matmul %70, %71, %cst_142 {dimension_numbers = #tpu.dot_dimension_numbers<[1], [0], [0], [1], [0, 0, 1, 1], [], []>} : vector<256x1152xbf16>, vector<1152x128xbf16>, vector<256x128xf32> -> vector<256x128xf32>
    %c0_143 = arith.constant 0 : index
    %c0_144 = arith.constant 0 : index
    %73 = vector.load %arg5[%c0_143, %c0_144] : memref<1x128xf32, #tpu.memory_space<vmem>>, vector<1x128xf32>
    %74 = vector.broadcast %73 : vector<1x128xf32> to vector<256x128xf32>
    %75 = arith.addf %72, %74 : vector<256x128xf32>
    %cst_145 = arith.constant 0.000000e+00 : f32
    %76 = vector.broadcast %cst_145 : f32 to vector<256x128xf32>
    %77 = arith.cmpf oge, %75, %76 : vector<256x128xf32>
    %cst_146 = arith.constant 2.000000e-01 : f32
    %78 = vector.broadcast %cst_146 : f32 to vector<256x128xf32>
    %79 = arith.mulf %78, %75 : vector<256x128xf32>
    %80 = arith.select %77, %75, %79 : vector<256x128xi1>, vector<256x128xf32>
    %81 = arith.truncf %80 : vector<256x128xf32> to vector<256x128xbf16>
    %82 = vector.shape_cast %81 : vector<256x128xbf16> to vector<4x4x16x128xbf16>
    %c1_147 = arith.constant 1 : index
    %c1_148 = arith.constant 1 : index
    %c0_149 = arith.constant 0 : index
    %c0_150 = arith.constant 0 : index
    %83 = vector.load %arg13[%c1_147, %c1_148, %c0_149, %c0_150] : memref<6x6x16x128xbf16, #tpu.memory_space<vmem>>, vector<4x4x16x128xbf16>
    tpu.vector_store %arg13[%c1_147, %c1_148, %c0_149, %c0_150], %82 {strides = array<i32>} : memref<6x6x16x128xbf16, #tpu.memory_space<vmem>>, vector<4x4x16x128xbf16>,
    %c0_151 = arith.constant 0 : index
    %c0_152 = arith.constant 0 : index
    %c0_153 = arith.constant 0 : index
    %c0_154 = arith.constant 0 : index
    %84 = vector.load %arg13[%c0_151, %c0_152, %c0_153, %c0_154] : memref<6x6x16x128xbf16, #tpu.memory_space<vmem>>, vector<4x4x16x128xbf16>
    %85 = vector.shape_cast %84 : vector<4x4x16x128xbf16> to vector<256x128xbf16>
    %c0_155 = arith.constant 0 : index
    %c1_156 = arith.constant 1 : index
    %c0_157 = arith.constant 0 : index
    %c0_158 = arith.constant 0 : index
    %86 = vector.load %arg13[%c0_155, %c1_156, %c0_157, %c0_158] : memref<6x6x16x128xbf16, #tpu.memory_space<vmem>>, vector<4x4x16x128xbf16>
    %87 = vector.shape_cast %86 : vector<4x4x16x128xbf16> to vector<256x128xbf16>
    %c0_159 = arith.constant 0 : index
    %c2_160 = arith.constant 2 : index
    %c0_161 = arith.constant 0 : index
    %c0_162 = arith.constant 0 : index
    %88 = vector.load %arg13[%c0_159, %c2_160, %c0_161, %c0_162] : memref<6x6x16x128xbf16, #tpu.memory_space<vmem>>, vector<4x4x16x128xbf16>
    %89 = vector.shape_cast %88 : vector<4x4x16x128xbf16> to vector<256x128xbf16>
    %c1_163 = arith.constant 1 : index
    %c0_164 = arith.constant 0 : index
    %c0_165 = arith.constant 0 : index
    %c0_166 = arith.constant 0 : index
    %90 = vector.load %arg13[%c1_163, %c0_164, %c0_165, %c0_166] : memref<6x6x16x128xbf16, #tpu.memory_space<vmem>>, vector<4x4x16x128xbf16>
    %91 = vector.shape_cast %90 : vector<4x4x16x128xbf16> to vector<256x128xbf16>
    %c1_167 = arith.constant 1 : index
    %c1_168 = arith.constant 1 : index
    %c0_169 = arith.constant 0 : index
    %c0_170 = arith.constant 0 : index
    %92 = vector.load %arg13[%c1_167, %c1_168, %c0_169, %c0_170] : memref<6x6x16x128xbf16, #tpu.memory_space<vmem>>, vector<4x4x16x128xbf16>
    %93 = vector.shape_cast %92 : vector<4x4x16x128xbf16> to vector<256x128xbf16>
    %c1_171 = arith.constant 1 : index
    %c2_172 = arith.constant 2 : index
    %c0_173 = arith.constant 0 : index
    %c0_174 = arith.constant 0 : index
    %94 = vector.load %arg13[%c1_171, %c2_172, %c0_173, %c0_174] : memref<6x6x16x128xbf16, #tpu.memory_space<vmem>>, vector<4x4x16x128xbf16>
    %95 = vector.shape_cast %94 : vector<4x4x16x128xbf16> to vector<256x128xbf16>
    %c2_175 = arith.constant 2 : index
    %c0_176 = arith.constant 0 : index
    %c0_177 = arith.constant 0 : index
    %c0_178 = arith.constant 0 : index
    %96 = vector.load %arg13[%c2_175, %c0_176, %c0_177, %c0_178] : memref<6x6x16x128xbf16, #tpu.memory_space<vmem>>, vector<4x4x16x128xbf16>
    %97 = vector.shape_cast %96 : vector<4x4x16x128xbf16> to vector<256x128xbf16>
    %c2_179 = arith.constant 2 : index
    %c1_180 = arith.constant 1 : index
    %c0_181 = arith.constant 0 : index
    %c0_182 = arith.constant 0 : index
    %98 = vector.load %arg13[%c2_179, %c1_180, %c0_181, %c0_182] : memref<6x6x16x128xbf16, #tpu.memory_space<vmem>>, vector<4x4x16x128xbf16>
    %99 = vector.shape_cast %98 : vector<4x4x16x128xbf16> to vector<256x128xbf16>
    %c2_183 = arith.constant 2 : index
    %c2_184 = arith.constant 2 : index
    %c0_185 = arith.constant 0 : index
    %c0_186 = arith.constant 0 : index
    %100 = vector.load %arg13[%c2_183, %c2_184, %c0_185, %c0_186] : memref<6x6x16x128xbf16, #tpu.memory_space<vmem>>, vector<4x4x16x128xbf16>
    %101 = vector.shape_cast %100 : vector<4x4x16x128xbf16> to vector<256x128xbf16>
    %102 = tpu.concatenate %85, %87, %89, %91, %93, %95, %97, %99, %101 in 1 : vector<256x128xbf16>, vector<256x128xbf16>, vector<256x128xbf16>, vector<256x128xbf16>, vector<256x128xbf16>, vector<256x128xbf16>, vector<256x128xbf16>, vector<256x128xbf16>, vector<256x128xbf16> -> vector<256x1152xbf16>
    %c0_187 = arith.constant 0 : index
    %c0_188 = arith.constant 0 : index
    %103 = vector.load %arg6[%c0_187, %c0_188] : memref<1152x128xbf16, #tpu.memory_space<vmem>>, vector<1152x128xbf16>
    %cst_189 = arith.constant dense<0.000000e+00> : vector<256x128xf32>
    %104 = tpu.matmul %102, %103, %cst_189 {dimension_numbers = #tpu.dot_dimension_numbers<[1], [0], [0], [1], [0, 0, 1, 1], [], []>} : vector<256x1152xbf16>, vector<1152x128xbf16>, vector<256x128xf32> -> vector<256x128xf32>
    %c0_190 = arith.constant 0 : index
    %c0_191 = arith.constant 0 : index
    %105 = vector.load %arg7[%c0_190, %c0_191] : memref<1x128xf32, #tpu.memory_space<vmem>>, vector<1x128xf32>
    %106 = vector.broadcast %105 : vector<1x128xf32> to vector<256x128xf32>
    %107 = arith.addf %104, %106 : vector<256x128xf32>
    %cst_192 = arith.constant 0.000000e+00 : f32
    %108 = vector.broadcast %cst_192 : f32 to vector<256x128xf32>
    %109 = arith.cmpf oge, %107, %108 : vector<256x128xf32>
    %cst_193 = arith.constant 2.000000e-01 : f32
    %110 = vector.broadcast %cst_193 : f32 to vector<256x128xf32>
    %111 = arith.mulf %110, %107 : vector<256x128xf32>
    %112 = arith.select %109, %107, %111 : vector<256x128xi1>, vector<256x128xf32>
    %113 = arith.truncf %112 : vector<256x128xf32> to vector<256x128xbf16>
    %114 = vector.extract_strided_slice %113 {offsets = [0, 0], sizes = [16, 128], strides = [1, 1]} : vector<256x128xbf16> to vector<16x128xbf16>
    %c0_194 = arith.constant 0 : index
    %c0_195 = arith.constant 0 : index
    %115 = vector.load %arg14[%c0_194, %c0_195] : memref<16x2048xbf16, #tpu.memory_space<vmem>>, vector<16x128xbf16>
    tpu.vector_store %arg14[%c0_194, %c0_195], %114 {strides = array<i32>} : memref<16x2048xbf16, #tpu.memory_space<vmem>>, vector<16x128xbf16>,
    %116 = vector.extract_strided_slice %113 {offsets = [16, 0], sizes = [16, 128], strides = [1, 1]} : vector<256x128xbf16> to vector<16x128xbf16>
    %c0_196 = arith.constant 0 : index
    %c128 = arith.constant 128 : index
    %117 = vector.load %arg14[%c0_196, %c128] : memref<16x2048xbf16, #tpu.memory_space<vmem>>, vector<16x128xbf16>
    tpu.vector_store %arg14[%c0_196, %c128], %116 {strides = array<i32>} : memref<16x2048xbf16, #tpu.memory_space<vmem>>, vector<16x128xbf16>,
    %118 = vector.extract_strided_slice %113 {offsets = [32, 0], sizes = [16, 128], strides = [1, 1]} : vector<256x128xbf16> to vector<16x128xbf16>
    %c0_197 = arith.constant 0 : index
    %c256 = arith.constant 256 : index
    %119 = vector.load %arg14[%c0_197, %c256] : memref<16x2048xbf16, #tpu.memory_space<vmem>>, vector<16x128xbf16>
    tpu.vector_store %arg14[%c0_197, %c256], %118 {strides = array<i32>} : memref<16x2048xbf16, #tpu.memory_space<vmem>>, vector<16x128xbf16>,
    %120 = vector.extract_strided_slice %113 {offsets = [48, 0], sizes = [16, 128], strides = [1, 1]} : vector<256x128xbf16> to vector<16x128xbf16>
    %c0_198 = arith.constant 0 : index
    %c384 = arith.constant 384 : index
    %121 = vector.load %arg14[%c0_198, %c384] : memref<16x2048xbf16, #tpu.memory_space<vmem>>, vector<16x128xbf16>
    tpu.vector_store %arg14[%c0_198, %c384], %120 {strides = array<i32>} : memref<16x2048xbf16, #tpu.memory_space<vmem>>, vector<16x128xbf16>,
    %122 = vector.extract_strided_slice %113 {offsets = [64, 0], sizes = [16, 128], strides = [1, 1]} : vector<256x128xbf16> to vector<16x128xbf16>
    %c0_199 = arith.constant 0 : index
    %c512 = arith.constant 512 : index
    %123 = vector.load %arg14[%c0_199, %c512] : memref<16x2048xbf16, #tpu.memory_space<vmem>>, vector<16x128xbf16>
    tpu.vector_store %arg14[%c0_199, %c512], %122 {strides = array<i32>} : memref<16x2048xbf16, #tpu.memory_space<vmem>>, vector<16x128xbf16>,
    %124 = vector.extract_strided_slice %113 {offsets = [80, 0], sizes = [16, 128], strides = [1, 1]} : vector<256x128xbf16> to vector<16x128xbf16>
    %c0_200 = arith.constant 0 : index
    %c640 = arith.constant 640 : index
    %125 = vector.load %arg14[%c0_200, %c640] : memref<16x2048xbf16, #tpu.memory_space<vmem>>, vector<16x128xbf16>
    tpu.vector_store %arg14[%c0_200, %c640], %124 {strides = array<i32>} : memref<16x2048xbf16, #tpu.memory_space<vmem>>, vector<16x128xbf16>,
    %126 = vector.extract_strided_slice %113 {offsets = [96, 0], sizes = [16, 128], strides = [1, 1]} : vector<256x128xbf16> to vector<16x128xbf16>
    %c0_201 = arith.constant 0 : index
    %c768 = arith.constant 768 : index
    %127 = vector.load %arg14[%c0_201, %c768] : memref<16x2048xbf16, #tpu.memory_space<vmem>>, vector<16x128xbf16>
    tpu.vector_store %arg14[%c0_201, %c768], %126 {strides = array<i32>} : memref<16x2048xbf16, #tpu.memory_space<vmem>>, vector<16x128xbf16>,
    %128 = vector.extract_strided_slice %113 {offsets = [112, 0], sizes = [16, 128], strides = [1, 1]} : vector<256x128xbf16> to vector<16x128xbf16>
    %c0_202 = arith.constant 0 : index
    %c896 = arith.constant 896 : index
    %129 = vector.load %arg14[%c0_202, %c896] : memref<16x2048xbf16, #tpu.memory_space<vmem>>, vector<16x128xbf16>
    tpu.vector_store %arg14[%c0_202, %c896], %128 {strides = array<i32>} : memref<16x2048xbf16, #tpu.memory_space<vmem>>, vector<16x128xbf16>,
    %130 = vector.extract_strided_slice %113 {offsets = [128, 0], sizes = [16, 128], strides = [1, 1]} : vector<256x128xbf16> to vector<16x128xbf16>
    %c0_203 = arith.constant 0 : index
    %c1024 = arith.constant 1024 : index
    %131 = vector.load %arg14[%c0_203, %c1024] : memref<16x2048xbf16, #tpu.memory_space<vmem>>, vector<16x128xbf16>
    tpu.vector_store %arg14[%c0_203, %c1024], %130 {strides = array<i32>} : memref<16x2048xbf16, #tpu.memory_space<vmem>>, vector<16x128xbf16>,
    %132 = vector.extract_strided_slice %113 {offsets = [144, 0], sizes = [16, 128], strides = [1, 1]} : vector<256x128xbf16> to vector<16x128xbf16>
    %c0_204 = arith.constant 0 : index
    %c1152 = arith.constant 1152 : index
    %133 = vector.load %arg14[%c0_204, %c1152] : memref<16x2048xbf16, #tpu.memory_space<vmem>>, vector<16x128xbf16>
    tpu.vector_store %arg14[%c0_204, %c1152], %132 {strides = array<i32>} : memref<16x2048xbf16, #tpu.memory_space<vmem>>, vector<16x128xbf16>,
    %134 = vector.extract_strided_slice %113 {offsets = [160, 0], sizes = [16, 128], strides = [1, 1]} : vector<256x128xbf16> to vector<16x128xbf16>
    %c0_205 = arith.constant 0 : index
    %c1280 = arith.constant 1280 : index
    %135 = vector.load %arg14[%c0_205, %c1280] : memref<16x2048xbf16, #tpu.memory_space<vmem>>, vector<16x128xbf16>
    tpu.vector_store %arg14[%c0_205, %c1280], %134 {strides = array<i32>} : memref<16x2048xbf16, #tpu.memory_space<vmem>>, vector<16x128xbf16>,
    %136 = vector.extract_strided_slice %113 {offsets = [176, 0], sizes = [16, 128], strides = [1, 1]} : vector<256x128xbf16> to vector<16x128xbf16>
    %c0_206 = arith.constant 0 : index
    %c1408 = arith.constant 1408 : index
    %137 = vector.load %arg14[%c0_206, %c1408] : memref<16x2048xbf16, #tpu.memory_space<vmem>>, vector<16x128xbf16>
    tpu.vector_store %arg14[%c0_206, %c1408], %136 {strides = array<i32>} : memref<16x2048xbf16, #tpu.memory_space<vmem>>, vector<16x128xbf16>,
    %138 = vector.extract_strided_slice %113 {offsets = [192, 0], sizes = [16, 128], strides = [1, 1]} : vector<256x128xbf16> to vector<16x128xbf16>
    %c0_207 = arith.constant 0 : index
    %c1536 = arith.constant 1536 : index
    %139 = vector.load %arg14[%c0_207, %c1536] : memref<16x2048xbf16, #tpu.memory_space<vmem>>, vector<16x128xbf16>
    tpu.vector_store %arg14[%c0_207, %c1536], %138 {strides = array<i32>} : memref<16x2048xbf16, #tpu.memory_space<vmem>>, vector<16x128xbf16>,
    %140 = vector.extract_strided_slice %113 {offsets = [208, 0], sizes = [16, 128], strides = [1, 1]} : vector<256x128xbf16> to vector<16x128xbf16>
    %c0_208 = arith.constant 0 : index
    %c1664 = arith.constant 1664 : index
    %141 = vector.load %arg14[%c0_208, %c1664] : memref<16x2048xbf16, #tpu.memory_space<vmem>>, vector<16x128xbf16>
    tpu.vector_store %arg14[%c0_208, %c1664], %140 {strides = array<i32>} : memref<16x2048xbf16, #tpu.memory_space<vmem>>, vector<16x128xbf16>,
    %142 = vector.extract_strided_slice %113 {offsets = [224, 0], sizes = [16, 128], strides = [1, 1]} : vector<256x128xbf16> to vector<16x128xbf16>
    %c0_209 = arith.constant 0 : index
    %c1792 = arith.constant 1792 : index
    %143 = vector.load %arg14[%c0_209, %c1792] : memref<16x2048xbf16, #tpu.memory_space<vmem>>, vector<16x128xbf16>
    tpu.vector_store %arg14[%c0_209, %c1792], %142 {strides = array<i32>} : memref<16x2048xbf16, #tpu.memory_space<vmem>>, vector<16x128xbf16>,
    %144 = vector.extract_strided_slice %113 {offsets = [240, 0], sizes = [16, 128], strides = [1, 1]} : vector<256x128xbf16> to vector<16x128xbf16>
    %c0_210 = arith.constant 0 : index
    %c1920 = arith.constant 1920 : index
    %145 = vector.load %arg14[%c0_210, %c1920] : memref<16x2048xbf16, #tpu.memory_space<vmem>>, vector<16x128xbf16>
    tpu.vector_store %arg14[%c0_210, %c1920], %144 {strides = array<i32>} : memref<16x2048xbf16, #tpu.memory_space<vmem>>, vector<16x128xbf16>,
    %c0_211 = arith.constant 0 : index
    %c0_212 = arith.constant 0 : index
    %146 = vector.load %arg14[%c0_211, %c0_212] : memref<16x2048xbf16, #tpu.memory_space<vmem>>, vector<16x2048xbf16>
    %c0_213 = arith.constant 0 : index
    %c0_214 = arith.constant 0 : index
    %147 = vector.load %arg8[%c0_213, %c0_214] : memref<2048x128xbf16, #tpu.memory_space<vmem>>, vector<2048x128xbf16>
    %cst_215 = arith.constant dense<0.000000e+00> : vector<16x128xf32>
    %148 = tpu.matmul %146, %147, %cst_215 {dimension_numbers = #tpu.dot_dimension_numbers<[1], [0], [0], [1], [0, 0, 1, 1], [], []>} : vector<16x2048xbf16>, vector<2048x128xbf16>, vector<16x128xf32> -> vector<16x128xf32>
    %c0_216 = arith.constant 0 : index
    %c0_217 = arith.constant 0 : index
    %149 = vector.load %arg9[%c0_216, %c0_217] : memref<1x128xf32, #tpu.memory_space<vmem>>, vector<1x128xf32>
    %150 = vector.broadcast %149 : vector<1x128xf32> to vector<16x128xf32>
    %151 = arith.addf %148, %150 : vector<16x128xf32>
    %c0_218 = arith.constant 0 : index
    %c0_219 = arith.constant 0 : index
    %152 = vector.load %arg10[%c0_218, %c0_219] : memref<16x128xf32, #tpu.memory_space<vmem>>, vector<16x128xf32>
    tpu.vector_store %arg10[%c0_218, %c0_219], %151 {strides = array<i32>} : memref<16x128xf32, #tpu.memory_space<vmem>>, vector<16x128xf32>,
    return
  }
  func.func @transform_0(%arg0: i32) -> (i32, i32, i32, i32) {
    %c0_i32 = arith.constant 0 : i32
    %c0_i32_0 = arith.constant 0 : i32
    %c0_i32_1 = arith.constant 0 : i32
    %c0_i32_2 = arith.constant 0 : i32
    return %c0_i32, %c0_i32_0, %arg0, %c0_i32_1 : i32, i32, i32, i32
  }
  func.func @transform_1(%arg0: i32) -> (i32, i32) {
    %c0_i32 = arith.constant 0 : i32
    %c0_i32_0 = arith.constant 0 : i32
    %c0_i32_1 = arith.constant 0 : i32
    return %c0_i32, %c0_i32_0 : i32, i32
  }
  func.func @transform_2(%arg0: i32) -> (i32, i32) {
    %c0_i32 = arith.constant 0 : i32
    %c0_i32_0 = arith.constant 0 : i32
    %c0_i32_1 = arith.constant 0 : i32
    return %c0_i32, %c0_i32_0 : i32, i32
  }
  func.func @transform_3(%arg0: i32) -> (i32, i32) {
    %c0_i32 = arith.constant 0 : i32
    %c0_i32_0 = arith.constant 0 : i32
    %c0_i32_1 = arith.constant 0 : i32
    return %c0_i32, %c0_i32_0 : i32, i32
  }
  func.func @transform_4(%arg0: i32) -> (i32, i32) {
    %c0_i32 = arith.constant 0 : i32
    %c0_i32_0 = arith.constant 0 : i32
    %c0_i32_1 = arith.constant 0 : i32
    return %c0_i32, %c0_i32_0 : i32, i32
  }
  func.func @transform_5(%arg0: i32) -> (i32, i32) {
    %c0_i32 = arith.constant 0 : i32
    %c0_i32_0 = arith.constant 0 : i32
    %c0_i32_1 = arith.constant 0 : i32
    return %c0_i32, %c0_i32_0 : i32, i32
  }
  func.func @transform_6(%arg0: i32) -> (i32, i32) {
    %c0_i32 = arith.constant 0 : i32
    %c0_i32_0 = arith.constant 0 : i32
    %c0_i32_1 = arith.constant 0 : i32
    return %c0_i32, %c0_i32_0 : i32, i32
  }
  func.func @transform_7(%arg0: i32) -> (i32, i32) {
    %c0_i32 = arith.constant 0 : i32
    %c0_i32_0 = arith.constant 0 : i32
    %c0_i32_1 = arith.constant 0 : i32
    return %c0_i32, %c0_i32_0 : i32, i32
  }
  func.func @transform_8(%arg0: i32) -> (i32, i32) {
    %c0_i32 = arith.constant 0 : i32
    %c0_i32_0 = arith.constant 0 : i32
    %c0_i32_1 = arith.constant 0 : i32
    return %c0_i32, %c0_i32_0 : i32, i32
  }
  func.func @transform_9(%arg0: i32) -> (i32, i32) {
    %c0_i32 = arith.constant 0 : i32
    %c0_i32_0 = arith.constant 0 : i32
    return %arg0, %c0_i32 : i32, i32
  }
}

</mosaic_0001>

<bundles_post_ra>
// kernel: discriminator_forward.1
= control target key start
LH: loop header
LB: loop body
LE: loop exit
PB: predicated region body
PF: predicated region fallthrough
CT: control target
= control target key end

     0   :  { %v16422_v1 = vmov 0   ;;  %s20169_s1 = inlined_call_operand.vmem [shape: bf16[2304,128], index: 1, kind: input, shape index: {}]   ;;  %s20170_s0 = inlined_call_operand.vmem [shape: bf16[4,4,16,256], index: 0, kind: input, shape index: {}]   ;;  %s20171_s2 = inlined_call_operand.vmem [shape: f32[1,128], index: 2, kind: input, shape index: {}]   ;;  %s20172_s3 = inlined_call_operand.vmem [shape: bf16[1152,128], index: 3, kind: input, shape index: {}]   ;;  %s20173_s4 = inlined_call_operand.vmem [shape: f32[1,128], index: 4, kind: input, shape index: {}]   ;;  %s20174_s5 = inlined_call_operand.vmem [shape: bf16[1152,128], index: 5, kind: input, shape index: {}]   ;;  %s20175_s6 = inlined_call_operand.vmem [shape: f32[1,128], index: 6, kind: input, shape index: {}]   ;;  %s20176_s7 = inlined_call_operand.vmem [shape: bf16[2048,128], index: 7, kind: input, shape index: {}]   ;;  %s20177_s8 = inlined_call_operand.vmem [shape: f32[1,128], index: 8, kind: input, shape index: {}]   ;;  %s20178_s9 = inlined_call_operand.vmem [shape: f32[16,128], index: 9, kind: output, shape index: {}]  }
   0x1   :  { %v16476_v0 = vld [vmem:[%s20169_s1 + $0x78] sm:$0xff]   ;;  %v16480_v2 = vcombine.high %v16422_v1, %v16422_v1  ;;  %76 = vst [vmem:[#allocation3] sm:$0xf] %v16422_v1  ;;  %77 = vst [vmem:[#allocation3 + $0x4] sm:$0xf] %v16422_v1  ;;  %v15626_v6 = vld [vmem:[%s20169_s1 + $0x70] sm:$0xff]   ;;  %v16657_v33 = vcombine.low %v16422_v1, %v16422_v1 }
   0x2   :  { %78 = vst [vmem:[#allocation3 + $0x8] sm:$0xf] %v16422_v1  ;;  %79 = vst [vmem:[#allocation3 + $0xc] sm:$0xf] %v16422_v1  ;;  %v15623_v3 = vld [vmem:[%s20169_s1 + $0x38] sm:$0xff]   ;;  %13397 = vmatprep.subr.bf16.mxu0 %v16476_v0  ;;  %v15627_v7 = vld [vmem:[%s20169_s1 + $0x30] sm:$0xff]  }
   0x3   :  { %80 = vst [vmem:[#allocation3 + $0x10] sm:$0xf] %v16422_v1  ;;  %81 = vst [vmem:[#allocation3 + $0x14] sm:$0xf] %v16422_v1  ;;  %v15624_v4 = vld [vmem:[%s20169_s1 + $0xf8] sm:$0xff]   ;;  %3152 = vmatprep.mubr.bf16.mxu0 %v16480_v2  ;;  %13398 = vmatpush3.bf16.msra.mxu0 %v15623_v3  ;;  %v15628_v8 = vld [vmem:[%s20169_s1 + $0xf0] sm:$0xff]  }
   0x4   :  { %82 = vst [vmem:[#allocation3 + $0x18] sm:$0xf] %v16422_v1  ;;  %83 = vst [vmem:[#allocation3 + $0x1c] sm:$0xf] %v16422_v1  ;;  %v15625_v5 = vld [vmem:[%s20169_s1 + $0xb8] sm:$0xff]   ;;  %3313 = vmatprep.mubr.bf16.mxu1 %v16480_v2  ;;  %13509 = vmatprep.subr.bf16.mxu1 %v15624_v4  ;;  %v15629_v9 = vld [vmem:[%s20169_s1 + $0xb0] sm:$0xff]  }
   0x5   :  { %84 = vst [vmem:[#allocation3 + $0x20] sm:$0xf] %v16422_v1  ;;  %85 = vst [vmem:[#allocation3 + $0x24] sm:$0xf] %v16422_v1  ;;  %13510 = vmatpush3.bf16.msra.mxu1 %v15625_v5  ;;  %13399 = vmatprep.subr.bf16.mxu0 %v15626_v6  ;;  %v15630_v10 = vld [vmem:[%s20169_s1 + $0x68] sm:$0xff]   ;;  %v15634_v14 = vld [vmem:[%s20169_s1 + $0x60] sm:$0xff]  }
   0x6   :  { %86 = vst [vmem:[#allocation3 + $0x28] sm:$0xf] %v16422_v1  ;;  %87 = vst [vmem:[#allocation3 + $0x2c] sm:$0xf] %v16422_v1  ;;  %13511 = vmatprep.subr.bf16.mxu1 %v15628_v8  ;;  %v15631_v11 = vld [vmem:[%s20169_s1 + $0x28] sm:$0xff]   ;;  %v15635_v15 = vld [vmem:[%s20169_s1 + $0x20] sm:$0xff]  }
   0x7   :  { %89 = vst [vmem:[#allocation3 + $0xf0] sm:$0xf] %v16422_v1  ;;  %90 = vst [vmem:[#allocation3 + $0xf4] sm:$0xf] %v16422_v1  ;;  %13400 = vmatpush3.bf16.msra.mxu0 %v15627_v7  ;;  %v15632_v12 = vld [vmem:[%s20169_s1 + $0xe8] sm:$0xff]   ;;  %v15636_v16 = vld [vmem:[%s20169_s1 + $0xe0] sm:$0xff]  }
   0x8   :  { %91 = vst [vmem:[#allocation3 + $0xf8] sm:$0xf] %v16422_v1  ;;  %92 = vst [vmem:[#allocation3 + $0xfc] sm:$0xf] %v16422_v1  ;;  %13401 = vmatprep.subr.bf16.mxu0 %v15630_v10  ;;  %v15633_v13 = vld [vmem:[%s20169_s1 + $0xa8] sm:$0xff]   ;;  %v15637_v17 = vld [vmem:[%s20169_s1 + $0xa0] sm:$0xff]  }
   0x9   :  { %93 = vst [vmem:[#allocation3 + $0x100] sm:$0xf] %v16422_v1  ;;  %94 = vst [vmem:[#allocation3 + $0x104] sm:$0xf] %v16422_v1  ;;  %13512 = vmatpush3.bf16.msra.mxu1 %v15629_v9  ;;  %v15638_v18 = vld [vmem:[%s20169_s1 + $0x58] sm:$0xff]   ;;  %v15642_v22 = vld [vmem:[%s20169_s1 + $0x50] sm:$0xff]  }
   0xa   :  { %95 = vst [vmem:[#allocation3 + $0x108] sm:$0xf] %v16422_v1  ;;  %96 = vst [vmem:[#allocation3 + $0x10c] sm:$0xf] %v16422_v1  ;;  %13513 = vmatprep.subr.bf16.mxu1 %v15632_v12  ;;  %v15639_v19 = vld [vmem:[%s20169_s1 + $0x18] sm:$0xff]   ;;  %v15643_v23 = vld [vmem:[%s20169_s1 + $0x10] sm:$0xff]  }
   0xb   :  { %97 = vst [vmem:[#allocation3 + $0x110] sm:$0xf] %v16422_v1  ;;  %98 = vst [vmem:[#allocation3 + $0x114] sm:$0xf] %v16422_v1  ;;  %13402 = vmatpush3.bf16.msra.mxu0 %v15631_v11  ;;  %v15640_v20 = vld [vmem:[%s20169_s1 + $0xd8] sm:$0xff]   ;;  %v15644_v24 = vld [vmem:[%s20169_s1 + $0xd0] sm:$0xff]  }
   0xc   :  { %99 = vst [vmem:[#allocation3 + $0x118] sm:$0xf] %v16422_v1  ;;  %100 = vst [vmem:[#allocation3 + $0x11c] sm:$0xf] %v16422_v1  ;;  %13403 = vmatprep.subr.bf16.mxu0 %v15634_v14  ;;  %v15641_v21 = vld [vmem:[%s20169_s1 + $0x98] sm:$0xff]   ;;  %v15645_v25 = vld [vmem:[%s20169_s1 + $0x90] sm:$0xff]  }
   0xd   :  { %102 = vst [vmem:[#allocation3 + $0x30] sm:$0xf] %v16422_v1  ;;  %103 = vst [vmem:[#allocation3 + $0x34] sm:$0xf] %v16422_v1  ;;  %13514 = vmatpush3.bf16.msra.mxu1 %v15633_v13  ;;  %v15646_v26 = vld [vmem:[%s20169_s1 + $0x48] sm:$0xff]   ;;  %v15650_v30 = vld [vmem:[%s20169_s1 + $0x40] sm:$0xff]  }
   0xe   :  { %104 = vst [vmem:[#allocation3 + $0x60] sm:$0xf] %v16422_v1  ;;  %105 = vst [vmem:[#allocation3 + $0x64] sm:$0xf] %v16422_v1  ;;  %13515 = vmatprep.subr.bf16.mxu1 %v15636_v16  ;;  %v15647_v27 = vld [vmem:[%s20169_s1 + $0x8] sm:$0xff]   ;;  %v15651_v31 = vld [vmem:[%s20169_s1] sm:$0xff]  }
   0xf   :  { %106 = vst [vmem:[#allocation3 + $0x90] sm:$0xf] %v16422_v1  ;;  %107 = vst [vmem:[#allocation3 + $0x94] sm:$0xf] %v16422_v1  ;;  %13404 = vmatpush3.bf16.msra.mxu0 %v15635_v15  ;;  %v15648_v28 = vld [vmem:[%s20169_s1 + $0xc8] sm:$0xff]   ;;  %v15652_v32 = vld [vmem:[%s20169_s1 + $0xc0] sm:$0xff]  }
  0x10   :  { %108 = vst [vmem:[#allocation3 + $0xc0] sm:$0xf] %v16422_v1  ;;  %109 = vst [vmem:[#allocation3 + $0xc4] sm:$0xf] %v16422_v1  ;;  %13405 = vmatprep.subr.bf16.mxu0 %v15638_v18  ;;  %v15649_v29 = vld [vmem:[%s20169_s1 + $0x88] sm:$0xff]   ;;  %v15653_v34 = vld [vmem:[%s20169_s1 + $0x80] sm:$0xff]  }
  0x11   :  { %111 = vst [vmem:[#allocation3 + $0x58] sm:$0xf] %v16422_v1  ;;  %112 = vst [vmem:[#allocation3 + $0x5c] sm:$0xf] %v16422_v1  ;;  %13516 = vmatpush3.bf16.msra.mxu1 %v15637_v17  ;;  %v15654_v35 = vld [vmem:[%s20169_s1 + $0x178] sm:$0xff]   ;;  %v15656_v37 = vld [vmem:[%s20169_s1 + $0x170] sm:$0xff]  }
  0x12   :  { %113 = vst [vmem:[#allocation3 + $0x88] sm:$0xf] %v16422_v1  ;;  %114 = vst [vmem:[#allocation3 + $0x8c] sm:$0xf] %v16422_v1  ;;  %13517 = vmatprep.subr.bf16.mxu1 %v15640_v20  ;;  %v15655_v36 = vld [vmem:[%s20169_s1 + $0x138] sm:$0xff]   ;;  %v15657_v38 = vld [vmem:[%s20169_s1 + $0x130] sm:$0xff]  }
  0x13   :  { %115 = vst [vmem:[#allocation3 + $0xb8] sm:$0xf] %v16422_v1  ;;  %116 = vst [vmem:[#allocation3 + $0xbc] sm:$0xf] %v16422_v1  ;;  %13406 = vmatpush3.bf16.msra.mxu0 %v15639_v19  ;;  %v15658_v39 = vld [vmem:[%s20169_s1 + $0x168] sm:$0xff]   ;;  %v15666_v41 = vld [vmem:[%s20169_s1 + $0x160] sm:$0xff]  }
  0x14   :  { %117 = vst [vmem:[#allocation3 + $0xe8] sm:$0xf] %v16422_v1  ;;  %118 = vst [vmem:[#allocation3 + $0xec] sm:$0xf] %v16422_v1  ;;  %13407 = vmatprep.subr.bf16.mxu0 %v15642_v22  ;;  %v15661_v40 = vld [vmem:[%s20169_s1 + $0x128] sm:$0xff]   ;;  %v15669_v42 = vld [vmem:[%s20169_s1 + $0x120] sm:$0xff]  }
  0x15   :  { %119 = vst [vmem:[#allocation4] sm:$0xf] %v16422_v1  ;;  %120 = vst [vmem:[#allocation4 + $0x4] sm:$0xf] %v16422_v1  ;;  %13518 = vmatpush3.bf16.msra.mxu1 %v15641_v21  ;;  %v15674_v43 = vld [vmem:[%s20169_s1 + $0x158] sm:$0xff]   ;;  %v15682_v45 = vld [vmem:[%s20169_s1 + $0x150] sm:$0xff]  }
  0x16   :  { %121 = vst [vmem:[#allocation4 + $0x8] sm:$0xf] %v16422_v1  ;;  %122 = vst [vmem:[#allocation4 + $0xc] sm:$0xf] %v16422_v1  ;;  %13519 = vmatprep.subr.bf16.mxu1 %v15644_v24  ;;  %v15677_v44 = vld [vmem:[%s20169_s1 + $0x118] sm:$0xff]   ;;  %v15685_v46 = vld [vmem:[%s20169_s1 + $0x110] sm:$0xff]  }
  0x17   :  { %123 = vst [vmem:[#allocation4 + $0x10] sm:$0xf] %v16422_v1  ;;  %124 = vst [vmem:[#allocation4 + $0x14] sm:$0xf] %v16422_v1  ;;  %13408 = vmatpush3.bf16.msra.mxu0 %v15643_v23  ;;  %v15690_v47 = vld [vmem:[%s20169_s1 + $0x148] sm:$0xff]   ;;  %v15695_v50 = vld [vmem:[%s20169_s1 + $0x1f8] sm:$0xff]  }
  0x18   :  { %125 = vst [vmem:[#allocation4 + $0x18] sm:$0xf] %v16422_v1  ;;  %126 = vst [vmem:[#allocation4 + $0x1c] sm:$0xf] %v16422_v1  ;;  %13409 = vmatprep.subr.bf16.mxu0 %v15646_v26  ;;  %v16716_v48 = vld [vmem:[%s20170_s0 + $0x4] ss:$8 sps:$4 sm:$0xff]  }
  0x19   :  { %127 = vst [vmem:[#allocation4 + $0x20] sm:$0xf] %v16422_v1  ;;  %128 = vst [vmem:[#allocation4 + $0x24] sm:$0xf] %v16422_v1  ;;  %13520 = vmatpush3.bf16.msra.mxu1 %v15645_v25  ;;  %v15693_v49 = vld [vmem:[%s20169_s1 + $0x108] sm:$0xff]   ;;  %v15696_v51 = vld [vmem:[%s20169_s1 + $0x1b8] sm:$0xff]  }
  0x1a   :  { %129 = vst [vmem:[#allocation4 + $0x28] sm:$0xf] %v16422_v1  ;;  %130 = vst [vmem:[#allocation4 + $0x2c] sm:$0xf] %v16422_v1  ;;  %13521 = vmatprep.subr.bf16.mxu1 %v15648_v28  ;;  %v15697_v52 = vld [vmem:[%s20169_s1 + $0x1f0] sm:$0xff]   ;;  %v15702_v56 = vld [vmem:[%s20169_s1 + $0x1e8] sm:$0xff]  }
  0x1b   :  { %132 = vst [vmem:[#allocation4 + $0xf0] sm:$0xf] %v16422_v1  ;;  %133 = vst [vmem:[#allocation4 + $0xf4] sm:$0xf] %v16422_v1  ;;  %13410 = vmatpush3.bf16.msra.mxu0 %v15647_v27  ;;  %v15698_v53 = vld [vmem:[%s20169_s1 + $0x1b0] sm:$0xff]   ;;  %v15703_v57 = vld [vmem:[%s20169_s1 + $0x1a8] sm:$0xff]  }
  0x1c   :  { %134 = vst [vmem:[#allocation4 + $0xf8] sm:$0xf] %v16422_v1  ;;  %135 = vst [vmem:[#allocation4 + $0xfc] sm:$0xf] %v16422_v1  ;;  %13411 = vmatprep.subr.bf16.mxu0 %v15650_v30  ;;  %v16740_v54 = vld [vmem:[%s20170_s0] ss:$8 sps:$4 sm:$0xff]  }
  0x1d   :  { %136 = vst [vmem:[#allocation4 + $0x100] sm:$0xf] %v16422_v1  ;;  %137 = vst [vmem:[#allocation4 + $0x104] sm:$0xf] %v16422_v1  ;;  %13522 = vmatpush3.bf16.msra.mxu1 %v15649_v29  ;;  %v16745_v55 = vld [vmem:[%s20170_s0 + $0x14] ss:$8 sps:$4 sm:$0xff]  }
  0x1e   :  { %138 = vst [vmem:[#allocation4 + $0x108] sm:$0xf] %v16422_v1  ;;  %139 = vst [vmem:[#allocation4 + $0x10c] sm:$0xf] %v16422_v1  ;;  %13523 = vmatprep.subr.bf16.mxu1 %v15652_v32  ;;  %v15704_v58 = vld [vmem:[%s20169_s1 + $0x1e0] sm:$0xff]   ;;  %v15711_v63 = vld [vmem:[%s20169_s1 + $0x1d8] sm:$0xff]  }
  0x1f   :  { %140 = vst [vmem:[#allocation4 + $0x110] sm:$0xf] %v16422_v1  ;;  %141 = vst [vmem:[#allocation4 + $0x114] sm:$0xf] %v16422_v1  ;;  %13412 = vmatpush3.bf16.msra.mxu0 %v15651_v31  ;;  %v15706_v59 = vld [vmem:[%s20169_s1 + $0x140] sm:$0xff]   ;;  %v15713_v3 = vld [vmem:[%s20169_s1 + $0x1d0] sm:$0xff]  }
  0x20   :  { %142 = vst [vmem:[#allocation4 + $0x118] sm:$0xf] %v16422_v1  ;;  %143 = vst [vmem:[#allocation4 + $0x11c] sm:$0xf] %v16422_v1  ;;  %13621 = vmatprep.subr.bf16.mxu0 %v15654_v35  ;;  %v15705_v60 = vld [vmem:[%s20169_s1 + $0x1a0] sm:$0xff]   ;;  %v15714_v4 = vld [vmem:[%s20169_s1 + $0x190] sm:$0xff]  }
  0x21   :  { %145 = vst [vmem:[#allocation4 + $0x30] sm:$0xf] %v16422_v1  ;;  %146 = vst [vmem:[#allocation4 + $0x34] sm:$0xf] %v16422_v1  ;;  %13524 = vmatpush3.bf16.msra.mxu1 %v15653_v34  ;;  %v16769_v61 = vld [vmem:[%s20170_s0 + $0x10] ss:$8 sps:$4 sm:$0xff]  }
  0x22   :  { %147 = vst [vmem:[#allocation4 + $0x60] sm:$0xf] %v16422_v1  ;;  %148 = vst [vmem:[#allocation4 + $0x64] sm:$0xf] %v16422_v1  ;;  %3153 = vmatmul.mubr.bf16.vlgmr.msra.gmra.mxu0 %v16657_v33  ;;  %13733 = vmatprep.subr.bf16.mxu1 %v15695_v50  ;;  %v15709_v62 = vld [vmem:[%s20169_s1 + $0x100] sm:$0xff]   ;;  %v15718_v6 = vld [vmem:[%s20169_s1 + $0x1c8] sm:$0xff]  }
  0x23   :  { %149 = vst [vmem:[#allocation4 + $0x90] sm:$0xf] %v16422_v1  ;;  %150 = vst [vmem:[#allocation4 + $0x94] sm:$0xf] %v16422_v1  ;;  %13622 = vmatpush3.bf16.msra.mxu0 %v15655_v36  ;;  %3160 = vmatprep.mubr.bf16.mxu0 %v16480_v2  ;;  %v16780_v0 = vld [vmem:[%s20170_s0 + $0x24] ss:$8 sps:$4 sm:$0xff]  }
  0x24   :  { %151 = vst [vmem:[#allocation4 + $0xc0] sm:$0xf] %v16422_v1  ;;  %152 = vst [vmem:[#allocation4 + $0xc4] sm:$0xf] %v16422_v1  ;;  %3314 = vmatmul.mubr.bf16.vlgmr.msra.gmra.mxu1 %v16657_v33  ;;  %13623 = vmatprep.subr.bf16.mxu0 %v15656_v37  ;;  %v16798_v5 = vld [vmem:[%s20170_s0 + $0x20] ss:$8 sps:$4 sm:$0xff]  }
  0x25   :  { %154 = vst [vmem:[#allocation4 + $0x58] sm:$0xf] %v16422_v1  ;;  %155 = vst [vmem:[#allocation4 + $0x5c] sm:$0xf] %v16422_v1  ;;  %3321 = vmatprep.mubr.bf16.mxu1 %v16480_v2  ;;  %13734 = vmatpush3.bf16.msra.mxu1 %v15696_v51  ;;  %v16806_v7 = vld [vmem:[%s20170_s0 + $0x34] ss:$8 sps:$4 sm:$0xff]  }
  0x26   :  { %156 = vst [vmem:[#allocation4 + $0x88] sm:$0xf] %v16422_v1  ;;  %157 = vst [vmem:[#allocation4 + $0x8c] sm:$0xf] %v16422_v1  ;;  %13735 = vmatprep.subr.bf16.mxu1 %v15697_v52  ;;  %v15722_v8 = vld [vmem:[%s20169_s1 + $0x278] sm:$0xff]   ;;  %v15719_v9 = vld [vmem:[%s20169_s1 + $0x188] sm:$0xff]  }
  0x27   :  { %158 = vst [vmem:[#allocation4 + $0xb8] sm:$0xf] %v16422_v1  ;;  %159 = vst [vmem:[#allocation4 + $0xbc] sm:$0xf] %v16422_v1  ;;  %13624 = vmatpush3.bf16.msra.mxu0 %v15657_v38  ;;  %v15720_v10 = vld [vmem:[%s20169_s1 + $0x1c0] sm:$0xff]   ;;  %v15736_v24 = vld [vmem:[%s20169_s1 + $0x2f8] sm:$0xff]  }
  0x28   :  { %160 = vst [vmem:[#allocation4 + $0xe8] sm:$0xf] %v16422_v1  ;;  %161 = vst [vmem:[#allocation4 + $0xec] sm:$0xf] %v16422_v1  ;;  %13625 = vmatprep.subr.bf16.mxu0 %v15658_v39  ;;  %v15712_v1 = vld [vmem:[%s20169_s1 + $0x198] sm:$0xff]   ;;  %v15721_v11 = vld [vmem:[%s20169_s1 + $0x180] sm:$0xff]  }
  0x29   :  { %13736 = vmatpush3.bf16.msra.mxu1 %v15698_v53  ;;  %v16827_v12 = vld [vmem:[%s20170_s0 + $0x30] ss:$8 sps:$4 sm:$0xff]   ;;  %v16832_v13 = vld [vmem:[%s20170_s0 + $0x44] ss:$8 sps:$4 sm:$0xff]   ;;  %v16841_v14 = vld [vmem:[%s20170_s0 + $0x40] ss:$8 sps:$4 sm:$0xff]  }
  0x2a   :  { %3161 = vmatmul.mubr.bf16.gmra.mxu0 %v16657_v33  ;;  %13737 = vmatprep.subr.bf16.mxu1 %v15702_v56  ;;  %v16846_v15 = vld [vmem:[%s20170_s0 + $0x54] ss:$8 sps:$4 sm:$0xff]   ;;  %v16855_v16 = vld [vmem:[%s20170_s0 + $0x50] ss:$8 sps:$4 sm:$0xff]   ;;  %v16860_v17 = vld [vmem:[%s20170_s0 + $0x64] ss:$8 sps:$4 sm:$0xff]  }
  0x2b   :  { %3168 = vmatprep.mubr.bf16.mxu0 %v16480_v2  ;;  %13626 = vmatpush3.bf16.msra.mxu0 %v15661_v40  ;;  %v16869_v18 = vld [vmem:[%s20170_s0 + $0x60] ss:$8 sps:$4 sm:$0xff]   ;;  %v16874_v19 = vld [vmem:[%s20170_s0 + $0x74] ss:$8 sps:$4 sm:$0xff]   ;;  %v16883_v20 = vld [vmem:[%s20170_s0 + $0x70] ss:$8 sps:$4 sm:$0xff]  }
  0x2c   :  { %3322 = vmatmul.mubr.bf16.gmra.mxu1 %v16657_v33  ;;  %13627 = vmatprep.subr.bf16.mxu0 %v15666_v41  ;;  %v16888_v21 = vld [vmem:[%s20170_s0 + $0x84] ss:$8 sps:$4 sm:$0xff]   ;;  %v16897_v22 = vld [vmem:[%s20170_s0 + $0x80] ss:$8 sps:$4 sm:$0xff]   ;;  %v16902_v23 = vld [vmem:[%s20170_s0 + $0x94] ss:$8 sps:$4 sm:$0xff]  }
  0x2d   :  { %3329 = vmatprep.mubr.bf16.mxu1 %v16480_v2  ;;  %13738 = vmatpush3.bf16.msra.mxu1 %v15703_v57  ;;  %v16914_v25 = vld [vmem:[%s20170_s0 + $0x90] ss:$8 sps:$4 sm:$0xff]   ;;  %v16919_v26 = vld [vmem:[%s20170_s0 + $0xa4] ss:$8 sps:$4 sm:$0xff]   ;;  %v16928_v27 = vld [vmem:[%s20170_s0 + $0xa0] ss:$8 sps:$4 sm:$0xff]  }
  0x2e   :  { %13739 = vmatprep.subr.bf16.mxu1 %v15704_v58  ;;  %v16933_v28 = vld [vmem:[%s20170_s0 + $0xb4] ss:$8 sps:$4 sm:$0xff]   ;;  %v16942_v29 = vld [vmem:[%s20170_s0 + $0xb0] ss:$8 sps:$4 sm:$0xff]   ;;  %v15726_v36 = vld [vmem:[%s20169_s1 + $0x268] sm:$0xff]  }
  0x2f   :  { %13628 = vmatpush3.bf16.msra.mxu0 %v15669_v42  ;;  %v15723_v30 = vld [vmem:[%s20169_s1 + $0x238] sm:$0xff]   ;;  %v15724_v31 = vld [vmem:[%s20169_s1 + $0x270] sm:$0xff]   ;;  %v15727_v37 = vld [vmem:[%s20169_s1 + $0x228] sm:$0xff]  }
  0x30   :  { %13629 = vmatprep.subr.bf16.mxu0 %v15674_v43  ;;  %v15737_v32 = vld [vmem:[%s20169_s1 + $0x2b8] sm:$0xff]   ;;  %v15738_v34 = vld [vmem:[%s20169_s1 + $0x2f0] sm:$0xff]   ;;  %v15743_v39 = vld [vmem:[%s20169_s1 + $0x2e8] sm:$0xff]  }
  0x31   :  { %13740 = vmatpush3.bf16.msra.mxu1 %v15705_v60  ;;  %v15725_v35 = vld [vmem:[%s20169_s1 + $0x230] sm:$0xff]   ;;  %v15728_v40 = vld [vmem:[%s20169_s1 + $0x260] sm:$0xff]   ;;  %v15744_v41 = vld [vmem:[%s20169_s1 + $0x2a8] sm:$0xff]  }
  0x32   :  { %3169 = vmatmul.mubr.bf16.gmra.mxu0 %v16657_v33  ;;  %13741 = vmatprep.subr.bf16.mxu1 %v15711_v63  ;;  %v15739_v38 = vld [vmem:[%s20169_s1 + $0x2b0] sm:$0xff]   ;;  %v15745_v42 = vld [vmem:[%s20169_s1 + $0x2e0] sm:$0xff]   ;;  %v15734_v52 = vld [vmem:[%s20169_s1 + $0x248] sm:$0xff]  }
  0x33   :  { %3176 = vmatprep.mubr.bf16.mxu0 %v16480_v2  ;;  %13630 = vmatpush3.bf16.msra.mxu0 %v15677_v44  ;;  %v15729_v43 = vld [vmem:[%s20169_s1 + $0x220] sm:$0xff]   ;;  %v15730_v44 = vld [vmem:[%s20169_s1 + $0x258] sm:$0xff]   ;;  %v15754_v50 = vld [vmem:[%s20169_s1 + $0x2d0] sm:$0xff]  }
  0x34   :  { %3330 = vmatmul.mubr.bf16.gmra.mxu1 %v16657_v33  ;;  %13631 = vmatprep.subr.bf16.mxu0 %v15682_v45  ;;  %v15746_v45 = vld [vmem:[%s20169_s1 + $0x2a0] sm:$0xff]   ;;  %v15733_v51 = vld [vmem:[%s20169_s1 + $0x210] sm:$0xff]   ;;  %v15735_v53 = vld [vmem:[%s20169_s1 + $0x208] sm:$0xff]  }
  0x35   :  { %3337 = vmatprep.mubr.bf16.mxu1 %v16480_v2  ;;  %13742 = vmatpush3.bf16.msra.mxu1 %v15712_v1  ;;  %v15759_v56 = vld [vmem:[%s20169_s1 + $0x2c8] sm:$0xff]   ;;  %v15747_v57 = vld [vmem:[%s20169_s1 + $0x240] sm:$0xff]  }
  0x36   :  { %13743 = vmatprep.subr.bf16.mxu1 %v15713_v3  ;;  %v15760_v58 = vld [vmem:[%s20169_s1 + $0x288] sm:$0xff]   ;;  %v15750_v60 = vld [vmem:[%s20169_s1 + $0x200] sm:$0xff]  }
  0x37   :  { %13632 = vmatpush3.bf16.msra.mxu0 %v15685_v46  ;;  %v15752_v46 = vld [vmem:[%s20169_s1 + $0x2d8] sm:$0xff]   ;;  %v15762_v63 = vld [vmem:[%s20169_s1 + $0x280] sm:$0xff]  }
  0x38   :  { %13633 = vmatprep.subr.bf16.mxu0 %v15690_v47  ;;  %v15731_v47 = vld [vmem:[%s20169_s1 + $0x218] sm:$0xff]  }
  0x39   :  { %13744 = vmatpush3.bf16.msra.mxu1 %v15714_v4 }
  0x3a   :  { %3177 = vmatmul.mubr.bf16.gmra.mxu0 %v16657_v33  ;;  %13745 = vmatprep.subr.bf16.mxu1 %v15718_v6 }
  0x3b   :  { %3184 = vmatprep.mubr.bf16.mxu0 %v16480_v2  ;;  %13634 = vmatpush3.bf16.msra.mxu0 %v15693_v49  ;;  %v15753_v49 = vld [vmem:[%s20169_s1 + $0x298] sm:$0xff]  }
  0x3c   :  { %3338 = vmatmul.mubr.bf16.gmra.mxu1 %v16657_v33  ;;  %13635 = vmatprep.subr.bf16.mxu0 %v15706_v59  ;;  %v15761_v59 = vld [vmem:[%s20169_s1 + $0x2c0] sm:$0xff]  }
  0x3d   :  { %3345 = vmatprep.mubr.bf16.mxu1 %v16716_v48  ;;  %13746 = vmatpush3.bf16.msra.mxu1 %v15719_v9 }
  0x3e   :  { %13747 = vmatprep.subr.bf16.mxu1 %v15720_v10 }
  0x3f   :  { %13636 = vmatpush3.bf16.msra.mxu0 %v15709_v62  ;;  %v15763_v62 = vld [vmem:[%s20169_s1 + $0x378] sm:$0xff]  }
  0x40   :  { %13845 = vmatprep.subr.bf16.mxu0 %v15722_v8 }
  0x41   :  { %13748 = vmatpush3.bf16.msra.mxu1 %v15721_v11 }
  0x42   :  { %3185 = vmatmul.mubr.bf16.gmra.mxu0 %v16657_v33  ;;  %13957 = vmatprep.subr.bf16.mxu1 %v15736_v24 }
  0x43   :  { %3192 = vmatprep.mubr.bf16.mxu0 %v16716_v48 }
  0x44   :  { %3346 = vmatmul.mubr.bf16.gmra.mxu1 %v16740_v54 }
  0x45   :  { %3353 = vmatprep.mubr.bf16.mxu1 %v16745_v55 }
  0x4a   :  { %3193 = vmatmul.mubr.bf16.gmra.mxu0 %v16740_v54 }
  0x4b   :  { %3200 = vmatprep.mubr.bf16.mxu0 %v16745_v55 }
  0x4c   :  { %3354 = vmatmul.mubr.bf16.gmra.mxu1 %v16769_v61 }
  0x4d   :  { %3361 = vmatprep.mubr.bf16.mxu1 %v16780_v0 }
  0x52   :  { %3201 = vmatmul.mubr.bf16.gmra.mxu0 %v16769_v61 }
  0x53   :  { %3208 = vmatprep.mubr.bf16.mxu0 %v16780_v0 }
  0x54   :  { %3362 = vmatmul.mubr.bf16.gmra.mxu1 %v16798_v5 }
  0x55   :  { %3369 = vmatprep.mubr.bf16.mxu1 %v16806_v7 }
  0x5a   :  { %3209 = vmatmul.mubr.bf16.gmra.mxu0 %v16798_v5 }
  0x5b   :  { %3216 = vmatprep.mubr.bf16.mxu0 %v16480_v2 }
  0x5c   :  { %3370 = vmatmul.mubr.bf16.gmra.mxu1 %v16827_v12 }
  0x5d   :  { %3377 = vmatprep.mubr.bf16.mxu1 %v16832_v13 }
  0x62   :  { %3217 = vmatmul.mubr.bf16.gmra.mxu0 %v16657_v33 }
  0x63   :  { %3224 = vmatprep.mubr.bf16.mxu0 %v16832_v13 }
  0x64   :  { %3378 = vmatmul.mubr.bf16.gmra.mxu1 %v16841_v14 }
  0x65   :  { %3385 = vmatprep.mubr.bf16.mxu1 %v16846_v15 }
  0x6a   :  { %3225 = vmatmul.mubr.bf16.gmra.mxu0 %v16841_v14 }
  0x6b   :  { %3232 = vmatprep.mubr.bf16.mxu0 %v16846_v15 }
  0x6c   :  { %3386 = vmatmul.mubr.bf16.gmra.mxu1 %v16855_v16 }
  0x6d   :  { %3393 = vmatprep.mubr.bf16.mxu1 %v16860_v17 }
  0x72   :  { %3233 = vmatmul.mubr.bf16.gmra.mxu0 %v16855_v16 }
  0x73   :  { %3240 = vmatprep.mubr.bf16.mxu0 %v16860_v17 }
  0x74   :  { %3394 = vmatmul.mubr.bf16.gmra.mxu1 %v16869_v18 }
  0x75   :  { %3401 = vmatprep.mubr.bf16.mxu1 %v16874_v19 }
  0x7a   :  { %3241 = vmatmul.mubr.bf16.gmra.mxu0 %v16869_v18 }
  0x7b   :  { %3248 = vmatprep.mubr.bf16.mxu0 %v16480_v2 }
  0x7c   :  { %3402 = vmatmul.mubr.bf16.gmra.mxu1 %v16883_v20 }
  0x7d   :  { %3409 = vmatprep.mubr.bf16.mxu1 %v16888_v21 }
  0x82   :  { %3249 = vmatmul.mubr.bf16.gmra.mxu0 %v16657_v33 }
  0x83   :  { %3256 = vmatprep.mubr.bf16.mxu0 %v16888_v21 }
  0x84   :  { %3410 = vmatmul.mubr.bf16.gmra.mxu1 %v16897_v22 }
  0x85   :  { %3417 = vmatprep.mubr.bf16.mxu1 %v16902_v23 }
  0x8a   :  { %3257 = vmatmul.mubr.bf16.gmra.mxu0 %v16897_v22 }
  0x8b   :  { %3264 = vmatprep.mubr.bf16.mxu0 %v16902_v23 }
  0x8c   :  { %3418 = vmatmul.mubr.bf16.gmra.mxu1 %v16914_v25 }
  0x8d   :  { %3425 = vmatprep.mubr.bf16.mxu1 %v16919_v26 }
  0x92   :  { %3265 = vmatmul.mubr.bf16.gmra.mxu0 %v16914_v25 }
  0x93   :  { %3272 = vmatprep.mubr.bf16.mxu0 %v16919_v26 }
  0x94   :  { %3426 = vmatmul.mubr.bf16.gmra.mxu1 %v16928_v27 }
  0x95   :  { %3433 = vmatprep.mubr.bf16.mxu1 %v16933_v28 }
  0x9a   :  { %3273 = vmatmul.mubr.bf16.gmra.mxu0 %v16928_v27 }
  0x9b   :  { %3474 = vmatprep.mubr.bf16.mxu0 %v16480_v2 }
  0x9c   :  { %3434 = vmatmul.mubr.bf16.gmra.mxu1 %v16942_v29 }
  0x9d   :  { %3635 = vmatprep.mubr.bf16.mxu1 %v16480_v2 }
  0xa2   :  { %3475 = vmatmul.mubr.bf16.vlgmr.msra.gmra.mxu0 %v16657_v33 }
  0xa3   :  { %13846 = vmatpush3.bf16.msra.mxu0 %v15723_v30  ;;  %3482 = vmatprep.mubr.bf16.mxu0 %v16480_v2 }
  0xa4   :  { %3636 = vmatmul.mubr.bf16.vlgmr.msra.gmra.mxu1 %v16657_v33  ;;  %13847 = vmatprep.subr.bf16.mxu0 %v15724_v31 }
  0xa5   :  { %3643 = vmatprep.mubr.bf16.mxu1 %v16716_v48  ;;  %13958 = vmatpush3.bf16.msra.mxu1 %v15737_v32  ;;  %v15732_v48 = vld [vmem:[%s20169_s1 + $0x250] sm:$0xff]  }
  0xa6   :  { %13959 = vmatprep.subr.bf16.mxu1 %v15738_v34 }
  0xa7   :  { %13848 = vmatpush3.bf16.msra.mxu0 %v15725_v35 }
  0xa8   :  { %13849 = vmatprep.subr.bf16.mxu0 %v15726_v36 }
  0xa9   :  { %13960 = vmatpush3.bf16.msra.mxu1 %v15739_v38 }
  0xaa   :  { %3483 = vmatmul.mubr.bf16.gmra.mxu0 %v16657_v33  ;;  %13961 = vmatprep.subr.bf16.mxu1 %v15743_v39 }
  0xab   :  { %3490 = vmatprep.mubr.bf16.mxu0 %v16480_v2  ;;  %13850 = vmatpush3.bf16.msra.mxu0 %v15727_v37 }
  0xac   :  { %3644 = vmatmul.mubr.bf16.gmra.mxu1 %v16740_v54  ;;  %13851 = vmatprep.subr.bf16.mxu0 %v15728_v40  ;;  %v15755_v54 = vld [vmem:[%s20169_s1 + $0x290] sm:$0xff]  }
  0xad   :  { %3651 = vmatprep.mubr.bf16.mxu1 %v16745_v55  ;;  %13962 = vmatpush3.bf16.msra.mxu1 %v15744_v41 }
  0xae   :  { %13963 = vmatprep.subr.bf16.mxu1 %v15745_v42 }
  0xaf   :  { %13852 = vmatpush3.bf16.msra.mxu0 %v15729_v43 }
  0xb0   :  { %13853 = vmatprep.subr.bf16.mxu0 %v15730_v44 }
  0xb1   :  { %13964 = vmatpush3.bf16.msra.mxu1 %v15746_v45 }
  0xb2   :  { %3491 = vmatmul.mubr.bf16.gmra.mxu0 %v16657_v33  ;;  %13965 = vmatprep.subr.bf16.mxu1 %v15752_v46 }
  0xb3   :  { %3498 = vmatprep.mubr.bf16.mxu0 %v16480_v2  ;;  %13854 = vmatpush3.bf16.msra.mxu0 %v15731_v47 }
  0xb4   :  { %3652 = vmatmul.mubr.bf16.gmra.mxu1 %v16769_v61  ;;  %13855 = vmatprep.subr.bf16.mxu0 %v15732_v48 }
  0xb5   :  { %3659 = vmatprep.mubr.bf16.mxu1 %v16780_v0  ;;  %13966 = vmatpush3.bf16.msra.mxu1 %v15753_v49 }
  0xb6   :  { %13967 = vmatprep.subr.bf16.mxu1 %v15754_v50 }
  0xb7   :  { %13856 = vmatpush3.bf16.msra.mxu0 %v15733_v51 }
  0xb8   :  { %13857 = vmatprep.subr.bf16.mxu0 %v15734_v52 }
  0xb9   :  { %13968 = vmatpush3.bf16.msra.mxu1 %v15755_v54 }
  0xba   :  { %3499 = vmatmul.mubr.bf16.gmra.mxu0 %v16657_v33  ;;  %13969 = vmatprep.subr.bf16.mxu1 %v15759_v56 }
  0xbb   :  { %3506 = vmatprep.mubr.bf16.mxu0 %v16745_v55  ;;  %13858 = vmatpush3.bf16.msra.mxu0 %v15735_v53 }
  0xbc   :  { %3660 = vmatmul.mubr.bf16.gmra.mxu1 %v16798_v5  ;;  %13859 = vmatprep.subr.bf16.mxu0 %v15747_v57 }
  0xbd   :  { %3667 = vmatprep.mubr.bf16.mxu1 %v16480_v2  ;;  %13970 = vmatpush3.bf16.msra.mxu1 %v15760_v58 }
  0xbe   :  { %13971 = vmatprep.subr.bf16.mxu1 %v15761_v59 }
  0xbf   :  { %13860 = vmatpush3.bf16.msra.mxu0 %v15750_v60 }
  0xc0   :  { %14069 = vmatprep.subr.bf16.mxu0 %v15763_v62 }
  0xc1   :  { %13972 = vmatpush3.bf16.msra.mxu1 %v15762_v63 }
  0xc2   :  { %3507 = vmatmul.mubr.bf16.gmra.mxu0 %v16769_v61  ;;  %v17078_v61 = vld [vmem:[%s20171_s2] ss:$0 sm:$0xff] }
  0xc3   :  { %3514 = vmatprep.mubr.bf16.mxu0 %v16780_v0 }
  0xc4   :  { %3668 = vmatmul.mubr.bf16.gmra.mxu1 %v16657_v33 }
  0xc5   :  { %3675 = vmatprep.mubr.bf16.mxu1 %v16832_v13 }
  0xca   :  { %3515 = vmatmul.mubr.bf16.gmra.mxu0 %v16798_v5 }
  0xcb   :  { %3522 = vmatprep.mubr.bf16.mxu0 %v16806_v7 }
  0xcc   :  { %3676 = vmatmul.mubr.bf16.gmra.mxu1 %v16841_v14 }
  0xcd   :  { %3683 = vmatprep.mubr.bf16.mxu1 %v16846_v15 }
  0xd2   :  { %3523 = vmatmul.mubr.bf16.gmra.mxu0 %v16827_v12 }
  0xd3   :  { %3530 = vmatprep.mubr.bf16.mxu0 %v16480_v2 }
  0xd4   :  { %3684 = vmatmul.mubr.bf16.gmra.mxu1 %v16855_v16 }
  0xd5   :  { %3691 = vmatprep.mubr.bf16.mxu1 %v16860_v17 }
  0xda   :  { %3531 = vmatmul.mubr.bf16.gmra.mxu0 %v16657_v33 }
  0xdb   :  { %3538 = vmatprep.mubr.bf16.mxu0 %v16846_v15 }
  0xdc   :  { %3692 = vmatmul.mubr.bf16.gmra.mxu1 %v16869_v18 }
  0xdd   :  { %3699 = vmatprep.mubr.bf16.mxu1 %v16480_v2 }
  0xe2   :  { %v13413_v55 = vpop.f32.mrf.mxu0  ;;  %3539 = vmatmul.mubr.bf16.gmra.mxu0 %v16855_v16 }
  0xe3   :  { %3546 = vmatprep.mubr.bf16.mxu0 %v16860_v17 }
  0xe4   :  { %v13414_v0 = vpop.f32.mrf.mxu0  ;;  %v13525_v1 = vpop.f32.mrf.mxu1  ;;  %3700 = vmatmul.mubr.bf16.gmra.mxu1 %v16657_v33 }
  0xe5   :  { %v13415_v3 = vadd.f32 %v13414_v0, %v13413_v55  ;;  %3707 = vmatprep.mubr.bf16.mxu1 %v16888_v21 }
  0xe6   :  { %v13416_v4 = vpop.f32.mrf.mxu0  ;;  %v13526_v5 = vpop.f32.mrf.mxu1 }
  0xe7   :  { %v3155_v6 = vadd.f32 %v13415_v3, %v17078_v61  ;;  %v13527_v7 = vadd.f32 %v13526_v5, %v13525_v1 }
  0xe8   :  { %v13417_v8 = vpop.f32.mrf.mxu0  ;;  %v13528_v9 = vpop.f32.mrf.mxu1 }
  0xe9   :  { %v17083_v10 = vadd.f32 %v13527_v7, %v3155_v6  ;;  %v13418_v11 = vadd.f32 %v13417_v8, %v13416_v4  ;;  %v15777_v7 = vld [vmem:[%s20169_s1 + $0x3f8] sm:$0xff]  }
  0xea   :  { %v13419_v12 = vpop.f32.mrf.mxu0  ;;  %v13529_v13 = vpop.f32.mrf.mxu1  ;;  %3547 = vmatmul.mubr.bf16.gmra.mxu0 %v16869_v18  ;;  %14181 = vmatprep.subr.bf16.mxu1 %v15777_v7 }
  0xeb   :  { %v3158_v14 = vadd.f32 %v13418_v11, %v17078_v61  ;;  %v13530_v15 = vadd.f32 %v13529_v13, %v13528_v9  ;;  %3554 = vmatprep.mubr.bf16.mxu0 %v16874_v19 }
  0xec   :  { %v13420_v16 = vpop.f32.mrf.mxu0  ;;  %v13531_v17 = vpop.f32.mrf.mxu1  ;;  %3708 = vmatmul.mubr.bf16.gmra.mxu1 %v16897_v22 }
  0xed   :  { %v17089_v21 = vadd.f32 %v13530_v15, %v3158_v14  ;;  %v13421_v24 = vadd.f32 %v13420_v16, %v13419_v12  ;;  %3715 = vmatprep.mubr.bf16.mxu1 %v16902_v23 }
  0xee   :  { %v13422_v30 = vpop.f32.mrf.mxu0  ;;  %v13532_v31 = vpop.f32.mrf.mxu1 }
  0xef   :  { %v3163_v32 = vadd.f32 %v13421_v24, %v17078_v61  ;;  %v13533_v34 = vadd.f32 %v13532_v31, %v13531_v17 }
  0xf0   :  { %v13423_v18 = vpop.f32.mrf.mxu0  ;;  %v13534_v35 = vpop.f32.mrf.mxu1 }
  0xf1   :  { %v17093_v36 = vadd.f32 %v13533_v34, %v3163_v32  ;;  %v13424_v37 = vadd.f32 %v13423_v18, %v13422_v30  ;;  %v17141_v34 = vld [vmem:[%s20170_s0 + $0xd4] ss:$8 sps:$4 sm:$0xff]  }
  0xf2   :  { %v13425_v19 = vpop.f32.mrf.mxu0  ;;  %v13535_v38 = vpop.f32.mrf.mxu1  ;;  %3555 = vmatmul.mubr.bf16.gmra.mxu0 %v16883_v20 }
  0xf3   :  { %v3166_v22 = vadd.f32 %v13424_v37, %v17078_v61  ;;  %v13536_v39 = vadd.f32 %v13535_v38, %v13534_v35  ;;  %3562 = vmatprep.mubr.bf16.mxu0 %v16480_v2 }
  0xf4   :  { %v13426_v40 = vpop.f32.mrf.mxu0  ;;  %v13537_v41 = vpop.f32.mrf.mxu1  ;;  %3716 = vmatmul.mubr.bf16.gmra.mxu1 %v16914_v25 }
  0xf5   :  { %v17099_v42 = vadd.f32 %v13536_v39, %v3166_v22  ;;  %v13427_v43 = vadd.f32 %v13426_v40, %v13425_v19  ;;  %3723 = vmatprep.mubr.bf16.mxu1 %v16919_v26 }
  0xf6   :  { %v13428_v44 = vpop.f32.mrf.mxu0  ;;  %v13538_v45 = vpop.f32.mrf.mxu1 }
  0xf7   :  { %v3171_v46 = vadd.f32 %v13427_v43, %v17078_v61  ;;  %v13539_v47 = vadd.f32 %v13538_v45, %v13537_v41 }
  0xf8   :  { %v13429_v20 = vpop.f32.mrf.mxu0  ;;  %v13540_v48 = vpop.f32.mrf.mxu1 }
  0xf9   :  { %v17103_v49 = vadd.f32 %v13539_v47, %v3171_v46  ;;  %v13430_v50 = vadd.f32 %v13429_v20, %v13428_v44 }
  0xfa   :  { %v13431_v51 = vpop.f32.mrf.mxu0  ;;  %v13541_v52 = vpop.f32.mrf.mxu1  ;;  %3563 = vmatmul.mubr.bf16.gmra.mxu0 %v16657_v33 }
  0xfb   :  { %v3174_v53 = vadd.f32 %v13430_v50, %v17078_v61  ;;  %v13542_v54 = vadd.f32 %v13541_v52, %v13540_v48  ;;  %3570 = vmatprep.mubr.bf16.mxu0 %v16902_v23  ;;  %v17118_v23 = vld [vmem:[%s20170_s0 + $0xc4] ss:$8 sps:$4 sm:$0xff]  }
  0xfc   :  { %v13432_v56 = vpop.f32.mrf.mxu0  ;;  %v13543_v57 = vpop.f32.mrf.mxu1  ;;  %3724 = vmatmul.mubr.bf16.gmra.mxu1 %v16928_v27  ;;  %v17161_v48 = vld [vmem:[%s20170_s0 + $0xe4] ss:$8 sps:$4 sm:$0xff]  }
  0xfd   :  { %v17109_v58 = vadd.f32 %v13542_v54, %v3174_v53  ;;  %v13433_v59 = vadd.f32 %v13432_v56, %v13431_v51  ;;  %3731 = vmatprep.mubr.bf16.mxu1 %v16480_v2 }
  0xfe   :  { %v13434_v60 = vpop.f32.mrf.mxu0  ;;  %v13544_v62 = vpop.f32.mrf.mxu1 }
  0xff   :  { %v3179_v63 = vadd.f32 %v13433_v59, %v17078_v61  ;;  %v13545_v55 = vadd.f32 %v13544_v62, %v13543_v57 }
 0x100   :  { %v13435_v0 = vpop.f32.mrf.mxu0  ;;  %v13546_v1 = vpop.f32.mrf.mxu1 }
 0x101   :  { %v17113_v3 = vadd.f32 %v13545_v55, %v3179_v63  ;;  %v13436_v4 = vadd.f32 %v13435_v0, %v13434_v60 }
 0x102   :  { %v13437_v5 = vpop.f32.mrf.mxu0  ;;  %v13547_v6 = vpop.f32.mrf.mxu1  ;;  %3571 = vmatmul.mubr.bf16.gmra.mxu0 %v16914_v25 }
 0x103   :  { %v3182_v8 = vadd.f32 %v13436_v4, %v17078_v61  ;;  %v13548_v9 = vadd.f32 %v13547_v6, %v13546_v1  ;;  %3578 = vmatprep.mubr.bf16.mxu0 %v16919_v26  ;;  %v17134_v26 = vld [vmem:[%s20170_s0 + $0xc0] ss:$8 sps:$4 sm:$0xff]  }
 0x104   :  { %v13438_v11 = vpop.f32.mrf.mxu0  ;;  %v13549_v12 = vpop.f32.mrf.mxu1  ;;  %3732 = vmatmul.mubr.bf16.gmra.mxu1 %v16657_v33  ;;  %v17174_v1 = vld [vmem:[%s20170_s0 + $0xe0] ss:$8 sps:$4 sm:$0xff]  }
 0x105   :  { %v17127_v13 = vadd.f32 %v13548_v9, %v3182_v8  ;;  %v13439_v14 = vadd.f32 %v13438_v11, %v13437_v5  ;;  %3739 = vmatprep.mubr.bf16.mxu1 %v17118_v23  ;;  %v16374_v11 = vld [vmem:[%s20170_s0 + $0x4] ss:$8 sps:$4 sm:$0xff]  }
 0x106   :  { %v13440_v25 = vpop.f32.mrf.mxu0  ;;  %v13550_v15 = vpop.f32.mrf.mxu1 }
 0x107   :  { %v3187_v16 = vadd.f32 %v13439_v14, %v17078_v61  ;;  %v13551_v17 = vadd.f32 %v13550_v15, %v13549_v12 }
 0x108   :  { %v13441_v24 = vpop.f32.mrf.mxu0  ;;  %v13552_v30 = vpop.f32.mrf.mxu1 }
 0x109   :  { %v17136_v31 = vadd.f32 %v13551_v17, %v3187_v16  ;;  %v13442_v32 = vadd.f32 %v13441_v24, %v13440_v25  ;;  %v16375_v16 = vld [vmem:[%s20170_s0 + $0x14] ss:$8 sps:$4 sm:$0xff]  }
 0x10a   :  { %v13443_v18 = vpop.f32.mrf.mxu0  ;;  %v13553_v35 = vpop.f32.mrf.mxu1  ;;  %3579 = vmatmul.mubr.bf16.gmra.mxu0 %v16928_v27 }
 0x10b   :  { %v3190_v37 = vadd.f32 %v13442_v32, %v17078_v61  ;;  %v13554_v19 = vadd.f32 %v13553_v35, %v13552_v30  ;;  %3586 = vmatprep.mubr.bf16.mxu0 %v16933_v28  ;;  %v17154_v28 = vld [vmem:[%s20170_s0 + $0xd0] ss:$8 sps:$4 sm:$0xff]  }
 0x10c   :  { %v13444_v38 = vpop.f32.mrf.mxu0  ;;  %v13555_v22 = vpop.f32.mrf.mxu1  ;;  %3740 = vmatmul.mubr.bf16.gmra.mxu1 %v17134_v26 }
 0x10d   :  { %v17147_v39 = vadd.f32 %v13554_v19, %v3190_v37  ;;  %v13445_v40 = vadd.f32 %v13444_v38, %v13443_v18  ;;  %3747 = vmatprep.mubr.bf16.mxu1 %v17141_v34  ;;  %v15764_v18 = vld [vmem:[%s20169_s1 + $0x338] sm:$0xff]   ;;  %v15765_v19 = vld [vmem:[%s20169_s1 + $0x370] sm:$0xff]  }
 0x10e   :  { %v13446_v41 = vpop.f32.mrf.mxu0  ;;  %v13556_v43 = vpop.f32.mrf.mxu1 }
 0x10f   :  { %v3195_v44 = vadd.f32 %v13445_v40, %v17078_v61  ;;  %v13557_v45 = vadd.f32 %v13556_v43, %v13555_v22  ;;  %v15778_v40 = vld [vmem:[%s20169_s1 + $0x3b8] sm:$0xff]  }
 0x110   :  { %v13447_v27 = vpop.f32.mrf.mxu0  ;;  %v13558_v46 = vpop.f32.mrf.mxu1 }
 0x111   :  { %v17156_v47 = vadd.f32 %v13557_v45, %v3195_v44  ;;  %v13448_v20 = vadd.f32 %v13447_v27, %v13446_v41  ;;  %v16376_v44 = vld [vmem:[%s20170_s0] ss:$8 sps:$4 sm:$0xff]   ;;  %v15779_v45 = vld [vmem:[%s20169_s1 + $0x3f0] sm:$0xff]  }
 0x112   :  { %v13449_v50 = vpop.f32.mrf.mxu0  ;;  %v13559_v51 = vpop.f32.mrf.mxu1  ;;  %3587 = vmatmul.mubr.bf16.gmra.mxu0 %v16942_v29 }
 0x113   :  { %v3198_v52 = vadd.f32 %v13448_v20, %v17078_v61  ;;  %v13560_v53 = vadd.f32 %v13559_v51, %v13558_v46  ;;  %3594 = vmatprep.mubr.bf16.mxu0 %v16480_v2  ;;  %v15766_v20 = vld [vmem:[%s20169_s1 + $0x330] sm:$0xff]  }
 0x114   :  { %v13450_v54 = vpop.f32.mrf.mxu0  ;;  %v13561_v56 = vpop.f32.mrf.mxu1  ;;  %3748 = vmatmul.mubr.bf16.gmra.mxu1 %v17154_v28 }
 0x115   :  { %v17167_v57 = vadd.f32 %v13560_v53, %v3198_v52  ;;  %v13451_v59 = vadd.f32 %v13450_v54, %v13449_v50  ;;  %3755 = vmatprep.mubr.bf16.mxu1 %v17161_v48  ;;  %v16377_v52 = vld [vmem:[%s20170_s0 + $0x10] ss:$8 sps:$4 sm:$0xff]   ;;  %v15767_v53 = vld [vmem:[%s20169_s1 + $0x368] sm:$0xff]  }
 0x116   :  { %v13452_v60 = vpop.f32.mrf.mxu0  ;;  %v13562_v62 = vpop.f32.mrf.mxu1 }
 0x117   :  { %v3203_v63 = vadd.f32 %v13451_v59, %v17078_v61  ;;  %v13563_v55 = vadd.f32 %v13562_v62, %v13561_v56  ;;  %v16378_v59 = vld [vmem:[%s20170_s0 + $0x24] ss:$8 sps:$4 sm:$0xff]  }
 0x118   :  { %v13453_v29 = vpop.f32.mrf.mxu0  ;;  %v13564_v0 = vpop.f32.mrf.mxu1 }
 0x119   :  { %v17176_v4 = vadd.f32 %v13563_v55, %v3203_v63  ;;  %v13454_v5 = vadd.f32 %v13453_v29, %v13452_v60  ;;  %v15780_v60 = vld [vmem:[%s20169_s1 + $0x3b0] sm:$0xff]   ;;  %v15781_v55 = vld [vmem:[%s20169_s1 + $0x3e8] sm:$0xff]  }
 0x11a   :  { %v13455_v6 = vpop.f32.mrf.mxu0  ;;  %v13565_v7 = vpop.f32.mrf.mxu1  ;;  %3595 = vmatmul.mubr.bf16.gmra.mxu0 %v16657_v33 }
 0x11b   :  { %v3206_v8 = vadd.f32 %v13454_v5, %v17078_v61  ;;  %v13566_v9 = vadd.f32 %v13565_v7, %v13564_v0  ;;  %3796 = vmatprep.mubr.bf16.mxu0 %v16374_v11  ;;  %v15768_v5 = vld [vmem:[%s20169_s1 + $0x328] sm:$0xff]  }
 0x11c   :  { %v13456_v12 = vpop.f32.mrf.mxu0  ;;  %v13567_v14 = vpop.f32.mrf.mxu1  ;;  %3756 = vmatmul.mubr.bf16.gmra.mxu1 %v17174_v1 }
 0x11d   :  { %v17184_v25 = vadd.f32 %v13566_v9, %v3206_v8  ;;  %v13457_v15 = vadd.f32 %v13456_v12, %v13455_v6  ;;  %3957 = vmatprep.mubr.bf16.mxu1 %v16375_v16  ;;  %v15769_v8 = vld [vmem:[%s20169_s1 + $0x360] sm:$0xff]   ;;  %v15782_v12 = vld [vmem:[%s20169_s1 + $0x3a8] sm:$0xff]  }
 0x11e   :  { %v13458_v17 = vpop.f32.mrf.mxu0  ;;  %v13568_v24 = vpop.f32.mrf.mxu1 }
 0x11f   :  { %v3211_v30 = vadd.f32 %v13457_v15, %v17078_v61  ;;  %v13569_v32 = vadd.f32 %v13568_v24, %v13567_v14 }
 0x120   :  { %v13459_v35 = vpop.f32.mrf.mxu0  ;;  %v13570_v37 = vpop.f32.mrf.mxu1 }
 0x121   :  { %v17196_v38 = vadd.f32 %v13569_v32, %v3211_v30  ;;  %v13460_v22 = vadd.f32 %v13459_v35, %v13458_v17  ;;  %v15770_v30 = vld [vmem:[%s20169_s1 + $0x320] sm:$0xff]  }
 0x122   :  { %v13461_v41 = vpop.f32.mrf.mxu0  ;;  %v13571_v43 = vpop.f32.mrf.mxu1  ;;  %3797 = vmatmul.mubr.bf16.vlgmr.msra.gmra.mxu0 %v16376_v44  ;;  %v16379_v35 = vld [vmem:[%s20170_s0 + $0x20] ss:$8 sps:$4 sm:$0xff]  }
 0x123   :  { %v3214_v27 = vadd.f32 %v13460_v22, %v17078_v61  ;;  %v13572_v46 = vadd.f32 %v13571_v43, %v13570_v37  ;;  %14070 = vmatpush3.bf16.msra.mxu0 %v15764_v18  ;;  %3804 = vmatprep.mubr.bf16.mxu0 %v16375_v16  ;;  %v15783_v16 = vld [vmem:[%s20169_s1 + $0x3e0] sm:$0xff]   ;;  %v15771_v37 = vld [vmem:[%s20169_s1 + $0x358] sm:$0xff]  }
 0x124   :  { %v13462_v50 = vpop.f32.mrf.mxu0  ;;  %v13573_v51 = vpop.f32.mrf.mxu1  ;;  %3958 = vmatmul.mubr.bf16.vlgmr.msra.gmra.mxu1 %v16377_v52  ;;  %14071 = vmatprep.subr.bf16.mxu0 %v15765_v19 }
 0x125   :  { %v17217_v54 = vadd.f32 %v13572_v46, %v3214_v27  ;;  %v13463_v56 = vadd.f32 %v13462_v50, %v13461_v41  ;;  %3965 = vmatprep.mubr.bf16.mxu1 %v16378_v59  ;;  %14182 = vmatpush3.bf16.msra.mxu1 %v15778_v40  ;;  %v16380_v40 = vld [vmem:[%s20170_s0 + $0x34] ss:$8 sps:$4 sm:$0xff]   ;;  %v15784_v41 = vld [vmem:[%s20169_s1 + $0x3a0] sm:$0xff]  }
 0x126   :  { %v13464_v62 = vpop.f32.mrf.mxu0  ;;  %v13574_v63 = vpop.f32.mrf.mxu1  ;;  %14183 = vmatprep.subr.bf16.mxu1 %v15779_v45  ;;  %v15790_v45 = vld [vmem:[%s20169_s1 + $0x3d8] sm:$0xff]  }
 0x127   :  { %v3219_v29 = vadd.f32 %v13463_v56, %v17078_v61  ;;  %v13575_v0 = vadd.f32 %v13574_v63, %v13573_v51  ;;  %14072 = vmatpush3.bf16.msra.mxu0 %v15766_v20  ;;  %v15772_v20 = vld [vmem:[%s20169_s1 + $0x318] sm:$0xff]   ;;  %v15792_v63 = vld [vmem:[%s20169_s1 + $0x3d0] sm:$0xff]  }
 0x128   :  { %v13465_v6 = vpop.f32.mrf.mxu0  ;;  %v13576_v7 = vpop.f32.mrf.mxu1  ;;  %14073 = vmatprep.subr.bf16.mxu0 %v15767_v53 }
 0x129   :  { %v17235_v9 = vadd.f32 %v13575_v0, %v3219_v29  ;;  %v13466_v11 = vadd.f32 %v13465_v6, %v13464_v62  ;;  %14184 = vmatpush3.bf16.msra.mxu1 %v15780_v60  ;;  %v15774_v0 = vld [vmem:[%s20169_s1 + $0x310] sm:$0xff]  }
 0x12a   :  { %v13467_v14 = vpop.f32.mrf.mxu0  ;;  %v13577_v15 = vpop.f32.mrf.mxu1  ;;  %3805 = vmatmul.mubr.bf16.gmra.mxu0 %v16377_v52  ;;  %14185 = vmatprep.subr.bf16.mxu1 %v15781_v55  ;;  %v15773_v52 = vld [vmem:[%s20169_s1 + $0x350] sm:$0xff]  }
 0x12b   :  { %v3222_v17 = vadd.f32 %v13466_v11, %v17078_v61  ;;  %v13578_v24 = vadd.f32 %v13577_v15, %v13576_v7  ;;  %3812 = vmatprep.mubr.bf16.mxu0 %v16378_v59  ;;  %14074 = vmatpush3.bf16.msra.mxu0 %v15768_v5  ;;  %v15791_v59 = vld [vmem:[%s20169_s1 + $0x398] sm:$0xff]  }
 0x12c   :  { %v13468_v32 = vpop.f32.mrf.mxu0  ;;  %v13579_v18 = vpop.f32.mrf.mxu1  ;;  %3966 = vmatmul.mubr.bf16.gmra.mxu1 %v16379_v35  ;;  %14075 = vmatprep.subr.bf16.mxu0 %v15769_v8  ;;  %v16381_v7 = vld [vmem:[%s20170_s0 + $0x30] ss:$8 sps:$4 sm:$0xff]   ;;  %v15775_v8 = vld [vmem:[%s20169_s1 + $0x348] sm:$0xff]  }
 0x12d   :  { %v17253_v19 = vadd.f32 %v13578_v24, %v3222_v17  ;;  %v13469_v22 = vadd.f32 %v13468_v32, %v13467_v14  ;;  %3973 = vmatprep.mubr.bf16.mxu1 %v16380_v40  ;;  %14186 = vmatpush3.bf16.msra.mxu1 %v15782_v12  ;;  %v15793_v14 = vld [vmem:[%s20169_s1 + $0x390] sm:$0xff]   ;;  %v15794_v17 = vld [vmem:[%s20169_s1 + $0x3c8] sm:$0xff]  }
 0x12e   :  { %v13470_v43 = vpop.f32.mrf.mxu0  ;;  %v13580_v44 = vpop.f32.mrf.mxu1  ;;  %14187 = vmatprep.subr.bf16.mxu1 %v15783_v16  ;;  %v15776_v32 = vld [vmem:[%s20169_s1 + $0x308] sm:$0xff]  }
 0x12f   :  { %v3227_v27 = vadd.f32 %v13469_v22, %v17078_v61  ;;  %v13581_v46 = vadd.f32 %v13580_v44, %v13579_v18  ;;  %14076 = vmatpush3.bf16.msra.mxu0 %v15770_v30 }
 0x130   :  { %v13471_v50 = vpop.f32.mrf.mxu0  ;;  %v13582_v51 = vpop.f32.mrf.mxu1  ;;  %14077 = vmatprep.subr.bf16.mxu0 %v15771_v37  ;;  %v15785_v37 = vld [vmem:[%s20169_s1 + $0x340] sm:$0xff]  }
 0x131   :  { %v17271_v53 = vadd.f32 %v13581_v46, %v3227_v27  ;;  %v13472_v56 = vadd.f32 %v13471_v50, %v13470_v43  ;;  %14188 = vmatpush3.bf16.msra.mxu1 %v15784_v41  ;;  %v15795_v41 = vld [vmem:[%s20169_s1 + $0x388] sm:$0xff]   ;;  %v15788_v50 = vld [vmem:[%s20169_s1 + $0x300] sm:$0xff]  }
 0x132   :  { %v13473_v60 = vpop.f32.mrf.mxu0  ;;  %v13583_v62 = vpop.f32.mrf.mxu1  ;;  %3813 = vmatmul.mubr.bf16.gmra.mxu0 %v16379_v35  ;;  %14189 = vmatprep.subr.bf16.mxu1 %v15790_v45  ;;  %v15796_v45 = vld [vmem:[%s20169_s1 + $0x3c0] sm:$0xff]  }
 0x133   :  { %v3230_v55 = vadd.f32 %v13472_v56, %v17078_v61  ;;  %v13584_v29 = vadd.f32 %v13583_v62, %v13582_v51  ;;  %3820 = vmatprep.mubr.bf16.mxu0 %v16380_v40  ;;  %14078 = vmatpush3.bf16.msra.mxu0 %v15772_v20  ;;  %v17317_v20 = vld [vmem:[%s20170_s0 + $0x44] ss:$8 sps:$4 sm:$0xff]   ;;  %v15798_v56 = vld [vmem:[%s20169_s1 + $0x478] sm:$0xff]  }
 0x134   :  { %v13474_v5 = vpop.f32.mrf.mxu0  ;;  %v13585_v6 = vpop.f32.mrf.mxu1  ;;  %3974 = vmatmul.mubr.bf16.gmra.mxu1 %v16381_v7  ;;  %14079 = vmatprep.subr.bf16.mxu0 %v15773_v52  ;;  %v17332_v62 = vld [vmem:[%s20170_s0 + $0x54] ss:$8 sps:$4 sm:$0xff]  }
 0x135   :  { %v17289_v11 = vadd.f32 %v13584_v29, %v3230_v55  ;;  %v13475_v12 = vadd.f32 %v13474_v5, %v13473_v60  ;;  %3981 = vmatprep.mubr.bf16.mxu1 %v16480_v2  ;;  %14190 = vmatpush3.bf16.msra.mxu1 %v15791_v59 }
 0x136   :  { %v13476_v15 = vpop.f32.mrf.mxu0  ;;  %v13586_v16 = vpop.f32.mrf.mxu1  ;;  %14191 = vmatprep.subr.bf16.mxu1 %v15792_v63  ;;  %v15797_v63 = vld [vmem:[%s20169_s1 + $0x380] sm:$0xff]  }
 0x137   :  { %v3235_v24 = vadd.f32 %v13475_v12, %v17078_v61  ;;  %v13587_v30 = vadd.f32 %v13586_v16, %v13585_v6  ;;  %14080 = vmatpush3.bf16.msra.mxu0 %v15774_v0  ;;  %v17344_v16 = vld [vmem:[%s20170_s0 + $0x40] ss:$8 sps:$4 sm:$0xff]  }
 0x138   :  { %v13477_v18 = vpop.f32.mrf.mxu0  ;;  %v13588_v35 = vpop.f32.mrf.mxu1  ;;  %14081 = vmatprep.subr.bf16.mxu0 %v15775_v8 }
 0x139   :  { %v17305_v22 = vadd.f32 %v13587_v30, %v3235_v24  ;;  %v13478_v40 = vadd.f32 %v13477_v18, %v13476_v15  ;;  %14192 = vmatpush3.bf16.msra.mxu1 %v15793_v14  ;;  %v17352_v18 = vld [vmem:[%s20170_s0 + $0x50] ss:$8 sps:$4 sm:$0xff]  }
 0x13a   :  { %v13479_v43 = vpop.f32.mrf.mxu0  ;;  %v13589_v44 = vpop.f32.mrf.mxu1  ;;  %3821 = vmatmul.mubr.bf16.gmra.mxu0 %v16381_v7  ;;  %14193 = vmatprep.subr.bf16.mxu1 %v15794_v17 }
 0x13b   :  { %v3238_v27 = vadd.f32 %v13478_v40, %v17078_v61  ;;  %v13590_v46 = vadd.f32 %v13589_v44, %v13588_v35  ;;  %3828 = vmatprep.mubr.bf16.mxu0 %v17317_v20  ;;  %14082 = vmatpush3.bf16.msra.mxu0 %v15776_v32  ;;  %v17360_v40 = vld [vmem:[%s20170_s0 + $0x64] ss:$8 sps:$4 sm:$0xff]  }
 0x13c   :  { %v13480_v51 = vpop.f32.mrf.mxu0  ;;  %v13591_v52 = vpop.f32.mrf.mxu1  ;;  %3982 = vmatmul.mubr.bf16.gmra.mxu1 %v16657_v33  ;;  %14083 = vmatprep.subr.bf16.mxu0 %v15785_v37 }
 0x13d   :  { %v17327_v59 = vadd.f32 %v13590_v46, %v3238_v27  ;;  %v13481_v60 = vadd.f32 %v13480_v51, %v13479_v43  ;;  %3989 = vmatprep.mubr.bf16.mxu1 %v17332_v62  ;;  %14194 = vmatpush3.bf16.msra.mxu1 %v15795_v41 }
 0x13e   :  { %v13482_v55 = vpop.f32.mrf.mxu0  ;;  %v13592_v29 = vpop.f32.mrf.mxu1  ;;  %14195 = vmatprep.subr.bf16.mxu1 %v15796_v45 }
 0x13f   :  { %v3243_v0 = vadd.f32 %v13481_v60, %v17078_v61  ;;  %v13593_v5 = vadd.f32 %v13592_v29, %v13591_v52  ;;  %14084 = vmatpush3.bf16.msra.mxu0 %v15788_v50 }
 0x140   :  { %v13483_v6 = vpop.f32.mrf.mxu0  ;;  %v13594_v7 = vpop.f32.mrf.mxu1  ;;  %14293 = vmatprep.subr.bf16.mxu0 %v15798_v56 }
 0x141   :  { %v17339_v8 = vadd.f32 %v13593_v5, %v3243_v0  ;;  %v13484_v12 = vadd.f32 %v13483_v6, %v13482_v55  ;;  %14196 = vmatpush3.bf16.msra.mxu1 %v15797_v63  ;;  %v17372_v0 = vld [vmem:[%s20170_s0 + $0x60] ss:$8 sps:$4 sm:$0xff]  }
 0x142   :  { %v13485_v14 = vpop.f32.mrf.mxu0  ;;  %v13595_v15 = vpop.f32.mrf.mxu1  ;;  %3829 = vmatmul.mubr.bf16.gmra.mxu0 %v17344_v16 }
 0x143   :  { %v3246_v17 = vadd.f32 %v13484_v12, %v17078_v61  ;;  %v13596_v24 = vadd.f32 %v13595_v15, %v13594_v7  ;;  %3836 = vmatprep.mubr.bf16.mxu0 %v17332_v62  ;;  %v17380_v7 = vld [vmem:[%s20170_s0 + $0x74] ss:$8 sps:$4 sm:$0xff]  }
 0x144   :  { %v13486_v30 = vpop.f32.mrf.mxu0  ;;  %v13597_v32 = vpop.f32.mrf.mxu1  ;;  %3990 = vmatmul.mubr.bf16.gmra.mxu1 %v17352_v18 }
 0x145   :  { %v17355_v35 = vadd.f32 %v13596_v24, %v3246_v17  ;;  %v13487_v37 = vadd.f32 %v13486_v30, %v13485_v14  ;;  %3997 = vmatprep.mubr.bf16.mxu1 %v17360_v40 }
 0x146   :  { %v13488_v41 = vpop.f32.mrf.mxu0  ;;  %v13598_v43 = vpop.f32.mrf.mxu1 }
 0x147   :  { %v3251_v44 = vadd.f32 %v13487_v37, %v17078_v61  ;;  %v13599_v45 = vadd.f32 %v13598_v43, %v13597_v32 }
 0x148   :  { %v13489_v27 = vpop.f32.mrf.mxu0  ;;  %v13600_v46 = vpop.f32.mrf.mxu1 }
 0x149   :  { %v17364_v50 = vadd.f32 %v13599_v45, %v3251_v44  ;;  %v13490_v51 = vadd.f32 %v13489_v27, %v13488_v41 }
 0x14a   :  { %v13491_v52 = vpop.f32.mrf.mxu0  ;;  %v13601_v56 = vpop.f32.mrf.mxu1  ;;  %3837 = vmatmul.mubr.bf16.gmra.mxu0 %v17352_v18 }
 0x14b   :  { %v3254_v60 = vadd.f32 %v13490_v51, %v17078_v61  ;;  %v13602_v63 = vadd.f32 %v13601_v56, %v13600_v46  ;;  %3844 = vmatprep.mubr.bf16.mxu0 %v17360_v40  ;;  %v17392_v51 = vld [vmem:[%s20170_s0 + $0x70] ss:$8 sps:$4 sm:$0xff]  }
 0x14c   :  { %v13492_v55 = vpop.f32.mrf.mxu0  ;;  %v13603_v29 = vpop.f32.mrf.mxu1  ;;  %3998 = vmatmul.mubr.bf16.gmra.mxu1 %v17372_v0 }
 0x14d   :  { %v17375_v5 = vadd.f32 %v13602_v63, %v3254_v60  ;;  %v13493_v6 = vadd.f32 %v13492_v55, %v13491_v52  ;;  %4005 = vmatprep.mubr.bf16.mxu1 %v17380_v7 }
 0x14e   :  { %v13494_v12 = vpop.f32.mrf.mxu0  ;;  %v13604_v14 = vpop.f32.mrf.mxu1 }
 0x14f   :  { %v3259_v15 = vadd.f32 %v13493_v6, %v17078_v61  ;;  %v13605_v17 = vadd.f32 %v13604_v14, %v13603_v29 }
 0x150   :  { %v13495_v24 = vpop.f32.mrf.mxu0  ;;  %v13606_v30 = vpop.f32.mrf.mxu1 }
 0x151   :  { %v17384_v32 = vadd.f32 %v13605_v17, %v3259_v15  ;;  %v13496_v37 = vadd.f32 %v13495_v24, %v13494_v12 }
 0x152   :  { %v13497_v41 = vpop.f32.mrf.mxu0  ;;  %v13607_v43 = vpop.f32.mrf.mxu1  ;;  %3845 = vmatmul.mubr.bf16.gmra.mxu0 %v17372_v0 }
 0x153   :  { %v3262_v44 = vadd.f32 %v13496_v37, %v17078_v61  ;;  %v13608_v45 = vadd.f32 %v13607_v43, %v13606_v30  ;;  %3852 = vmatprep.mubr.bf16.mxu0 %v17380_v7 }
 0x154   :  { %v13498_v27 = vpop.f32.mrf.mxu0  ;;  %v13609_v46 = vpop.f32.mrf.mxu1  ;;  %4006 = vmatmul.mubr.bf16.gmra.mxu1 %v17392_v51 }
 0x155   :  { %v17395_v52 = vadd.f32 %v13608_v45, %v3262_v44  ;;  %v13499_v56 = vadd.f32 %v13498_v27, %v13497_v41  ;;  %4013 = vmatprep.mubr.bf16.mxu1 %v16480_v2  ;;  %v17406_v41 = vld [vmem:[%s20170_s0 + $0x84] ss:$8 sps:$4 sm:$0xff]  }
 0x156   :  { %v13500_v60 = vpop.f32.mrf.mxu0  ;;  %v13610_v63 = vpop.f32.mrf.mxu1 }
 0x157   :  { %20179 = vst [vmem:[#allocation6_spill] sm:$0xff] %v17395_v52  ;;  %v3267_v55 = vadd.f32 %v13499_v56, %v17078_v61  ;;  %v13611_v29 = vadd.f32 %v13610_v63, %v13609_v46  ;;  %v17415_v46 = vld [vmem:[%s20170_s0 + $0x94] ss:$8 sps:$4 sm:$0xff]  }
 0x158   :  { %v13501_v6 = vpop.f32.mrf.mxu0  ;;  %v13612_v12 = vpop.f32.mrf.mxu1 }
 0x159   :  { %v17399_v14 = vadd.f32 %v13611_v29, %v3267_v55  ;;  %v13502_v15 = vadd.f32 %v13501_v6, %v13500_v60 }
 0x15a   :  { %v13503_v17 = vpop.f32.mrf.mxu0  ;;  %v13613_v24 = vpop.f32.mrf.mxu1  ;;  %3853 = vmatmul.mubr.bf16.gmra.mxu0 %v17392_v51 }
 0x15b   :  { %20180 = vst [vmem:[#allocation7_spill] sm:$0xff] %v17399_v14  ;;  %v3270_v30 = vadd.f32 %v13502_v15, %v17078_v61  ;;  %v13614_v37 = vadd.f32 %v13613_v24, %v13612_v12  ;;  %3860 = vmatprep.mubr.bf16.mxu0 %v17406_v41 }
 0x15c   :  { %v13504_v43 = vpop.f32.mrf.mxu0  ;;  %v13615_v44 = vpop.f32.mrf.mxu1  ;;  %4014 = vmatmul.mubr.bf16.gmra.mxu1 %v16657_v33 }
 0x15d   :  { %v17410_v45 = vadd.f32 %v13614_v37, %v3270_v30  ;;  %v13505_v27 = vadd.f32 %v13504_v43, %v13503_v17  ;;  %4021 = vmatprep.mubr.bf16.mxu1 %v17415_v46  ;;  %v17424_v17 = vld [vmem:[%s20170_s0 + $0x80] ss:$8 sps:$4 sm:$0xff]  }
 0x15e   :  { %v13506_v56 = vpop.f32.mrf.mxu0  ;;  %v13616_v60 = vpop.f32.mrf.mxu1 }
 0x15f   :  { %20181 = vst [vmem:[#allocation8_spill] sm:$0xff] %v17410_v45  ;;  %v3275_v63 = vadd.f32 %v13505_v27, %v17078_v61  ;;  %v13617_v55 = vadd.f32 %v13616_v60, %v13615_v44 }
 0x160   :  { %v13507_v29 = vpop.f32.mrf.mxu0  ;;  %v13618_v6 = vpop.f32.mrf.mxu1 }
 0x161   :  { %v17419_v12 = vadd.f32 %v13617_v55, %v3275_v63  ;;  %v13508_v15 = vadd.f32 %v13507_v29, %v13506_v56  ;;  %v17432_v56 = vld [vmem:[%s20170_s0 + $0x90] ss:$8 sps:$4 sm:$0xff]   ;;  %v17440_v55 = vld [vmem:[%s20170_s0 + $0xa4] ss:$8 sps:$4 sm:$0xff]  }
 0x162   :  { %v13619_v24 = vpop.f32.mrf.mxu1  ;;  %v13637_v30 = vpop.f32.mrf.mxu0  ;;  %3861 = vmatmul.mubr.bf16.gmra.mxu0 %v17424_v17 }
 0x163   :  { %20182 = vst [vmem:[#allocation9_spill] sm:$0xff] %v17419_v12  ;;  %v3278_v37 = vadd.f32 %v13508_v15, %v17078_v61  ;;  %v13620_v43 = vadd.f32 %v13619_v24, %v13618_v6  ;;  %3868 = vmatprep.mubr.bf16.mxu0 %v17415_v46 }
 0x164   :  { %v13638_v44 = vpop.f32.mrf.mxu0  ;;  %v13749_v27 = vpop.f32.mrf.mxu1  ;;  %4022 = vmatmul.mubr.bf16.gmra.mxu1 %v17432_v56 }
 0x165   :  { %v17435_v60 = vadd.f32 %v13620_v43, %v3278_v37  ;;  %v13639_v63 = vadd.f32 %v13638_v44, %v13637_v30  ;;  %4029 = vmatprep.mubr.bf16.mxu1 %v17440_v55 }
 0x166   :  { %v13640_v61 = vpop.f32.mrf.mxu0  ;;  %v13750_v29 = vpop.f32.mrf.mxu1 }
 0x167   :  { %20183 = vst [vmem:[#allocation10_spill] sm:$0xff] %v17435_v60  ;;  %v3477_v6 = vadd.f32 %v13639_v63, %v17083_v10  ;;  %v13751_v15 = vadd.f32 %v13750_v29, %v13749_v27  ;;  %v17452_v10 = vld [vmem:[%s20170_s0 + $0xa0] ss:$8 sps:$4 sm:$0xff]  }
 0x168   :  { %v13641_v24 = vpop.f32.mrf.mxu0  ;;  %v13752_v12 = vpop.f32.mrf.mxu1 }
 0x169   :  { %v17444_v45 = vadd.f32 %v13751_v15, %v3477_v6  ;;  %v13642_v14 = vadd.f32 %v13641_v24, %v13640_v61  ;;  %v17460_v61 = vld [vmem:[%s20170_s0 + $0xb4] ss:$8 sps:$4 sm:$0xff]  }
 0x16a   :  { %v13643_v37 = vpop.f32.mrf.mxu0  ;;  %v13753_v43 = vpop.f32.mrf.mxu1  ;;  %3869 = vmatmul.mubr.bf16.gmra.mxu0 %v17432_v56 }
 0x16b   :  { %20184 = vst [vmem:[#allocation11_spill] sm:$0xff] %v17444_v45  ;;  %v3480_v30 = vadd.f32 %v13642_v14, %v17089_v21  ;;  %v13754_v44 = vadd.f32 %v13753_v43, %v13752_v12  ;;  %3876 = vmatprep.mubr.bf16.mxu0 %v17440_v55 }
 0x16c   :  { %v13644_v60 = vpop.f32.mrf.mxu0  ;;  %v13755_v52 = vpop.f32.mrf.mxu1  ;;  %4030 = vmatmul.mubr.bf16.gmra.mxu1 %v17452_v10 }
 0x16d   :  { %v17455_v27 = vadd.f32 %v13754_v44, %v3480_v30  ;;  %v13645_v63 = vadd.f32 %v13644_v60, %v13643_v37  ;;  %4037 = vmatprep.mubr.bf16.mxu1 %v17460_v61 }
 0x16e   :  { %v13646_v21 = vpop.f32.mrf.mxu0  ;;  %v13756_v14 = vpop.f32.mrf.mxu1 }
 0x16f   :  { %20185 = vst [vmem:[#allocation12_spill] sm:$0xff] %v17455_v27  ;;  %v3485_v12 = vadd.f32 %v13645_v63, %v17093_v36  ;;  %v13757_v29 = vadd.f32 %v13756_v14, %v13755_v52  ;;  %v17472_v36 = vld [vmem:[%s20170_s0 + $0xb0] ss:$8 sps:$4 sm:$0xff]  }
 0x170   :  { %v13647_v6 = vpop.f32.mrf.mxu0  ;;  %v13758_v15 = vpop.f32.mrf.mxu1 }
 0x171   :  { %v17464_v24 = vadd.f32 %v13757_v29, %v3485_v12  ;;  %v13648_v43 = vadd.f32 %v13647_v6, %v13646_v21 }
 0x172   :  { %v13649_v30 = vpop.f32.mrf.mxu0  ;;  %v13759_v44 = vpop.f32.mrf.mxu1  ;;  %3877 = vmatmul.mubr.bf16.gmra.mxu0 %v17452_v10 }
 0x173   :  { %20186 = vst [vmem:[#allocation13_spill] sm:$0xff] %v17464_v24  ;;  %v3488_v60 = vadd.f32 %v13648_v43, %v17099_v42  ;;  %v13760_v37 = vadd.f32 %v13759_v44, %v13758_v15  ;;  %3884 = vmatprep.mubr.bf16.mxu0 %v17460_v61 }
 0x174   :  { %v13650_v27 = vpop.f32.mrf.mxu0  ;;  %v13761_v45 = vpop.f32.mrf.mxu1  ;;  %4038 = vmatmul.mubr.bf16.gmra.mxu1 %v17472_v36 }
 0x175   :  { %v17475_v52 = vadd.f32 %v13760_v37, %v3488_v60  ;;  %v13651_v63 = vadd.f32 %v13650_v27, %v13649_v30  ;;  %4045 = vmatprep.mubr.bf16.mxu1 %v16480_v2 }
 0x176   :  { %v13652_v21 = vpop.f32.mrf.mxu0  ;;  %v13762_v14 = vpop.f32.mrf.mxu1 }
 0x177   :  { %v3493_v42 = vadd.f32 %v13651_v63, %v17103_v49  ;;  %v13763_v12 = vadd.f32 %v13762_v14, %v13761_v45 }
 0x178   :  { %v13653_v29 = vpop.f32.mrf.mxu0  ;;  %v13764_v6 = vpop.f32.mrf.mxu1 }
 0x179   :  { %v17479_v15 = vadd.f32 %v13763_v12, %v3493_v42  ;;  %v13654_v43 = vadd.f32 %v13653_v29, %v13652_v21 }
 0x17a   :  { %v13655_v44 = vpop.f32.mrf.mxu0  ;;  %v13765_v24 = vpop.f32.mrf.mxu1  ;;  %3885 = vmatmul.mubr.bf16.gmra.mxu0 %v17472_v36 }
 0x17b   :  { %v3496_v60 = vadd.f32 %v13654_v43, %v17109_v58  ;;  %v13766_v37 = vadd.f32 %v13765_v24, %v13764_v6  ;;  %3892 = vmatprep.mubr.bf16.mxu0 %v17118_v23 }
 0x17c   :  { %v13656_v27 = vpop.f32.mrf.mxu0  ;;  %v13767_v30 = vpop.f32.mrf.mxu1  ;;  %4046 = vmatmul.mubr.bf16.gmra.mxu1 %v16657_v33 }
 0x17d   :  { %v17485_v49 = vadd.f32 %v13766_v37, %v3496_v60  ;;  %v13657_v45 = vadd.f32 %v13656_v27, %v13655_v44  ;;  %4053 = vmatprep.mubr.bf16.mxu1 %v17141_v34 }
 0x17e   :  { %v13658_v63 = vpop.f32.mrf.mxu0  ;;  %v13768_v21 = vpop.f32.mrf.mxu1 }
 0x17f   :  { %v3501_v14 = vadd.f32 %v13657_v45, %v17113_v3  ;;  %v13769_v42 = vadd.f32 %v13768_v21, %v13767_v30 }
 0x180   :  { %v13659_v12 = vpop.f32.mrf.mxu0  ;;  %v13770_v29 = vpop.f32.mrf.mxu1 }
 0x181   :  { %v17489_v58 = vadd.f32 %v13769_v42, %v3501_v14  ;;  %v13660_v24 = vadd.f32 %v13659_v12, %v13658_v63 }
 0x182   :  { %v13661_v23 = vpop.f32.mrf.mxu0  ;;  %v13771_v6 = vpop.f32.mrf.mxu1  ;;  %3893 = vmatmul.mubr.bf16.gmra.mxu0 %v17134_v26 }
 0x183   :  { %v3504_v43 = vadd.f32 %v13660_v24, %v17127_v13  ;;  %v13772_v60 = vadd.f32 %v13771_v6, %v13770_v29  ;;  %3900 = vmatprep.mubr.bf16.mxu0 %v17141_v34  ;;  %v17504_v34 = vld [vmem:[%s20170_s0 + $0xf4] ss:$8 sps:$4 sm:$0xff]  }
 0x184   :  { %v13662_v44 = vpop.f32.mrf.mxu0  ;;  %v13773_v37 = vpop.f32.mrf.mxu1  ;;  %4054 = vmatmul.mubr.bf16.gmra.mxu1 %v17154_v28 }
 0x185   :  { %v17495_v3 = vadd.f32 %v13772_v60, %v3504_v43  ;;  %v13663_v27 = vadd.f32 %v13662_v44, %v13661_v23  ;;  %4061 = vmatprep.mubr.bf16.mxu1 %v17161_v48 }
 0x186   :  { %v13664_v30 = vpop.f32.mrf.mxu0  ;;  %v13774_v45 = vpop.f32.mrf.mxu1 }
 0x187   :  { %v3509_v63 = vadd.f32 %v13663_v27, %v17136_v31  ;;  %v13775_v21 = vadd.f32 %v13774_v45, %v13773_v37 }
 0x188   :  { %v13665_v26 = vpop.f32.mrf.mxu0  ;;  %v13776_v14 = vpop.f32.mrf.mxu1 }
 0x189   :  { %v17499_v13 = vadd.f32 %v13775_v21, %v3509_v63  ;;  %v13666_v42 = vadd.f32 %v13665_v26, %v13664_v30 }
 0x18a   :  { %v13667_v12 = vpop.f32.mrf.mxu0  ;;  %v13777_v29 = vpop.f32.mrf.mxu1  ;;  %3901 = vmatmul.mubr.bf16.gmra.mxu0 %v17154_v28 }
 0x18b   :  { %v3512_v24 = vadd.f32 %v13666_v42, %v17147_v39  ;;  %v13778_v23 = vadd.f32 %v13777_v29, %v13776_v14  ;;  %3908 = vmatprep.mubr.bf16.mxu0 %v17161_v48  ;;  %v17517_v39 = vld [vmem:[%s20170_s0 + $0xf0] ss:$8 sps:$4 sm:$0xff]  }
 0x18c   :  { %v13668_v31 = vpop.f32.mrf.mxu0  ;;  %v13779_v6 = vpop.f32.mrf.mxu1  ;;  %4062 = vmatmul.mubr.bf16.gmra.mxu1 %v17174_v1 }
 0x18d   :  { %v17510_v43 = vadd.f32 %v13778_v23, %v3512_v24  ;;  %v13669_v60 = vadd.f32 %v13668_v31, %v13667_v12  ;;  %4069 = vmatprep.mubr.bf16.mxu1 %v17504_v34 }
 0x18e   :  { %v13670_v44 = vpop.f32.mrf.mxu0  ;;  %v13780_v37 = vpop.f32.mrf.mxu1 }
 0x18f   :  { %v3517_v27 = vadd.f32 %v13669_v60, %v17156_v47  ;;  %v13781_v30 = vadd.f32 %v13780_v37, %v13779_v6 }
 0x190   :  { %v13671_v28 = vpop.f32.mrf.mxu0  ;;  %v13782_v45 = vpop.f32.mrf.mxu1 }
 0x191   :  { %v17519_v48 = vadd.f32 %v13781_v30, %v3517_v27  ;;  %v13672_v63 = vadd.f32 %v13671_v28, %v13670_v44 }
 0x192   :  { %v13673_v21 = vpop.f32.mrf.mxu0  ;;  %v13783_v26 = vpop.f32.mrf.mxu1  ;;  %3909 = vmatmul.mubr.bf16.gmra.mxu0 %v17174_v1 }
 0x193   :  { %v3520_v14 = vadd.f32 %v13672_v63, %v17167_v57  ;;  %v13784_v42 = vadd.f32 %v13783_v26, %v13782_v45  ;;  %3916 = vmatprep.mubr.bf16.mxu0 %v17504_v34 }
 0x194   :  { %v13674_v47 = vpop.f32.mrf.mxu0  ;;  %v13785_v12 = vpop.f32.mrf.mxu1  ;;  %4070 = vmatmul.mubr.bf16.gmra.mxu1 %v17517_v39 }
 0x195   :  { %v17525_v29 = vadd.f32 %v13784_v42, %v3520_v14  ;;  %v13675_v24 = vadd.f32 %v13674_v47, %v13673_v21  ;;  %4077 = vmatprep.mubr.bf16.mxu1 %v16480_v2 }
 0x196   :  { %v13676_v23 = vpop.f32.mrf.mxu0  ;;  %v13786_v31 = vpop.f32.mrf.mxu1 }
 0x197   :  { %v3525_v6 = vadd.f32 %v13675_v24, %v17176_v4  ;;  %v13787_v60 = vadd.f32 %v13786_v31, %v13785_v12  ;;  %v15800_v31 = vld [vmem:[%s20169_s1 + $0x470] sm:$0xff]  }
 0x198   :  { %v13677_v1 = vpop.f32.mrf.mxu0  ;;  %v13788_v44 = vpop.f32.mrf.mxu1 }
 0x199   :  { %v17529_v57 = vadd.f32 %v13787_v60, %v3525_v6  ;;  %v13678_v37 = vadd.f32 %v13677_v1, %v13676_v23 }
 0x19a   :  { %v13679_v27 = vpop.f32.mrf.mxu0  ;;  %v13789_v30 = vpop.f32.mrf.mxu1  ;;  %3917 = vmatmul.mubr.bf16.gmra.mxu0 %v17517_v39 }
 0x19b   :  { %v3528_v28 = vadd.f32 %v13678_v37, %v17184_v25  ;;  %v13790_v45 = vadd.f32 %v13789_v30, %v13788_v44  ;;  %4118 = vmatprep.mubr.bf16.mxu0 %v16480_v2  ;;  %v15799_v25 = vld [vmem:[%s20169_s1 + $0x438] sm:$0xff]  }
 0x19c   :  { %v13680_v63 = vpop.f32.mrf.mxu0  ;;  %v13791_v21 = vpop.f32.mrf.mxu1  ;;  %4078 = vmatmul.mubr.bf16.gmra.mxu1 %v16657_v33 }
 0x19d   :  { %v17535_v4 = vadd.f32 %v13790_v45, %v3528_v28  ;;  %v13681_v26 = vadd.f32 %v13680_v63, %v13679_v27  ;;  %4279 = vmatprep.mubr.bf16.mxu1 %v17317_v20  ;;  %v15801_v27 = vld [vmem:[%s20169_s1 + $0x430] sm:$0xff]   ;;  %v15802_v45 = vld [vmem:[%s20169_s1 + $0x468] sm:$0xff]  }
 0x19e   :  { %v13682_v14 = vpop.f32.mrf.mxu0  ;;  %v13792_v42 = vpop.f32.mrf.mxu1 }
 0x19f   :  { %v3533_v47 = vadd.f32 %v13681_v26, %v17196_v38  ;;  %v13793_v12 = vadd.f32 %v13792_v42, %v13791_v21  ;;  %v15803_v42 = vld [vmem:[%s20169_s1 + $0x428] sm:$0xff]  }
 0x1a0   :  { %v13683_v24 = vpop.f32.mrf.mxu0  ;;  %v13794_v23 = vpop.f32.mrf.mxu1 }
 0x1a1   :  { %v17545_v6 = vadd.f32 %v13793_v12, %v3533_v47  ;;  %v13684_v60 = vadd.f32 %v13683_v24, %v13682_v14 }
 0x1a2   :  { %v13685_v1 = vpop.f32.mrf.mxu0  ;;  %v13795_v44 = vpop.f32.mrf.mxu1  ;;  %4119 = vmatmul.mubr.bf16.vlgmr.msra.gmra.mxu0 %v16657_v33 }
 0x1a3   :  { %v3536_v38 = vadd.f32 %v13684_v60, %v17217_v54  ;;  %v13796_v37 = vadd.f32 %v13795_v44, %v13794_v23  ;;  %14294 = vmatpush3.bf16.msra.mxu0 %v15799_v25  ;;  %4126 = vmatprep.mubr.bf16.mxu0 %v17317_v20  ;;  %v15804_v25 = vld [vmem:[%s20169_s1 + $0x460] sm:$0xff]  }
 0x1a4   :  { %v13686_v30 = vpop.f32.mrf.mxu0  ;;  %v13797_v28 = vpop.f32.mrf.mxu1  ;;  %4280 = vmatmul.mubr.bf16.vlgmr.msra.gmra.mxu1 %v17344_v16  ;;  %14295 = vmatprep.subr.bf16.mxu0 %v15800_v31  ;;  %v15805_v44 = vld [vmem:[%s20169_s1 + $0x420] sm:$0xff]  }
 0x1a5   :  { %v17557_v63 = vadd.f32 %v13796_v37, %v3536_v38  ;;  %v13687_v54 = vadd.f32 %v13686_v30, %v13685_v1  ;;  %4287 = vmatprep.mubr.bf16.mxu1 %v17332_v62 }
 0x1a6   :  { %v13688_v21 = vpop.f32.mrf.mxu0  ;;  %v13798_v20 = vpop.f32.mrf.mxu1 }
 0x1a7   :  { %v3541_v26 = vadd.f32 %v13687_v54, %v17235_v9  ;;  %v13799_v14 = vadd.f32 %v13798_v20, %v13797_v28  ;;  %14296 = vmatpush3.bf16.msra.mxu0 %v15801_v27  ;;  %v15806_v27 = vld [vmem:[%s20169_s1 + $0x458] sm:$0xff]  }
 0x1a8   :  { %v13689_v47 = vpop.f32.mrf.mxu0  ;;  %v13800_v12 = vpop.f32.mrf.mxu1  ;;  %14297 = vmatprep.subr.bf16.mxu0 %v15802_v45  ;;  %v15807_v54 = vld [vmem:[%s20169_s1 + $0x418] sm:$0xff]  }
 0x1a9   :  { %v17567_v24 = vadd.f32 %v13799_v14, %v3541_v26  ;;  %v13690_v23 = vadd.f32 %v13689_v47, %v13688_v21  ;;  %v15808_v26 = vld [vmem:[%s20169_s1 + $0x450] sm:$0xff]  }
 0x1aa   :  { %v13691_v31 = vpop.f32.mrf.mxu0  ;;  %v13801_v60 = vpop.f32.mrf.mxu1  ;;  %4127 = vmatmul.mubr.bf16.gmra.mxu0 %v17344_v16 }
 0x1ab   :  { %v3544_v9 = vadd.f32 %v13690_v23, %v17253_v19  ;;  %v13802_v1 = vadd.f32 %v13801_v60, %v13800_v12  ;;  %4134 = vmatprep.mubr.bf16.mxu0 %v17332_v62  ;;  %14298 = vmatpush3.bf16.msra.mxu0 %v15803_v42  ;;  %v15809_v23 = vld [vmem:[%s20169_s1 + $0x410] sm:$0xff]  }
 0x1ac   :  { %v13692_v38 = vpop.f32.mrf.mxu0  ;;  %v13803_v37 = vpop.f32.mrf.mxu1  ;;  %4288 = vmatmul.mubr.bf16.gmra.mxu1 %v17352_v18  ;;  %14299 = vmatprep.subr.bf16.mxu0 %v15804_v25 }
 0x1ad   :  { %v17579_v16 = vadd.f32 %v13802_v1, %v3544_v9  ;;  %v13693_v19 = vadd.f32 %v13692_v38, %v13691_v31  ;;  %4295 = vmatprep.mubr.bf16.mxu1 %v17360_v40  ;;  %v15810_v9 = vld [vmem:[%s20169_s1 + $0x448] sm:$0xff]  }
 0x1ae   :  { %v13694_v62 = vpop.f32.mrf.mxu0  ;;  %v13804_v30 = vpop.f32.mrf.mxu1 }
 0x1af   :  { %v3549_v28 = vadd.f32 %v13693_v19, %v17271_v53  ;;  %v13805_v45 = vadd.f32 %v13804_v30, %v13803_v37  ;;  %14300 = vmatpush3.bf16.msra.mxu0 %v15805_v44  ;;  %v15811_v37 = vld [vmem:[%s20169_s1 + $0x408] sm:$0xff]  }
 0x1b0   :  { %v13695_v21 = vpop.f32.mrf.mxu0  ;;  %v13806_v20 = vpop.f32.mrf.mxu1  ;;  %14301 = vmatprep.subr.bf16.mxu0 %v15806_v27 }
 0x1b1   :  { %v17589_v14 = vadd.f32 %v13805_v45, %v3549_v28  ;;  %v13696_v42 = vadd.f32 %v13695_v21, %v13694_v62  ;;  %v15812_v62 = vld [vmem:[%s20169_s1 + $0x440] sm:$0xff]  }
 0x1b2   :  { %v13697_v47 = vpop.f32.mrf.mxu0  ;;  %v13807_v12 = vpop.f32.mrf.mxu1  ;;  %4135 = vmatmul.mubr.bf16.gmra.mxu0 %v17352_v18  ;;  %v15813_v21 = vld [vmem:[%s20169_s1 + $0x400] sm:$0xff]  }
 0x1b3   :  { %v3552_v53 = vadd.f32 %v13696_v42, %v17289_v11  ;;  %v13808_v25 = vadd.f32 %v13807_v12, %v13806_v20  ;;  %4142 = vmatprep.mubr.bf16.mxu0 %v17360_v40  ;;  %14302 = vmatpush3.bf16.msra.mxu0 %v15807_v54 }
 0x1b4   :  { %v13698_v31 = vpop.f32.mrf.mxu0  ;;  %v13809_v60 = vpop.f32.mrf.mxu1  ;;  %4296 = vmatmul.mubr.bf16.gmra.mxu1 %v17372_v0  ;;  %14303 = vmatprep.subr.bf16.mxu0 %v15808_v26 }
 0x1b5   :  { %v17601_v18 = vadd.f32 %v13808_v25, %v3552_v53  ;;  %v13699_v11 = vadd.f32 %v13698_v31, %v13697_v47  ;;  %4303 = vmatprep.mubr.bf16.mxu1 %v17380_v7 }
 0x1b6   :  { %v13700_v40 = vpop.f32.mrf.mxu0  ;;  %v13810_v1 = vpop.f32.mrf.mxu1 }
 0x1b7   :  { %v3557_v44 = vadd.f32 %v13699_v11, %v17305_v22  ;;  %v13811_v38 = vadd.f32 %v13810_v1, %v13809_v60  ;;  %14304 = vmatpush3.bf16.msra.mxu0 %v15809_v23 }
 0x1b8   :  { %v13701_v27 = vpop.f32.mrf.mxu0  ;;  %v13812_v19 = vpop.f32.mrf.mxu1  ;;  %14305 = vmatprep.subr.bf16.mxu0 %v15810_v9 }
 0x1b9   :  { %v17611_v30 = vadd.f32 %v13811_v38, %v3557_v44  ;;  %v13702_v7 = vadd.f32 %v13701_v27, %v13700_v40 }
 0x1ba   :  { %v13703_v28 = vpop.f32.mrf.mxu0  ;;  %v13813_v45 = vpop.f32.mrf.mxu1  ;;  %4143 = vmatmul.mubr.bf16.gmra.mxu0 %v17372_v0 }
 0x1bb   :  { %v3560_v22 = vadd.f32 %v13702_v7, %v17327_v59  ;;  %v13814_v54 = vadd.f32 %v13813_v45, %v13812_v19  ;;  %4150 = vmatprep.mubr.bf16.mxu0 %v16480_v2  ;;  %14306 = vmatpush3.bf16.msra.mxu0 %v15811_v37 }
 0x1bc   :  { %v13704_v20 = vpop.f32.mrf.mxu0  ;;  %v13815_v26 = vpop.f32.mrf.mxu1  ;;  %4304 = vmatmul.mubr.bf16.gmra.mxu1 %v17392_v51  ;;  %14307 = vmatprep.subr.bf16.mxu0 %v15812_v62 }
 0x1bd   :  { %v17620_v42 = vadd.f32 %v13814_v54, %v3560_v22  ;;  %v13705_v47 = vadd.f32 %v13704_v20, %v13703_v28  ;;  %4311 = vmatprep.mubr.bf16.mxu1 %v17406_v41 }
 0x1be   :  { %v13706_v0 = vpop.f32.mrf.mxu0  ;;  %v13816_v59 = vpop.f32.mrf.mxu1 }
 0x1bf   :  { %v3565_v12 = vadd.f32 %v13705_v47, %v17339_v8  ;;  %v13817_v53 = vadd.f32 %v13816_v59, %v13815_v26  ;;  %14308 = vmatpush3.bf16.msra.mxu0 %v15813_v21 }
 0x1c0   :  { %v13707_v25 = vpop.f32.mrf.mxu0  ;;  %v13818_v23 = vpop.f32.mrf.mxu1 }
 0x1c1   :  { %v17624_v31 = vadd.f32 %v13817_v53, %v3565_v12  ;;  %v13708_v60 = vadd.f32 %v13707_v25, %v13706_v0 }
 0x1c2   :  { %v13709_v9 = vpop.f32.mrf.mxu0  ;;  %v13819_v11 = vpop.f32.mrf.mxu1  ;;  %4151 = vmatmul.mubr.bf16.gmra.mxu0 %v16657_v33 }
 0x1c3   :  { %v3568_v51 = vadd.f32 %v13708_v60, %v17355_v35  ;;  %v13820_v40 = vadd.f32 %v13819_v11, %v13818_v23  ;;  %4158 = vmatprep.mubr.bf16.mxu0 %v17406_v41 }
 0x1c4   :  { %v13710_v1 = vpop.f32.mrf.mxu0  ;;  %v13821_v44 = vpop.f32.mrf.mxu1  ;;  %4312 = vmatmul.mubr.bf16.gmra.mxu1 %v17424_v17 }
 0x1c5   :  { %v17630_v8 = vadd.f32 %v13820_v40, %v3568_v51  ;;  %v13711_v38 = vadd.f32 %v13710_v1, %v13709_v9  ;;  %4319 = vmatprep.mubr.bf16.mxu1 %v17415_v46  ;;  %v20187_v9 = vld [vmem:[#allocation6_spill] sm:$0xff] }
 0x1c6   :  { %v13712_v37 = vpop.f32.mrf.mxu0  ;;  %v13822_v27 = vpop.f32.mrf.mxu1 }
 0x1c7   :  { %v3573_v19 = vadd.f32 %v13711_v38, %v17364_v50  ;;  %v13823_v62 = vadd.f32 %v13822_v27, %v13821_v44  ;;  %v20188_v27 = vld [vmem:[#allocation7_spill] sm:$0xff] }
 0x1c8   :  { %v13713_v7 = vpop.f32.mrf.mxu0  ;;  %v13824_v28 = vpop.f32.mrf.mxu1 }
 0x1c9   :  { %v17634_v35 = vadd.f32 %v13823_v62, %v3573_v19  ;;  %v13714_v45 = vadd.f32 %v13713_v7, %v13712_v37 }
 0x1ca   :  { %v13715_v41 = vpop.f32.mrf.mxu0  ;;  %v13825_v22 = vpop.f32.mrf.mxu1  ;;  %4159 = vmatmul.mubr.bf16.gmra.mxu0 %v17424_v17 }
 0x1cb   :  { %v3576_v54 = vadd.f32 %v13714_v45, %v17375_v5  ;;  %v13826_v21 = vadd.f32 %v13825_v22, %v13824_v28  ;;  %4166 = vmatprep.mubr.bf16.mxu0 %v17415_v46  ;;  %v20189_v22 = vld [vmem:[#allocation8_spill] sm:$0xff] }
 0x1cc   :  { %v13716_v20 = vpop.f32.mrf.mxu0  ;;  %v13827_v26 = vpop.f32.mrf.mxu1  ;;  %4320 = vmatmul.mubr.bf16.gmra.mxu1 %v17432_v56 }
 0x1cd   :  { %v17640_v50 = vadd.f32 %v13826_v21, %v3576_v54  ;;  %v13717_v47 = vadd.f32 %v13716_v20, %v13715_v41  ;;  %4327 = vmatprep.mubr.bf16.mxu1 %v17440_v55 }
 0x1ce   :  { %v13718_v0 = vpop.f32.mrf.mxu0  ;;  %v13828_v59 = vpop.f32.mrf.mxu1 }
 0x1cf   :  { %v3581_v12 = vadd.f32 %v13717_v47, %v17384_v32  ;;  %v13829_v53 = vadd.f32 %v13828_v59, %v13827_v26 }
 0x1d0   :  { %v13719_v17 = vpop.f32.mrf.mxu0  ;;  %v13830_v25 = vpop.f32.mrf.mxu1 }
 0x1d1   :  { %v17644_v5 = vadd.f32 %v13829_v53, %v3581_v12  ;;  %v13720_v23 = vadd.f32 %v13719_v17, %v13718_v0  ;;  %v16398_v0 = vld [vmem:[%s20170_s0 + $0xc4] ss:$8 sps:$4 sm:$0xff]  }
 0x1d2   :  { %v13721_v46 = vpop.f32.mrf.mxu0  ;;  %v13831_v60 = vpop.f32.mrf.mxu1  ;;  %4167 = vmatmul.mubr.bf16.gmra.mxu0 %v17432_v56 }
 0x1d3   :  { %v3584_v11 = vadd.f32 %v13720_v23, %v20187_v9  ;;  %v13832_v51 = vadd.f32 %v13831_v60, %v13830_v25  ;;  %4174 = vmatprep.mubr.bf16.mxu0 %v17440_v55  ;;  %v15815_v9 = vld [vmem:[%s20172_s3 + $0x38] sm:$0xff]  }
 0x1d4   :  { %v13722_v40 = vpop.f32.mrf.mxu0  ;;  %v13833_v1 = vpop.f32.mrf.mxu1  ;;  %4328 = vmatmul.mubr.bf16.gmra.mxu1 %v17452_v10 }
 0x1d5   :  { %v17650_v32 = vadd.f32 %v13832_v51, %v3584_v11  ;;  %v13723_v44 = vadd.f32 %v13722_v40, %v13721_v46  ;;  %4335 = vmatprep.mubr.bf16.mxu1 %v17460_v61  ;;  %v15814_v46 = vld [vmem:[%s20172_s3 + $0x78] sm:$0xff]   ;;  %v20191_v40 = vld [vmem:[#allocation10_spill] sm:$0xff] }
 0x1d6   :  { %v13724_v38 = vpop.f32.mrf.mxu0  ;;  %v13834_v37 = vpop.f32.mrf.mxu1  ;;  %14405 = vmatprep.subr.bf16.mxu1 %v15814_v46 }
 0x1d7   :  { %v3589_v19 = vadd.f32 %v13723_v44, %v20188_v27  ;;  %v13835_v62 = vadd.f32 %v13834_v37, %v13833_v1  ;;  %14406 = vmatpush3.bf16.msra.mxu1 %v15815_v9  ;;  %v16399_v27 = vld [vmem:[%s20170_s0 + $0xc0] ss:$8 sps:$4 sm:$0xff]  }
 0x1d8   :  { %v13725_v56 = vpop.f32.mrf.mxu0  ;;  %v13836_v7 = vpop.f32.mrf.mxu1 }
 0x1d9   :  { %v17654_v28 = vadd.f32 %v13835_v62, %v3589_v19  ;;  %v13726_v45 = vadd.f32 %v13725_v56, %v13724_v38  ;;  %v17684_v56 = vld [vmem:[%s20170_s0 + $0xd4] ss:$8 sps:$4 sm:$0xff]  }
 0x1da   :  { %v13727_v55 = vpop.f32.mrf.mxu0  ;;  %v13837_v41 = vpop.f32.mrf.mxu1  ;;  %4175 = vmatmul.mubr.bf16.gmra.mxu0 %v17452_v10  ;;  %v20190_v10 = vld [vmem:[#allocation9_spill] sm:$0xff] }
 0x1db   :  { %v3592_v54 = vadd.f32 %v13726_v45, %v20189_v22  ;;  %v13838_v21 = vadd.f32 %v13837_v41, %v13836_v7  ;;  %4182 = vmatprep.mubr.bf16.mxu0 %v16480_v2 }
 0x1dc   :  { %v13728_v61 = vpop.f32.mrf.mxu0  ;;  %v13839_v20 = vpop.f32.mrf.mxu1  ;;  %4336 = vmatmul.mubr.bf16.gmra.mxu1 %v17472_v36 }
 0x1dd   :  { %v17660_v26 = vadd.f32 %v13838_v21, %v3592_v54  ;;  %v13729_v47 = vadd.f32 %v13728_v61, %v13727_v55  ;;  %4343 = vmatprep.mubr.bf16.mxu1 %v16398_v0  ;;  %v20192_v55 = vld [vmem:[#allocation11_spill] sm:$0xff] }
 0x1de   :  { %v13730_v59 = vpop.f32.mrf.mxu0  ;;  %v13840_v12 = vpop.f32.mrf.mxu1 }
 0x1df   :  { %v3597_v53 = vadd.f32 %v13729_v47, %v20190_v10  ;;  %v13841_v17 = vadd.f32 %v13840_v12, %v13839_v20 }
 0x1e0   :  { %v13731_v25 = vpop.f32.mrf.mxu0  ;;  %v13842_v23 = vpop.f32.mrf.mxu1 }
 0x1e1   :  { %v17669_v36 = vadd.f32 %v13841_v17, %v3597_v53  ;;  %v13732_v60 = vadd.f32 %v13731_v25, %v13730_v59  ;;  %v20193_v59 = vld [vmem:[#allocation12_spill] sm:$0xff] }
 0x1e2   :  { %v13843_v11 = vpop.f32.mrf.mxu1  ;;  %v13861_v51 = vpop.f32.mrf.mxu0  ;;  %4183 = vmatmul.mubr.bf16.gmra.mxu0 %v16657_v33  ;;  %v17695_v25 = vld [vmem:[%s20170_s0 + $0xd0] ss:$8 sps:$4 sm:$0xff]  }
 0x1e3   :  { %v3600_v1 = vadd.f32 %v13732_v60, %v20191_v40  ;;  %v13844_v44 = vadd.f32 %v13843_v11, %v13842_v23  ;;  %4190 = vmatprep.mubr.bf16.mxu0 %v16398_v0  ;;  %v17703_v60 = vld [vmem:[%s20170_s0 + $0xe4] ss:$8 sps:$4 sm:$0xff]  }
 0x1e4   :  { %v13862_v38 = vpop.f32.mrf.mxu0  ;;  %v13973_v37 = vpop.f32.mrf.mxu1  ;;  %4344 = vmatmul.mubr.bf16.gmra.mxu1 %v16399_v27 }
 0x1e5   :  { %v17679_v19 = vadd.f32 %v13844_v44, %v3600_v1  ;;  %v13863_v62 = vadd.f32 %v13862_v38, %v13861_v51  ;;  %4351 = vmatprep.mubr.bf16.mxu1 %v17684_v56  ;;  %v20194_v51 = vld [vmem:[#allocation13_spill] sm:$0xff]  ;;  %v15816_v44 = vld [vmem:[%s20172_s3 + $0x70] sm:$0xff]  }
 0x1e6   :  { %v13864_v7 = vpop.f32.mrf.mxu0  ;;  %v13974_v45 = vpop.f32.mrf.mxu1  ;;  %14407 = vmatprep.subr.bf16.mxu1 %v15816_v44 }
 0x1e7   :  { %v3799_v41 = vadd.f32 %v13863_v62, %v20192_v55  ;;  %v13975_v22 = vadd.f32 %v13974_v45, %v13973_v37 }
 0x1e8   :  { %v13865_v54 = vpop.f32.mrf.mxu0  ;;  %v13976_v21 = vpop.f32.mrf.mxu1 }
 0x1e9   :  { %v17688_v61 = vadd.f32 %v13975_v22, %v3799_v41  ;;  %v13866_v20 = vadd.f32 %v13865_v54, %v13864_v7  ;;  %v15817_v7 = vld [vmem:[%s20172_s3 + $0x30] sm:$0xff]  }
 0x1ea   :  { %v13867_v47 = vpop.f32.mrf.mxu0  ;;  %v13977_v0 = vpop.f32.mrf.mxu1  ;;  %4191 = vmatmul.mubr.bf16.gmra.mxu0 %v16399_v27  ;;  %14408 = vmatpush3.bf16.msra.mxu1 %v15817_v7 }
 0x1eb   :  { %v3802_v12 = vadd.f32 %v13866_v20, %v20193_v59  ;;  %v13978_v10 = vadd.f32 %v13977_v0, %v13976_v21  ;;  %4198 = vmatprep.mubr.bf16.mxu0 %v17684_v56  ;;  %v17721_v20 = vld [vmem:[%s20170_s0 + $0xe0] ss:$8 sps:$4 sm:$0xff]  }
 0x1ec   :  { %v13868_v53 = vpop.f32.mrf.mxu0  ;;  %v13979_v17 = vpop.f32.mrf.mxu1  ;;  %4352 = vmatmul.mubr.bf16.gmra.mxu1 %v17695_v25 }
 0x1ed   :  { %v17698_v23 = vadd.f32 %v13978_v10, %v3802_v12  ;;  %v13869_v46 = vadd.f32 %v13868_v53, %v13867_v47  ;;  %4359 = vmatprep.mubr.bf16.mxu1 %v17703_v60 }
 0x1ee   :  { %v13870_v9 = vpop.f32.mrf.mxu0  ;;  %v13980_v11 = vpop.f32.mrf.mxu1 }
 0x1ef   :  { %v3807_v40 = vadd.f32 %v13869_v46, %v20194_v51  ;;  %v13981_v1 = vadd.f32 %v13980_v11, %v13979_v17 }
 0x1f0   :  { %v13871_v38 = vpop.f32.mrf.mxu0  ;;  %v13982_v37 = vpop.f32.mrf.mxu1 }
 0x1f1   :  { %v17710_v27 = vadd.f32 %v13981_v1, %v3807_v40  ;;  %v13872_v62 = vadd.f32 %v13871_v38, %v13870_v9 }
 0x1f2   :  { %v13873_v45 = vpop.f32.mrf.mxu0  ;;  %v13983_v55 = vpop.f32.mrf.mxu1  ;;  %4199 = vmatmul.mubr.bf16.gmra.mxu0 %v17695_v25 }
 0x1f3   :  { %v3810_v41 = vadd.f32 %v13872_v62, %v17475_v52  ;;  %v13984_v22 = vadd.f32 %v13983_v55, %v13982_v37  ;;  %4206 = vmatprep.mubr.bf16.mxu0 %v17703_v60 }
 0x1f4   :  { %v13874_v54 = vpop.f32.mrf.mxu0  ;;  %v13985_v21 = vpop.f32.mrf.mxu1  ;;  %4360 = vmatmul.mubr.bf16.gmra.mxu1 %v17721_v20 }
 0x1f5   :  { %v17724_v47 = vadd.f32 %v13984_v22, %v3810_v41  ;;  %v13875_v0 = vadd.f32 %v13874_v54, %v13873_v45  ;;  %4367 = vmatprep.mubr.bf16.mxu1 %v17504_v34 }
 0x1f6   :  { %v13876_v59 = vpop.f32.mrf.mxu0  ;;  %v13986_v52 = vpop.f32.mrf.mxu1 }
 0x1f7   :  { %v3815_v12 = vadd.f32 %v13875_v0, %v17479_v15  ;;  %v13987_v10 = vadd.f32 %v13986_v52, %v13985_v21 }
 0x1f8   :  { %v13877_v53 = vpop.f32.mrf.mxu0  ;;  %v13988_v17 = vpop.f32.mrf.mxu1 }
 0x1f9   :  { %v17728_v46 = vadd.f32 %v13987_v10, %v3815_v12  ;;  %v13878_v9 = vadd.f32 %v13877_v53, %v13876_v59 }
 0x1fa   :  { %v13879_v11 = vpop.f32.mrf.mxu0  ;;  %v13989_v51 = vpop.f32.mrf.mxu1  ;;  %4207 = vmatmul.mubr.bf16.gmra.mxu0 %v17721_v20 }
 0x1fb   :  { %v3818_v40 = vadd.f32 %v13878_v9, %v17485_v49  ;;  %v13990_v1 = vadd.f32 %v13989_v51, %v13988_v17  ;;  %4214 = vmatprep.mubr.bf16.mxu0 %v16480_v2  ;;  %v15818_v49 = vld [vmem:[%s20172_s3 + $0x68] sm:$0xff]  }
 0x1fc   :  { %v13880_v34 = vpop.f32.mrf.mxu0  ;;  %v13991_v44 = vpop.f32.mrf.mxu1  ;;  %4368 = vmatmul.mubr.bf16.gmra.mxu1 %v17517_v39  ;;  %14409 = vmatprep.subr.bf16.mxu1 %v15818_v49  ;;  %v15819_v39 = vld [vmem:[%s20172_s3 + $0x28] sm:$0xff]  }
 0x1fd   :  { %v17734_v15 = vadd.f32 %v13990_v1, %v3818_v40  ;;  %v13881_v38 = vadd.f32 %v13880_v34, %v13879_v11  ;;  %4375 = vmatprep.mubr.bf16.mxu1 %v16480_v2  ;;  %14410 = vmatpush3.bf16.msra.mxu1 %v15819_v39 }
 0x1fe   :  { %v13882_v37 = vpop.f32.mrf.mxu0  ;;  %v13992_v62 = vpop.f32.mrf.mxu1 }
 0x1ff   :  { %v3823_v7 = vadd.f32 %v13881_v38, %v17489_v58  ;;  %v13993_v45 = vadd.f32 %v13992_v62, %v13991_v44 }
 0x200   :  { %v13883_v55 = vpop.f32.mrf.mxu0  ;;  %v13994_v41 = vpop.f32.mrf.mxu1 }
 0x201   :  { %v17741_v22 = vadd.f32 %v13993_v45, %v3823_v7  ;;  %v13884_v54 = vadd.f32 %v13883_v55, %v13882_v37 }
 0x202   :  { %v13885_v21 = vpop.f32.mrf.mxu0  ;;  %v13995_v0 = vpop.f32.mrf.mxu1  ;;  %4215 = vmatmul.mubr.bf16.gmra.mxu0 %v16657_v33 }
 0x203   :  { %v3826_v58 = vadd.f32 %v13884_v54, %v17495_v3  ;;  %v13996_v59 = vadd.f32 %v13995_v0, %v13994_v41  ;;  %4222 = vmatprep.mubr.bf16.mxu0 %v16480_v2 }
 0x204   :  { %v13886_v52 = vpop.f32.mrf.mxu0  ;;  %v13997_v12 = vpop.f32.mrf.mxu1  ;;  %4376 = vmatmul.mubr.bf16.gmra.mxu1 %v16657_v33 }
 0x205   :  { %v17750_v10 = vadd.f32 %v13996_v59, %v3826_v58  ;;  %v13887_v53 = vadd.f32 %v13886_v52, %v13885_v21  ;;  %4383 = vmatprep.mubr.bf16.mxu1 %v16480_v2  ;;  %v15821_v52 = vld [vmem:[%s20172_s3 + $0x20] sm:$0xff]  }
 0x206   :  { %v13888_v17 = vpop.f32.mrf.mxu0  ;;  %v13998_v9 = vpop.f32.mrf.mxu1 }
 0x207   :  { %v3831_v11 = vadd.f32 %v13887_v53, %v17499_v13  ;;  %v13999_v51 = vadd.f32 %v13998_v9, %v13997_v12 }
 0x208   :  { %v13889_v40 = vpop.f32.mrf.mxu0  ;;  %v14000_v3 = vpop.f32.mrf.mxu1 }
 0x209   :  { %v17754_v1 = vadd.f32 %v13999_v51, %v3831_v11  ;;  %v13890_v34 = vadd.f32 %v13889_v40, %v13888_v17 }
 0x20a   :  { %v13891_v44 = vpop.f32.mrf.mxu0  ;;  %v14001_v38 = vpop.f32.mrf.mxu1  ;;  %4223 = vmatmul.mubr.bf16.gmra.mxu0 %v16657_v33 }
 0x20b   :  { %v3834_v37 = vadd.f32 %v13890_v34, %v17510_v43  ;;  %v14002_v62 = vadd.f32 %v14001_v38, %v14000_v3  ;;  %4230 = vmatprep.mubr.bf16.mxu0 %v16480_v2  ;;  %v15820_v43 = vld [vmem:[%s20172_s3 + $0x60] sm:$0xff]  }
 0x20c   :  { %v13892_v7 = vpop.f32.mrf.mxu0  ;;  %v14003_v45 = vpop.f32.mrf.mxu1  ;;  %4384 = vmatmul.mubr.bf16.gmra.mxu1 %v16657_v33  ;;  %14411 = vmatprep.subr.bf16.mxu1 %v15820_v43 }
 0x20d   :  { %v17760_v13 = vadd.f32 %v14002_v62, %v3834_v37  ;;  %v13893_v49 = vadd.f32 %v13892_v7, %v13891_v44  ;;  %4391 = vmatprep.mubr.bf16.mxu1 %v16480_v2  ;;  %14412 = vmatpush3.bf16.msra.mxu1 %v15821_v52 }
 0x20e   :  { %v13894_v55 = vpop.f32.mrf.mxu0  ;;  %v14004_v41 = vpop.f32.mrf.mxu1 }
 0x20f   :  { %v3839_v54 = vadd.f32 %v13893_v49, %v17519_v48  ;;  %v14005_v39 = vadd.f32 %v14004_v41, %v14003_v45 }
 0x210   :  { %v13895_v21 = vpop.f32.mrf.mxu0  ;;  %v14006_v0 = vpop.f32.mrf.mxu1 }
 0x211   :  { %v17767_v58 = vadd.f32 %v14005_v39, %v3839_v54  ;;  %v13896_v59 = vadd.f32 %v13895_v21, %v13894_v55  ;;  %v16404_v54 = vld [vmem:[%s20170_s0 + $0x54] ss:$8 sps:$4 sm:$0xff]  }
 0x212   :  { %v13897_v12 = vpop.f32.mrf.mxu0  ;;  %v14007_v53 = vpop.f32.mrf.mxu1  ;;  %4231 = vmatmul.mubr.bf16.gmra.mxu0 %v16657_v33 }
 0x213   :  { %v3842_v48 = vadd.f32 %v13896_v59, %v17525_v29  ;;  %v14008_v17 = vadd.f32 %v14007_v53, %v14006_v0  ;;  %4238 = vmatprep.mubr.bf16.mxu0 %v16480_v2 }
 0x214   :  { %v13898_v9 = vpop.f32.mrf.mxu0  ;;  %v14009_v11 = vpop.f32.mrf.mxu1  ;;  %4392 = vmatmul.mubr.bf16.gmra.mxu1 %v16657_v33 }
 0x215   :  { %v17776_v51 = vadd.f32 %v14008_v17, %v3842_v48  ;;  %v13899_v40 = vadd.f32 %v13898_v9, %v13897_v12  ;;  %4399 = vmatprep.mubr.bf16.mxu1 %v16480_v2 }
 0x216   :  { %v13900_v3 = vpop.f32.mrf.mxu0  ;;  %v14010_v34 = vpop.f32.mrf.mxu1 }
 0x217   :  { %v3847_v44 = vadd.f32 %v13899_v40, %v17529_v57  ;;  %v14011_v38 = vadd.f32 %v14010_v34, %v14009_v11  ;;  %v15823_v11 = vld [vmem:[%s20172_s3 + $0x18] sm:$0xff]  }
 0x218   :  { %v13901_v37 = vpop.f32.mrf.mxu0  ;;  %v14012_v29 = vpop.f32.mrf.mxu1 }
 0x219   :  { %v17780_v62 = vadd.f32 %v14011_v38, %v3847_v44  ;;  %v13902_v7 = vadd.f32 %v13901_v37, %v13900_v3  ;;  %v16406_v38 = vld [vmem:[%s20170_s0 + $0x64] ss:$8 sps:$4 sm:$0xff]  }
 0x21a   :  { %v13903_v45 = vpop.f32.mrf.mxu0  ;;  %v14013_v49 = vpop.f32.mrf.mxu1  ;;  %4239 = vmatmul.mubr.bf16.gmra.mxu0 %v16657_v33 }
 0x21b   :  { %v3850_v55 = vadd.f32 %v13902_v7, %v17535_v4  ;;  %v14014_v41 = vadd.f32 %v14013_v49, %v14012_v29  ;;  %4440 = vmatprep.mubr.bf16.mxu0 %v16404_v54  ;;  %v15822_v4 = vld [vmem:[%s20172_s3 + $0x58] sm:$0xff]  }
 0x21c   :  { %v13904_v39 = vpop.f32.mrf.mxu0  ;;  %v14015_v57 = vpop.f32.mrf.mxu1  ;;  %4400 = vmatmul.mubr.bf16.gmra.mxu1 %v16657_v33  ;;  %14413 = vmatprep.subr.bf16.mxu1 %v15822_v4 }
 0x21d   :  { %v17788_v43 = vadd.f32 %v14014_v41, %v3850_v55  ;;  %v13905_v21 = vadd.f32 %v13904_v39, %v13903_v45  ;;  %14414 = vmatpush3.bf16.msra.mxu1 %v15823_v11 }
 0x21e   :  { %v13906_v0 = vpop.f32.mrf.mxu0  ;;  %v14016_v59 = vpop.f32.mrf.mxu1 }
 0x21f   :  { %v3855_v52 = vadd.f32 %v13905_v21, %v17545_v6  ;;  %v14017_v12 = vadd.f32 %v14016_v59, %v14015_v57  ;;  %v16405_v6 = vld [vmem:[%s20170_s0 + $0x50] ss:$8 sps:$4 sm:$0xff]  }
 0x220   :  { %v13907_v53 = vpop.f32.mrf.mxu0  ;;  %v14018_v48 = vpop.f32.mrf.mxu1 }
 0x221   :  { %v17794_v17 = vadd.f32 %v14017_v12, %v3855_v52  ;;  %v13908_v9 = vadd.f32 %v13907_v53, %v13906_v0  ;;  %v16407_v52 = vld [vmem:[%s20170_s0 + $0x60] ss:$8 sps:$4 sm:$0xff]  }
 0x222   :  { %v13909_v40 = vpop.f32.mrf.mxu0  ;;  %v14019_v3 = vpop.f32.mrf.mxu1  ;;  %4441 = vmatmul.mubr.bf16.vlgmr.msra.gmra.mxu0 %v16405_v6 }
 0x223   :  { %v3858_v34 = vadd.f32 %v13908_v9, %v17557_v63  ;;  %v14020_v44 = vadd.f32 %v14019_v3, %v14018_v48  ;;  %4448 = vmatprep.mubr.bf16.mxu0 %v16406_v38 }
 0x224   :  { %v13910_v37 = vpop.f32.mrf.mxu0  ;;  %v14021_v29 = vpop.f32.mrf.mxu1 }
 0x225   :  { %v17806_v7 = vadd.f32 %v14020_v44, %v3858_v34  ;;  %v13911_v45 = vadd.f32 %v13910_v37, %v13909_v40 }
 0x226   :  { %v13912_v49 = vpop.f32.mrf.mxu0  ;;  %v14022_v55 = vpop.f32.mrf.mxu1 }
 0x227   :  { %v3863_v41 = vadd.f32 %v13911_v45, %v17567_v24  ;;  %v14023_v54 = vadd.f32 %v14022_v55, %v14021_v29  ;;  %v16408_v24 = vld [vmem:[%s20170_s0 + $0x74] ss:$8 sps:$4 sm:$0xff]  }
 0x228   :  { %v13913_v39 = vpop.f32.mrf.mxu0  ;;  %v14024_v57 = vpop.f32.mrf.mxu1  ;;  %v15825_v45 = vld [vmem:[%s20172_s3 + $0x10] sm:$0xff]  }
 0x229   :  { %v17809_v63 = vadd.f32 %v14023_v54, %v3863_v41  ;;  %v13914_v21 = vadd.f32 %v13913_v39, %v13912_v49 }
 0x22a   :  { %v13915_v0 = vpop.f32.mrf.mxu0  ;;  %v14025_v59 = vpop.f32.mrf.mxu1  ;;  %4449 = vmatmul.mubr.bf16.gmra.mxu0 %v16407_v52 }
 0x22b   :  { %v3866_v12 = vadd.f32 %v13914_v21, %v17579_v16  ;;  %v14026_v4 = vadd.f32 %v14025_v59, %v14024_v57  ;;  %4456 = vmatprep.mubr.bf16.mxu0 %v16408_v24  ;;  %v15824_v16 = vld [vmem:[%s20172_s3 + $0x50] sm:$0xff]  }
 0x22c   :  { %v13916_v53 = vpop.f32.mrf.mxu0  ;;  %v14027_v48 = vpop.f32.mrf.mxu1  ;;  %14415 = vmatprep.subr.bf16.mxu1 %v15824_v16 }
 0x22d   :  { %v17818_v9 = vadd.f32 %v14026_v4, %v3866_v12  ;;  %v13917_v11 = vadd.f32 %v13916_v53, %v13915_v0  ;;  %14416 = vmatpush3.bf16.msra.mxu1 %v15825_v45  ;;  %v15826_v12 = vld [vmem:[%s20172_s3 + $0xf8] sm:$0xff]  }
 0x22e   :  { %v13918_v40 = vpop.f32.mrf.mxu0  ;;  %v14028_v3 = vpop.f32.mrf.mxu1  ;;  %14517 = vmatprep.subr.bf16.mxu0 %v15826_v12 }
 0x22f   :  { %v3871_v6 = vadd.f32 %v13917_v11, %v17589_v14  ;;  %v14029_v34 = vadd.f32 %v14028_v3, %v14027_v48  ;;  %v16409_v14 = vld [vmem:[%s20170_s0 + $0x70] ss:$8 sps:$4 sm:$0xff]  }
 0x230   :  { %v13919_v44 = vpop.f32.mrf.mxu0  ;;  %v14030_v38 = vpop.f32.mrf.mxu1 }
 0x231   :  { %v17824_v37 = vadd.f32 %v14029_v34, %v3871_v6  ;;  %v13920_v29 = vadd.f32 %v13919_v44, %v13918_v40  ;;  %v16410_v44 = vld [vmem:[%s20170_s0 + $0x94] ss:$8 sps:$4 sm:$0xff]  }
 0x232   :  { %v13921_v49 = vpop.f32.mrf.mxu0  ;;  %v14031_v55 = vpop.f32.mrf.mxu1  ;;  %4457 = vmatmul.mubr.bf16.gmra.mxu0 %v16409_v14 }
 0x233   :  { %v3874_v41 = vadd.f32 %v13920_v29, %v17601_v18  ;;  %v14032_v54 = vadd.f32 %v14031_v55, %v14030_v38  ;;  %4464 = vmatprep.mubr.bf16.mxu0 %v16480_v2  ;;  %v15827_v18 = vld [vmem:[%s20172_s3 + $0xb8] sm:$0xff]   ;;  %v15831_v38 = vld [vmem:[%s20172_s3 + $0xb0] sm:$0xff]  }
 0x234   :  { %v13922_v39 = vpop.f32.mrf.mxu0  ;;  %v14033_v57 = vpop.f32.mrf.mxu1  ;;  %14518 = vmatpush3.bf16.msra.mxu0 %v15827_v18 }
 0x235   :  { %v17834_v21 = vadd.f32 %v14032_v54, %v3874_v41  ;;  %v13923_v0 = vadd.f32 %v13922_v39, %v13921_v49 }
 0x236   :  { %v13924_v59 = vpop.f32.mrf.mxu0  ;;  %v14034_v52 = vpop.f32.mrf.mxu1 }
 0x237   :  { %v3879_v4 = vadd.f32 %v13923_v0, %v17611_v30  ;;  %v14035_v24 = vadd.f32 %v14034_v52, %v14033_v57  ;;  %v15830_v30 = vld [vmem:[%s20172_s3 + $0xf0] sm:$0xff]   ;;  %v15828_v57 = vld [vmem:[%s20172_s3 + $0x48] sm:$0xff]  }
 0x238   :  { %v13925_v53 = vpop.f32.mrf.mxu0  ;;  %v14036_v48 = vpop.f32.mrf.mxu1  ;;  %14519 = vmatprep.subr.bf16.mxu0 %v15830_v30  ;;  %v15833_v0 = vld [vmem:[%s20172_s3 + $0xa8] sm:$0xff]   ;;  %14417 = vmatprep.subr.bf16.mxu1 %v15828_v57  ;;  %v15835_v30 = vld [vmem:[%s20172_s3 + $0xa0] sm:$0xff]  }
 0x239   :  { %v17843_v11 = vadd.f32 %v14035_v24, %v3879_v4  ;;  %v13926_v40 = vadd.f32 %v13925_v53, %v13924_v59  ;;  %14520 = vmatpush3.bf16.msra.mxu0 %v15831_v38  ;;  %v16411_v53 = vld [vmem:[%s20170_s0 + $0x90] ss:$8 sps:$4 sm:$0xff]  }
 0x23a   :  { %v13927_v3 = vpop.f32.mrf.mxu0  ;;  %v14037_v6 = vpop.f32.mrf.mxu1  ;;  %4465 = vmatmul.mubr.bf16.gmra.mxu0 %v16657_v33 }
 0x23b   :  { %v3882_v34 = vadd.f32 %v13926_v40, %v17620_v42  ;;  %v14038_v16 = vadd.f32 %v14037_v6, %v14036_v48  ;;  %4472 = vmatprep.mubr.bf16.mxu0 %v16410_v44  ;;  %v15832_v42 = vld [vmem:[%s20172_s3 + $0xe8] sm:$0xff]   ;;  %v15834_v48 = vld [vmem:[%s20172_s3 + $0xe0] sm:$0xff]  }
 0x23c   :  { %v13928_v29 = vpop.f32.mrf.mxu0  ;;  %v14039_v45 = vpop.f32.mrf.mxu1  ;;  %14521 = vmatprep.subr.bf16.mxu0 %v15832_v42  ;;  %v16412_v6 = vld [vmem:[%s20170_s0 + $0xa4] ss:$8 sps:$4 sm:$0xff]  }
 0x23d   :  { %v17856_v49 = vadd.f32 %v14038_v16, %v3882_v34  ;;  %v13929_v55 = vadd.f32 %v13928_v29, %v13927_v3  ;;  %14522 = vmatpush3.bf16.msra.mxu0 %v15833_v0 }
 0x23e   :  { %v13930_v14 = vpop.f32.mrf.mxu0  ;;  %v14040_v41 = vpop.f32.mrf.mxu1  ;;  %14523 = vmatprep.subr.bf16.mxu0 %v15834_v48 }
 0x23f   :  { %v3887_v54 = vadd.f32 %v13929_v55, %v17624_v31  ;;  %v14041_v39 = vadd.f32 %v14040_v41, %v14039_v45  ;;  %v15829_v31 = vld [vmem:[%s20172_s3 + $0x8] sm:$0xff]   ;;  %v15836_v45 = vld [vmem:[%s20172_s3 + $0xd8] sm:$0xff]  }
 0x240   :  { %v13931_v59 = vpop.f32.mrf.mxu0  ;;  %v14042_v52 = vpop.f32.mrf.mxu1  ;;  %14418 = vmatpush3.bf16.msra.mxu1 %v15829_v31  ;;  %v15837_v41 = vld [vmem:[%s20172_s3 + $0x98] sm:$0xff]  }
 0x241   :  { %v17868_v12 = vadd.f32 %v14041_v39, %v3887_v54  ;;  %v13932_v4 = vadd.f32 %v13931_v59, %v13930_v14  ;;  %14524 = vmatpush3.bf16.msra.mxu0 %v15835_v30 }
 0x242   :  { %v13933_v24 = vpop.f32.mrf.mxu0  ;;  %v14043_v18 = vpop.f32.mrf.mxu1  ;;  %4473 = vmatmul.mubr.bf16.gmra.mxu0 %v16411_v53  ;;  %14525 = vmatprep.subr.bf16.mxu0 %v15836_v45 }
 0x243   :  { %v3890_v40 = vadd.f32 %v13932_v4, %v17630_v8  ;;  %v14044_v3 = vadd.f32 %v14043_v18, %v14042_v52  ;;  %4480 = vmatprep.mubr.bf16.mxu0 %v16412_v6  ;;  %v16413_v52 = vld [vmem:[%s20170_s0 + $0xa0] ss:$8 sps:$4 sm:$0xff]   ;;  %v15841_v18 = vld [vmem:[%s20172_s3 + $0x90] sm:$0xff]  }
 0x244   :  { %v13934_v34 = vpop.f32.mrf.mxu0  ;;  %v14045_v16 = vpop.f32.mrf.mxu1 }
 0x245   :  { %v17886_v44 = vadd.f32 %v14044_v3, %v3890_v40  ;;  %v13935_v38 = vadd.f32 %v13934_v34, %v13933_v24  ;;  %14526 = vmatpush3.bf16.msra.mxu0 %v15837_v41  ;;  %v16414_v24 = vld [vmem:[%s20170_s0 + $0xb4] ss:$8 sps:$4 sm:$0xff]  }
 0x246   :  { %v13936_v29 = vpop.f32.mrf.mxu0  ;;  %v14046_v8 = vpop.f32.mrf.mxu1 }
 0x247   :  { %v3895_v55 = vadd.f32 %v13935_v38, %v17634_v35  ;;  %v14047_v14 = vadd.f32 %v14046_v8, %v14045_v16  ;;  %v15840_v35 = vld [vmem:[%s20172_s3 + $0xd0] sm:$0xff]   ;;  %v15838_v38 = vld [vmem:[%s20172_s3 + $0x40] sm:$0xff]  }
 0x248   :  { %v13937_v42 = vpop.f32.mrf.mxu0  ;;  %v14048_v54 = vpop.f32.mrf.mxu1  ;;  %14527 = vmatprep.subr.bf16.mxu0 %v15840_v35  ;;  %14419 = vmatprep.subr.bf16.mxu1 %v15838_v38  ;;  %v15846_v35 = vld [vmem:[%s20172_s3 + $0x80] sm:$0xff]  }
 0x249   :  { %v17895_v39 = vadd.f32 %v14047_v14, %v3895_v55  ;;  %v13938_v57 = vadd.f32 %v13937_v42, %v13936_v29  ;;  %14528 = vmatpush3.bf16.msra.mxu0 %v15841_v18  ;;  %v15843_v29 = vld [vmem:[%s20172_s3 + $0x88] sm:$0xff]  }
 0x24a   :  { %v13939_v0 = vpop.f32.mrf.mxu0  ;;  %v14049_v59 = vpop.f32.mrf.mxu1  ;;  %4481 = vmatmul.mubr.bf16.gmra.mxu0 %v16413_v52  ;;  %v15845_v52 = vld [vmem:[#allocation3 + $0x8] sm:$0xff]  }
 0x24b   :  { %v3898_v4 = vadd.f32 %v13938_v57, %v17640_v50  ;;  %v14050_v31 = vadd.f32 %v14049_v59, %v14048_v54  ;;  %4488 = vmatprep.mubr.bf16.mxu0 %v16414_v24  ;;  %v15842_v50 = vld [vmem:[%s20172_s3 + $0xc8] sm:$0xff]   ;;  %v16415_v54 = vld [vmem:[%s20170_s0 + $0xb0] ss:$8 sps:$4 sm:$0xff]   ;;  %v15844_v57 = vld [vmem:[%s20172_s3 + $0xc0] sm:$0xff]   ;;  %6599 = vmatprep.mubr.bf16.mxu1 %v15845_v52 }
 0x24c   :  { %v13940_v53 = vpop.f32.mrf.mxu0  ;;  %v14051_v48 = vpop.f32.mrf.mxu1  ;;  %14529 = vmatprep.subr.bf16.mxu0 %v15842_v50  ;;  %v15847_v24 = vld [vmem:[#allocation3] sm:$0xff]  }
 0x24d   :  { %v17910_v40 = vadd.f32 %v14050_v31, %v3898_v4  ;;  %v13941_v3 = vadd.f32 %v13940_v53, %v13939_v0  ;;  %14530 = vmatpush3.bf16.msra.mxu0 %v15843_v29 }
 0x24e   :  { %v13942_v6 = vpop.f32.mrf.mxu0  ;;  %v14052_v30 = vpop.f32.mrf.mxu1  ;;  %14531 = vmatprep.subr.bf16.mxu0 %v15844_v57 }
 0x24f   :  { %v3903_v34 = vadd.f32 %v13941_v3, %v17644_v5  ;;  %v14053_v16 = vadd.f32 %v14052_v30, %v14051_v48  ;;  %v15839_v5 = vld [vmem:[%s20172_s3] sm:$0xff]  }
 0x250   :  { %v13943_v8 = vpop.f32.mrf.mxu0  ;;  %v14054_v45 = vpop.f32.mrf.mxu1  ;;  %14420 = vmatpush3.bf16.msra.mxu1 %v15839_v5 }
 0x251   :  { %v17922_v55 = vadd.f32 %v14053_v16, %v3903_v34  ;;  %v13944_v14 = vadd.f32 %v13943_v8, %v13942_v6  ;;  %14532 = vmatpush3.bf16.msra.mxu0 %v15846_v35 }
 0x252   :  { %v13945_v41 = vpop.f32.mrf.mxu0  ;;  %v14055_v42 = vpop.f32.mrf.mxu1  ;;  %4489 = vmatmul.mubr.bf16.gmra.mxu0 %v16415_v54 }
 0x253   :  { %v3906_v0 = vadd.f32 %v13944_v14, %v17650_v32  ;;  %v14056_v59 = vadd.f32 %v14055_v42, %v14054_v45  ;;  %4496 = vmatprep.mubr.bf16.mxu0 %v16480_v2  ;;  %6600 = vmatmul.mubr.bf16.vlgmr.msra.gmra.mxu1 %v15847_v24  ;;  %v15852_v14 = vld [vmem:[#allocation3 + $0x10] sm:$0xff]   ;;  %v15853_v42 = vld [vmem:[#allocation3 + $0x8] sm:$0xff]   ;;  %v15851_v24 = vld [vmem:[%s20172_s3 + $0x138] sm:$0xff]  }
 0x254   :  { %v13946_v4 = vpop.f32.mrf.mxu0  ;;  %v14057_v31 = vpop.f32.mrf.mxu1  ;;  %6607 = vmatprep.mubr.bf16.mxu1 %v15852_v14 }
 0x255   :  { %v17938_v18 = vadd.f32 %v14056_v59, %v3906_v0  ;;  %v13947_v53 = vadd.f32 %v13946_v4, %v13945_v41 }
 0x256   :  { %v13948_v48 = vpop.f32.mrf.mxu0  ;;  %v14058_v32 = vpop.f32.mrf.mxu1 }
 0x257   :  { %v3911_v3 = vadd.f32 %v13947_v53, %v17654_v28  ;;  %v14059_v6 = vadd.f32 %v14058_v32, %v14057_v31 }
 0x258   :  { %v13949_v30 = vpop.f32.mrf.mxu0  ;;  %v14060_v50 = vpop.f32.mrf.mxu1 }
 0x259   :  { %v17941_v34 = vadd.f32 %v14059_v6, %v3911_v3  ;;  %v13950_v16 = vadd.f32 %v13949_v30, %v13948_v48  ;;  %v15854_v3 = vld [vmem:[#allocation3 + $0x18] sm:$0xff]  }
 0x25a   :  { %v13951_v38 = vpop.f32.mrf.mxu0  ;;  %v14061_v29 = vpop.f32.mrf.mxu1  ;;  %4497 = vmatmul.mubr.bf16.gmra.mxu0 %v16657_v33 }
 0x25b   :  { %v3914_v8 = vadd.f32 %v13950_v16, %v17660_v26  ;;  %v14062_v45 = vadd.f32 %v14061_v29, %v14060_v50  ;;  %4504 = vmatprep.mubr.bf16.mxu0 %v17684_v56  ;;  %6608 = vmatmul.mubr.bf16.gmra.mxu1 %v15853_v42  ;;  %v15850_v26 = vld [vmem:[%s20172_s3 + $0x178] sm:$0xff]   ;;  %v15855_v50 = vld [vmem:[#allocation3 + $0x10] sm:$0xff]  }
 0x25c   :  { %v13952_v5 = vpop.f32.mrf.mxu0  ;;  %v14063_v41 = vpop.f32.mrf.mxu1  ;;  %14629 = vmatprep.subr.bf16.mxu1 %v15850_v26  ;;  %6615 = vmatprep.mubr.bf16.mxu1 %v15854_v3  ;;  %v16416_v42 = vld [vmem:[%s20170_s0 + $0xf4] ss:$8 sps:$4 sm:$0xff]  }
 0x25d   :  { %v17946_v28 = vadd.f32 %v14062_v45, %v3914_v8  ;;  %v13953_v54 = vadd.f32 %v13952_v5, %v13951_v38  ;;  %14630 = vmatpush3.bf16.msra.mxu1 %v15851_v24 }
 0x25e   :  { %v13954_v57 = vpop.f32.mrf.mxu0  ;;  %v14064_v0 = vpop.f32.mrf.mxu1 }
 0x25f   :  { %v3919_v59 = vadd.f32 %v13953_v54, %v17669_v36  ;;  %v14065_v52 = vadd.f32 %v14064_v0, %v14063_v41  ;;  %v15858_v54 = vld [vmem:[#allocation3 + $0x20] sm:$0xff]   ;;  %v15859_v0 = vld [vmem:[#allocation3 + $0x18] sm:$0xff]  }
 0x260   :  { %v13955_v35 = vpop.f32.mrf.mxu0  ;;  %v14066_v56 = vpop.f32.mrf.mxu1 }
 0x261   :  { %v17952_v4 = vadd.f32 %v14065_v52, %v3919_v59  ;;  %v13956_v31 = vadd.f32 %v13955_v35, %v13954_v57 }
 0x262   :  { %v14067_v53 = vpop.f32.mrf.mxu1  ;;  %v14085_v48 = vpop.f32.mrf.mxu0  ;;  %4505 = vmatmul.mubr.bf16.gmra.mxu0 %v17695_v25 }
 0x263   :  { %v3922_v36 = vadd.f32 %v13956_v31, %v17679_v19  ;;  %v14068_v32 = vadd.f32 %v14067_v53, %v14066_v56  ;;  %4512 = vmatprep.mubr.bf16.mxu0 %v17703_v60  ;;  %6616 = vmatmul.mubr.bf16.gmra.mxu1 %v15855_v50  ;;  %v16417_v53 = vld [vmem:[%s20170_s0 + $0xf0] ss:$8 sps:$4 sm:$0xff]  }
 0x264   :  { %v14086_v6 = vpop.f32.mrf.mxu0  ;;  %v17960_v30 = vpop.f32.mrf.mxu1  ;;  %6623 = vmatprep.mubr.bf16.mxu1 %v15858_v54 }
 0x265   :  { %v17962_v16 = vadd.f32 %v14068_v32, %v3922_v36  ;;  %v14087_v38 = vadd.f32 %v14086_v6, %v14085_v48  ;;  %v15857_v36 = vld [vmem:[%s20172_s3 + $0x130] sm:$0xff]  }
 0x266   :  { %v14088_v29 = vpop.f32.mrf.mxu0  ;;  %v17964_v8 = vpop.f32.mrf.mxu1 }
 0x267   :  { %v17967_v25 = vadd.f32 %v14087_v38, %v17688_v61 }
 0x268   :  { %v14089_v19 = vpop.f32.mrf.mxu0  ;;  %v17969_v45 = vpop.f32.mrf.mxu1 }
 0x269   :  { %v14090_v60 = vadd.f32 %v14089_v19, %v14088_v29 }
 0x26a   :  { %v14091_v14 = vpop.f32.mrf.mxu0  ;;  %v17971_v5 = vpop.f32.mrf.mxu1  ;;  %4513 = vmatmul.mubr.bf16.gmra.mxu0 %v17721_v20 }
 0x26b   :  { %v17975_v41 = vadd.f32 %v14090_v60, %v17698_v23  ;;  %4520 = vmatprep.mubr.bf16.mxu0 %v16416_v42  ;;  %6624 = vmatmul.mubr.bf16.gmra.mxu1 %v15859_v0 }
 0x26c   :  { %v14092_v61 = vpop.f32.mrf.mxu0  ;;  %v17980_v57 = vpop.f32.mrf.mxu1 }
 0x26d   :  { %v14093_v59 = vadd.f32 %v14092_v61, %v14091_v14 }
 0x26e   :  { %v14094_v52 = vpop.f32.mrf.mxu0  ;;  %v17982_v26 = vpop.f32.mrf.mxu1 }
 0x26f   :  { %v17985_v20 = vadd.f32 %v14093_v59, %v17710_v27  ;;  %v15856_v27 = vld [vmem:[%s20172_s3 + $0x170] sm:$0xff]  }
 0x270   :  { %v14095_v23 = vpop.f32.mrf.mxu0  ;;  %v17987_v35 = vpop.f32.mrf.mxu1  ;;  %14631 = vmatprep.subr.bf16.mxu1 %v15856_v27 }
 0x271   :  { %v14096_v56 = vadd.f32 %v14095_v23, %v14094_v52  ;;  %14632 = vmatpush3.bf16.msra.mxu1 %v15857_v36 }
 0x272   :  { %v14097_v31 = vpop.f32.mrf.mxu0  ;;  %v17989_v24 = vpop.f32.mrf.mxu1  ;;  %4521 = vmatmul.mubr.bf16.gmra.mxu0 %v16417_v53 }
 0x273   :  { %v17995_v48 = vadd.f32 %v14096_v56, %v17724_v47  ;;  %4528 = vmatprep.mubr.bf16.mxu0 %v16480_v2 }
 0x274   :  { %v14098_v32 = vpop.f32.mrf.mxu0  ;;  %v18004_v3 = vpop.f32.mrf.mxu1 }
 0x275   :  { %v14099_v6 = vadd.f32 %v14098_v32, %v14097_v31  ;;  %v15864_v32 = vld [vmem:[%s20172_s3 + $0x168] sm:$0xff]  }
 0x276   :  { %v14100_v50 = vpop.f32.mrf.mxu0  ;;  %v18006_v38 = vpop.f32.mrf.mxu1  ;;  %14633 = vmatprep.subr.bf16.mxu1 %v15864_v32 }
 0x277   :  { %v18009_v47 = vadd.f32 %v14099_v6, %v17728_v46 }
 0x278   :  { %v14101_v29 = vpop.f32.mrf.mxu0  ;;  %v18011_v19 = vpop.f32.mrf.mxu1 }
 0x279   :  { %v14102_v60 = vadd.f32 %v14101_v29, %v14100_v50 }
 0x27a   :  { %v14103_v14 = vpop.f32.mrf.mxu0  ;;  %v18013_v42 = vpop.f32.mrf.mxu1  ;;  %4529 = vmatmul.mubr.bf16.gmra.mxu0 %v16657_v33 }
 0x27b   :  { %v18017_v54 = vadd.f32 %v14102_v60, %v17734_v15  ;;  %4536 = vmatprep.mubr.bf16.mxu0 %v16480_v2 }
 0x27c   :  { %v14104_v61 = vpop.f32.mrf.mxu0  ;;  %v18020_v0 = vpop.f32.mrf.mxu1 }
 0x27d   :  { %v14105_v59 = vadd.f32 %v14104_v61, %v14103_v14 }
 0x27e   :  { %v14106_v46 = vpop.f32.mrf.mxu0  ;;  %v18022_v52 = vpop.f32.mrf.mxu1 }
 0x27f   :  { %v18025_v23 = vadd.f32 %v14105_v59, %v17741_v22  ;;  %v15865_v22 = vld [vmem:[%s20172_s3 + $0x128] sm:$0xff]  }
 0x280   :  { %v14107_v56 = vpop.f32.mrf.mxu0  ;;  %v18027_v31 = vpop.f32.mrf.mxu1  ;;  %14634 = vmatpush3.bf16.msra.mxu1 %v15865_v22 }
 0x281   :  { %v14108_v53 = vadd.f32 %v14107_v56, %v14106_v46 }
 0x282   :  { %v14109_v27 = vpop.f32.mrf.mxu0  ;;  %v18029_v36 = vpop.f32.mrf.mxu1  ;;  %4537 = vmatmul.mubr.bf16.gmra.mxu0 %v16657_v33 }
 0x283   :  { %v18033_v15 = vadd.f32 %v14108_v53, %v17750_v10  ;;  %4544 = vmatprep.mubr.bf16.mxu0 %v16480_v2 }
 0x284   :  { %v14110_v6 = vpop.f32.mrf.mxu0  ;;  %v18042_v50 = vpop.f32.mrf.mxu1 }
 0x285   :  { %20195 = vst [vmem:[#allocation6_spill] sm:$0xff] %v18033_v15  ;;  %v14111_v29 = vadd.f32 %v14110_v6, %v14109_v27 }
 0x286   :  { %v14112_v60 = vpop.f32.mrf.mxu0  ;;  %v18044_v14 = vpop.f32.mrf.mxu1 }
 0x287   :  { %v18047_v10 = vadd.f32 %v14111_v29, %v17754_v1 }
 0x288   :  { %v14113_v61 = vpop.f32.mrf.mxu0  ;;  %v18049_v59 = vpop.f32.mrf.mxu1 }
 0x289   :  { %20196 = vst [vmem:[#allocation7_spill] sm:$0xff] %v18047_v10  ;;  %20197 = vst [vmem:[#allocation8_spill] sm:$0xff] %v18049_v59  ;;  %v14114_v46 = vadd.f32 %v14113_v61, %v14112_v60 }
 0x28a   :  { %v14115_v56 = vpop.f32.mrf.mxu0  ;;  %v18051_v53 = vpop.f32.mrf.mxu1  ;;  %4545 = vmatmul.mubr.bf16.gmra.mxu0 %v16657_v33 }
 0x28b   :  { %20198 = vst [vmem:[#allocation9_spill] sm:$0xff] %v18051_v53  ;;  %v18055_v15 = vadd.f32 %v14114_v46, %v17760_v13  ;;  %4552 = vmatprep.mubr.bf16.mxu0 %v16480_v2  ;;  %v15874_v46 = vld [vmem:[%s20172_s3 + $0x160] sm:$0xff]  }
 0x28c   :  { %v14116_v27 = vpop.f32.mrf.mxu0  ;;  %v18058_v32 = vpop.f32.mrf.mxu1  ;;  %14635 = vmatprep.subr.bf16.mxu1 %v15874_v46 }
 0x28d   :  { %v14117_v22 = vadd.f32 %v14116_v27, %v14115_v56 }
 0x28e   :  { %v14118_v1 = vpop.f32.mrf.mxu0  ;;  %v18060_v6 = vpop.f32.mrf.mxu1 }
 0x28f   :  { %v18063_v29 = vadd.f32 %v14117_v22, %v17767_v58  ;;  %v15875_v58 = vld [vmem:[%s20172_s3 + $0x120] sm:$0xff]  }
 0x290   :  { %v14119_v60 = vpop.f32.mrf.mxu0  ;;  %v18065_v61 = vpop.f32.mrf.mxu1  ;;  %14636 = vmatpush3.bf16.msra.mxu1 %v15875_v58 }
 0x291   :  { %20199 = vst [vmem:[#allocation10_spill] sm:$0xff] %v18063_v29  ;;  %20200 = vst [vmem:[#allocation11_spill] sm:$0xff] %v18065_v61  ;;  %v14120_v53 = vadd.f32 %v14119_v60, %v14118_v1 }
 0x292   :  { %v14121_v59 = vpop.f32.mrf.mxu0  ;;  %v18067_v10 = vpop.f32.mrf.mxu1  ;;  %4553 = vmatmul.mubr.bf16.gmra.mxu0 %v16657_v33 }
 0x293   :  { %20201 = vst [vmem:[#allocation12_spill] sm:$0xff] %v18067_v10  ;;  %v18071_v13 = vadd.f32 %v14120_v53, %v17776_v51  ;;  %4560 = vmatprep.mubr.bf16.mxu0 %v16480_v2  ;;  %v15848_v2 = vld [vmem:[#allocation3 + $0x30] sm:$0xff]  }
 0x294   :  { %v14122_v56 = vpop.f32.mrf.mxu0  ;;  %v18080_v27 = vpop.f32.mrf.mxu1 }
 0x295   :  { %20202 = vst [vmem:[#allocation13_spill] sm:$0xff] %v18071_v13  ;;  %v14123_v22 = vadd.f32 %v14122_v56, %v14121_v59 }
 0x296   :  { %v14124_v1 = vpop.f32.mrf.mxu0  ;;  %v18082_v60 = vpop.f32.mrf.mxu1 }
 0x297   :  { %20203 = vst [vmem:[#allocation14_spill] sm:$0xff] %v18082_v60  ;;  %v18085_v51 = vadd.f32 %v14123_v22, %v17780_v62 }
 0x298   :  { %v14125_v53 = vpop.f32.mrf.mxu0  ;;  %v18087_v13 = vpop.f32.mrf.mxu1 }
 0x299   :  { %20204 = vst [vmem:[#allocation15_spill] sm:$0xff] %v18085_v51  ;;  %20205 = vst [vmem:[#allocation16_spill] sm:$0xff] %v18087_v13  ;;  %v14126_v10 = vadd.f32 %v14125_v53, %v14124_v1  ;;  %v15849_v51 = vld [vmem:[#allocation3 + $0x10] sm:$0xff]  }
 0x29a   :  { %v14127_v61 = vpop.f32.mrf.mxu0  ;;  %v18089_v29 = vpop.f32.mrf.mxu1  ;;  %4561 = vmatmul.mubr.bf16.gmra.mxu0 %v16657_v33 }
 0x29b   :  { %20206 = vst [vmem:[#allocation17_spill] sm:$0xff] %v18089_v29  ;;  %v18093_v59 = vadd.f32 %v14126_v10, %v17788_v43  ;;  %6760 = vmatprep.mubr.bf16.mxu0 %v15848_v2  ;;  %v15884_v10 = vld [vmem:[%s20172_s3 + $0x158] sm:$0xff]  }
 0x29c   :  { %v14128_v46 = vpop.f32.mrf.mxu0  ;;  %v18095_v56 = vpop.f32.mrf.mxu1  ;;  %14637 = vmatprep.subr.bf16.mxu1 %v15884_v10 }
 0x29d   :  { %v14129_v58 = vadd.f32 %v14128_v46, %v14127_v61 }
 0x29e   :  { %v14130_v62 = vpop.f32.mrf.mxu0  ;;  %v18097_v22 = vpop.f32.mrf.mxu1 }
 0x29f   :  { %v18100_v13 = vadd.f32 %v14129_v58, %v17794_v17  ;;  %v15885_v17 = vld [vmem:[%s20172_s3 + $0x118] sm:$0xff]  }
 0x2a0   :  { %v14131_v1 = vpop.f32.mrf.mxu0  ;;  %v18102_v53 = vpop.f32.mrf.mxu1  ;;  %14638 = vmatpush3.bf16.msra.mxu1 %v15885_v17 }
 0x2a1   :  { %20207 = vst [vmem:[#allocation18_spill] sm:$0xff] %v18102_v53  ;;  %v14132_v29 = vadd.f32 %v14131_v1, %v14130_v62 }
 0x2a2   :  { %v14133_v33 = vpop.f32.mrf.mxu0  ;;  %v18104_v60 = vpop.f32.mrf.mxu1  ;;  %6761 = vmatmul.mubr.bf16.vlgmr.msra.gmra.mxu0 %v15849_v51 }
 0x2a3   :  { %20208 = vst [vmem:[#allocation19_spill] sm:$0xff] %v18104_v60  ;;  %v18107_v43 = vadd.f32 %v14132_v29, %v17806_v7 }
 0x2a4   :  { %v14134_v61 = vpop.f32.mrf.mxu0  ;;  %v18115_v2 = vpop.f32.mrf.mxu1 }
 0x2a5   :  { %20209 = vst [vmem:[#allocation20_spill] sm:$0xff] %v18107_v43  ;;  %20210 = vst [vmem:[#allocation21_spill] sm:$0xff] %v18115_v2  ;;  %v14135_v46 = vadd.f32 %v14134_v61, %v14133_v33 }
 0x2a6   :  { %v14136_v58 = vpop.f32.mrf.mxu0  ;;  %v18117_v62 = vpop.f32.mrf.mxu1 }
 0x2a7   :  { %20211 = vst [vmem:[#allocation22_spill] sm:$0xff] %v18117_v62  ;;  %v18120_v7 = vadd.f32 %v14135_v46, %v17809_v63 }
 0x2a8   :  { %v14137_v29 = vpop.f32.mrf.mxu0  ;;  %v18122_v51 = vpop.f32.mrf.mxu1 }
 0x2a9   :  { %20212 = vst [vmem:[#allocation23_spill] sm:$0xff] %v18122_v51  ;;  %v14138_v1 = vadd.f32 %v14137_v29, %v14136_v58 }
 0x2aa   :  { %v14139_v43 = vpop.f32.mrf.mxu0  ;;  %v18124_v60 = vpop.f32.mrf.mxu1 }
 0x2ab   :  { %v18127_v53 = vadd.f32 %v14138_v1, %v17818_v9  ;;  %v15894_v9 = vld [vmem:[%s20172_s3 + $0x150] sm:$0xff]  }
 0x2ac   :  { %v14140_v2 = vpop.f32.mrf.mxu0  ;;  %v18129_v33 = vpop.f32.mrf.mxu1  ;;  %14639 = vmatprep.subr.bf16.mxu1 %v15894_v9 }
 0x2ad   :  { %20213 = vst [vmem:[#allocation24_spill] sm:$0xff] %v18127_v53  ;;  %v14141_v10 = vadd.f32 %v14140_v2, %v14139_v43  ;;  %v15895_v43 = vld [vmem:[%s20172_s3 + $0x110] sm:$0xff]  }
 0x2ae   :  { %v14142_v61 = vpop.f32.mrf.mxu0  ;;  %v18131_v62 = vpop.f32.mrf.mxu1  ;;  %14640 = vmatpush3.bf16.msra.mxu1 %v15895_v43 }
 0x2af   :  { %20214 = vst [vmem:[#allocation25_spill] sm:$0xff] %v18131_v62  ;;  %v18134_v63 = vadd.f32 %v14141_v10, %v17824_v37 }
 0x2b0   :  { %v14143_v17 = vpop.f32.mrf.mxu0  ;;  %v18136_v51 = vpop.f32.mrf.mxu1 }
 0x2b1   :  { %20215 = vst [vmem:[#allocation26_spill] sm:$0xff] %v18134_v63  ;;  %v14144_v46 = vadd.f32 %v14143_v17, %v14142_v61  ;;  %20216 = vst [vmem:[#allocation27_spill] sm:$0xff] %v18136_v51 }
 0x2b2   :  { %v14145_v58 = vpop.f32.mrf.mxu0  ;;  %v18147_v1 = vpop.f32.mrf.mxu1 }
 0x2b3   :  { %v18139_v29 = vadd.f32 %v14144_v46, %v17834_v21  ;;  %20218 = vst [vmem:[#allocation29_spill] sm:$0xff] %v18147_v1 }
 0x2b4   :  { %v14146_v2 = vpop.f32.mrf.mxu0  ;;  %v18152_v17 = vpop.f32.mrf.mxu1 }
 0x2b5   :  { %20217 = vst [vmem:[#allocation28_spill] sm:$0xff] %v18139_v29  ;;  %v14147_v37 = vadd.f32 %v14146_v2, %v14145_v58 }
 0x2b6   :  { %v14148_v10 = vpop.f32.mrf.mxu0  ;;  %v18157_v53 = vpop.f32.mrf.mxu1 }
 0x2b7   :  { %v18150_v61 = vadd.f32 %v14147_v37, %v17843_v11 }
 0x2b8   :  { %v14149_v21 = vpop.f32.mrf.mxu0  ;;  %v18162_v43 = vpop.f32.mrf.mxu1 }
 0x2b9   :  { %v14150_v46 = vadd.f32 %v14149_v21, %v14148_v10 }
 0x2ba   :  { %v14151_v29 = vpop.f32.mrf.mxu0  ;;  %v18173_v10 = vpop.f32.mrf.mxu1 }
 0x2bb   :  { %v18155_v51 = vadd.f32 %v14150_v46, %v17856_v49  ;;  %v15904_v49 = vld [vmem:[%s20172_s3 + $0x148] sm:$0xff]   ;;  %20222 = vst [vmem:[#allocation33_spill] sm:$0xff] %v18173_v10 }
 0x2bc   :  { %v14152_v63 = vpop.f32.mrf.mxu0  ;;  %14641 = vmatprep.subr.bf16.mxu1 %v15904_v49  ;;  %v18178_v21 = vpop.f32.mrf.mxu1 }
 0x2bd   :  { %20219 = vst [vmem:[#allocation30_spill] sm:$0xff] %v18155_v51  ;;  %v14153_v62 = vadd.f32 %v14152_v63, %v14151_v29  ;;  %v15905_v63 = vld [vmem:[%s20172_s3 + $0x108] sm:$0xff]  }
 0x2be   :  { %v14154_v1 = vpop.f32.mrf.mxu0  ;;  %14642 = vmatpush3.bf16.msra.mxu1 %v15905_v63 }
 0x2bf   :  { %v18160_v58 = vadd.f32 %v14153_v62, %v17868_v12 }
 0x2c0   :  { %v14155_v9 = vpop.f32.mrf.mxu0 }
 0x2c1   :  { %20220 = vst [vmem:[#allocation31_spill] sm:$0xff] %v18160_v58  ;;  %v14156_v11 = vadd.f32 %v14155_v9, %v14154_v1  ;;  %v18183_v58 = vpop.f32.mrf.mxu1 }
 0x2c2   :  { %v14157_v2 = vpop.f32.mrf.mxu0 }
 0x2c3   :  { %v18165_v37 = vadd.f32 %v14156_v11, %v17886_v44  ;;  %v18188_v63 = vpop.f32.mrf.mxu1 }
 0x2c4   :  { %v14158_v29 = vpop.f32.mrf.mxu0 }
 0x2c5   :  { %20221 = vst [vmem:[#allocation32_spill] sm:$0xff] %v18165_v37  ;;  %v14159_v12 = vadd.f32 %v14158_v29, %v14157_v2 }
 0x2c6   :  { %v14160_v62 = vpop.f32.mrf.mxu0 }
 0x2c7   :  { %v18176_v1 = vadd.f32 %v14159_v12, %v17895_v39 }
 0x2c8   :  { %v14161_v44 = vpop.f32.mrf.mxu0 }
 0x2c9   :  { %v14162_v46 = vadd.f32 %v14161_v44, %v14160_v62  ;;  %v18199_v44 = vpop.f32.mrf.mxu1 }
 0x2ca   :  { %v14163_v9 = vpop.f32.mrf.mxu0 }
 0x2cb   :  { %v18181_v11 = vadd.f32 %v14162_v46, %v17910_v40  ;;  %v15914_v40 = vld [vmem:[%s20172_s3 + $0x140] sm:$0xff]  }
 0x2cc   :  { %v14164_v37 = vpop.f32.mrf.mxu0  ;;  %14643 = vmatprep.subr.bf16.mxu1 %v15914_v40 }
 0x2cd   :  { %v14165_v51 = vadd.f32 %v14164_v37, %v14163_v9  ;;  %v15915_v37 = vld [vmem:[%s20172_s3 + $0x100] sm:$0xff]   ;;  %v15922_v9 = vld [vmem:[%s20172_s3 + $0x1b8] sm:$0xff]  }
 0x2ce   :  { %v14166_v10 = vpop.f32.mrf.mxu0  ;;  %14644 = vmatpush3.bf16.msra.mxu1 %v15915_v37  ;;  %v15923_v37 = vld [vmem:[%s20172_s3 + $0x1f0] sm:$0xff]  }
 0x2cf   :  { %v18186_v2 = vadd.f32 %v14165_v51, %v17922_v55 }
 0x2d0   :  { %v14167_v49 = vpop.f32.mrf.mxu0 }
 0x2d1   :  { %v14168_v39 = vadd.f32 %v14167_v49, %v14166_v10  ;;  %v18210_v49 = vpop.f32.mrf.mxu1 }
 0x2d2   :  { %v14169_v29 = vpop.f32.mrf.mxu0 }
 0x2d3   :  { %v18191_v12 = vadd.f32 %v14168_v39, %v17938_v18  ;;  %v15920_v18 = vld [vmem:[%s20172_s3 + $0x1f8] sm:$0xff]  }
 0x2d4   :  { %v14170_v62 = vpop.f32.mrf.mxu0  ;;  %14741 = vmatprep.subr.bf16.mxu0 %v15920_v18 }
 0x2d5   :  { %v14171_v55 = vadd.f32 %v14170_v62, %v14169_v29  ;;  %14742 = vmatpush3.bf16.msra.mxu0 %v15922_v9  ;;  %v15924_v62 = vld [vmem:[%s20172_s3 + $0x1b0] sm:$0xff]   ;;  %v15931_v9 = vld [vmem:[%s20172_s3 + $0x1a8] sm:$0xff]  }
 0x2d6   :  { %v14172_v51 = vpop.f32.mrf.mxu0  ;;  %14743 = vmatprep.subr.bf16.mxu0 %v15923_v37 }
 0x2d7   :  { %v18205_v10 = vadd.f32 %v14171_v55, %v17941_v34  ;;  %v18221_v55 = vpop.f32.mrf.mxu1 }
 0x2d8   :  { %v14173_v46 = vpop.f32.mrf.mxu0 }
 0x2d9   :  { %20223 = vst [vmem:[#allocation34_spill] sm:$0xff] %v18205_v10  ;;  %v14174_v39 = vadd.f32 %v14173_v46, %v14172_v51  ;;  %14744 = vmatpush3.bf16.msra.mxu0 %v15924_v62  ;;  %v15932_v62 = vld [vmem:[%s20172_s3 + $0x1e0] sm:$0xff]  }
 0x2da   :  { %v14175_v29 = vpop.f32.mrf.mxu0 }
 0x2db   :  { %v18213_v40 = vadd.f32 %v14174_v39, %v17946_v28  ;;  %v15928_v28 = vld [vmem:[%s20172_s3 + $0x1e8] sm:$0xff]   ;;  %v14199_v39 = vadd.f32 %v17964_v8, %v17960_v30  ;;  %v15933_v30 = vld [vmem:[%s20172_s3 + $0x1a0] sm:$0xff]  }
 0x2dc   :  { %v14176_v34 = vpop.f32.mrf.mxu0  ;;  %14745 = vmatprep.subr.bf16.mxu0 %v15928_v28 }
 0x2dd   :  { %20224 = vst [vmem:[#allocation35_spill] sm:$0xff] %v18213_v40  ;;  %v14177_v18 = vadd.f32 %v14176_v34, %v14175_v29  ;;  %v18234_v40 = vpop.f32.mrf.mxu1  ;;  %14746 = vmatpush3.bf16.msra.mxu0 %v15931_v9  ;;  %v15929_v34 = vld [vmem:[%s20172_s3 + $0x238] sm:$0xff]   ;;  %v4282_v8 = vadd.f32 %v14199_v39, %v17967_v25 }
 0x2de   :  { %v14178_v10 = vpop.f32.mrf.mxu0  ;;  %15525 = vmatprep.subr.bf16.mxu1 %v15929_v34  ;;  %14747 = vmatprep.subr.bf16.mxu0 %v15932_v62 }
 0x2df   :  { %v18224_v51 = vadd.f32 %v14177_v18, %v17952_v4 }
 0x2e0   :  { %v14179_v46 = vpop.f32.mrf.mxu0 }
 0x2e1   :  { %20225 = vst [vmem:[#allocation36_spill] sm:$0xff] %v18224_v51  ;;  %v14180_v29 = vadd.f32 %v14179_v46, %v14178_v10  ;;  %v14202_v10 = vadd.f32 %v17971_v5, %v17969_v45  ;;  %14748 = vmatpush3.bf16.msra.mxu0 %v15933_v30  ;;  %v15937_v51 = vld [vmem:[%s20172_s3 + $0x1d8] sm:$0xff]  }
 0x2e2   :  { %v14309_v37 = vpop.f32.mrf.mxu0  ;;  %v15939_v5 = vld [vmem:[%s20172_s3 + $0x198] sm:$0xff]   ;;  %14749 = vmatprep.subr.bf16.mxu0 %v15937_v51 }
 0x2e3   :  { %v18237_v4 = vadd.f32 %v14180_v29, %v17962_v16  ;;  %v18251_v16 = vpop.f32.mrf.mxu1  ;;  %v14205_v29 = vadd.f32 %v17982_v26, %v17980_v57  ;;  %v4285_v25 = vadd.f32 %v14202_v10, %v17975_v41  ;;  %v15940_v57 = vld [vmem:[%s20172_s3 + $0x1d0] sm:$0xff]  }
 0x2e4   :  { %v14310_v18 = vpop.f32.mrf.mxu0  ;;  %v15941_v41 = vld [vmem:[%s20172_s3 + $0x190] sm:$0xff]  }
 0x2e5   :  { %20226 = vst [vmem:[#allocation37_spill] sm:$0xff] %v18237_v4  ;;  %v14311_v28 = vadd.f32 %v14310_v18, %v14309_v37  ;;  %v18259_v39 = vpop.f32.mrf.mxu1  ;;  %14750 = vmatpush3.bf16.msra.mxu0 %v15939_v5  ;;  %v4290_v62 = vadd.f32 %v14205_v29, %v17985_v20  ;;  %v14208_v18 = vadd.f32 %v17989_v24, %v17987_v35  ;;  %v15947_v20 = vld [vmem:[%s20172_s3 + $0x188] sm:$0xff]   ;;  %v15949_v5 = vld [vmem:[%s20172_s3 + $0x1c0] sm:$0xff]  }
 0x2e6   :  { %v14312_v46 = vpop.f32.mrf.mxu0  ;;  %14751 = vmatprep.subr.bf16.mxu0 %v15940_v57  ;;  %v14211_v35 = vadd.f32 %v18006_v38, %v18004_v3  ;;  %v15950_v3 = vld [vmem:[%s20172_s3 + $0x180] sm:$0xff]  }
 0x2e7   :  { %v4443_v9 = vadd.f32 %v14311_v28, %v4282_v8  ;;  %v18273_v51 = vpop.f32.mrf.mxu1  ;;  %v15945_v28 = vld [vmem:[%s20172_s3 + $0x1c8] sm:$0xff]  }
 0x2e8   :  { %v14313_v4 = vpop.f32.mrf.mxu0  ;;  %v4298_v38 = vadd.f32 %v14211_v35, %v18009_v47  ;;  %v15862_v35 = vld [vmem:[#allocation3 + $0x30] sm:$0xff]  }
 0x2e9   :  { %v14314_v45 = vadd.f32 %v14313_v4, %v14312_v46  ;;  %v4601_v26 = vmul.f32 0.2, %v4443_v9  ;;  %vm4569_vm0 = vcmp.ge.f32.partialorder %v4443_v9, 0.0  ;;  %14752 = vmatpush3.bf16.msra.mxu0 %v15941_v41 }
 0x2ea   :  { %v14315_v37 = vpop.f32.mrf.mxu0  ;;  %14753 = vmatprep.subr.bf16.mxu0 %v15945_v28 }
 0x2eb   :  { %v4446_v34 = vadd.f32 %v14314_v45, %v4285_v25  ;;  %v4633_v46 = vsel %vm4569_vm0, %v4443_v9, %v4601_v26  ;;  %v18287_v9 = vpop.f32.mrf.mxu1 }
 0x2ec   :  { %v14316_v4 = vpop.f32.mrf.mxu0 }
 0x2ed   :  { %vm4570_vm1 = vcmp.ge.f32.partialorder %v4446_v34, 0.0  ;;  %v4602_v30 = vmul.f32 0.2, %v4446_v34  ;;  %v14317_v8 = vadd.f32 %v14316_v4, %v14315_v37  ;;  %v4293_v37 = vadd.f32 %v14208_v18, %v17995_v48  ;;  %14754 = vmatpush3.bf16.msra.mxu0 %v15947_v20  ;;  %v18295_v4 = vpop.f32.mrf.mxu1 }
 0x2ee   :  { %v14318_v10 = vpop.f32.mrf.mxu0  ;;  %14755 = vmatprep.subr.bf16.mxu0 %v15949_v5  ;;  %v14214_v48 = vadd.f32 %v18013_v42, %v18011_v19 }
 0x2ef   :  { %v4634_v25 = vsel %vm4570_vm1, %v4446_v34, %v4602_v30  ;;  %v4451_v45 = vadd.f32 %v14317_v8, %v4290_v62 }
 0x2f0   :  { %v13099_v24 = vpack.c.bf16 %v4634_v25, %v4633_v46  ;;  %v14319_v29 = vpop.f32.mrf.mxu0  ;;  %v14217_v25 = vadd.f32 %v18022_v52, %v18020_v0  ;;  %v14220_v52 = vadd.f32 %v18029_v36, %v18027_v31 }
 0x2f1   :  { %v14320_v57 = vadd.f32 %v14319_v29, %v14318_v10  ;;  %v4603_v34 = vmul.f32 0.2, %v4451_v45  ;;  %vm4571_vm2 = vcmp.ge.f32.partialorder %v4451_v45, 0.0  ;;  %14756 = vmatpush3.bf16.msra.mxu0 %v15950_v3  ;;  %v18300_v29 = vpop.f32.mrf.mxu1 }
 0x2f2   :  { %13100 = vst [vmem:[#allocation3 + $0x38] sm:$0xff] %v13099_v24   ;;  %v14321_v26 = vpop.f32.mrf.mxu0  ;;  %v4301_v24 = vadd.f32 %v14214_v48, %v18017_v54 }
 0x2f3   :  { %v4454_v41 = vadd.f32 %v14320_v57, %v4293_v37  ;;  %v4635_v10 = vsel %vm4571_vm2, %v4451_v45, %v4603_v34  ;;  %v15863_v37 = vld [vmem:[#allocation3 + $0x18] sm:$0xff]   ;;  %v4306_v34 = vadd.f32 %v14217_v25, %v18025_v23  ;;  %v18305_v54 = vpop.f32.mrf.mxu1  ;;  %v14223_v23 = vadd.f32 %v18044_v14, %v18042_v50  ;;  %v20229_v14 = vld [vmem:[#allocation8_spill] sm:$0xff] }
 0x2f4   :  { %v14322_v62 = vpop.f32.mrf.mxu0 }
 0x2f5   :  { %vm4572_vm3 = vcmp.ge.f32.partialorder %v4454_v41, 0.0  ;;  %v4604_v18 = vmul.f32 0.2, %v4454_v41  ;;  %v14323_v30 = vadd.f32 %v14322_v62, %v14321_v26  ;;  %v18310_v31 = vpop.f32.mrf.mxu1 }
 0x2f6   :  { %v14324_v8 = vpop.f32.mrf.mxu0 }
 0x2f7   :  { %v4636_v28 = vsel %vm4572_vm3, %v4454_v41, %v4604_v18  ;;  %v4459_v46 = vadd.f32 %v14323_v30, %v4298_v38 }
 0x2f8   :  { %v13104_v47 = vpack.c.bf16 %v4636_v28, %v4635_v10  ;;  %v14325_v20 = vpop.f32.mrf.mxu0  ;;  %v15869_v10 = vld [vmem:[#allocation3 + $0x20] sm:$0xff]  }
 0x2f9   :  { %v4605_v19 = vmul.f32 0.2, %v4459_v46  ;;  %v14326_v42 = vadd.f32 %v14325_v20, %v14324_v8  ;;  %v15860_v5 = vld [vmem:[#allocation3 + $0x38] sm:$0xff]   ;;  %vm4573_vm4 = vcmp.ge.f32.partialorder %v4459_v46, 0.0  ;;  %v20227_v28 = vld [vmem:[#allocation6_spill] sm:$0xff] }
 0x2fa   :  { %13336 = vst [vmem:[#allocation3 + $0x40] sm:$0xff] %v13104_v47   ;;  %v14327_v57 = vpop.f32.mrf.mxu0  ;;  %6631 = vmatprep.mubr.bf16.mxu1 %v15860_v5  ;;  %v15861_v26 = vld [vmem:[#allocation3 + $0x38] sm:$0xff]   ;;  %v4309_v25 = vadd.f32 %v14220_v52, %v20227_v28 }
 0x2fb   :  { %v4462_v45 = vadd.f32 %v14326_v42, %v4301_v24  ;;  %6632 = vmatmul.mubr.bf16.gmra.mxu1 %v15862_v35  ;;  %6768 = vmatprep.mubr.bf16.mxu0 %v15861_v26  ;;  %v4637_v62 = vsel %vm4573_vm4, %v4459_v46, %v4605_v19  ;;  %v15868_v35 = vld [vmem:[#allocation3 + $0x38] sm:$0xff]   ;;  %v20228_v19 = vld [vmem:[#allocation7_spill] sm:$0xff] }
 0x2fc   :  { %v14328_v0 = vpop.f32.mrf.mxu0  ;;  %6769 = vmatmul.mubr.bf16.gmra.mxu0 %v15863_v37  ;;  %v4314_v5 = vadd.f32 %v14223_v23, %v20228_v19  ;;  %v20230_v37 = vld [vmem:[#allocation9_spill] sm:$0xff]  ;;  %v15873_v23 = vld [vmem:[#allocation3 + $0x28] sm:$0xff]  }
 0x2fd   :  { %vm4574_vm5 = vcmp.ge.f32.partialorder %v4462_v45, 0.0  ;;  %v4606_v41 = vmul.f32 0.2, %v4462_v45  ;;  %v14329_v3 = vadd.f32 %v14328_v0, %v14327_v57  ;;  %v14226_v57 = vadd.f32 %v20230_v37, %v20229_v14 }
 0x2fe   :  { %v14330_v38 = vpop.f32.mrf.mxu0 }
 0x2ff   :  { %v4638_v48 = vsel %vm4574_vm5, %v4462_v45, %v4606_v41  ;;  %v4467_v18 = vadd.f32 %v14329_v3, %v4306_v34  ;;  %v18315_v45 = vpop.f32.mrf.mxu1 }
 0x300   :  { %v13109_v30 = vpack.c.bf16 %v4638_v48, %v4637_v62  ;;  %v14331_v8 = vpop.f32.mrf.mxu0 }
 0x301   :  { %v4607_v36 = vmul.f32 0.2, %v4467_v18  ;;  %v14332_v47 = vadd.f32 %v14331_v8, %v14330_v38  ;;  %v15866_v20 = vld [vmem:[#allocation3 + $0x40] sm:$0xff]   ;;  %vm4575_vm6 = vcmp.ge.f32.partialorder %v4467_v18, 0.0  ;;  %v14229_v38 = vadd.f32 %v18060_v6, %v18058_v32  ;;  %v18320_v8 = vpop.f32.mrf.mxu1  ;;  %v20232_v6 = vld [vmem:[#allocation11_spill] sm:$0xff] }
 0x302   :  { %13337 = vst [vmem:[#allocation3 + $0x48] sm:$0xff] %v13109_v30   ;;  %v14333_v24 = vpop.f32.mrf.mxu0  ;;  %6639 = vmatprep.mubr.bf16.mxu1 %v15866_v20  ;;  %v15867_v46 = vld [vmem:[#allocation3 + $0x40] sm:$0xff]   ;;  %v4317_v30 = vadd.f32 %v14226_v57, %v18055_v15 }
 0x303   :  { %v4470_v42 = vadd.f32 %v14332_v47, %v4309_v25  ;;  %6640 = vmatmul.mubr.bf16.gmra.mxu1 %v15868_v35  ;;  %6776 = vmatprep.mubr.bf16.mxu0 %v15867_v46  ;;  %v4639_v52 = vsel %vm4575_vm6, %v4467_v18, %v4607_v36  ;;  %v15872_v20 = vld [vmem:[#allocation3 + $0x40] sm:$0xff]   ;;  %v20233_v46 = vld [vmem:[#allocation12_spill] sm:$0xff]  ;;  %v18325_v19 = vpop.f32.mrf.mxu1 }
 0x304   :  { %v14334_v50 = vpop.f32.mrf.mxu0  ;;  %6777 = vmatmul.mubr.bf16.gmra.mxu0 %v15869_v10  ;;  %v15877_v35 = vld [vmem:[#allocation3 + $0x60] sm:$0xff]   ;;  %v14232_v15 = vadd.f32 %v20233_v46, %v20232_v6 }
 0x305   :  { %vm4576_vm7 = vcmp.ge.f32.partialorder %v4470_v42, 0.0  ;;  %v4608_v26 = vmul.f32 0.2, %v4470_v42  ;;  %v14335_v34 = vadd.f32 %v14334_v50, %v14333_v24  ;;  %v20231_v24 = vld [vmem:[#allocation10_spill] sm:$0xff] }
 0x306   :  { %v14336_v0 = vpop.f32.mrf.mxu0 }
 0x307   :  { %v4640_v41 = vsel %vm4576_vm7, %v4470_v42, %v4608_v26  ;;  %v4475_v3 = vadd.f32 %v14335_v34, %v4314_v5  ;;  %v4322_v42 = vadd.f32 %v14229_v38, %v20231_v24  ;;  %v20234_v34 = vld [vmem:[#allocation14_spill] sm:$0xff]  ;;  %v20235_v38 = vld [vmem:[#allocation13_spill] sm:$0xff] }
 0x308   :  { %v13114_v62 = vpack.c.bf16 %v4640_v41, %v4639_v52  ;;  %v14337_v48 = vpop.f32.mrf.mxu0 }
 0x309   :  { %v4609_v28 = vmul.f32 0.2, %v4475_v3  ;;  %v14338_v25 = vadd.f32 %v14337_v48, %v14336_v0  ;;  %v15870_v47 = vld [vmem:[#allocation3 + $0x48] sm:$0xff]   ;;  %vm4577_vm8 = vcmp.ge.f32.partialorder %v4475_v3, 0.0  ;;  %v14235_v0 = vadd.f32 %v20234_v34, %v18080_v27  ;;  %v18330_v48 = vpop.f32.mrf.mxu1  ;;  %v15879_v27 = vld [vmem:[#allocation3 + $0x40] sm:$0xff]  }
 0x30a   :  { %13338 = vst [vmem:[#allocation3 + $0x50] sm:$0xff] %v13114_v62   ;;  %v14339_v10 = vpop.f32.mrf.mxu0  ;;  %6647 = vmatprep.mubr.bf16.mxu1 %v15870_v47  ;;  %v15871_v36 = vld [vmem:[#allocation3 + $0x48] sm:$0xff]   ;;  %v4325_v62 = vadd.f32 %v14232_v15, %v20235_v38 }
 0x30b   :  { %v4478_v18 = vadd.f32 %v14338_v25, %v4317_v30  ;;  %6648 = vmatmul.mubr.bf16.gmra.mxu1 %v15872_v20  ;;  %6784 = vmatprep.mubr.bf16.mxu0 %v15871_v36  ;;  %v4641_v37 = vsel %vm4577_vm8, %v4475_v3, %v4609_v28  ;;  %v15878_v47 = vld [vmem:[#allocation3 + $0x48] sm:$0xff]   ;;  %v20238_v36 = vld [vmem:[#allocation17_spill] sm:$0xff] }
 0x30c   :  { %v14340_v32 = vpop.f32.mrf.mxu0  ;;  %6785 = vmatmul.mubr.bf16.gmra.mxu0 %v15873_v23  ;;  %v20236_v3 = vld [vmem:[#allocation15_spill] sm:$0xff] }
 0x30d   :  { %vm4578_vm9 = vcmp.ge.f32.partialorder %v4478_v18, 0.0  ;;  %v4610_v5 = vmul.f32 0.2, %v4478_v18  ;;  %v14341_v50 = vadd.f32 %v14340_v32, %v14339_v10  ;;  %6792 = vmatprep.mubr.bf16.mxu0 %v15877_v35  ;;  %v4330_v28 = vadd.f32 %v14235_v0, %v20236_v3  ;;  %v15882_v0 = vld [vmem:[#allocation3 + $0x60] sm:$0xff]   ;;  %v20240_v3 = vld [vmem:[#allocation19_spill] sm:$0xff] }
 0x30e   :  { %v14342_v14 = vpop.f32.mrf.mxu0 }
 0x30f   :  { %v4642_v57 = vsel %vm4578_vm9, %v4478_v18, %v4610_v5  ;;  %v4483_v26 = vadd.f32 %v14341_v50, %v4322_v42  ;;  %v20237_v18 = vld [vmem:[#allocation16_spill] sm:$0xff]  ;;  %v18335_v42 = vpop.f32.mrf.mxu1 }
 0x310   :  { %v13119_v52 = vpack.c.bf16 %v4642_v57, %v4641_v37  ;;  %v14343_v41 = vpop.f32.mrf.mxu0  ;;  %v14238_v24 = vadd.f32 %v20238_v36, %v20237_v18  ;;  %v14241_v37 = vadd.f32 %v18097_v22, %v18095_v56 }
 0x311   :  { %v14344_v30 = vadd.f32 %v14343_v41, %v14342_v14  ;;  %v15876_v25 = vld [vmem:[#allocation3 + $0x50] sm:$0xff]   ;;  %v4611_v23 = vmul.f32 0.2, %v4483_v26  ;;  %vm4579_vm10 = vcmp.ge.f32.partialorder %v4483_v26, 0.0 }
 0x312   :  { %13339 = vst [vmem:[#allocation3 + $0x68] sm:$0xff] %v13119_v52   ;;  %v14345_v20 = vpop.f32.mrf.mxu0  ;;  %6655 = vmatprep.mubr.bf16.mxu1 %v15876_v25  ;;  %v4333_v52 = vadd.f32 %v14238_v24, %v18093_v59  ;;  %v4338_v56 = vadd.f32 %v14241_v37, %v18100_v13  ;;  %v20239_v59 = vld [vmem:[#allocation18_spill] sm:$0xff] }
 0x313   :  { %v4486_v10 = vadd.f32 %v14344_v30, %v4325_v62  ;;  %6656 = vmatmul.mubr.bf16.gmra.mxu1 %v15878_v47  ;;  %v4643_v15 = vsel %vm4579_vm10, %v4483_v26, %v4611_v23  ;;  %v14421_v14 = vpop.f32.mrf.mxu1  ;;  %v20242_v13 = vld [vmem:[#allocation22_spill] sm:$0xff] }
 0x314   :  { %v14346_v35 = vpop.f32.mrf.mxu0  ;;  %6793 = vmatmul.mubr.bf16.gmra.mxu0 %v15879_v27 }
 0x315   :  { %vm4580_vm11 = vcmp.ge.f32.partialorder %v4486_v10, 0.0  ;;  %v4612_v32 = vmul.f32 0.2, %v4486_v10  ;;  %v14347_v6 = vadd.f32 %v14346_v35, %v14345_v20  ;;  %v14422_v30 = vpop.f32.mrf.mxu1 }
 0x316   :  { %v14348_v46 = vpop.f32.mrf.mxu0  ;;  %v18340_v47 = vadd.f32 %v14422_v30, %v14421_v14 }
 0x317   :  { %v4644_v5 = vsel %vm4580_vm11, %v4486_v10, %v4612_v32  ;;  %v4491_v50 = vadd.f32 %v14347_v6, %v4330_v28  ;;  %v18342_v23 = vpop.f32.mrf.mxu1  ;;  %v15883_v10 = vld [vmem:[#allocation3 + $0x48] sm:$0xff]   ;;  %v14244_v28 = vadd.f32 %v20240_v3, %v20239_v59 }
 0x318   :  { %v13124_v57 = vpack.c.bf16 %v4644_v5, %v4643_v15  ;;  %v14349_v34 = vpop.f32.mrf.mxu0  ;;  %v20244_v59 = vld [vmem:[#allocation23_spill] sm:$0xff] }
 0x319   :  { %v4613_v41 = vmul.f32 0.2, %v4491_v50  ;;  %v14350_v38 = vadd.f32 %v14349_v34, %v14348_v46  ;;  %v15880_v62 = vld [vmem:[#allocation3 + $0x68] sm:$0xff]   ;;  %vm4581_vm12 = vcmp.ge.f32.partialorder %v4491_v50, 0.0  ;;  %v18347_v36 = vpop.f32.mrf.mxu1  ;;  %v20241_v46 = vld [vmem:[#allocation21_spill] sm:$0xff]  ;;  %v14250_v3 = vadd.f32 %v18124_v60, %v20244_v59 }
 0x31a   :  { %13340 = vst [vmem:[#allocation3 + $0x70] sm:$0xff] %v13124_v57   ;;  %v14351_v25 = vpop.f32.mrf.mxu0  ;;  %6663 = vmatprep.mubr.bf16.mxu1 %v15880_v62  ;;  %v15881_v20 = vld [vmem:[#allocation3 + $0x68] sm:$0xff]   ;;  %v14247_v15 = vadd.f32 %v20242_v13, %v20241_v46  ;;  %v20243_v57 = vld [vmem:[#allocation20_spill] sm:$0xff]  ;;  %v20245_v46 = vld [vmem:[#allocation25_spill] sm:$0xff] }
 0x31b   :  { %v4494_v26 = vadd.f32 %v14350_v38, %v4333_v52  ;;  %6664 = vmatmul.mubr.bf16.gmra.mxu1 %v15882_v0  ;;  %6800 = vmatprep.mubr.bf16.mxu0 %v15881_v20  ;;  %v4645_v24 = vsel %vm4581_vm12, %v4491_v50, %v4613_v41  ;;  %v14427_v37 = vpop.f32.mrf.mxu1  ;;  %v4341_v34 = vadd.f32 %v14244_v28, %v20243_v57  ;;  %v15888_v62 = vld [vmem:[#allocation3 + $0x68] sm:$0xff]   ;;  %v20246_v57 = vld [vmem:[#allocation24_spill] sm:$0xff] }
 0x31c   :  { %v14352_v22 = vpop.f32.mrf.mxu0  ;;  %6801 = vmatmul.mubr.bf16.gmra.mxu0 %v15883_v10  ;;  %v14253_v13 = vadd.f32 %v20245_v46, %v18129_v33  ;;  %v4349_v60 = vadd.f32 %v14250_v3, %v20246_v57  ;;  %v20247_v33 = vld [vmem:[#allocation26_spill] sm:$0xff]  ;;  %v20248_v59 = vld [vmem:[#allocation27_spill] sm:$0xff]  ;;  %v20249_v3 = vld [vmem:[#allocation29_spill] sm:$0xff] }
 0x31d   :  { %vm4582_vm13 = vcmp.ge.f32.partialorder %v4494_v26, 0.0  ;;  %v4614_v35 = vmul.f32 0.2, %v4494_v26  ;;  %v14353_v27 = vadd.f32 %v14352_v22, %v14351_v25  ;;  %v14428_v25 = vpop.f32.mrf.mxu1  ;;  %v15889_v22 = vld [vmem:[#allocation3 + $0x50] sm:$0xff]  }
 0x31e   :  { %v14354_v18 = vpop.f32.mrf.mxu0  ;;  %v18352_v41 = vadd.f32 %v14428_v25, %v14427_v37 }
 0x31f   :  { %v4646_v32 = vsel %vm4582_vm13, %v4494_v26, %v4614_v35  ;;  %v4499_v6 = vadd.f32 %v14353_v27, %v4338_v56  ;;  %v4346_v26 = vadd.f32 %v14247_v15, %v18120_v7  ;;  %v18355_v10 = vpop.f32.mrf.mxu1 }
 0x320   :  { %v13129_v5 = vpack.c.bf16 %v4646_v32, %v4645_v24  ;;  %v14355_v14 = vpop.f32.mrf.mxu0 }
 0x321   :  { %v4615_v0 = vmul.f32 0.2, %v4499_v6  ;;  %v14356_v52 = vadd.f32 %v14355_v14, %v14354_v18  ;;  %v15886_v38 = vld [vmem:[#allocation3 + $0x70] sm:$0xff]   ;;  %vm4583_vm14 = vcmp.ge.f32.partialorder %v4499_v6, 0.0  ;;  %v18359_v18 = vpop.f32.mrf.mxu1  ;;  %v15893_v14 = vld [vmem:[#allocation3 + $0x58] sm:$0xff]  }
 0x322   :  { %13341 = vst [vmem:[#allocation3 + $0x78] sm:$0xff] %v13129_v5   ;;  %v14357_v30 = vpop.f32.mrf.mxu0  ;;  %6671 = vmatprep.mubr.bf16.mxu1 %v15886_v38  ;;  %v15887_v50 = vld [vmem:[#allocation3 + $0x70] sm:$0xff]  }
 0x323   :  { %v4502_v20 = vadd.f32 %v14356_v52, %v4341_v34  ;;  %6672 = vmatmul.mubr.bf16.gmra.mxu1 %v15888_v62  ;;  %6808 = vmatprep.mubr.bf16.mxu0 %v15887_v50  ;;  %v4647_v24 = vsel %vm4583_vm14, %v4499_v6, %v4615_v0  ;;  %v14433_v37 = vpop.f32.mrf.mxu1  ;;  %v15892_v62 = vld [vmem:[#allocation3 + $0x70] sm:$0xff]  }
 0x324   :  { %v14358_v56 = vpop.f32.mrf.mxu0  ;;  %6809 = vmatmul.mubr.bf16.gmra.mxu0 %v15889_v22 }
 0x325   :  { %vm4584_vm15 = vcmp.ge.f32.partialorder %v4502_v20, 0.0  ;;  %v4616_v28 = vmul.f32 0.2, %v4502_v20  ;;  %v14359_v35 = vadd.f32 %v14358_v56, %v14357_v30  ;;  %v15897_v30 = vld [vmem:[#allocation3 + $0x90] sm:$0xff]   ;;  %v14434_v50 = vpop.f32.mrf.mxu1 }
 0x326   :  { %v14360_v27 = vpop.f32.mrf.mxu0 }
 0x327   :  { %v4648_v32 = vsel %vm4584_vm15, %v4502_v20, %v4616_v28  ;;  %v4507_v7 = vadd.f32 %v14359_v35, %v4346_v26  ;;  %v18364_v20 = vadd.f32 %v14434_v50, %v14433_v37  ;;  %v4354_v26 = vadd.f32 %v14253_v13, %v20247_v33  ;;  %v18367_v22 = vpop.f32.mrf.mxu1 }
 0x328   :  { %v13134_v15 = vpack.c.bf16 %v4648_v32, %v4647_v24  ;;  %v14361_v5 = vpop.f32.mrf.mxu0  ;;  %v14256_v28 = vadd.f32 %v20249_v3, %v20248_v59  ;;  %v14259_v13 = vadd.f32 %v18157_v53, %v18152_v17  ;;  %v15899_v17 = vld [vmem:[#allocation3 + $0x70] sm:$0xff]  }
 0x329   :  { %v4617_v34 = vmul.f32 0.2, %v4507_v7  ;;  %v14362_v52 = vadd.f32 %v14361_v5, %v14360_v27  ;;  %v15890_v38 = vld [vmem:[#allocation3 + $0x78] sm:$0xff]   ;;  %vm4585_vm0 = vcmp.ge.f32.partialorder %v4507_v7, 0.0  ;;  %v18371_v32 = vpop.f32.mrf.mxu1 }
 0x32a   :  { %13342 = vst [vmem:[#allocation3 + $0x80] sm:$0xff] %v13134_v15   ;;  %v14363_v25 = vpop.f32.mrf.mxu0  ;;  %6679 = vmatprep.mubr.bf16.mxu1 %v15890_v38  ;;  %v15891_v0 = vld [vmem:[#allocation3 + $0x78] sm:$0xff]  }
 0x32b   :  { %v4510_v6 = vadd.f32 %v14362_v52, %v4349_v60  ;;  %6680 = vmatmul.mubr.bf16.gmra.mxu1 %v15892_v62  ;;  %6816 = vmatprep.mubr.bf16.mxu0 %v15891_v0  ;;  %v4649_v46 = vsel %vm4585_vm0, %v4507_v7, %v4617_v34  ;;  %v14439_v60 = vpop.f32.mrf.mxu1  ;;  %v20250_v52 = vld [vmem:[#allocation28_spill] sm:$0xff]  ;;  %v4362_v34 = vadd.f32 %v14259_v13, %v18150_v61  ;;  %v20252_v13 = vld [vmem:[#allocation30_spill] sm:$0xff] }
 0x32c   :  { %v14364_v56 = vpop.f32.mrf.mxu0  ;;  %6817 = vmatmul.mubr.bf16.gmra.mxu0 %v15893_v14  ;;  %v4357_v38 = vadd.f32 %v14256_v28, %v20250_v52 }
 0x32d   :  { %vm4586_vm1 = vcmp.ge.f32.partialorder %v4510_v6, 0.0  ;;  %v4618_v35 = vmul.f32 0.2, %v4510_v6  ;;  %v14365_v27 = vadd.f32 %v14364_v56, %v14363_v25  ;;  %6824 = vmatprep.mubr.bf16.mxu0 %v15897_v30  ;;  %v15898_v25 = vld [vmem:[#allocation3 + $0x78] sm:$0xff]   ;;  %v14440_v0 = vpop.f32.mrf.mxu1 }
 0x32e   :  { %v14366_v24 = vpop.f32.mrf.mxu0  ;;  %v18376_v7 = vadd.f32 %v14440_v0, %v14439_v60  ;;  %v20251_v30 = vld [vmem:[#allocation33_spill] sm:$0xff] }
 0x32f   :  { %v4650_v15 = vsel %vm4586_vm1, %v4510_v6, %v4618_v35  ;;  %v4515_v5 = vadd.f32 %v14365_v27, %v4354_v26  ;;  %v14262_v6 = vadd.f32 %v20251_v30, %v18162_v43 }
 0x330   :  { %v13139_v37 = vpack.c.bf16 %v4650_v15, %v4649_v46  ;;  %v14367_v57 = vpop.f32.mrf.mxu0  ;;  %v15902_v15 = vld [vmem:[#allocation3 + $0x90] sm:$0xff]  }
 0x331   :  { %v14368_v62 = vadd.f32 %v14367_v57, %v14366_v24  ;;  %v15896_v50 = vld [vmem:[#allocation3 + $0x80] sm:$0xff]   ;;  %v4619_v33 = vmul.f32 0.2, %v4515_v5  ;;  %vm4587_vm2 = vcmp.ge.f32.partialorder %v4515_v5, 0.0  ;;  %v14265_v24 = vadd.f32 %v18183_v58, %v18178_v21 }
 0x332   :  { %13343 = vst [vmem:[#allocation3 + $0x98] sm:$0xff] %v13139_v37   ;;  %v14369_v14 = vpop.f32.mrf.mxu0  ;;  %6687 = vmatprep.mubr.bf16.mxu1 %v15896_v50  ;;  %v4365_v37 = vadd.f32 %v14262_v6, %v20252_v13  ;;  %v20253_v50 = vld [vmem:[#allocation31_spill] sm:$0xff]  ;;  %v14268_v58 = vadd.f32 %v18199_v44, %v18188_v63 }
 0x333   :  { %v4518_v56 = vadd.f32 %v14368_v62, %v4357_v38  ;;  %6688 = vmatmul.mubr.bf16.gmra.mxu1 %v15898_v25  ;;  %v4651_v28 = vsel %vm4587_vm2, %v4515_v5, %v4619_v33  ;;  %v4370_v5 = vadd.f32 %v14265_v24, %v20253_v50 }
 0x334   :  { %v14370_v53 = vpop.f32.mrf.mxu0  ;;  %6825 = vmatmul.mubr.bf16.gmra.mxu0 %v15899_v17  ;;  %v14271_v17 = vadd.f32 %v18221_v55, %v18210_v49  ;;  %v14274_v49 = vadd.f32 %v18251_v16, %v18234_v40 }
 0x335   :  { %vm4588_vm3 = vcmp.ge.f32.partialorder %v4518_v56, 0.0  ;;  %v4620_v26 = vmul.f32 0.2, %v4518_v56  ;;  %v14371_v59 = vadd.f32 %v14370_v53, %v14369_v14  ;;  %v15903_v14 = vld [vmem:[#allocation3 + $0x78] sm:$0xff]  }
 0x336   :  { %v14372_v3 = vpop.f32.mrf.mxu0  ;;  %v4381_v50 = vadd.f32 %v14274_v49, %v18181_v11 }
 0x337   :  { %v4652_v35 = vsel %vm4588_vm3, %v4518_v56, %v4620_v26  ;;  %v4523_v27 = vadd.f32 %v14371_v59, %v4362_v34  ;;  %v20254_v26 = vld [vmem:[#allocation32_spill] sm:$0xff] }
 0x338   :  { %v13144_v46 = vpack.c.bf16 %v4652_v35, %v4651_v28  ;;  %v14373_v61 = vpop.f32.mrf.mxu0  ;;  %v4373_v59 = vadd.f32 %v14268_v58, %v20254_v26 }
 0x339   :  { %v4621_v57 = vmul.f32 0.2, %v4523_v27  ;;  %v14374_v60 = vadd.f32 %v14373_v61, %v14372_v3  ;;  %v15900_v52 = vld [vmem:[#allocation3 + $0x98] sm:$0xff]   ;;  %vm4589_vm4 = vcmp.ge.f32.partialorder %v4523_v27, 0.0 }
 0x33a   :  { %13344 = vst [vmem:[#allocation3 + $0xa0] sm:$0xff] %v13144_v46   ;;  %v14375_v43 = vpop.f32.mrf.mxu0  ;;  %6695 = vmatprep.mubr.bf16.mxu1 %v15900_v52  ;;  %v15901_v62 = vld [vmem:[#allocation3 + $0x98] sm:$0xff]  }
 0x33b   :  { %v4526_v38 = vadd.f32 %v14374_v60, %v4365_v37  ;;  %6696 = vmatmul.mubr.bf16.gmra.mxu1 %v15902_v15  ;;  %6832 = vmatprep.mubr.bf16.mxu0 %v15901_v62  ;;  %v4653_v56 = vsel %vm4589_vm4, %v4523_v27, %v4621_v57  ;;  %v15908_v63 = vld [vmem:[#allocation3 + $0x98] sm:$0xff]   ;;  %v4378_v27 = vadd.f32 %v14271_v17, %v18176_v1  ;;  %v15909_v15 = vld [vmem:[#allocation3 + $0x80] sm:$0xff]   ;;  %v15913_v62 = vld [vmem:[#allocation3 + $0x88] sm:$0xff]  }
 0x33c   :  { %v14376_v25 = vpop.f32.mrf.mxu0  ;;  %6833 = vmatmul.mubr.bf16.gmra.mxu0 %v15903_v14  ;;  %v15917_v14 = vld [vmem:[#allocation3 + $0xc0] sm:$0xff]  }
 0x33d   :  { %vm4590_vm5 = vcmp.ge.f32.partialorder %v4526_v38, 0.0  ;;  %v4622_v21 = vmul.f32 0.2, %v4526_v38  ;;  %v14377_v0 = vadd.f32 %v14376_v25, %v14375_v43  ;;  %v14277_v43 = vadd.f32 %v18273_v51, %v18259_v39 }
 0x33e   :  { %v14378_v33 = vpop.f32.mrf.mxu0  ;;  %v14280_v39 = vadd.f32 %v18295_v4, %v18287_v9  ;;  %v15921_v4 = vld [vmem:[#allocation3 + $0x40] sm:$0xff]  }
 0x33f   :  { %v4654_v34 = vsel %vm4590_vm5, %v4526_v38, %v4622_v21  ;;  %v4531_v53 = vadd.f32 %v14377_v0, %v4370_v5 }
 0x340   :  { %v13149_v30 = vpack.c.bf16 %v4654_v34, %v4653_v56  ;;  %v14379_v6 = vpop.f32.mrf.mxu0 }
 0x341   :  { %v4623_v3 = vmul.f32 0.2, %v4531_v53  ;;  %v14380_v28 = vadd.f32 %v14379_v6, %v14378_v33  ;;  %v15906_v35 = vld [vmem:[#allocation3 + $0xa0] sm:$0xff]   ;;  %vm4591_vm6 = vcmp.ge.f32.partialorder %v4531_v53, 0.0  ;;  %v4386_v33 = vadd.f32 %v14277_v43, %v18186_v2  ;;  %v15946_v43 = vld [vmem:[%s20172_s3 + $0x230] sm:$0xff]  }
 0x342   :  { %13345 = vst [vmem:[#allocation3 + $0xa8] sm:$0xff] %v13149_v30   ;;  %v14381_v44 = vpop.f32.mrf.mxu0  ;;  %6703 = vmatprep.mubr.bf16.mxu1 %v15906_v35  ;;  %v15907_v46 = vld [vmem:[#allocation3 + $0xa0] sm:$0xff]   ;;  %v14283_v6 = vadd.f32 %v18305_v54, %v18300_v29  ;;  %v14286_v29 = vadd.f32 %v18315_v45, %v18310_v31  ;;  %v20256_v31 = vld [vmem:[#allocation35_spill] sm:$0xff] }
 0x343   :  { %v4534_v24 = vadd.f32 %v14380_v28, %v4373_v59  ;;  %6704 = vmatmul.mubr.bf16.gmra.mxu1 %v15908_v63  ;;  %6840 = vmatprep.mubr.bf16.mxu0 %v15907_v46  ;;  %v4655_v57 = vsel %vm4591_vm6, %v4531_v53, %v4623_v3  ;;  %v15912_v16 = vld [vmem:[#allocation3 + $0xa0] sm:$0xff]   ;;  %v4389_v59 = vadd.f32 %v14280_v39, %v18191_v12 }
 0x344   :  { %v14382_v61 = vpop.f32.mrf.mxu0  ;;  %6841 = vmatmul.mubr.bf16.gmra.mxu0 %v15909_v15  ;;  %v4397_v45 = vadd.f32 %v14286_v29, %v20256_v31  ;;  %v15953_v31 = vld [vmem:[#allocation3 + $0x60] sm:$0xff]  }
 0x345   :  { %vm4592_vm7 = vcmp.ge.f32.partialorder %v4534_v24, 0.0  ;;  %v4624_v55 = vmul.f32 0.2, %v4534_v24  ;;  %v14383_v13 = vadd.f32 %v14382_v61, %v14381_v44  ;;  %v15919_v61 = vld [vmem:[#allocation3 + $0xa0] sm:$0xff]  }
 0x346   :  { %v14384_v37 = vpop.f32.mrf.mxu0 }
 0x347   :  { %v4656_v60 = vsel %vm4592_vm7, %v4534_v24, %v4624_v55  ;;  %v4539_v52 = vadd.f32 %v14383_v13, %v4378_v27  ;;  %v20255_v24 = vld [vmem:[#allocation34_spill] sm:$0xff] }
 0x348   :  { %v13154_v1 = vpack.c.bf16 %v4656_v60, %v4655_v57  ;;  %v14385_v38 = vpop.f32.mrf.mxu0  ;;  %v4394_v46 = vadd.f32 %v14283_v6, %v20255_v24 }
 0x349   :  { %v4625_v5 = vmul.f32 0.2, %v4539_v52  ;;  %v14386_v25 = vadd.f32 %v14385_v38, %v14384_v37  ;;  %v15910_v40 = vld [vmem:[#allocation3 + $0xa8] sm:$0xff]   ;;  %vm4593_vm8 = vcmp.ge.f32.partialorder %v4539_v52, 0.0  ;;  %v14289_v37 = vadd.f32 %v18325_v19, %v18320_v8 }
 0x34a   :  { %13346 = vst [vmem:[#allocation3 + $0xb0] sm:$0xff] %v13154_v1   ;;  %v14387_v58 = vpop.f32.mrf.mxu0  ;;  %6711 = vmatprep.mubr.bf16.mxu1 %v15910_v40  ;;  %v15911_v0 = vld [vmem:[#allocation3 + $0xa8] sm:$0xff]   ;;  %v20257_v40 = vld [vmem:[#allocation36_spill] sm:$0xff] }
 0x34b   :  { %v4542_v21 = vadd.f32 %v14386_v25, %v4381_v50  ;;  %6712 = vmatmul.mubr.bf16.gmra.mxu1 %v15912_v16  ;;  %6848 = vmatprep.mubr.bf16.mxu0 %v15911_v0  ;;  %v4657_v53 = vsel %vm4593_vm8, %v4539_v52, %v4625_v5  ;;  %v15918_v9 = vld [vmem:[#allocation3 + $0xa8] sm:$0xff]   ;;  %v15927_v52 = vld [vmem:[#allocation3 + $0x38] sm:$0xff]   ;;  %v4402_v16 = vadd.f32 %v14289_v37, %v20257_v40 }
 0x34c   :  { %v14388_v56 = vpop.f32.mrf.mxu0  ;;  %6849 = vmatmul.mubr.bf16.gmra.mxu0 %v15913_v62  ;;  %v15930_v62 = vld [vmem:[#allocation3 + $0x48] sm:$0xff]   ;;  %v16418_v0 = vld [vmem:[%s20172_s3 + $0x238] sm:$0xff]  }
 0x34d   :  { %vm4594_vm9 = vcmp.ge.f32.partialorder %v4542_v21, 0.0  ;;  %v4626_v11 = vmul.f32 0.2, %v4542_v21  ;;  %v14389_v51 = vadd.f32 %v14388_v56, %v14387_v58  ;;  %6856 = vmatprep.mubr.bf16.mxu0 %v15917_v14  ;;  %v15926_v19 = vld [vmem:[#allocation3 + $0xa8] sm:$0xff]   ;;  %v14292_v14 = vadd.f32 %v18335_v42, %v18330_v48  ;;  %v15960_v40 = vld [vmem:[#allocation3 + $0x78] sm:$0xff]  }
 0x34e   :  { %v14390_v34 = vpop.f32.mrf.mxu0  ;;  %v15958_v56 = vld [vmem:[%s20172_s3 + $0x228] sm:$0xff]  }
 0x34f   :  { %v4658_v17 = vsel %vm4594_vm9, %v4542_v21, %v4626_v11  ;;  %v4547_v30 = vadd.f32 %v14389_v51, %v4386_v33 }
 0x350   :  { %v13159_v2 = vpack.c.bf16 %v4658_v17, %v4657_v53  ;;  %v14391_v26 = vpop.f32.mrf.mxu0  ;;  %v15967_v53 = vld [vmem:[%s20172_s3 + $0x220] sm:$0xff]  }
 0x351   :  { %v14392_v3 = vadd.f32 %v14391_v26, %v14390_v34  ;;  %v15916_v28 = vld [vmem:[#allocation3 + $0xb0] sm:$0xff]   ;;  %v4627_v63 = vmul.f32 0.2, %v4547_v30  ;;  %vm4595_vm10 = vcmp.ge.f32.partialorder %v4547_v30, 0.0  ;;  %v15936_v34 = vld [vmem:[#allocation3 + $0x40] sm:$0xff]  }
 0x352   :  { %13347 = vst [vmem:[#allocation3 + $0xc8] sm:$0xff] %v13159_v2   ;;  %v14393_v35 = vpop.f32.mrf.mxu0  ;;  %6719 = vmatprep.mubr.bf16.mxu1 %v15916_v28  ;;  %v18427_v17 = vld [vmem:[%s20173_s4] ss:$0 sm:$0xff] }
 0x353   :  { %v4550_v44 = vadd.f32 %v14392_v3, %v4389_v59  ;;  %6720 = vmatmul.mubr.bf16.gmra.mxu1 %v15918_v9  ;;  %v4659_v49 = vsel %vm4595_vm10, %v4547_v30, %v4627_v63  ;;  %v20258_v30 = vld [vmem:[#allocation37_spill] sm:$0xff]  ;;  %v15938_v59 = vld [vmem:[#allocation3 + $0x50] sm:$0xff]  }
 0x354   :  { %v14394_v27 = vpop.f32.mrf.mxu0  ;;  %6921 = vmatprep.mubr.bf16.mxu1 %v15921_v4  ;;  %6857 = vmatmul.mubr.bf16.gmra.mxu0 %v15919_v61  ;;  %v4405_v6 = vadd.f32 %v14292_v14, %v20258_v30  ;;  %v6602_v4 = vadd.f32 %v18340_v47, %v18427_v17  ;;  %v15935_v63 = vld [vmem:[#allocation3 + $0xb0] sm:$0xff]   ;;  %v15964_v14 = vld [vmem:[#allocation3 + $0x80] sm:$0xff]  }
 0x355   :  { %vm4596_vm11 = vcmp.ge.f32.partialorder %v4550_v44, 0.0  ;;  %v4628_v12 = vmul.f32 0.2, %v4550_v44  ;;  %v14395_v54 = vadd.f32 %v14394_v27, %v14393_v35  ;;  %v14426_v35 = vadd.f32 %v18347_v36, %v18342_v23  ;;  %v15976_v27 = vld [vmem:[%s20172_s3 + $0x218] sm:$0xff]   ;;  %v15979_v30 = vld [vmem:[#allocation3 + $0xa0] sm:$0xff]  }
 0x356   :  { %v14396_v15 = vpop.f32.mrf.mxu0 }
 0x357   :  { %v4660_v55 = vsel %vm4596_vm11, %v4550_v44, %v4628_v12  ;;  %v4555_v13 = vadd.f32 %v14395_v54, %v4394_v46  ;;  %v15951_v12 = vld [vmem:[#allocation3 + $0x58] sm:$0xff]   ;;  %v6605_v36 = vadd.f32 %v14426_v35, %v18427_v17  ;;  %v15989_v35 = vld [vmem:[#allocation3 + $0xc0] sm:$0xff]  }
 0x358   :  { %v13164_v57 = vpack.c.bf16 %v4660_v55, %v4659_v49  ;;  %v14397_v60 = vpop.f32.mrf.mxu0  ;;  %v15944_v49 = vld [vmem:[#allocation3 + $0x48] sm:$0xff]  }
 0x359   :  { %v14398_v1 = vadd.f32 %v14397_v60, %v14396_v15  ;;  %v15925_v38 = vld [vmem:[#allocation3 + $0xc8] sm:$0xff]   ;;  %v4629_v5 = vmul.f32 0.2, %v4555_v13  ;;  %vm4597_vm12 = vcmp.ge.f32.partialorder %v4555_v13, 0.0  ;;  %v15943_v15 = vld [vmem:[#allocation3 + $0xb8] sm:$0xff]  }
 0x35a   :  { %13348 = vst [vmem:[#allocation3 + $0xd0] sm:$0xff] %v13164_v57   ;;  %v14399_v50 = vpop.f32.mrf.mxu0  ;;  %6864 = vmatprep.mubr.bf16.mxu0 %v15925_v38  ;;  %v15985_v57 = vld [vmem:[%s20172_s3 + $0x210] sm:$0xff]  }
 0x35b   :  { %v4558_v25 = vadd.f32 %v14398_v1, %v4397_v45  ;;  %6922 = vmatmul.mubr.bf16.vlgmr.msra.gmra.mxu1 %v15927_v52  ;;  %v4661_v39 = vsel %vm4597_vm12, %v4555_v13, %v4629_v5  ;;  %v15948_v52 = vld [vmem:[#allocation3 + $0x68] sm:$0xff]   ;;  %v15952_v45 = vld [vmem:[#allocation3 + $0x50] sm:$0xff]   ;;  %v16003_v1 = vld [vmem:[%s20172_s3 + $0x200] sm:$0xff]  }
 0x35c   :  { %v14400_v8 = vpop.f32.mrf.mxu0  ;;  %6929 = vmatprep.mubr.bf16.mxu1 %v15930_v62  ;;  %15526 = vmatpush3.bf16.msra.mxu1 %v16418_v0  ;;  %v15954_v38 = vld [vmem:[#allocation3 + $0x70] sm:$0xff]   ;;  %v15959_v5 = vld [vmem:[#allocation3 + $0x78] sm:$0xff]  }
 0x35d   :  { %vm4598_vm13 = vcmp.ge.f32.partialorder %v4558_v25, 0.0  ;;  %v4630_v58 = vmul.f32 0.2, %v4558_v25  ;;  %v14401_v21 = vadd.f32 %v14400_v8, %v14399_v50  ;;  %6865 = vmatmul.mubr.bf16.gmra.mxu0 %v15926_v19  ;;  %15527 = vmatprep.subr.bf16.mxu1 %v15946_v43  ;;  %v15955_v62 = vld [vmem:[#allocation3 + $0x70] sm:$0xff]   ;;  %v15956_v50 = vld [vmem:[#allocation3 + $0x68] sm:$0xff]   ;;  %v15963_v8 = vld [vmem:[#allocation3 + $0x80] sm:$0xff]  }
 0x35e   :  { %v14402_v33 = vpop.f32.mrf.mxu0  ;;  %v15962_v19 = vld [vmem:[#allocation3 + $0x70] sm:$0xff]   ;;  %v15966_v0 = vld [vmem:[#allocation3 + $0x78] sm:$0xff]  }
 0x35f   :  { %v4662_v11 = vsel %vm4598_vm13, %v4558_v25, %v4630_v58  ;;  %v4563_v48 = vadd.f32 %v14401_v21, %v4402_v16  ;;  %v15957_v25 = vld [vmem:[#allocation3 + $0x68] sm:$0xff]   ;;  %v15961_v16 = vld [vmem:[#allocation3 + $0x70] sm:$0xff]   ;;  %v15965_v21 = vld [vmem:[#allocation3 + $0x78] sm:$0xff]  }
 0x360   :  { %v13169_v42 = vpack.c.bf16 %v4662_v11, %v4661_v39  ;;  %v14403_v51 = vpop.f32.mrf.mxu0  ;;  %15528 = vmatpush3.bf16.msra.mxu1 %v15946_v43  ;;  %v15994_v43 = vld [vmem:[%s20172_s3 + $0x208] sm:$0xff]   ;;  %v15971_v39 = vld [vmem:[#allocation3 + $0x90] sm:$0xff]   ;;  %v15972_v11 = vld [vmem:[#allocation3 + $0xa0] sm:$0xff]  }
 0x361   :  { %v14404_v2 = vadd.f32 %v14403_v51, %v14402_v33  ;;  %v15934_v26 = vld [vmem:[#allocation3 + $0xd0] sm:$0xff]   ;;  %15529 = vmatprep.subr.bf16.mxu1 %v15958_v56  ;;  %v4631_v28 = vmul.f32 0.2, %v4563_v48  ;;  %vm4599_vm14 = vcmp.ge.f32.partialorder %v4563_v48, 0.0  ;;  %v15969_v58 = vld [vmem:[#allocation3 + $0x88] sm:$0xff]   ;;  %v15968_v33 = vld [vmem:[#allocation3 + $0x98] sm:$0xff]  }
 0x362   :  { %13349 = vst [vmem:[#allocation3 + $0xd8] sm:$0xff] %v13169_v42   ;;  %v14533_v3 = vpop.f32.mrf.mxu0  ;;  %6872 = vmatprep.mubr.bf16.mxu0 %v15934_v26  ;;  %v15974_v42 = vld [vmem:[#allocation3 + $0x98] sm:$0xff]   ;;  %v15977_v51 = vld [vmem:[#allocation3 + $0xa8] sm:$0xff]   ;;  %v15982_v26 = vld [vmem:[#allocation3 + $0xb0] sm:$0xff]  }
 0x363   :  { %v4566_v9 = vadd.f32 %v14404_v2, %v4405_v6  ;;  %6930 = vmatmul.mubr.bf16.gmra.mxu1 %v15936_v34  ;;  %v4663_v47 = vsel %vm4599_vm14, %v4563_v48, %v4631_v28  ;;  %v15973_v48 = vld [vmem:[#allocation3 + $0xa0] sm:$0xff]   ;;  %v15975_v34 = vld [vmem:[#allocation3 + $0x98] sm:$0xff]   ;;  %v15981_v6 = vld [vmem:[#allocation3 + $0xb0] sm:$0xff]  }
 0x364   :  { %v14534_v44 = vpop.f32.mrf.mxu0  ;;  %6937 = vmatprep.mubr.bf16.mxu1 %v15938_v59  ;;  %15530 = vmatpush3.bf16.msra.mxu1 %v15958_v56  ;;  %v15970_v56 = vld [vmem:[#allocation3 + $0x80] sm:$0xff]   ;;  %v15987_v59 = vld [vmem:[#allocation3 + $0xb8] sm:$0xff]   ;;  %v15984_v28 = vld [vmem:[#allocation3 + $0xa8] sm:$0xff]  }
 0x365   :  { %vm4600_vm15 = vcmp.ge.f32.partialorder %v4566_v9, 0.0  ;;  %v4632_v24 = vmul.f32 0.2, %v4566_v9  ;;  %v14535_v46 = vadd.f32 %v14534_v44, %v14533_v3  ;;  %6873 = vmatmul.mubr.bf16.gmra.mxu0 %v15935_v63  ;;  %15531 = vmatprep.subr.bf16.mxu1 %v15967_v53  ;;  %v15980_v2 = vld [vmem:[#allocation3 + $0xa0] sm:$0xff]   ;;  %v15983_v3 = vld [vmem:[#allocation3 + $0xa8] sm:$0xff]   ;;  %v15990_v63 = vld [vmem:[#allocation3 + $0xd0] sm:$0xff]  }
 0x366   :  { %v14536_v61 = vpop.f32.mrf.mxu0  ;;  %v15991_v44 = vld [vmem:[#allocation3 + $0xd0] sm:$0xff]  }
 0x367   :  { %v4664_v29 = vsel %vm4600_vm15, %v4566_v9, %v4632_v24  ;;  %v18437_v23 = vadd.f32 %v14535_v46, %v6602_v4  ;;  %v15986_v9 = vld [vmem:[#allocation3 + $0xc8] sm:$0xff]   ;;  %v15988_v4 = vld [vmem:[#allocation3 + $0xb0] sm:$0xff]   ;;  %v18451_v24 = vpop.f32.mrf.mxu1 }
 0x368   :  { %v13174_v54 = vpack.c.bf16 %v4664_v29, %v4663_v47  ;;  %v14537_v55 = vpop.f32.mrf.mxu0  ;;  %15532 = vmatpush3.bf16.msra.mxu1 %v15967_v53  ;;  %v15978_v53 = vld [vmem:[#allocation3 + $0xa8] sm:$0xff]  }
 0x369   :  { %v15942_v13 = vld [vmem:[#allocation3 + $0xd8] sm:$0xff]   ;;  %v14538_v37 = vadd.f32 %v14537_v55, %v14536_v61  ;;  %15533 = vmatprep.subr.bf16.mxu1 %v15976_v27  ;;  %v18453_v46 = vpop.f32.mrf.mxu1  ;;  %v15993_v29 = vld [vmem:[#allocation3 + $0xc8] sm:$0xff]  }
 0x36a   :  { %13350 = vst [vmem:[#allocation3 + $0xe0] sm:$0xff] %v13174_v54   ;;  %6880 = vmatprep.mubr.bf16.mxu0 %v15942_v13  ;;  %v15995_v61 = vld [vmem:[#allocation3 + $0xd8] sm:$0xff]   ;;  %v6610_v13 = vadd.f32 %v18352_v41, %v18427_v17 }
 0x36b   :  { %v18443_v60 = vadd.f32 %v14538_v37, %v6605_v36  ;;  %6938 = vmatmul.mubr.bf16.gmra.mxu1 %v15944_v49  ;;  %v14432_v37 = vadd.f32 %v18359_v18, %v18355_v10 }
 0x36c   :  { %6945 = vmatprep.mubr.bf16.mxu1 %v15951_v12  ;;  %15534 = vmatpush3.bf16.msra.mxu1 %v15976_v27  ;;  %v15992_v27 = vld [vmem:[#allocation3 + $0xc8] sm:$0xff]   ;;  %v15996_v12 = vld [vmem:[#allocation3 + $0xd8] sm:$0xff]  }
 0x36d   :  { %6881 = vmatmul.mubr.bf16.gmra.mxu0 %v15943_v15  ;;  %15535 = vmatprep.subr.bf16.mxu1 %v15985_v57 }
 0x36e   :  { %7082 = vmatprep.mubr.bf16.mxu0 %v15948_v52 }
 0x370   :  { %15536 = vmatpush3.bf16.msra.mxu1 %v15985_v57 }
 0x371   :  { %15537 = vmatprep.subr.bf16.mxu1 %v15994_v43  ;;  %v16000_v41 = vld [vmem:[#allocation3 + $0xe0] sm:$0xff]  }
 0x373   :  { %6946 = vmatmul.mubr.bf16.gmra.mxu1 %v15952_v45 }
 0x374   :  { %6953 = vmatprep.mubr.bf16.mxu1 %v15954_v38  ;;  %15538 = vmatpush3.bf16.msra.mxu1 %v15994_v43  ;;  %v15999_v38 = vld [vmem:[#allocation3 + $0xe0] sm:$0xff]  }
 0x375   :  { %7083 = vmatmul.mubr.bf16.vlgmr.msra.gmra.mxu0 %v15953_v31  ;;  %15539 = vmatprep.subr.bf16.mxu1 %v16003_v1  ;;  %v15997_v31 = vld [vmem:[#allocation3 + $0xd0] sm:$0xff]  }
 0x376   :  { %7090 = vmatprep.mubr.bf16.mxu0 %v15955_v62 }
 0x378   :  { %15540 = vmatpush3.bf16.msra.mxu1 %v16003_v1 }
 0x37b   :  { %6954 = vmatmul.mubr.bf16.gmra.mxu1 %v15956_v50 }
 0x37c   :  { %6961 = vmatprep.mubr.bf16.mxu1 %v15959_v5  ;;  %v15998_v5 = vld [vmem:[#allocation3 + $0xd0] sm:$0xff]  }
 0x37d   :  { %7091 = vmatmul.mubr.bf16.gmra.mxu0 %v15957_v25  ;;  %v6613_v25 = vadd.f32 %v14432_v37, %v18427_v17  ;;  %v16030_v37 = vld [vmem:[%s20174_s5 + $0x78] sm:$0xff]  }
 0x37e   :  { %7098 = vmatprep.mubr.bf16.mxu0 %v15960_v40  ;;  %14877 = vmatprep.subr.bf16.mxu1 %v16030_v37  ;;  %v16035_v37 = vld [vmem:[%s20174_s5 + $0x28] sm:$0xff]  }
 0x383   :  { %6962 = vmatmul.mubr.bf16.gmra.mxu1 %v15961_v16 }
 0x384   :  { %6969 = vmatprep.mubr.bf16.mxu1 %v15963_v8 }
 0x385   :  { %7099 = vmatmul.mubr.bf16.gmra.mxu0 %v15962_v19 }
 0x386   :  { %7106 = vmatprep.mubr.bf16.mxu0 %v15964_v14 }
 0x38b   :  { %6970 = vmatmul.mubr.bf16.gmra.mxu1 %v15965_v21  ;;  %v14438_v21 = vadd.f32 %v18371_v32, %v18367_v22 }
 0x38c   :  { %6977 = vmatprep.mubr.bf16.mxu1 %v15969_v58  ;;  %v6618_v58 = vadd.f32 %v18364_v20, %v18427_v17 }
 0x38d   :  { %7107 = vmatmul.mubr.bf16.gmra.mxu0 %v15966_v0 }
 0x38e   :  { %7114 = vmatprep.mubr.bf16.mxu0 %v15968_v33  ;;  %v16004_v33 = vld [vmem:[#allocation3 + $0xe8] sm:$0xff]  }
 0x393   :  { %6978 = vmatmul.mubr.bf16.gmra.mxu1 %v15970_v56 }
 0x394   :  { %6985 = vmatprep.mubr.bf16.mxu1 %v15972_v11  ;;  %v16001_v11 = vld [vmem:[#allocation3 + $0xd8] sm:$0xff]  }
 0x395   :  { %7115 = vmatmul.mubr.bf16.gmra.mxu0 %v15971_v39 }
 0x396   :  { %7122 = vmatprep.mubr.bf16.mxu0 %v15973_v48 }
 0x39b   :  { %6986 = vmatmul.mubr.bf16.gmra.mxu1 %v15974_v42 }
 0x39c   :  { %6993 = vmatprep.mubr.bf16.mxu1 %v15977_v51  ;;  %v16005_v51 = vld [vmem:[#allocation3 + $0xf8] sm:$0xff]  }
 0x39d   :  { %7123 = vmatmul.mubr.bf16.gmra.mxu0 %v15975_v34 }
 0x39e   :  { %7130 = vmatprep.mubr.bf16.mxu0 %v15978_v53 }
 0x3a3   :  { %6994 = vmatmul.mubr.bf16.gmra.mxu1 %v15979_v30  ;;  %v16002_v30 = vld [vmem:[#allocation3 + $0xd8] sm:$0xff]  }
 0x3a4   :  { %7001 = vmatprep.mubr.bf16.mxu1 %v15981_v6  ;;  %v6621_v6 = vadd.f32 %v14438_v21, %v18427_v17 }
 0x3a5   :  { %7131 = vmatmul.mubr.bf16.gmra.mxu0 %v15980_v2 }
 0x3a6   :  { %7138 = vmatprep.mubr.bf16.mxu0 %v15982_v26 }
 0x3ab   :  { %7002 = vmatmul.mubr.bf16.gmra.mxu1 %v15983_v3 }
 0x3ac   :  { %7009 = vmatprep.mubr.bf16.mxu1 %v15987_v59 }
 0x3ad   :  { %7139 = vmatmul.mubr.bf16.gmra.mxu0 %v15984_v28  ;;  %v6626_v28 = vadd.f32 %v18376_v7, %v18427_v17 }
 0x3ae   :  { %7146 = vmatprep.mubr.bf16.mxu0 %v15986_v9  ;;  %v14444_v9 = vadd.f32 %v18453_v46, %v18451_v24 }
 0x3b3   :  { %7010 = vmatmul.mubr.bf16.gmra.mxu1 %v15988_v4 }
 0x3b4   :  { %7017 = vmatprep.mubr.bf16.mxu1 %v15990_v63 }
 0x3b5   :  { %7147 = vmatmul.mubr.bf16.gmra.mxu0 %v15989_v35 }
 0x3b6   :  { %7154 = vmatprep.mubr.bf16.mxu0 %v15991_v44  ;;  %v16006_v44 = vld [vmem:[#allocation3 + $0xe0] sm:$0xff]  }
 0x3bb   :  { %v14445_v47 = vpop.f32.mrf.mxu1  ;;  %7018 = vmatmul.mubr.bf16.gmra.mxu1 %v15992_v27  ;;  %v16007_v27 = vld [vmem:[#allocation3 + $0xf0] sm:$0xff]  }
 0x3bc   :  { %7025 = vmatprep.mubr.bf16.mxu1 %v15995_v61  ;;  %v14539_v36 = vpop.f32.mrf.mxu0 }
 0x3bd   :  { %7155 = vmatmul.mubr.bf16.gmra.mxu0 %v15993_v29  ;;  %v14446_v54 = vpop.f32.mrf.mxu1  ;;  %v16008_v29 = vld [vmem:[#allocation3 + $0x70] sm:$0xff]  }
 0x3be   :  { %7162 = vmatprep.mubr.bf16.mxu0 %v15996_v12  ;;  %v18455_v15 = vadd.f32 %v14446_v54, %v14445_v47  ;;  %v14540_v49 = vpop.f32.mrf.mxu0  ;;  %v16009_v12 = vld [vmem:[#allocation3 + $0x100] sm:$0xff]  }
 0x3bf   :  { %v14448_v55 = vpop.f32.mrf.mxu1  ;;  %v14541_v57 = vadd.f32 %v14540_v49, %v14539_v36  ;;  %v6629_v49 = vadd.f32 %v14444_v9, %v18427_v17 }
 0x3c0   :  { %v14542_v52 = vpop.f32.mrf.mxu0 }
 0x3c1   :  { %v14449_v43 = vpop.f32.mrf.mxu1  ;;  %v18461_v45 = vadd.f32 %v14541_v57, %v6610_v13 }
 0x3c2   :  { %v18463_v1 = vadd.f32 %v14449_v43, %v14448_v55  ;;  %v14543_v62 = vpop.f32.mrf.mxu0  ;;  %v16010_v43 = vld [vmem:[#allocation3 + $0xf8] sm:$0xff]  }
 0x3c3   :  { %v14451_v50 = vpop.f32.mrf.mxu1  ;;  %7026 = vmatmul.mubr.bf16.gmra.mxu1 %v15997_v31  ;;  %v14544_v40 = vadd.f32 %v14543_v62, %v14542_v52  ;;  %v16011_v31 = vld [vmem:[#allocation3 + $0x78] sm:$0xff]  }
 0x3c4   :  { %7033 = vmatprep.mubr.bf16.mxu1 %v15999_v38  ;;  %v14545_v16 = vpop.f32.mrf.mxu0  ;;  %v6634_v38 = vadd.f32 %v18455_v15, %v18427_v17  ;;  %v6637_v15 = vadd.f32 %v18463_v1, %v18427_v17 }
 0x3c5   :  { %7163 = vmatmul.mubr.bf16.gmra.mxu0 %v15998_v5  ;;  %v14452_v10 = vpop.f32.mrf.mxu1  ;;  %v18466_v18 = vadd.f32 %v14544_v40, %v6613_v25  ;;  %v16013_v5 = vld [vmem:[#allocation3 + $0x108] sm:$0xff]   ;;  %v16031_v25 = vld [vmem:[%s20174_s5 + $0x38] sm:$0xff]  }
 0x3c6   :  { %7170 = vmatprep.mubr.bf16.mxu0 %v16000_v41  ;;  %v18468_v8 = vadd.f32 %v14452_v10, %v14451_v50  ;;  %v14546_v19 = vpop.f32.mrf.mxu0  ;;  %v16012_v50 = vld [vmem:[#allocation3 + $0x80] sm:$0xff]  }
 0x3c7   :  { %v14454_v14 = vpop.f32.mrf.mxu1  ;;  %v14547_v0 = vadd.f32 %v14546_v19, %v14545_v16 }
 0x3c8   :  { %v14548_v56 = vpop.f32.mrf.mxu0  ;;  %v6642_v1 = vadd.f32 %v18468_v8, %v18427_v17 }
 0x3c9   :  { %v14455_v39 = vpop.f32.mrf.mxu1  ;;  %v18474_v48 = vadd.f32 %v14547_v0, %v6618_v58 }
 0x3ca   :  { %v18476_v42 = vadd.f32 %v14455_v39, %v14454_v14  ;;  %v14549_v34 = vpop.f32.mrf.mxu0 }
 0x3cb   :  { %v14457_v53 = vpop.f32.mrf.mxu1  ;;  %7034 = vmatmul.mubr.bf16.gmra.mxu1 %v16001_v11  ;;  %v14550_v20 = vadd.f32 %v14549_v34, %v14548_v56  ;;  %v16032_v56 = vld [vmem:[%s20174_s5 + $0x70] sm:$0xff]  }
 0x3cc   :  { %7041 = vmatprep.mubr.bf16.mxu1 %v16004_v33  ;;  %v14551_v2 = vpop.f32.mrf.mxu0  ;;  %v16015_v33 = vld [vmem:[#allocation3 + $0x88] sm:$0xff]   ;;  %v6645_v8 = vadd.f32 %v18476_v42, %v18427_v17 }
 0x3cd   :  { %7171 = vmatmul.mubr.bf16.gmra.mxu0 %v16002_v30  ;;  %v14458_v22 = vpop.f32.mrf.mxu1  ;;  %v18479_v32 = vadd.f32 %v14550_v20, %v6621_v6  ;;  %v16016_v6 = vld [vmem:[#allocation3 + $0xa0] sm:$0xff]   ;;  %v16017_v20 = vld [vmem:[#allocation3 + $0x110] sm:$0xff]  }
 0x3ce   :  { %v18481_v26 = vadd.f32 %v14458_v22, %v14457_v53  ;;  %7178 = vmatprep.mubr.bf16.mxu0 %v16005_v51  ;;  %v14552_v59 = vpop.f32.mrf.mxu0  ;;  %v16014_v53 = vld [vmem:[#allocation3 + $0x100] sm:$0xff]  }
 0x3cf   :  { %v14460_v3 = vpop.f32.mrf.mxu1  ;;  %v14553_v4 = vadd.f32 %v14552_v59, %v14551_v2  ;;  %v16033_v2 = vld [vmem:[%s20174_s5 + $0x30] sm:$0xff]  }
 0x3d0   :  { %v14554_v35 = vpop.f32.mrf.mxu0  ;;  %v6650_v42 = vadd.f32 %v18481_v26, %v18427_v17 }
 0x3d1   :  { %v14461_v63 = vpop.f32.mrf.mxu1  ;;  %v18487_v61 = vadd.f32 %v14553_v4, %v6626_v28 }
 0x3d2   :  { %v18489_v47 = vadd.f32 %v14461_v63, %v14460_v3  ;;  %v14555_v36 = vpop.f32.mrf.mxu0 }
 0x3d3   :  { %v14463_v54 = vpop.f32.mrf.mxu1  ;;  %7042 = vmatmul.mubr.bf16.gmra.mxu1 %v16006_v44  ;;  %v14556_v7 = vadd.f32 %v14555_v36, %v14554_v35 }
 0x3d4   :  { %15541 = vmatprep.mubr.bf16.mxu1 %v16008_v29  ;;  %v14557_v55 = vpop.f32.mrf.mxu0 }
 0x3d5   :  { %7179 = vmatmul.mubr.bf16.gmra.mxu0 %v16007_v27  ;;  %v14464_v24 = vpop.f32.mrf.mxu1  ;;  %v18492_v46 = vadd.f32 %v14556_v7, %v6629_v49  ;;  %v16034_v27 = vld [vmem:[%s20174_s5 + $0x68] sm:$0xff]  }
 0x3d6   :  { %v18494_v13 = vadd.f32 %v14464_v24, %v14463_v54  ;;  %7186 = vmatprep.mubr.bf16.mxu0 %v16009_v12  ;;  %v14558_v57 = vpop.f32.mrf.mxu0  ;;  %v16018_v49 = vld [vmem:[#allocation3 + $0x108] sm:$0xff]   ;;  %v16020_v24 = vld [vmem:[#allocation3 + $0xb0] sm:$0xff]  }
 0x3d7   :  { %v14466_v52 = vpop.f32.mrf.mxu1  ;;  %v14559_v62 = vadd.f32 %v14558_v57, %v14557_v55  ;;  %v16019_v7 = vld [vmem:[#allocation3 + $0xa8] sm:$0xff]  }
 0x3d8   :  { %v14560_v40 = vpop.f32.mrf.mxu0 }
 0x3d9   :  { %v14467_v41 = vpop.f32.mrf.mxu1  ;;  %v18504_v16 = vadd.f32 %v14559_v62, %v6634_v38 }
 0x3da   :  { %v18506_v10 = vadd.f32 %v14467_v41, %v14466_v52  ;;  %v14561_v19 = vpop.f32.mrf.mxu0  ;;  %v16036_v41 = vld [vmem:[%s20174_s5 + $0x60] sm:$0xff]  }
 0x3db   :  { %v14469_v14 = vpop.f32.mrf.mxu1  ;;  %15542 = vmatmul.mubr.bf16.vlgmr.msra.gmra.mxu1 %v16011_v31  ;;  %v14562_v58 = vadd.f32 %v14561_v19, %v14560_v40  ;;  %v16021_v40 = vld [vmem:[#allocation3 + $0xb8] sm:$0xff]  }
 0x3dc   :  { %15545 = vmatprep.mubr.bf16.mxu1 %v16012_v50  ;;  %14878 = vmatpush3.bf16.msra.mxu1 %v16031_v25  ;;  %v14563_v21 = vpop.f32.mrf.mxu0  ;;  %v6653_v50 = vadd.f32 %v18489_v47, %v18427_v17  ;;  %v6658_v47 = vadd.f32 %v18494_v13, %v18427_v17 }
 0x3dd   :  { %7187 = vmatmul.mubr.bf16.gmra.mxu0 %v16010_v43  ;;  %v14470_v0 = vpop.f32.mrf.mxu1  ;;  %v18513_v39 = vadd.f32 %v14562_v58, %v6637_v15  ;;  %14879 = vmatprep.subr.bf16.mxu1 %v16032_v56 }
 0x3de   :  { %v18515_v11 = vadd.f32 %v14470_v0, %v14469_v14  ;;  %7194 = vmatprep.mubr.bf16.mxu0 %v16013_v5  ;;  %v14564_v51 = vpop.f32.mrf.mxu0  ;;  %v16022_v0 = vld [vmem:[#allocation3 + $0xd0] sm:$0xff]  }
 0x3df   :  { %v14472_v34 = vpop.f32.mrf.mxu1  ;;  %v14565_v30 = vadd.f32 %v14564_v51, %v14563_v21 }
 0x3e0   :  { %v14566_v22 = vpop.f32.mrf.mxu0  ;;  %14880 = vmatpush3.bf16.msra.mxu1 %v16033_v2  ;;  %v16039_v2 = vld [vmem:[%s20174_s5 + $0xb8] sm:$0xff]  }
 0x3e1   :  { %v14473_v59 = vpop.f32.mrf.mxu1  ;;  %v18522_v3 = vadd.f32 %v14565_v30, %v6642_v1  ;;  %14881 = vmatprep.subr.bf16.mxu1 %v16034_v27 }
 0x3e2   :  { %v18524_v28 = vadd.f32 %v14473_v59, %v14472_v34  ;;  %v14567_v9 = vpop.f32.mrf.mxu0 }
 0x3e3   :  { %v14475_v4 = vpop.f32.mrf.mxu1  ;;  %15546 = vmatmul.mubr.bf16.gmra.mxu1 %v16015_v33  ;;  %v14568_v35 = vadd.f32 %v14567_v9, %v14566_v22  ;;  %v16037_v33 = vld [vmem:[%s20174_s5 + $0x20] sm:$0xff]   ;;  %v16040_v9 = vld [vmem:[%s20174_s5 + $0x58] sm:$0xff]  }
 0x3e4   :  { %15549 = vmatprep.mubr.bf16.mxu1 %v16016_v6  ;;  %v14569_v63 = vpop.f32.mrf.mxu0  ;;  %14882 = vmatpush3.bf16.msra.mxu1 %v16035_v37  ;;  %v6661_v6 = vadd.f32 %v18506_v10, %v18427_v17 }
 0x3e5   :  { %7195 = vmatmul.mubr.bf16.gmra.mxu0 %v16014_v53  ;;  %v14476_v44 = vpop.f32.mrf.mxu1  ;;  %v18531_v29 = vadd.f32 %v14568_v35, %v6645_v8  ;;  %14883 = vmatprep.subr.bf16.mxu1 %v16036_v41 }
 0x3e6   :  { %v18533_v12 = vadd.f32 %v14476_v44, %v14475_v4  ;;  %7202 = vmatprep.mubr.bf16.mxu0 %v16017_v20  ;;  %v14570_v36 = vpop.f32.mrf.mxu0  ;;  %v16038_v20 = vld [vmem:[%s20174_s5 + $0xf8] sm:$0xff]   ;;  %v6666_v44 = vadd.f32 %v18515_v11, %v18427_v17 }
 0x3e7   :  { %v14478_v54 = vpop.f32.mrf.mxu1  ;;  %v14571_v55 = vadd.f32 %v14570_v36, %v14569_v63  ;;  %14989 = vmatprep.subr.bf16.mxu0 %v16038_v20  ;;  %v16023_v63 = vld [vmem:[#allocation3 + $0xd8] sm:$0xff]   ;;  %v16024_v36 = vld [vmem:[#allocation3 + $0xe0] sm:$0xff]  }
 0x3e8   :  { %v14572_v57 = vpop.f32.mrf.mxu0  ;;  %14884 = vmatpush3.bf16.msra.mxu1 %v16037_v33  ;;  %14990 = vmatpush3.bf16.msra.mxu0 %v16039_v2  ;;  %v16047_v33 = vld [vmem:[%s20174_s5 + $0x10] sm:$0xff]  }
 0x3e9   :  { %v14479_v52 = vpop.f32.mrf.mxu1  ;;  %v18540_v43 = vadd.f32 %v14571_v55, %v6650_v42  ;;  %14885 = vmatprep.subr.bf16.mxu1 %v16040_v9  ;;  %v16051_v9 = vld [vmem:[%s20174_s5 + $0x98] sm:$0xff]  }
 0x3ea   :  { %v18542_v31 = vadd.f32 %v14479_v52, %v14478_v54  ;;  %v14573_v38 = vpop.f32.mrf.mxu0  ;;  %v16041_v54 = vld [vmem:[%s20174_s5 + $0x18] sm:$0xff]   ;;  %v6669_v52 = vadd.f32 %v18524_v28, %v18427_v17  ;;  %v16026_v28 = vld [vmem:[#allocation3 + $0x100] sm:$0xff]  }
 0x3eb   :  { %v14481_v62 = vpop.f32.mrf.mxu1  ;;  %15550 = vmatmul.mubr.bf16.gmra.mxu1 %v16019_v7  ;;  %v14574_v26 = vadd.f32 %v14573_v38, %v14572_v57  ;;  %v16043_v7 = vld [vmem:[%s20174_s5 + $0xb0] sm:$0xff]  }
 0x3ec   :  { %15553 = vmatprep.mubr.bf16.mxu1 %v16020_v24  ;;  %v14575_v5 = vpop.f32.mrf.mxu0  ;;  %14886 = vmatpush3.bf16.msra.mxu1 %v16041_v54 }
 0x3ed   :  { %7203 = vmatmul.mubr.bf16.gmra.mxu0 %v16018_v49  ;;  %v14482_v25 = vpop.f32.mrf.mxu1  ;;  %v18549_v19 = vadd.f32 %v14574_v26, %v6653_v50  ;;  %v16042_v49 = vld [vmem:[%s20174_s5 + $0xf0] sm:$0xff]   ;;  %v16045_v50 = vld [vmem:[%s20174_s5 + $0xa8] sm:$0xff]  }
 0x3ee   :  { %v18551_v14 = vadd.f32 %v14482_v25, %v14481_v62  ;;  %v14576_v15 = vpop.f32.mrf.mxu0  ;;  %14991 = vmatprep.subr.bf16.mxu0 %v16042_v49  ;;  %v16044_v62 = vld [vmem:[%s20174_s5 + $0xe8] sm:$0xff]  }
 0x3ef   :  { %v14484_v58 = vpop.f32.mrf.mxu1  ;;  %v14577_v21 = vadd.f32 %v14576_v15, %v14575_v5  ;;  %14992 = vmatpush3.bf16.msra.mxu0 %v16043_v7  ;;  %v16025_v25 = vld [vmem:[#allocation3 + $0xe8] sm:$0xff]  }
 0x3f0   :  { %v14578_v56 = vpop.f32.mrf.mxu0  ;;  %14993 = vmatprep.subr.bf16.mxu0 %v16044_v62 }
 0x3f1   :  { %v14485_v51 = vpop.f32.mrf.mxu1  ;;  %v18558_v34 = vadd.f32 %v14577_v21, %v6658_v47  ;;  %v18610_v47 = vld [vmem:[%s20173_s4] ss:$0 sm:$0xff] }
 0x3f2   :  { %v18560_v53 = vadd.f32 %v14485_v51, %v14484_v58  ;;  %v14579_v1 = vpop.f32.mrf.mxu0  ;;  %v6674_v21 = vadd.f32 %v18610_v47, %v18533_v12  ;;  %v16049_v51 = vld [vmem:[%s20174_s5 + $0xa0] sm:$0xff]   ;;  %v6677_v2 = vadd.f32 %v18610_v47, %v18542_v31  ;;  %v6682_v7 = vadd.f32 %v18610_v47, %v18551_v14 }
 0x3f3   :  { %v14487_v30 = vpop.f32.mrf.mxu1  ;;  %15554 = vmatmul.mubr.bf16.gmra.mxu1 %v16021_v40  ;;  %v14580_v13 = vadd.f32 %v14579_v1, %v14578_v56  ;;  %v16046_v40 = vld [vmem:[%s20174_s5 + $0x50] sm:$0xff]   ;;  %14994 = vmatpush3.bf16.msra.mxu0 %v16045_v50  ;;  %v16048_v56 = vld [vmem:[%s20174_s5 + $0xe0] sm:$0xff]  }
 0x3f4   :  { %15557 = vmatprep.mubr.bf16.mxu1 %v16022_v0  ;;  %v14581_v22 = vpop.f32.mrf.mxu0  ;;  %14887 = vmatprep.subr.bf16.mxu1 %v16046_v40  ;;  %v16056_v40 = vld [vmem:[%s20174_s5 + $0xc8] sm:$0xff]  }
 0x3f5   :  { %v14488_v59 = vpop.f32.mrf.mxu1  ;;  %v18573_v4 = vadd.f32 %v14580_v13, %v6661_v6  ;;  %14888 = vmatpush3.bf16.msra.mxu1 %v16047_v33  ;;  %14995 = vmatprep.subr.bf16.mxu0 %v16048_v56 }
 0x3f6   :  { %v18575_v8 = vadd.f32 %v14488_v59, %v14487_v30  ;;  %v14582_v10 = vpop.f32.mrf.mxu0  ;;  %v16050_v59 = vld [vmem:[%s20174_s5 + $0xd8] sm:$0xff]  }
 0x3f7   :  { %v14490_v35 = vpop.f32.mrf.mxu1  ;;  %v14583_v27 = vadd.f32 %v14582_v10, %v14581_v22  ;;  %14996 = vmatpush3.bf16.msra.mxu0 %v16049_v51 }
 0x3f8   :  { %v14584_v42 = vpop.f32.mrf.mxu0  ;;  %14997 = vmatprep.subr.bf16.mxu0 %v16050_v59 }
 0x3f9   :  { %v14491_v55 = vpop.f32.mrf.mxu1  ;;  %v18588_v24 = vadd.f32 %v14583_v27, %v6666_v44  ;;  %v16052_v44 = vld [vmem:[%s20174_s5 + $0x48] sm:$0xff]  }
 0x3fa   :  { %v18590_v37 = vadd.f32 %v14491_v55, %v14490_v35  ;;  %v14585_v11 = vpop.f32.mrf.mxu0  ;;  %14889 = vmatprep.subr.bf16.mxu1 %v16052_v44  ;;  %v16053_v55 = vld [vmem:[%s20174_s5 + $0x8] sm:$0xff]  }
 0x3fb   :  { %v14493_v57 = vpop.f32.mrf.mxu1  ;;  %15558 = vmatmul.mubr.bf16.gmra.mxu1 %v16023_v63  ;;  %v14586_v38 = vadd.f32 %v14585_v11, %v14584_v42  ;;  %v16027_v63 = vld [vmem:[#allocation3 + $0x108] sm:$0xff]   ;;  %14998 = vmatpush3.bf16.msra.mxu0 %v16051_v9  ;;  %v16054_v11 = vld [vmem:[%s20174_s5 + $0xd0] sm:$0xff]  }
 0x3fc   :  { %15561 = vmatprep.mubr.bf16.mxu1 %v16024_v36  ;;  %v14587_v26 = vpop.f32.mrf.mxu0  ;;  %v16028_v36 = vld [vmem:[#allocation3 + $0x110] sm:$0xff]   ;;  %14890 = vmatpush3.bf16.msra.mxu1 %v16053_v55  ;;  %v16066_v55 = vld [vmem:[%s20174_s5 + $0x178] sm:$0xff]  }
 0x3fd   :  { %v14494_v5 = vpop.f32.mrf.mxu1  ;;  %v18603_v41 = vadd.f32 %v14586_v38, %v6669_v52  ;;  %14999 = vmatprep.subr.bf16.mxu0 %v16054_v11 }
 0x3fe   :  { %v18605_v17 = vadd.f32 %v14494_v5, %v14493_v57  ;;  %v14588_v15 = vpop.f32.mrf.mxu0  ;;  %v16055_v57 = vld [vmem:[%s20174_s5 + $0x90] sm:$0xff]   ;;  %v6685_v5 = vadd.f32 %v18610_v47, %v18560_v53  ;;  %v16059_v53 = vld [vmem:[%s20174_s5] sm:$0xff]  }
 0x3ff   :  { %v14496_v58 = vpop.f32.mrf.mxu1  ;;  %v14589_v0 = vadd.f32 %v14588_v15, %v14587_v26  ;;  %15000 = vmatpush3.bf16.msra.mxu0 %v16055_v57 }
 0x400   :  { %v14590_v1 = vpop.f32.mrf.mxu0  ;;  %15001 = vmatprep.subr.bf16.mxu0 %v16056_v40 }
 0x401   :  { %v14497_v30 = vpop.f32.mrf.mxu1  ;;  %v18623_v6 = vadd.f32 %v14589_v0, %v6674_v21  ;;  %v16029_v21 = vld [vmem:[#allocation3 + $0x118] sm:$0xff]   ;;  %v16058_v0 = vld [vmem:[%s20174_s5 + $0x40] sm:$0xff]  }
 0x402   :  { %v18625_v13 = vadd.f32 %v14497_v30, %v14496_v58  ;;  %v14591_v12 = vpop.f32.mrf.mxu0  ;;  %14891 = vmatprep.subr.bf16.mxu1 %v16058_v0  ;;  %v6690_v30 = vadd.f32 %v18610_v47, %v18575_v8 }
 0x403   :  { %v14499_v20 = vpop.f32.mrf.mxu1  ;;  %15562 = vmatmul.mubr.bf16.gmra.mxu1 %v16025_v25  ;;  %v14592_v22 = vadd.f32 %v14591_v12, %v14590_v1 }
 0x404   :  { %15565 = vmatprep.mubr.bf16.mxu1 %v16026_v28  ;;  %v14593_v10 = vpop.f32.mrf.mxu0  ;;  %v16057_v28 = vld [vmem:[%s20174_s5 + $0x88] sm:$0xff]   ;;  %14892 = vmatpush3.bf16.msra.mxu1 %v16059_v53  ;;  %v6701_v53 = vadd.f32 %v18610_v47, %v18625_v13 }
 0x405   :  { %v14500_v35 = vpop.f32.mrf.mxu1  ;;  %v18638_v27 = vadd.f32 %v14592_v22, %v6677_v2  ;;  %15002 = vmatpush3.bf16.msra.mxu0 %v16057_v28  ;;  %v16061_v2 = vld [vmem:[#allocation4 + $0x8] sm:$0xff]   ;;  %v16062_v22 = vld [vmem:[%s20174_s5 + $0x80] sm:$0xff]   ;;  %15101 = vmatprep.subr.bf16.mxu1 %v16066_v55 }
 0x406   :  { %v18640_v31 = vadd.f32 %v14500_v35, %v14499_v20  ;;  %v14594_v54 = vpop.f32.mrf.mxu0  ;;  %v16060_v20 = vld [vmem:[%s20174_s5 + $0xc0] sm:$0xff]  }
 0x407   :  { %v14502_v49 = vpop.f32.mrf.mxu1  ;;  %v14595_v42 = vadd.f32 %v14594_v54, %v14593_v10  ;;  %v16064_v10 = vld [vmem:[#allocation4 + $0x30] sm:$0xff]   ;;  %15003 = vmatprep.subr.bf16.mxu0 %v16060_v20 }
 0x408   :  { %v14596_v52 = vpop.f32.mrf.mxu0  ;;  %9563 = vmatprep.mubr.bf16.mxu0 %v16064_v10 }
 0x409   :  { %v14503_v38 = vpop.f32.mrf.mxu1  ;;  %v18653_v62 = vadd.f32 %v14595_v42, %v6682_v7  ;;  %15004 = vmatpush3.bf16.msra.mxu0 %v16062_v22  ;;  %v16069_v22 = vld [vmem:[#allocation4 + $0x8] sm:$0xff]  }
 0x40a   :  { %v18655_v50 = vadd.f32 %v14503_v38, %v14502_v49  ;;  %v14597_v14 = vpop.f32.mrf.mxu0  ;;  %v16065_v49 = vld [vmem:[#allocation4 + $0x10] sm:$0xff]  }
 0x40b   :  { %v14505_v26 = vpop.f32.mrf.mxu1  ;;  %15566 = vmatmul.mubr.bf16.gmra.mxu1 %v16027_v63  ;;  %v14598_v25 = vadd.f32 %v14597_v14, %v14596_v52  ;;  %v16063_v14 = vld [vmem:[#allocation4] sm:$0xff]  }
 0x40c   :  { %15569 = vmatprep.mubr.bf16.mxu1 %v16028_v36  ;;  %v14599_v15 = vpop.f32.mrf.mxu0  ;;  %v6693_v36 = vadd.f32 %v18610_v47, %v18590_v37  ;;  %9564 = vmatmul.mubr.bf16.vlgmr.msra.gmra.mxu0 %v16065_v49  ;;  %v6698_v37 = vadd.f32 %v18610_v47, %v18605_v17 }
 0x40d   :  { %v14506_v58 = vpop.f32.mrf.mxu1  ;;  %v18671_v33 = vadd.f32 %v14598_v25, %v6685_v5  ;;  %v16067_v5 = vld [vmem:[%s20174_s5 + $0x138] sm:$0xff]   ;;  %v16068_v25 = vld [vmem:[#allocation4 + $0x10] sm:$0xff]  }
 0x40e   :  { %v18673_v56 = vadd.f32 %v14506_v58, %v14505_v26  ;;  %v14600_v51 = vpop.f32.mrf.mxu0 }
 0x40f   :  { %v14508_v1 = vpop.f32.mrf.mxu1  ;;  %v14601_v12 = vadd.f32 %v14600_v51, %v14599_v15 }
 0x410   :  { %v14602_v59 = vpop.f32.mrf.mxu0 }
 0x411   :  { %v14509_v9 = vpop.f32.mrf.mxu1  ;;  %v18683_v35 = vadd.f32 %v14601_v12, %v6690_v30 }
 0x412   :  { %v18685_v63 = vadd.f32 %v14509_v9, %v14508_v1  ;;  %v14603_v8 = vpop.f32.mrf.mxu0 }
 0x413   :  { %v14511_v44 = vpop.f32.mrf.mxu1  ;;  %15570 = vmatmul.mubr.bf16.gmra.mxu1 %v16029_v21  ;;  %v14604_v54 = vadd.f32 %v14603_v8, %v14602_v59  ;;  %v6706_v59 = vadd.f32 %v18610_v47, %v18640_v31 }
 0x414   :  { %9402 = vmatprep.mubr.bf16.mxu1 %v16061_v2  ;;  %v14605_v7 = vpop.f32.mrf.mxu0 }
 0x415   :  { %v14512_v42 = vpop.f32.mrf.mxu1  ;;  %v18692_v11 = vadd.f32 %v14604_v54, %v6693_v36  ;;  %v16070_v54 = vld [vmem:[#allocation4 + $0x18] sm:$0xff]  }
 0x416   :  { %v18694_v57 = vadd.f32 %v14512_v42, %v14511_v44  ;;  %v14606_v52 = vpop.f32.mrf.mxu0  ;;  %v6709_v42 = vadd.f32 %v18610_v47, %v18655_v50  ;;  %v16071_v50 = vld [vmem:[#allocation4 + $0x10] sm:$0xff]  }
 0x417   :  { %v14514_v38 = vpop.f32.mrf.mxu1  ;;  %v14607_v26 = vadd.f32 %v14606_v52, %v14605_v7 }
 0x418   :  { %v14608_v40 = vpop.f32.mrf.mxu0 }
 0x419   :  { %v14515_v28 = vpop.f32.mrf.mxu1  ;;  %v18701_v15 = vadd.f32 %v14607_v26, %v6698_v37 }
 0x41a   :  { %v18703_v58 = vadd.f32 %v14515_v28, %v14514_v38  ;;  %v14609_v21 = vpop.f32.mrf.mxu0 }
 0x41b   :  { %v14645_v0 = vpop.f32.mrf.mxu1  ;;  %9403 = vmatmul.mubr.bf16.vlgmr.msra.gmra.mxu1 %v16063_v14  ;;  %v14610_v51 = vadd.f32 %v14609_v21, %v14608_v40 }
 0x41c   :  { %15102 = vmatpush3.bf16.msra.mxu1 %v16067_v5  ;;  %9410 = vmatprep.mubr.bf16.mxu1 %v16068_v25  ;;  %v6714_v5 = vadd.f32 %v18610_v47, %v18673_v56  ;;  %v16073_v56 = vld [vmem:[%s20174_s5 + $0x130] sm:$0xff]  }
 0x41d   :  { %v14611_v17 = vpop.f32.mrf.mxu0  ;;  %v14646_v1 = vpop.f32.mrf.mxu1  ;;  %v18707_v30 = vadd.f32 %v14610_v51, %v6701_v53 }
 0x41e   :  { %v14647_v12 = vadd.f32 %v14646_v1, %v14645_v0  ;;  %v6717_v1 = vadd.f32 %v18610_v47, %v18685_v63 }
 0x41f   :  { %v14612_v20 = vpop.f32.mrf.mxu0  ;;  %v14648_v2 = vpop.f32.mrf.mxu1 }
 0x420   :  { %v14613_v9 = vadd.f32 %v14612_v20, %v14611_v17  ;;  %v18712_v10 = vadd.f32 %v14647_v12, %v18437_v23 }
 0x421   :  { %v14614_v8 = vpop.f32.mrf.mxu0  ;;  %v14649_v13 = vpop.f32.mrf.mxu1 }
 0x422   :  { %v18714_v44 = vadd.f32 %v14613_v9, %v6706_v59  ;;  %v14650_v36 = vadd.f32 %v14649_v13, %v14648_v2 }
 0x423   :  { %v14615_v49 = vpop.f32.mrf.mxu0  ;;  %v14651_v7 = vpop.f32.mrf.mxu1  ;;  %9411 = vmatmul.mubr.bf16.gmra.mxu1 %v16069_v22 }
 0x424   :  { %v14616_v55 = vadd.f32 %v14615_v49, %v14614_v8  ;;  %v18719_v52 = vadd.f32 %v14650_v36, %v18443_v60  ;;  %9418 = vmatprep.mubr.bf16.mxu1 %v16070_v54  ;;  %v16072_v60 = vld [vmem:[%s20174_s5 + $0x170] sm:$0xff]   ;;  %v16075_v36 = vld [vmem:[#allocation4 + $0x18] sm:$0xff]   ;;  %v6722_v54 = vadd.f32 %v18610_v47, %v18694_v57 }
 0x425   :  { %v14617_v31 = vpop.f32.mrf.mxu0  ;;  %v14652_v23 = vpop.f32.mrf.mxu1  ;;  %15103 = vmatprep.subr.bf16.mxu1 %v16072_v60 }
 0x426   :  { %v18721_v38 = vadd.f32 %v14616_v55, %v6709_v42  ;;  %v14653_v14 = vadd.f32 %v14652_v23, %v14651_v7  ;;  %15104 = vmatpush3.bf16.msra.mxu1 %v16073_v56 }
 0x427   :  { %v14618_v37 = vpop.f32.mrf.mxu0  ;;  %v14654_v26 = vpop.f32.mrf.mxu1 }
 0x428   :  { %v14619_v25 = vadd.f32 %v14618_v37, %v14617_v31  ;;  %v18726_v40 = vadd.f32 %v14653_v14, %v18461_v45  ;;  %v16074_v45 = vld [vmem:[#allocation4 + $0x20] sm:$0xff]   ;;  %v6725_v14 = vadd.f32 %v18610_v47, %v18703_v58  ;;  %v16080_v47 = vld [vmem:[%s20174_s5 + $0x168] sm:$0xff]  }
 0x429   :  { %v14620_v28 = vpop.f32.mrf.mxu0  ;;  %v14655_v21 = vpop.f32.mrf.mxu1  ;;  %15105 = vmatprep.subr.bf16.mxu1 %v16080_v47 }
 0x42a   :  { %v18731_v0 = vadd.f32 %v14619_v25, %v6714_v5  ;;  %v14656_v53 = vadd.f32 %v14655_v21, %v14654_v26 }
 0x42b   :  { %v14621_v51 = vpop.f32.mrf.mxu0  ;;  %v14657_v17 = vpop.f32.mrf.mxu1  ;;  %9419 = vmatmul.mubr.bf16.gmra.mxu1 %v16071_v50 }
 0x42c   :  { %v14622_v12 = vadd.f32 %v14621_v51, %v14620_v28  ;;  %v18739_v20 = vadd.f32 %v14656_v53, %v18466_v18  ;;  %9426 = vmatprep.mubr.bf16.mxu1 %v16074_v45 }
 0x42d   :  { %v14623_v2 = vpop.f32.mrf.mxu0  ;;  %v14658_v22 = vpop.f32.mrf.mxu1 }
 0x42e   :  { %v18741_v59 = vadd.f32 %v14622_v12, %v6717_v1  ;;  %v14659_v9 = vadd.f32 %v14658_v22, %v14657_v17  ;;  %v16083_v17 = vld [vmem:[%s20174_s5 + $0x128] sm:$0xff]  }
 0x42f   :  { %v14624_v8 = vpop.f32.mrf.mxu0  ;;  %v14660_v13 = vpop.f32.mrf.mxu1  ;;  %15106 = vmatpush3.bf16.msra.mxu1 %v16083_v17 }
 0x430   :  { %v14625_v49 = vadd.f32 %v14624_v8, %v14623_v2  ;;  %v6940_v63 = vadd.f32 %v14659_v9, %v18474_v48 }
 0x431   :  { %v14626_v7 = vpop.f32.mrf.mxu0  ;;  %v14661_v42 = vpop.f32.mrf.mxu1 }
 0x432   :  { %v18746_v18 = vadd.f32 %v14625_v49, %v6722_v54  ;;  %v14662_v55 = vadd.f32 %v14661_v42, %v14660_v13 }
 0x433   :  { %v14627_v31 = vpop.f32.mrf.mxu0  ;;  %v14663_v23 = vpop.f32.mrf.mxu1  ;;  %9427 = vmatmul.mubr.bf16.gmra.mxu1 %v16075_v36 }
 0x434   :  { %20259 = vst [vmem:[#allocation6_spill] sm:$0xff] %v18746_v18  ;;  %v14628_v37 = vadd.f32 %v14627_v31, %v14626_v7  ;;  %v18751_v26 = vadd.f32 %v14662_v55, %v18479_v32 }
 0x435   :  { %v14757_v5 = vpop.f32.mrf.mxu0  ;;  %v14664_v57 = vpop.f32.mrf.mxu1 }
 0x436   :  { %v18753_v25 = vadd.f32 %v14628_v37, %v6725_v14  ;;  %v14665_v48 = vadd.f32 %v14664_v57, %v14663_v23 }
 0x437   :  { %v14758_v50 = vpop.f32.mrf.mxu0  ;;  %v14666_v28 = vpop.f32.mrf.mxu1 }
 0x438   :  { %20260 = vst [vmem:[#allocation7_spill] sm:$0xff] %v18753_v25  ;;  %v18756_v21 = vadd.f32 %v14665_v48, %v18487_v61  ;;  %v14759_v60 = vadd.f32 %v14758_v50, %v14757_v5  ;;  %v16090_v48 = vld [vmem:[%s20174_s5 + $0x160] sm:$0xff]  }
 0x439   :  { %v14760_v53 = vpop.f32.mrf.mxu0  ;;  %v14667_v51 = vpop.f32.mrf.mxu1  ;;  %15107 = vmatprep.subr.bf16.mxu1 %v16090_v48 }
 0x43a   :  { %v14668_v58 = vadd.f32 %v14667_v51, %v14666_v28  ;;  %v18762_v32 = vadd.f32 %v14759_v60, %v18712_v10 }
 0x43b   :  { %v14761_v56 = vpop.f32.mrf.mxu0  ;;  %v14669_v45 = vpop.f32.mrf.mxu1 }
 0x43c   :  { %v18768_v61 = vadd.f32 %v14668_v58, %v18492_v46  ;;  %v14762_v1 = vadd.f32 %v14761_v56, %v14760_v53 }
 0x43d   :  { %v18770_v12 = vpop.f32.mrf.mxu0  ;;  %v14670_v2 = vpop.f32.mrf.mxu1 }
 0x43e   :  { %v14671_v22 = vadd.f32 %v14670_v2, %v14669_v45  ;;  %v18773_v9 = vadd.f32 %v14762_v1, %v18719_v52 }
 0x43f   :  { %v18775_v10 = vpop.f32.mrf.mxu0  ;;  %v14672_v8 = vpop.f32.mrf.mxu1 }
 0x440   :  { %v18778_v13 = vadd.f32 %v14671_v22, %v18504_v16 }
 0x441   :  { %v18780_v36 = vpop.f32.mrf.mxu0  ;;  %v14673_v54 = vpop.f32.mrf.mxu1 }
 0x442   :  { %v14674_v46 = vadd.f32 %v14673_v54, %v14672_v8 }
 0x443   :  { %v18782_v49 = vpop.f32.mrf.mxu0  ;;  %v14675_v7 = vpop.f32.mrf.mxu1 }
 0x444   :  { %v18785_v42 = vadd.f32 %v14674_v46, %v18513_v39  ;;  %v16092_v39 = vld [vmem:[%s20174_s5 + $0x120] sm:$0xff]  }
 0x445   :  { %v14769_v55 = vpop.f32.mrf.mxu0  ;;  %v14676_v31 = vpop.f32.mrf.mxu1  ;;  %15108 = vmatpush3.bf16.msra.mxu1 %v16092_v39 }
 0x446   :  { %v14677_v52 = vadd.f32 %v14676_v31, %v14675_v7 }
 0x447   :  { %v14770_v23 = vpop.f32.mrf.mxu0  ;;  %v14678_v14 = vpop.f32.mrf.mxu1 }
 0x448   :  { %v18788_v37 = vadd.f32 %v14677_v52, %v18522_v3  ;;  %v14771_v16 = vadd.f32 %v14770_v23, %v14769_v55 }
 0x449   :  { %v18790_v5 = vpop.f32.mrf.mxu0  ;;  %v14679_v57 = vpop.f32.mrf.mxu1 }
 0x44a   :  { %v14680_v50 = vadd.f32 %v14679_v57, %v14678_v14  ;;  %v18795_v28 = vadd.f32 %v14771_v16, %v6940_v63  ;;  %v16100_v14 = vld [vmem:[%s20174_s5 + $0x158] sm:$0xff]  }
 0x44b   :  { %v18800_v60 = vpop.f32.mrf.mxu0  ;;  %v14681_v53 = vpop.f32.mrf.mxu1  ;;  %15109 = vmatprep.subr.bf16.mxu1 %v16100_v14  ;;  %v16110_v14 = vld [vmem:[%s20174_s5 + $0x150] sm:$0xff]  }
 0x44c   :  { %v18803_v3 = vadd.f32 %v14680_v50, %v18531_v29 }
 0x44d   :  { %v18805_v51 = vpop.f32.mrf.mxu0  ;;  %v14682_v47 = vpop.f32.mrf.mxu1 }
 0x44e   :  { %v14683_v58 = vadd.f32 %v14682_v47, %v14681_v53 }
 0x44f   :  { %v18807_v17 = vpop.f32.mrf.mxu0  ;;  %v14684_v63 = vpop.f32.mrf.mxu1 }
 0x450   :  { %v18810_v56 = vadd.f32 %v14683_v58, %v18540_v43 }
 0x451   :  { %v18812_v45 = vpop.f32.mrf.mxu0  ;;  %v14685_v1 = vpop.f32.mrf.mxu1 }
 0x452   :  { %v14686_v2 = vadd.f32 %v14685_v1, %v14684_v63 }
 0x453   :  { %v18814_v22 = vpop.f32.mrf.mxu0  ;;  %v14687_v8 = vpop.f32.mrf.mxu1 }
 0x454   :  { %v18817_v29 = vadd.f32 %v14686_v2, %v18549_v19  ;;  %v16103_v19 = vld [vmem:[%s20174_s5 + $0x118] sm:$0xff]  }
 0x455   :  { %v18819_v54 = vpop.f32.mrf.mxu0  ;;  %v14688_v46 = vpop.f32.mrf.mxu1  ;;  %15110 = vmatpush3.bf16.msra.mxu1 %v16103_v19 }
 0x456   :  { %20261 = vst [vmem:[#allocation8_spill] sm:$0xff] %v18817_v29  ;;  %v14689_v7 = vadd.f32 %v14688_v46, %v14687_v8  ;;  %15111 = vmatprep.subr.bf16.mxu1 %v16110_v14 }
 0x457   :  { %v18821_v55 = vpop.f32.mrf.mxu0  ;;  %v14690_v31 = vpop.f32.mrf.mxu1 }
 0x458   :  { %v18824_v43 = vadd.f32 %v14689_v7, %v18558_v34 }
 0x459   :  { %v18826_v52 = vpop.f32.mrf.mxu0  ;;  %v14691_v23 = vpop.f32.mrf.mxu1 }
 0x45a   :  { %v14692_v16 = vadd.f32 %v14691_v23, %v14690_v31 }
 0x45b   :  { %v18834_v57 = vpop.f32.mrf.mxu0  ;;  %v14693_v48 = vpop.f32.mrf.mxu1 }
 0x45c   :  { %v18837_v50 = vadd.f32 %v14692_v16, %v18573_v4 }
 0x45d   :  { %v18839_v34 = vpop.f32.mrf.mxu0  ;;  %v14694_v39 = vpop.f32.mrf.mxu1 }
 0x45e   :  { %v14695_v53 = vadd.f32 %v14694_v39, %v14693_v48 }
 0x45f   :  { %v18841_v47 = vpop.f32.mrf.mxu0  ;;  %v14696_v58 = vpop.f32.mrf.mxu1 }
 0x460   :  { %v18844_v63 = vadd.f32 %v14695_v53, %v18588_v24  ;;  %v16112_v24 = vld [vmem:[%s20174_s5 + $0x110] sm:$0xff]  }
 0x461   :  { %v18846_v1 = vpop.f32.mrf.mxu0  ;;  %v14697_v2 = vpop.f32.mrf.mxu1  ;;  %15112 = vmatpush3.bf16.msra.mxu1 %v16112_v24 }
 0x462   :  { %20262 = vst [vmem:[#allocation9_spill] sm:$0xff] %v18844_v63  ;;  %v14698_v8 = vadd.f32 %v14697_v2, %v14696_v58 }
 0x463   :  { %v18848_v46 = vpop.f32.mrf.mxu0  ;;  %v14699_v7 = vpop.f32.mrf.mxu1 }
 0x464   :  { %v18851_v4 = vadd.f32 %v14698_v8, %v18603_v41 }
 0x465   :  { %v18853_v31 = vpop.f32.mrf.mxu0  ;;  %v14700_v23 = vpop.f32.mrf.mxu1 }
 0x466   :  { %20263 = vst [vmem:[#allocation10_spill] sm:$0xff] %v18851_v4  ;;  %v14701_v16 = vadd.f32 %v14700_v23, %v14699_v7 }
 0x467   :  { %v18861_v19 = vpop.f32.mrf.mxu0  ;;  %v14702_v48 = vpop.f32.mrf.mxu1 }
 0x468   :  { %v18864_v39 = vadd.f32 %v14701_v16, %v18623_v6 }
 0x469   :  { %v18866_v41 = vpop.f32.mrf.mxu0  ;;  %v14703_v53 = vpop.f32.mrf.mxu1 }
 0x46a   :  { %20264 = vst [vmem:[#allocation11_spill] sm:$0xff] %v18864_v39  ;;  %v14704_v58 = vadd.f32 %v14703_v53, %v14702_v48 }
 0x46b   :  { %v18868_v2 = vpop.f32.mrf.mxu0  ;;  %v14705_v8 = vpop.f32.mrf.mxu1 }
 0x46c   :  { %v18871_v25 = vadd.f32 %v14704_v58, %v18638_v27 }
 0x46d   :  { %v18873_v18 = vpop.f32.mrf.mxu0  ;;  %v14706_v7 = vpop.f32.mrf.mxu1 }
 0x46e   :  { %20265 = vst [vmem:[#allocation12_spill] sm:$0xff] %v18871_v25  ;;  %v14707_v23 = vadd.f32 %v14706_v7, %v14705_v8  ;;  %v16120_v8 = vld [vmem:[%s20174_s5 + $0x148] sm:$0xff]  }
 0x46f   :  { %v18875_v4 = vpop.f32.mrf.mxu0  ;;  %v14708_v14 = vpop.f32.mrf.mxu1  ;;  %15113 = vmatprep.subr.bf16.mxu1 %v16120_v8  ;;  %v16129_v8 = vld [vmem:[%s20174_s5 + $0x1b8] sm:$0xff]  }
 0x470   :  { %v18878_v6 = vadd.f32 %v14707_v23, %v18653_v62  ;;  %v16123_v62 = vld [vmem:[%s20174_s5 + $0x108] sm:$0xff]  }
 0x471   :  { %v18880_v24 = vpop.f32.mrf.mxu0  ;;  %v14709_v16 = vpop.f32.mrf.mxu1  ;;  %15114 = vmatpush3.bf16.msra.mxu1 %v16123_v62 }
 0x472   :  { %20266 = vst [vmem:[#allocation14_spill] sm:$0xff] %v18878_v6  ;;  %v14710_v48 = vadd.f32 %v14709_v16, %v14708_v14 }
 0x473   :  { %v18882_v53 = vpop.f32.mrf.mxu0  ;;  %v14711_v63 = vpop.f32.mrf.mxu1 }
 0x474   :  { %v18885_v27 = vadd.f32 %v14710_v48, %v18671_v33 }
 0x475   :  { %v18887_v58 = vpop.f32.mrf.mxu0  ;;  %v14712_v25 = vpop.f32.mrf.mxu1 }
 0x476   :  { %20267 = vst [vmem:[#allocation13_spill] sm:$0xff] %v18885_v27  ;;  %v14713_v7 = vadd.f32 %v14712_v25, %v14711_v63 }
 0x477   :  { %v18895_v23 = vpop.f32.mrf.mxu0  ;;  %v14714_v14 = vpop.f32.mrf.mxu1 }
 0x478   :  { %20268 = vst [vmem:[#allocation15_spill] sm:$0xff] %v18895_v23  ;;  %v18898_v16 = vadd.f32 %v14713_v7, %v18683_v35  ;;  %v16128_v35 = vld [vmem:[%s20174_s5 + $0x1f8] sm:$0xff]  }
 0x479   :  { %v18900_v33 = vpop.f32.mrf.mxu0  ;;  %v14715_v48 = vpop.f32.mrf.mxu1  ;;  %15213 = vmatprep.subr.bf16.mxu0 %v16128_v35 }
 0x47a   :  { %20269 = vst [vmem:[#allocation16_spill] sm:$0xff] %v18898_v16  ;;  %20270 = vst [vmem:[#allocation17_spill] sm:$0xff] %v18900_v33  ;;  %v14716_v27 = vadd.f32 %v14715_v48, %v14714_v14  ;;  %15214 = vmatpush3.bf16.msra.mxu0 %v16129_v8 }
 0x47b   :  { %v18902_v6 = vpop.f32.mrf.mxu0  ;;  %v14717_v39 = vpop.f32.mrf.mxu1 }
 0x47c   :  { %20271 = vst [vmem:[#allocation18_spill] sm:$0xff] %v18902_v6  ;;  %v18905_v25 = vadd.f32 %v14716_v27, %v18692_v11 }
 0x47d   :  { %v18907_v63 = vpop.f32.mrf.mxu0  ;;  %v14718_v29 = vpop.f32.mrf.mxu1 }
 0x47e   :  { %20272 = vst [vmem:[#allocation19_spill] sm:$0xff] %v18905_v25  ;;  %v14719_v23 = vadd.f32 %v14718_v29, %v14717_v39 }
 0x47f   :  { %v18915_v7 = vpop.f32.mrf.mxu0  ;;  %v14720_v62 = vpop.f32.mrf.mxu1 }
 0x480   :  { %v18918_v14 = vadd.f32 %v14719_v23, %v18701_v15  ;;  %v16132_v15 = vld [vmem:[%s20174_s5 + $0x140] sm:$0xff]  }
 0x481   :  { %v18920_v11 = vpop.f32.mrf.mxu0  ;;  %v14721_v27 = vpop.f32.mrf.mxu1  ;;  %v16134_v23 = vld [vmem:[%s20174_s5 + $0x100] sm:$0xff]   ;;  %15115 = vmatprep.subr.bf16.mxu1 %v16132_v15  ;;  %v16141_v15 = vld [vmem:[%s20174_s5 + $0x1b0] sm:$0xff]  }
 0x482   :  { %20273 = vst [vmem:[#allocation21_spill] sm:$0xff] %v18918_v14  ;;  %v14722_v29 = vadd.f32 %v14721_v27, %v14720_v62  ;;  %15116 = vmatpush3.bf16.msra.mxu1 %v16134_v23 }
 0x483   :  { %v18922_v39 = vpop.f32.mrf.mxu0  ;;  %v14723_v48 = vpop.f32.mrf.mxu1 }
 0x484   :  { %20274 = vst [vmem:[#allocation22_spill] sm:$0xff] %v18922_v39  ;;  %v18925_v25 = vadd.f32 %v14722_v29, %v18707_v30 }
 0x485   :  { %v18927_v16 = vpop.f32.mrf.mxu0  ;;  %v14724_v6 = vpop.f32.mrf.mxu1 }
 0x486   :  { %20275 = vst [vmem:[#allocation20_spill] sm:$0xff] %v18925_v25  ;;  %20276 = vst [vmem:[#allocation23_spill] sm:$0xff] %v18927_v16  ;;  %v14725_v35 = vadd.f32 %v14724_v6, %v14723_v48 }
 0x487   :  { %v18935_v8 = vpop.f32.mrf.mxu0  ;;  %v14726_v62 = vpop.f32.mrf.mxu1 }
 0x488   :  { %v18938_v27 = vadd.f32 %v14725_v35, %v18714_v44  ;;  %v16140_v44 = vld [vmem:[%s20174_s5 + $0x1f0] sm:$0xff]  }
 0x489   :  { %v18940_v30 = vpop.f32.mrf.mxu0  ;;  %v14727_v29 = vpop.f32.mrf.mxu1  ;;  %15215 = vmatprep.subr.bf16.mxu0 %v16140_v44  ;;  %v16148_v44 = vld [vmem:[%s20174_s5 + $0x1a8] sm:$0xff]  }
 0x48a   :  { %20277 = vst [vmem:[#allocation25_spill] sm:$0xff] %v18938_v27  ;;  %v14728_v25 = vadd.f32 %v14727_v29, %v14726_v62  ;;  %15216 = vmatpush3.bf16.msra.mxu0 %v16141_v15  ;;  %v14765_v15 = vadd.f32 %v18775_v10, %v18770_v12 }
 0x48b   :  { %v18942_v14 = vpop.f32.mrf.mxu0  ;;  %v14729_v16 = vpop.f32.mrf.mxu1 }
 0x48c   :  { %20278 = vst [vmem:[#allocation24_spill] sm:$0xff] %v18942_v14  ;;  %v18945_v33 = vadd.f32 %v14728_v25, %v18721_v38  ;;  %v7093_v12 = vadd.f32 %v14765_v15, %v18726_v40  ;;  %v16157_v40 = vld [vmem:[%s20174_s5 + $0x1d0] sm:$0xff]  }
 0x48d   :  { %v18947_v39 = vpop.f32.mrf.mxu0  ;;  %v14730_v6 = vpop.f32.mrf.mxu1 }
 0x48e   :  { %20279 = vst [vmem:[#allocation26_spill] sm:$0xff] %v18945_v33  ;;  %v14731_v48 = vadd.f32 %v14730_v6, %v14729_v16 }
 0x48f   :  { %v18955_v23 = vpop.f32.mrf.mxu0  ;;  %v14732_v35 = vpop.f32.mrf.mxu1 }
 0x490   :  { %v18958_v62 = vadd.f32 %v14731_v48, %v18731_v0  ;;  %v16144_v0 = vld [vmem:[%s20174_s5 + $0x1e8] sm:$0xff]   ;;  %v16145_v48 = vld [vmem:[%s20174_s5 + $0x238] sm:$0xff]  }
 0x491   :  { %v18960_v38 = vpop.f32.mrf.mxu0  ;;  %v14733_v25 = vpop.f32.mrf.mxu1  ;;  %15217 = vmatprep.subr.bf16.mxu0 %v16144_v0  ;;  %15573 = vmatprep.subr.bf16.mxu1 %v16145_v48  ;;  %v14777_v0 = vadd.f32 %v18807_v17, %v18805_v51  ;;  %v16158_v17 = vld [vmem:[%s20174_s5 + $0x190] sm:$0xff]  }
 0x492   :  { %20280 = vst [vmem:[#allocation27_spill] sm:$0xff] %v18958_v62  ;;  %v14734_v16 = vadd.f32 %v14733_v25, %v14732_v35  ;;  %15218 = vmatpush3.bf16.msra.mxu0 %v16148_v44 }
 0x493   :  { %v18962_v29 = vpop.f32.mrf.mxu0  ;;  %v18964_v6 = vpop.f32.mrf.mxu1 }
 0x494   :  { %v18967_v33 = vadd.f32 %v14734_v16, %v18741_v59  ;;  %v16149_v59 = vld [vmem:[%s20174_s5 + $0x1e0] sm:$0xff]  }
 0x495   :  { %v18969_v27 = vpop.f32.mrf.mxu0  ;;  %v18971_v14 = vpop.f32.mrf.mxu1  ;;  %v16150_v16 = vld [vmem:[%s20174_s5 + $0x1a0] sm:$0xff]   ;;  %15219 = vmatprep.subr.bf16.mxu0 %v16149_v59 }
 0x496   :  { %20281 = vst [vmem:[#allocation29_spill] sm:$0xff] %v18967_v33  ;;  %20282 = vst [vmem:[#allocation28_spill] sm:$0xff] %v18971_v14  ;;  %v14768_v14 = vadd.f32 %v18782_v49, %v18780_v36  ;;  %15220 = vmatpush3.bf16.msra.mxu0 %v16150_v16  ;;  %v16156_v36 = vld [vmem:[%s20174_s5 + $0x198] sm:$0xff]  }
 0x497   :  { %v18987_v35 = vpop.f32.mrf.mxu0  ;;  %v18989_v25 = vpop.f32.mrf.mxu1 }
 0x498   :  { %20283 = vst [vmem:[#allocation33_spill] sm:$0xff] %v18989_v25  ;;  %v16153_v25 = vld [vmem:[%s20174_s5 + $0x1d8] sm:$0xff]   ;;  %v7096_v49 = vadd.f32 %v14768_v14, %v18739_v20 }
 0x499   :  { %v18994_v33 = vpop.f32.mrf.mxu1  ;;  %v18996_v62 = vpop.f32.mrf.mxu0  ;;  %15221 = vmatprep.subr.bf16.mxu0 %v16153_v25 }
 0x49a   :  { %20284 = vst [vmem:[#allocation30_spill] sm:$0xff] %v18994_v33  ;;  %20285 = vst [vmem:[#allocation31_spill] sm:$0xff] %v18996_v62  ;;  %15222 = vmatpush3.bf16.msra.mxu0 %v16156_v36 }
 0x49b   :  { %v15543_v10 = vpop.f32.mrf.mxu1  ;;  %v19006_v33 = vpop.f32.mrf.mxu0  ;;  %15223 = vmatprep.subr.bf16.mxu0 %v16157_v40 }
 0x49c   :  { %v7254_v48 = vadd.f32 %v15543_v10, %v7093_v12  ;;  %20286 = vst [vmem:[#allocation32_spill] sm:$0xff] %v19006_v33  ;;  %v7109_v12 = vadd.f32 %v14777_v0, %v18756_v21  ;;  %v14780_v10 = vadd.f32 %v18814_v22, %v18812_v45  ;;  %v16161_v22 = vld [vmem:[%s20174_s5 + $0x1c8] sm:$0xff]  }
 0x49d   :  { %v7245_v44 = vpop.f32.mrf.mxu1 }
 0x49e   :  { %v7246_v59 = vadd.f32 %v7245_v44, %v18762_v32  ;;  %v7406_v15 = vmul.f32 0.2, %v7254_v48  ;;  %v19022_v44 = vpop.f32.mrf.mxu0  ;;  %vm7374_vm0 = vcmp.ge.f32.partialorder %v7254_v48, 0.0  ;;  %15224 = vmatpush3.bf16.msra.mxu0 %v16158_v17  ;;  %v14783_v17 = vadd.f32 %v18821_v55, %v18819_v54 }
 0x49f   :  { %v15544_v51 = vpop.f32.mrf.mxu1  ;;  %15225 = vmatprep.subr.bf16.mxu0 %v16161_v22  ;;  %v14792_v54 = vadd.f32 %v18848_v46, %v18846_v1  ;;  %v14795_v22 = vadd.f32 %v18861_v19, %v18853_v31 }
 0x4a0   :  { %v7257_v16 = vadd.f32 %v15544_v51, %v7096_v49  ;;  %v7404_v20 = vmul.f32 0.2, %v7246_v59  ;;  %vm7372_vm1 = vcmp.ge.f32.partialorder %v7246_v59, 0.0  ;;  %v14774_v49 = vadd.f32 %v18800_v60, %v18790_v5 }
 0x4a1   :  { %v7248_v32 = vpop.f32.mrf.mxu1  ;;  %v7438_v0 = vsel %vm7374_vm0, %v7254_v48, %v7406_v15  ;;  %v7112_v60 = vadd.f32 %v14780_v10, %v18768_v61  ;;  %v16165_v48 = vld [vmem:[%s20174_s5 + $0x1c0] sm:$0xff]   ;;  %v14789_v15 = vadd.f32 %v18841_v47, %v18839_v34 }
 0x4a2   :  { %v7249_v14 = vadd.f32 %v7248_v32, %v18773_v9  ;;  %vm7375_vm2 = vcmp.ge.f32.partialorder %v7257_v16, 0.0  ;;  %v7407_v25 = vmul.f32 0.2, %v7257_v16  ;;  %v16163_v9 = vld [vmem:[%s20174_s5 + $0x188] sm:$0xff]   ;;  %v19033_v32 = vpop.f32.mrf.mxu0  ;;  %v7436_v33 = vsel %vm7372_vm1, %v7246_v59, %v7404_v20  ;;  %v16166_v10 = vld [vmem:[%s20174_s5 + $0x180] sm:$0xff]  }
 0x4a3   :  { %v15547_v36 = vpop.f32.mrf.mxu1  ;;  %v7104_v61 = vadd.f32 %v14774_v49, %v18751_v26  ;;  %15226 = vmatpush3.bf16.msra.mxu0 %v16163_v9  ;;  %v14786_v26 = vadd.f32 %v18834_v57, %v18826_v52 }
 0x4a4   :  { %vm7373_vm3 = vcmp.ge.f32.partialorder %v7249_v14, 0.0  ;;  %v7405_v51 = vmul.f32 0.2, %v7249_v14  ;;  %v7270_v21 = vadd.f32 %v15547_v36, %v7109_v12  ;;  %v7439_v40 = vsel %vm7375_vm2, %v7257_v16, %v7407_v25  ;;  %15227 = vmatprep.subr.bf16.mxu0 %v16165_v48 }
 0x4a5   :  { %v7261_v45 = vpop.f32.mrf.mxu1  ;;  %v13184_v62 = vpack.c.bf16 %v7439_v40, %v7438_v0  ;;  %v7117_v36 = vadd.f32 %v14783_v17, %v18778_v13  ;;  %v14801_v13 = vadd.f32 %v18875_v4, %v18873_v18  ;;  %v16079_v17 = vld [vmem:[#allocation4 + $0x18] sm:$0xff]  }
 0x4a6   :  { %v7437_v5 = vsel %vm7373_vm3, %v7249_v14, %v7405_v51  ;;  %v7262_v12 = vadd.f32 %v7261_v45, %v18795_v28  ;;  %v7410_v59 = vmul.f32 0.2, %v7270_v21  ;;  %vm7378_vm4 = vcmp.ge.f32.partialorder %v7270_v21, 0.0  ;;  %v19050_v28 = vpop.f32.mrf.mxu0 }
 0x4a7   :  { %v13179_v16 = vpack.c.bf16 %v7437_v5, %v7436_v33  ;;  %v15548_v25 = vpop.f32.mrf.mxu1  ;;  %13351 = vst [vmem:[#allocation4 + $0x40] sm:$0xff] %v13184_v62   ;;  %v7125_v62 = vadd.f32 %v14789_v15, %v18788_v37  ;;  %15228 = vmatpush3.bf16.msra.mxu0 %v16166_v10  ;;  %v7128_v45 = vadd.f32 %v14792_v54, %v18803_v3  ;;  %v16078_v5 = vld [vmem:[#allocation4 + $0x30] sm:$0xff]  }
 0x4a8   :  { %v7273_v20 = vadd.f32 %v15548_v25, %v7112_v60  ;;  %v7408_v34 = vmul.f32 0.2, %v7262_v12  ;;  %vm7376_vm6 = vcmp.ge.f32.partialorder %v7262_v12, 0.0  ;;  %v7442_v1 = vsel %vm7378_vm4, %v7270_v21, %v7410_v59  ;;  %v19059_v52 = vpop.f32.mrf.mxu0 }
 0x4a9   :  { %13180 = vst [vmem:[#allocation4 + $0x38] sm:$0xff] %v13179_v16   ;;  %v7264_v55 = vpop.f32.mrf.mxu1  ;;  %v7120_v16 = vadd.f32 %v14786_v26, %v18785_v42  ;;  %v7141_v42 = vadd.f32 %v14801_v13, %v18824_v43  ;;  %v7133_v54 = vadd.f32 %v14795_v22, %v18810_v56  ;;  %v14813_v43 = vadd.f32 %v18915_v7, %v18907_v63  ;;  %v20289_v22 = vld [vmem:[#allocation22_spill] sm:$0xff]  ;;  %v20290_v13 = vld [vmem:[#allocation11_spill] sm:$0xff] }
 0x4aa   :  { %vm7379_vm5 = vcmp.ge.f32.partialorder %v7273_v20, 0.0  ;;  %v7411_v47 = vmul.f32 0.2, %v7273_v20  ;;  %v7265_v33 = vadd.f32 %v7264_v55, %v7104_v61  ;;  %v7440_v57 = vsel %vm7376_vm6, %v7262_v12, %v7408_v34  ;;  %v19066_v59 = vpop.f32.mrf.mxu0 }
 0x4ab   :  { %v15551_v14 = vpop.f32.mrf.mxu1  ;;  %v14804_v12 = vadd.f32 %v18882_v53, %v18880_v24  ;;  %v14798_v61 = vadd.f32 %v18868_v2, %v18866_v41 }
 0x4ac   :  { %v7443_v46 = vsel %vm7379_vm5, %v7273_v20, %v7411_v47  ;;  %vm7377_vm7 = vcmp.ge.f32.partialorder %v7265_v33, 0.0  ;;  %v7409_v49 = vmul.f32 0.2, %v7265_v33  ;;  %v7286_v0 = vadd.f32 %v15551_v14, %v7125_v62  ;;  %v19076_v2 = vpop.f32.mrf.mxu0 }
 0x4ad   :  { %v13194_v51 = vpack.c.bf16 %v7443_v46, %v7442_v1  ;;  %v7277_v40 = vpop.f32.mrf.mxu1  ;;  %v7144_v41 = vadd.f32 %v14804_v12, %v18837_v50 }
 0x4ae   :  { %v7441_v37 = vsel %vm7377_vm7, %v7265_v33, %v7409_v49  ;;  %v7278_v9 = vadd.f32 %v7277_v40, %v7117_v36  ;;  %vm7382_vm8 = vcmp.ge.f32.partialorder %v7286_v0, 0.0  ;;  %v7414_v60 = vmul.f32 0.2, %v7286_v0  ;;  %v16081_v19 = vld [vmem:[#allocation4 + $0x40] sm:$0xff]   ;;  %v20287_v36 = vld [vmem:[#allocation15_spill] sm:$0xff] }
 0x4af   :  { %13353 = vst [vmem:[#allocation4 + $0x50] sm:$0xff] %v13194_v51   ;;  %v13189_v21 = vpack.c.bf16 %v7441_v37, %v7440_v57  ;;  %v15552_v48 = vpop.f32.mrf.mxu1  ;;  %v16082_v34 = vld [vmem:[#allocation4 + $0x40] sm:$0xff]   ;;  %v14807_v1 = vadd.f32 %v20287_v36, %v18887_v58  ;;  %v14816_v57 = vadd.f32 %v20289_v22, %v18920_v11 }
 0x4b0   :  { %v7412_v15 = vmul.f32 0.2, %v7278_v9  ;;  %v7289_v3 = vadd.f32 %v15552_v48, %v7128_v45  ;;  %v16076_v31 = vld [vmem:[#allocation4 + $0x38] sm:$0xff]   ;;  %vm7380_vm10 = vcmp.ge.f32.partialorder %v7278_v9, 0.0  ;;  %v7446_v24 = vsel %vm7382_vm8, %v7286_v0, %v7414_v60  ;;  %v16085_v0 = vld [vmem:[#allocation4 + $0x20] sm:$0xff]   ;;  %v20288_v45 = vld [vmem:[#allocation8_spill] sm:$0xff] }
 0x4b1   :  { %13352 = vst [vmem:[#allocation4 + $0x48] sm:$0xff] %v13189_v21   ;;  %v7280_v25 = vpop.f32.mrf.mxu1  ;;  %9434 = vmatprep.mubr.bf16.mxu1 %v16076_v31  ;;  %v16077_v20 = vld [vmem:[#allocation4 + $0x38] sm:$0xff]   ;;  %v7136_v63 = vadd.f32 %v14798_v61, %v20288_v45  ;;  %v7157_v21 = vadd.f32 %v14813_v43, %v20290_v13  ;;  %v20296_v43 = vld [vmem:[#allocation10_spill] sm:$0xff]  ;;  %v20298_v45 = vld [vmem:[#allocation24_spill] sm:$0xff] }
 0x4b2   :  { %vm7383_vm9 = vcmp.ge.f32.partialorder %v7289_v3, 0.0  ;;  %v7415_v18 = vmul.f32 0.2, %v7289_v3  ;;  %v7281_v4 = vadd.f32 %v7280_v25, %v7120_v16  ;;  %9435 = vmatmul.mubr.bf16.gmra.mxu1 %v16078_v5  ;;  %9571 = vmatprep.mubr.bf16.mxu0 %v16077_v20  ;;  %v7444_v56 = vsel %vm7380_vm10, %v7278_v9, %v7412_v15  ;;  %v16084_v7 = vld [vmem:[#allocation4 + $0x38] sm:$0xff]   ;;  %v19084_v9 = vpop.f32.mrf.mxu0  ;;  %v16093_v36 = vld [vmem:[#allocation4 + $0x60] sm:$0xff]  }
 0x4b3   :  { %v15555_v10 = vpop.f32.mrf.mxu1  ;;  %9442 = vmatprep.mubr.bf16.mxu1 %v16081_v19  ;;  %9572 = vmatmul.mubr.bf16.gmra.mxu0 %v16079_v17  ;;  %v20291_v48 = vld [vmem:[#allocation17_spill] sm:$0xff]  ;;  %v20292_v17 = vld [vmem:[#allocation18_spill] sm:$0xff] }
 0x4b4   :  { %v7447_v53 = vsel %vm7383_vm9, %v7289_v3, %v7415_v18  ;;  %vm7381_vm11 = vcmp.ge.f32.partialorder %v7281_v4, 0.0  ;;  %v7413_v55 = vmul.f32 0.2, %v7281_v4  ;;  %v7302_v33 = vadd.f32 %v15555_v10, %v7141_v42  ;;  %9579 = vmatprep.mubr.bf16.mxu0 %v16082_v34  ;;  %v20293_v31 = vld [vmem:[#allocation9_spill] sm:$0xff]  ;;  %v20294_v42 = vld [vmem:[#allocation12_spill] sm:$0xff] }
 0x4b5   :  { %v13204_v47 = vpack.c.bf16 %v7447_v53, %v7446_v24  ;;  %v7293_v26 = vpop.f32.mrf.mxu1  ;;  %v14810_v15 = vadd.f32 %v20292_v17, %v20291_v48  ;;  %v7149_v19 = vadd.f32 %v14807_v1, %v20293_v31  ;;  %v7160_v10 = vadd.f32 %v14816_v57, %v20294_v42  ;;  %v20299_v57 = vld [vmem:[#allocation14_spill] sm:$0xff] }
 0x4b6   :  { %v7445_v62 = vsel %vm7381_vm11, %v7281_v4, %v7413_v55  ;;  %v7294_v14 = vadd.f32 %v7293_v26, %v7133_v54  ;;  %v7418_v49 = vmul.f32 0.2, %v7302_v33  ;;  %vm7386_vm12 = vcmp.ge.f32.partialorder %v7302_v33, 0.0  ;;  %v19093_v54 = vpop.f32.mrf.mxu0 }
 0x4b7   :  { %13355 = vst [vmem:[#allocation4 + $0x70] sm:$0xff] %v13204_v47   ;;  %v13199_v46 = vpack.c.bf16 %v7445_v62, %v7444_v56  ;;  %v15556_v51 = vpop.f32.mrf.mxu1  ;;  %v14825_v4 = vadd.f32 %v18955_v23, %v18947_v39  ;;  %v20295_v47 = vld [vmem:[#allocation23_spill] sm:$0xff]  ;;  %v7152_v56 = vadd.f32 %v14810_v15, %v20296_v43  ;;  %v16088_v62 = vld [vmem:[#allocation4 + $0x40] sm:$0xff]   ;;  %v14837_v48 = vadd.f32 %v19033_v32, %v19022_v44  ;;  %v20302_v44 = vld [vmem:[#allocation28_spill] sm:$0xff] }
 0x4b8   :  { %v7416_v50 = vmul.f32 0.2, %v7294_v14  ;;  %v7305_v40 = vadd.f32 %v15556_v51, %v7144_v41  ;;  %v16086_v60 = vld [vmem:[#allocation4 + $0x48] sm:$0xff]   ;;  %v7450_v3 = vsel %vm7386_vm12, %v7302_v33, %v7418_v49  ;;  %vm7384_vm14 = vcmp.ge.f32.partialorder %v7294_v14, 0.0  ;;  %v14847_v51 = vpop.f32.mrf.mxu0 }
 0x4b9   :  { %13354 = vst [vmem:[#allocation4 + $0x68] sm:$0xff] %v13199_v46   ;;  %v7296_v37 = vpop.f32.mrf.mxu1  ;;  %v16087_v18 = vld [vmem:[#allocation4 + $0x48] sm:$0xff]   ;;  %v14819_v33 = vadd.f32 %v18935_v8, %v20295_v47  ;;  %v20297_v46 = vld [vmem:[#allocation16_spill] sm:$0xff]  ;;  %v14737_v32 = vadd.f32 %v20302_v44, %v18964_v6  ;;  %v16095_v6 = vld [vmem:[#allocation4 + $0x40] sm:$0xff]  }
 0x4ba   :  { %vm7387_vm13 = vcmp.ge.f32.partialorder %v7305_v40, 0.0  ;;  %v7419_v58 = vmul.f32 0.2, %v7305_v40  ;;  %v7297_v5 = vadd.f32 %v7296_v37, %v7136_v63  ;;  %9443 = vmatmul.mubr.bf16.gmra.mxu1 %v16084_v7  ;;  %v7448_v24 = vsel %vm7384_vm14, %v7294_v14, %v7416_v50  ;;  %v16089_v39 = vld [vmem:[#allocation4 + $0x28] sm:$0xff]   ;;  %v20305_v47 = vld [vmem:[#allocation32_spill] sm:$0xff] }
 0x4bb   :  { %v15559_v16 = vpop.f32.mrf.mxu1  ;;  %9450 = vmatprep.mubr.bf16.mxu1 %v16086_v60  ;;  %9580 = vmatmul.mubr.bf16.gmra.mxu0 %v16085_v0  ;;  %v14828_v14 = vadd.f32 %v18962_v29, %v18960_v38  ;;  %v7173_v49 = vadd.f32 %v14825_v4, %v20297_v46  ;;  %v14822_v63 = vadd.f32 %v20298_v45, %v18940_v30  ;;  %v14848_v30 = vpop.f32.mrf.mxu0  ;;  %v16098_v45 = vld [vmem:[#allocation4 + $0x60] sm:$0xff]  }
 0x4bc   :  { %v7451_v11 = vsel %vm7387_vm13, %v7305_v40, %v7419_v58  ;;  %vm7385_vm15 = vcmp.ge.f32.partialorder %v7297_v5, 0.0  ;;  %v7417_v12 = vmul.f32 0.2, %v7297_v5  ;;  %v7318_v25 = vadd.f32 %v15559_v16, %v7157_v21  ;;  %9587 = vmatprep.mubr.bf16.mxu0 %v16087_v18  ;;  %v16091_v40 = vld [vmem:[#allocation4 + $0x50] sm:$0xff]   ;;  %v20300_v21 = vld [vmem:[#allocation19_spill] sm:$0xff]  ;;  %v20301_v18 = vld [vmem:[#allocation13_spill] sm:$0xff] }
 0x4bd   :  { %v13214_v20 = vpack.c.bf16 %v7451_v11, %v7450_v3  ;;  %v7309_v61 = vpop.f32.mrf.mxu1  ;;  %v7165_v37 = vadd.f32 %v14819_v33, %v20299_v57  ;;  %v7176_v60 = vadd.f32 %v14828_v14, %v20300_v21  ;;  %v14831_v16 = vadd.f32 %v18987_v35, %v18969_v27  ;;  %v20310_v57 = vld [vmem:[#allocation30_spill] sm:$0xff] }
 0x4be   :  { %v7449_v53 = vsel %vm7385_vm15, %v7297_v5, %v7417_v12  ;;  %v7422_v55 = vmul.f32 0.2, %v7318_v25  ;;  %v7310_v34 = vadd.f32 %v7309_v61, %v7149_v19  ;;  %vm7390_vm0 = vcmp.ge.f32.partialorder %v7318_v25, 0.0  ;;  %v16102_v44 = vld [vmem:[#allocation4 + $0x70] sm:$0xff]  }
 0x4bf   :  { %13357 = vst [vmem:[#allocation4 + $0x80] sm:$0xff] %v13214_v20   ;;  %v13209_v26 = vpack.c.bf16 %v7449_v53, %v7448_v24  ;;  %v15560_v41 = vpop.f32.mrf.mxu1  ;;  %v7168_v4 = vadd.f32 %v14822_v63, %v20301_v18  ;;  %v16094_v20 = vld [vmem:[#allocation4 + $0x48] sm:$0xff]   ;;  %v14840_v61 = vadd.f32 %v19059_v52, %v19050_v28  ;;  %v20303_v24 = vld [vmem:[#allocation25_spill] sm:$0xff]  ;;  %v20308_v63 = vld [vmem:[#allocation6_spill] sm:$0xff] }
 0x4c0   :  { %vm7388_vm1 = vcmp.ge.f32.partialorder %v7310_v34, 0.0  ;;  %v7321_v23 = vadd.f32 %v15560_v41, %v7160_v10  ;;  %v7420_v8 = vmul.f32 0.2, %v7310_v34  ;;  %v7454_v7 = vsel %vm7390_vm0, %v7318_v25, %v7422_v55  ;;  %v14850_v10 = vpop.f32.mrf.mxu0  ;;  %v16096_v55 = vld [vmem:[#allocation4 + $0x68] sm:$0xff]  }
 0x4c1   :  { %13356 = vst [vmem:[#allocation4 + $0x78] sm:$0xff] %v13209_v26   ;;  %v7312_v1 = vpop.f32.mrf.mxu1  ;;  %v7189_v53 = vadd.f32 %v14837_v48, %v20303_v24 }
 0x4c2   :  { %vm7391_vm2 = vcmp.ge.f32.partialorder %v7321_v23, 0.0  ;;  %v7423_v0 = vmul.f32 0.2, %v7321_v23  ;;  %v7313_v50 = vadd.f32 %v7312_v1, %v7152_v56  ;;  %9451 = vmatmul.mubr.bf16.gmra.mxu1 %v16088_v62  ;;  %v7452_v17 = vsel %vm7388_vm1, %v7310_v34, %v7420_v8  ;;  %v20304_v34 = vld [vmem:[#allocation31_spill] sm:$0xff]  ;;  %v20307_v1 = vld [vmem:[#allocation26_spill] sm:$0xff] }
 0x4c3   :  { %v15563_v22 = vpop.f32.mrf.mxu1  ;;  %9458 = vmatprep.mubr.bf16.mxu1 %v16091_v40  ;;  %9588 = vmatmul.mubr.bf16.gmra.mxu0 %v16089_v39  ;;  %v14834_v33 = vadd.f32 %v20305_v47, %v20304_v34  ;;  %v20306_v39 = vld [vmem:[#allocation21_spill] sm:$0xff]  ;;  %v16097_v56 = vld [vmem:[#allocation4 + $0x68] sm:$0xff]   ;;  %v14849_v62 = vadd.f32 %v14848_v30, %v14847_v51  ;;  %v7192_v46 = vadd.f32 %v14840_v61, %v20307_v1 }
 0x4c4   :  { %v7455_v38 = vsel %vm7391_vm2, %v7321_v23, %v7423_v0  ;;  %vm7389_vm3 = vcmp.ge.f32.partialorder %v7313_v50, 0.0  ;;  %v7421_v29 = vmul.f32 0.2, %v7313_v50  ;;  %v7334_v58 = vadd.f32 %v15563_v22, %v7173_v49  ;;  %9595 = vmatprep.mubr.bf16.mxu0 %v16093_v36  ;;  %v14851_v49 = vpop.f32.mrf.mxu0  ;;  %v20309_v22 = vld [vmem:[#allocation33_spill] sm:$0xff]  ;;  %v16099_v30 = vld [vmem:[#allocation4 + $0x48] sm:$0xff]  }
 0x4c5   :  { %v13224_v5 = vpack.c.bf16 %v7455_v38, %v7454_v7  ;;  %v7325_v13 = vpop.f32.mrf.mxu1  ;;  %v7181_v28 = vadd.f32 %v14831_v16, %v20306_v39  ;;  %v7044_v7 = vadd.f32 %v14737_v32, %v20308_v63  ;;  %v14843_v51 = vadd.f32 %v19076_v2, %v19066_v59  ;;  %v16101_v16 = vld [vmem:[#allocation4 + $0x70] sm:$0xff]  }
 0x4c6   :  { %v7453_v15 = vsel %vm7389_vm3, %v7313_v50, %v7421_v29  ;;  %v7326_v3 = vadd.f32 %v7325_v13, %v7165_v37  ;;  %v7426_v19 = vmul.f32 0.2, %v7334_v58  ;;  %vm7394_vm4 = vcmp.ge.f32.partialorder %v7334_v58, 0.0 }
 0x4c7   :  { %13359 = vst [vmem:[#allocation4 + $0xa0] sm:$0xff] %v13224_v5   ;;  %v13219_v31 = vpack.c.bf16 %v7453_v15, %v7452_v17  ;;  %v15564_v11 = vpop.f32.mrf.mxu1  ;;  %v14740_v37 = vadd.f32 %v20310_v57, %v20309_v22  ;;  %v20311_v5 = vld [vmem:[#allocation20_spill] sm:$0xff]  ;;  %v14852_v21 = vadd.f32 %v14851_v49, %v14850_v10  ;;  %v7205_v48 = vadd.f32 %v14849_v62, %v7044_v7 }
 0x4c8   :  { %v7424_v12 = vmul.f32 0.2, %v7326_v3  ;;  %v7337_v25 = vadd.f32 %v15564_v11, %v7176_v60  ;;  %v7458_v26 = vsel %vm7394_vm4, %v7334_v58, %v7426_v19  ;;  %vm7392_vm6 = vcmp.ge.f32.partialorder %v7326_v3, 0.0  ;;  %v16107_v1 = vld [vmem:[#allocation4 + $0x78] sm:$0xff]   ;;  %v16113_v7 = vld [vmem:[#allocation4 + $0x90] sm:$0xff]  }
 0x4c9   :  { %13358 = vst [vmem:[#allocation4 + $0x98] sm:$0xff] %v13219_v31   ;;  %v7328_v42 = vpop.f32.mrf.mxu1  ;;  %v7184_v13 = vadd.f32 %v14834_v33, %v20311_v5  ;;  %v20312_v31 = vld [vmem:[#allocation7_spill] sm:$0xff]  ;;  %v14846_v2 = vadd.f32 %v19093_v54, %v19084_v9  ;;  %v20314_v33 = vld [vmem:[#allocation29_spill] sm:$0xff]  ;;  %v16108_v22 = vld [vmem:[#allocation4 + $0x70] sm:$0xff]  }
 0x4ca   :  { %vm7395_vm5 = vcmp.ge.f32.partialorder %v7337_v25, 0.0  ;;  %v7427_v27 = vmul.f32 0.2, %v7337_v25  ;;  %v7329_v35 = vadd.f32 %v7328_v42, %v7168_v4  ;;  %9459 = vmatmul.mubr.bf16.gmra.mxu1 %v16094_v20  ;;  %v7456_v8 = vsel %vm7392_vm6, %v7326_v3, %v7424_v12  ;;  %v20313_v12 = vld [vmem:[#allocation27_spill] sm:$0xff]  ;;  %v16114_v5 = vld [vmem:[#allocation4 + $0x78] sm:$0xff]  }
 0x4cb   :  { %v15567_v41 = vpop.f32.mrf.mxu1  ;;  %9466 = vmatprep.mubr.bf16.mxu1 %v16096_v55  ;;  %9596 = vmatmul.mubr.bf16.gmra.mxu0 %v16095_v6  ;;  %v7047_v59 = vadd.f32 %v14740_v37, %v20312_v31  ;;  %v16111_v37 = vld [vmem:[#allocation4 + $0x80] sm:$0xff]  }
 0x4cc   :  { %v7459_v52 = vsel %vm7395_vm5, %v7337_v25, %v7427_v27  ;;  %vm7393_vm7 = vcmp.ge.f32.partialorder %v7329_v35, 0.0  ;;  %v7425_v23 = vmul.f32 0.2, %v7329_v35  ;;  %v7350_v43 = vadd.f32 %v15567_v41, %v7189_v53  ;;  %9603 = vmatprep.mubr.bf16.mxu0 %v16097_v56  ;;  %v15005_v54 = vpop.f32.mrf.mxu0  ;;  %v16104_v53 = vld [vmem:[#allocation4 + $0x68] sm:$0xff]  }
 0x4cd   :  { %v13234_v36 = vpack.c.bf16 %v7459_v52, %v7458_v26  ;;  %v7341_v14 = vpop.f32.mrf.mxu1  ;;  %v7197_v25 = vadd.f32 %v14843_v51, %v20313_v12  ;;  %v7208_v42 = vadd.f32 %v14852_v21, %v7047_v59  ;;  %v7200_v26 = vadd.f32 %v14846_v2, %v20314_v33 }
 0x4ce   :  { %v7457_v0 = vsel %vm7393_vm7, %v7329_v35, %v7425_v23  ;;  %v7430_v50 = vmul.f32 0.2, %v7350_v43  ;;  %v7342_v40 = vadd.f32 %v7341_v14, %v7181_v28  ;;  %vm7398_vm8 = vcmp.ge.f32.partialorder %v7350_v43, 0.0  ;;  %v15006_v41 = vpop.f32.mrf.mxu0  ;;  %v16106_v23 = vld [vmem:[#allocation4 + $0x78] sm:$0xff]   ;;  %v16121_v2 = vld [vmem:[#allocation4 + $0xa0] sm:$0xff]  }
 0x4cf   :  { %13361 = vst [vmem:[#allocation4 + $0xb0] sm:$0xff] %v13234_v36   ;;  %v13229_v38 = vpack.c.bf16 %v7457_v0, %v7456_v8  ;;  %v15568_v29 = vpop.f32.mrf.mxu1  ;;  %v19137_v39 = vadd.f32 %v15006_v41, %v15005_v54  ;;  %v16122_v12 = vld [vmem:[#allocation4 + $0xa0] sm:$0xff]  }
 0x4d0   :  { %vm7396_vm9 = vcmp.ge.f32.partialorder %v7342_v40, 0.0  ;;  %v7353_v58 = vadd.f32 %v15568_v29, %v7192_v46  ;;  %v7428_v17 = vmul.f32 0.2, %v7342_v40  ;;  %v7462_v19 = vsel %vm7398_vm8, %v7350_v43, %v7430_v50  ;;  %v16105_v43 = vld [vmem:[#allocation4 + $0x50] sm:$0xff]   ;;  %v16116_v21 = vld [vmem:[#allocation4 + $0x98] sm:$0xff]   ;;  %v15008_v31 = vpop.f32.mrf.mxu0  ;;  %v16137_v41 = vld [vmem:[#allocation4 + $0xa0] sm:$0xff]  }
 0x4d1   :  { %13360 = vst [vmem:[#allocation4 + $0xa8] sm:$0xff] %v13229_v38   ;;  %v7344_v60 = vpop.f32.mrf.mxu1 }
 0x4d2   :  { %vm7399_vm10 = vcmp.ge.f32.partialorder %v7353_v58, 0.0  ;;  %v7431_v15 = vmul.f32 0.2, %v7353_v58  ;;  %v7345_v3 = vadd.f32 %v7344_v60, %v7184_v13  ;;  %9467 = vmatmul.mubr.bf16.gmra.mxu1 %v16098_v45  ;;  %v7460_v10 = vsel %vm7396_vm9, %v7342_v40, %v7428_v17  ;;  %v16109_v45 = vld [vmem:[#allocation4 + $0x58] sm:$0xff]   ;;  %v16115_v60 = vld [vmem:[#allocation4 + $0x70] sm:$0xff]  }
 0x4d3   :  { %v15571_v11 = vpop.f32.mrf.mxu1  ;;  %9474 = vmatprep.mubr.bf16.mxu1 %v16101_v16  ;;  %9604 = vmatmul.mubr.bf16.gmra.mxu0 %v16099_v30  ;;  %v16117_v30 = vld [vmem:[#allocation4 + $0x98] sm:$0xff]  }
 0x4d4   :  { %v7463_v18 = vsel %vm7399_vm10, %v7353_v58, %v7431_v15  ;;  %vm7397_vm11 = vcmp.ge.f32.partialorder %v7345_v3, 0.0  ;;  %v7429_v4 = vmul.f32 0.2, %v7345_v3  ;;  %v7366_v20 = vadd.f32 %v15571_v11, %v7205_v48  ;;  %9611 = vmatprep.mubr.bf16.mxu0 %v16102_v44 }
 0x4d5   :  { %v13244_v32 = vpack.c.bf16 %v7463_v18, %v7462_v19  ;;  %v7357_v61 = vpop.f32.mrf.mxu1  ;;  %v16119_v19 = vld [vmem:[#allocation4 + $0x78] sm:$0xff]  }
 0x4d6   :  { %v7461_v27 = vsel %vm7397_vm11, %v7345_v3, %v7429_v4  ;;  %vm7402_vm12 = vcmp.ge.f32.partialorder %v7366_v20, 0.0  ;;  %v7358_v9 = vadd.f32 %v7357_v61, %v7197_v25  ;;  %v7434_v55 = vmul.f32 0.2, %v7366_v20  ;;  %v16118_v3 = vld [vmem:[#allocation4 + $0x90] sm:$0xff]   ;;  %v15009_v25 = vpop.f32.mrf.mxu0  ;;  %v19157_v61 = vld [vmem:[%s20175_s6] ss:$0 sm:$0xff] }
 0x4d7   :  { %13363 = vst [vmem:[#allocation4 + $0xd0] sm:$0xff] %v13244_v32   ;;  %v13239_v35 = vpack.c.bf16 %v7461_v27, %v7460_v10  ;;  %v15572_v24 = vpop.f32.mrf.mxu1  ;;  %v15010_v44 = vadd.f32 %v15009_v25, %v15008_v31  ;;  %v16124_v32 = vld [vmem:[#allocation4 + $0x98] sm:$0xff]   ;;  %v16180_v31 = vld [vmem:[#allocation4 + $0x80] sm:$0xff]  }
 0x4d8   :  { %v7432_v34 = vmul.f32 0.2, %v7358_v9  ;;  %v7369_v47 = vadd.f32 %v15572_v24, %v7208_v42  ;;  %vm7400_vm14 = vcmp.ge.f32.partialorder %v7358_v9, 0.0  ;;  %v7466_v62 = vsel %vm7402_vm12, %v7366_v20, %v7434_v55  ;;  %v16126_v42 = vld [vmem:[#allocation4 + $0xa8] sm:$0xff]   ;;  %v16135_v55 = vld [vmem:[#allocation4 + $0xc0] sm:$0xff]  }
 0x4d9   :  { %13362 = vst [vmem:[#allocation4 + $0xc8] sm:$0xff] %v13239_v35   ;;  %v7360_v6 = vpop.f32.mrf.mxu1  ;;  %v16127_v54 = vld [vmem:[#allocation4 + $0xa8] sm:$0xff]   ;;  %v16186_v25 = vld [vmem:[#allocation4 + $0x80] sm:$0xff]  }
 0x4da   :  { %vm7403_vm13 = vcmp.ge.f32.partialorder %v7369_v47, 0.0  ;;  %v7435_v28 = vmul.f32 0.2, %v7369_v47  ;;  %v7361_v52 = vadd.f32 %v7360_v6, %v7200_v26  ;;  %9475 = vmatmul.mubr.bf16.gmra.mxu1 %v16104_v53  ;;  %v7464_v8 = vsel %vm7400_vm14, %v7358_v9, %v7432_v34  ;;  %v16125_v9 = vld [vmem:[#allocation4 + $0x80] sm:$0xff]   ;;  %v16131_v53 = vld [vmem:[#allocation4 + $0x88] sm:$0xff]  }
 0x4db   :  { %v14893_v56 = vpop.f32.mrf.mxu1  ;;  %9482 = vmatprep.mubr.bf16.mxu1 %v16106_v23  ;;  %9612 = vmatmul.mubr.bf16.gmra.mxu0 %v16105_v43  ;;  %v16130_v34 = vld [vmem:[#allocation4 + $0xa0] sm:$0xff]   ;;  %v16136_v33 = vld [vmem:[#allocation4 + $0xa8] sm:$0xff]  }
 0x4dc   :  { %v7467_v36 = vsel %vm7403_vm13, %v7369_v47, %v7435_v28  ;;  %vm7401_vm15 = vcmp.ge.f32.partialorder %v7361_v52, 0.0  ;;  %v7433_v14 = vmul.f32 0.2, %v7361_v52  ;;  %9619 = vmatprep.mubr.bf16.mxu0 %v16107_v1  ;;  %v16133_v47 = vld [vmem:[#allocation4 + $0xb0] sm:$0xff]   ;;  %v16139_v26 = vld [vmem:[#allocation4 + $0x40] sm:$0xff]   ;;  %v16143_v28 = vld [vmem:[#allocation4 + $0x38] sm:$0xff]  }
 0x4dd   :  { %v13254_v46 = vpack.c.bf16 %v7467_v36, %v7466_v62  ;;  %v14894_v49 = vpop.f32.mrf.mxu1  ;;  %v16142_v23 = vld [vmem:[#allocation4 + $0xa8] sm:$0xff]   ;;  %v16152_v36 = vld [vmem:[#allocation4 + $0x40] sm:$0xff]   ;;  %v16155_v1 = vld [vmem:[#allocation4 + $0x50] sm:$0xff]  }
 0x4de   :  { %v7465_v0 = vsel %vm7401_vm15, %v7361_v52, %v7433_v14  ;;  %v14895_v50 = vadd.f32 %v14894_v49, %v14893_v56  ;;  %v16147_v52 = vld [vmem:[#allocation4 + $0x48] sm:$0xff]   ;;  %v16146_v43 = vld [vmem:[#allocation4 + $0xd0] sm:$0xff]   ;;  %v16420_v56 = vld [vmem:[%s20174_s5 + $0x238] sm:$0xff]  }
 0x4df   :  { %13365 = vst [vmem:[#allocation4 + $0xe0] sm:$0xff] %v13254_v46   ;;  %v13249_v40 = vpack.c.bf16 %v7465_v0, %v7464_v8  ;;  %v14896_v63 = vpop.f32.mrf.mxu1  ;;  %v16174_v62 = vld [vmem:[%s20174_s5 + $0x228] sm:$0xff]   ;;  %v16183_v14 = vld [vmem:[%s20174_s5 + $0x220] sm:$0xff]   ;;  %v16151_v46 = vld [vmem:[#allocation4 + $0xb0] sm:$0xff]  }
 0x4e0   :  { %v9405_v10 = vadd.f32 %v14895_v50, %v19157_v61  ;;  %v16138_v6 = vld [vmem:[#allocation4 + $0xc8] sm:$0xff]   ;;  %v16192_v8 = vld [vmem:[%s20174_s5 + $0x218] sm:$0xff]  }
 0x4e1   :  { %13364 = vst [vmem:[#allocation4 + $0xd8] sm:$0xff] %v13249_v40   ;;  %v14897_v57 = vpop.f32.mrf.mxu1  ;;  %v16167_v0 = vld [vmem:[#allocation4 + $0x58] sm:$0xff]   ;;  %v16160_v40 = vld [vmem:[#allocation4 + $0x48] sm:$0xff]  }
 0x4e2   :  { %9483 = vmatmul.mubr.bf16.gmra.mxu1 %v16108_v22  ;;  %v14898_v4 = vadd.f32 %v14897_v57, %v14896_v63  ;;  %v19162_v35 = vadd.f32 %v19137_v39, %v9405_v10  ;;  %v16162_v39 = vld [vmem:[%s20174_s5 + $0x230] sm:$0xff]   ;;  %v16159_v50 = vld [vmem:[#allocation4 + $0xb8] sm:$0xff]   ;;  %v16164_v63 = vld [vmem:[#allocation4 + $0x68] sm:$0xff]  }
 0x4e3   :  { %v14899_v51 = vpop.f32.mrf.mxu1  ;;  %9490 = vmatprep.mubr.bf16.mxu1 %v16111_v37  ;;  %9620 = vmatmul.mubr.bf16.gmra.mxu0 %v16109_v45  ;;  %v16201_v45 = vld [vmem:[%s20174_s5 + $0x210] sm:$0xff]   ;;  %v16169_v57 = vld [vmem:[#allocation4 + $0x60] sm:$0xff]   ;;  %v16191_v10 = vld [vmem:[#allocation4 + $0x98] sm:$0xff]  }
 0x4e4   :  { %9627 = vmatprep.mubr.bf16.mxu0 %v16113_v7  ;;  %v9408_v27 = vadd.f32 %v14898_v4, %v19157_v61  ;;  %v16210_v7 = vld [vmem:[%s20174_s5 + $0x208] sm:$0xff]   ;;  %v16168_v22 = vld [vmem:[#allocation4 + $0x50] sm:$0xff]   ;;  %v16219_v37 = vld [vmem:[%s20174_s5 + $0x200] sm:$0xff]  }
 0x4e5   :  { %v14900_v38 = vpop.f32.mrf.mxu1  ;;  %v16188_v4 = vld [vmem:[#allocation4 + $0xa0] sm:$0xff]  }
 0x4e6   :  { %v19140_v29 = vadd.f32 %v14900_v38, %v14899_v51  ;;  %v19164_v24 = vadd.f32 %v15010_v44, %v9408_v27  ;;  %v16170_v51 = vld [vmem:[#allocation4 + $0x70] sm:$0xff]   ;;  %v16189_v44 = vld [vmem:[#allocation4 + $0xa0] sm:$0xff]   ;;  %v16194_v27 = vld [vmem:[#allocation4 + $0xa8] sm:$0xff]  }
 0x4e7   :  { %v19142_v58 = vpop.f32.mrf.mxu1  ;;  %v16171_v38 = vld [vmem:[#allocation4 + $0x70] sm:$0xff]  }
 0x4e8   :  { %v16154_v49 = vld [vmem:[#allocation4 + $0xd8] sm:$0xff]  }
 0x4e9   :  { %v19144_v13 = vpop.f32.mrf.mxu1 }
 0x4ea   :  { %9491 = vmatmul.mubr.bf16.gmra.mxu1 %v16114_v5  ;;  %v16172_v5 = vld [vmem:[#allocation4 + $0x68] sm:$0xff]  }
 0x4eb   :  { %v14905_v48 = vpop.f32.mrf.mxu1  ;;  %9498 = vmatprep.mubr.bf16.mxu1 %v16116_v21  ;;  %9628 = vmatmul.mubr.bf16.gmra.mxu0 %v16115_v60  ;;  %v16175_v21 = vld [vmem:[#allocation4 + $0x78] sm:$0xff]   ;;  %v16173_v60 = vld [vmem:[#allocation4 + $0x68] sm:$0xff]  }
 0x4ec   :  { %9635 = vmatprep.mubr.bf16.mxu0 %v16117_v30  ;;  %v16177_v30 = vld [vmem:[#allocation4 + $0x70] sm:$0xff]  }
 0x4ed   :  { %v14906_v17 = vpop.f32.mrf.mxu1 }
 0x4ee   :  { %v19146_v15 = vadd.f32 %v14906_v17, %v14905_v48  ;;  %v16176_v48 = vld [vmem:[#allocation4 + $0x78] sm:$0xff]   ;;  %v16179_v17 = vld [vmem:[#allocation4 + $0x80] sm:$0xff]  }
 0x4ef   :  { %v19148_v16 = vpop.f32.mrf.mxu1 }
 0x4f1   :  { %v19150_v59 = vpop.f32.mrf.mxu1 }
 0x4f2   :  { %9499 = vmatmul.mubr.bf16.gmra.mxu1 %v16118_v3  ;;  %v16178_v3 = vld [vmem:[#allocation4 + $0x70] sm:$0xff]  }
 0x4f3   :  { %v14911_v11 = vpop.f32.mrf.mxu1  ;;  %9506 = vmatprep.mubr.bf16.mxu1 %v16121_v2  ;;  %9636 = vmatmul.mubr.bf16.gmra.mxu0 %v16119_v19  ;;  %v16185_v2 = vld [vmem:[#allocation4 + $0x88] sm:$0xff]   ;;  %v16181_v19 = vld [vmem:[#allocation4 + $0x78] sm:$0xff]  }
 0x4f4   :  { %9643 = vmatprep.mubr.bf16.mxu0 %v16122_v12  ;;  %v16184_v12 = vld [vmem:[#allocation4 + $0x98] sm:$0xff]  }
 0x4f5   :  { %v14912_v18 = vpop.f32.mrf.mxu1 }
 0x4f6   :  { %v19152_v20 = vadd.f32 %v14912_v18, %v14911_v11  ;;  %v16182_v11 = vld [vmem:[#allocation4 + $0x78] sm:$0xff]   ;;  %v16187_v18 = vld [vmem:[#allocation4 + $0x90] sm:$0xff]  }
 0x4fa   :  { %9507 = vmatmul.mubr.bf16.gmra.mxu1 %v16124_v32  ;;  %v16190_v32 = vld [vmem:[#allocation4 + $0x98] sm:$0xff]  }
 0x4fb   :  { %9514 = vmatprep.mubr.bf16.mxu1 %v16126_v42  ;;  %9644 = vmatmul.mubr.bf16.gmra.mxu0 %v16125_v9  ;;  %v16193_v42 = vld [vmem:[#allocation4 + $0xa8] sm:$0xff]   ;;  %v16195_v9 = vld [vmem:[#allocation4 + $0xa0] sm:$0xff]  }
 0x4fc   :  { %9651 = vmatprep.mubr.bf16.mxu0 %v16127_v54  ;;  %v16197_v54 = vld [vmem:[#allocation4 + $0xb0] sm:$0xff]  }
 0x502   :  { %9515 = vmatmul.mubr.bf16.gmra.mxu1 %v16130_v34  ;;  %v16203_v34 = vld [vmem:[#allocation4 + $0xb8] sm:$0xff]  }
 0x503   :  { %9522 = vmatprep.mubr.bf16.mxu1 %v16133_v47  ;;  %9652 = vmatmul.mubr.bf16.gmra.mxu0 %v16131_v53  ;;  %v16196_v53 = vld [vmem:[#allocation4 + $0xa0] sm:$0xff]   ;;  %v16199_v47 = vld [vmem:[#allocation4 + $0xa8] sm:$0xff]  }
 0x504   :  { %9659 = vmatprep.mubr.bf16.mxu0 %v16135_v55  ;;  %v16198_v55 = vld [vmem:[#allocation4 + $0xb0] sm:$0xff]  }
 0x50a   :  { %9523 = vmatmul.mubr.bf16.gmra.mxu1 %v16136_v33  ;;  %v16200_v33 = vld [vmem:[#allocation4 + $0xa8] sm:$0xff]  }
 0x50b   :  { %9724 = vmatprep.mubr.bf16.mxu1 %v16139_v26  ;;  %9660 = vmatmul.mubr.bf16.gmra.mxu0 %v16137_v41  ;;  %v16202_v26 = vld [vmem:[#allocation4 + $0xc8] sm:$0xff]   ;;  %v16204_v41 = vld [vmem:[#allocation4 + $0xb0] sm:$0xff]  }
 0x50c   :  { %9667 = vmatprep.mubr.bf16.mxu0 %v16138_v6  ;;  %v16205_v6 = vld [vmem:[#allocation4 + $0xc0] sm:$0xff]  }
 0x512   :  { %9725 = vmatmul.mubr.bf16.vlgmr.msra.gmra.mxu1 %v16143_v28  ;;  %v16207_v28 = vld [vmem:[#allocation4 + $0xd0] sm:$0xff]  }
 0x513   :  { %9732 = vmatprep.mubr.bf16.mxu1 %v16147_v52  ;;  %15574 = vmatpush3.bf16.msra.mxu1 %v16420_v56  ;;  %v16246_v52 = vld [vmem:[%s20176_s7 + $0x78] sm:$0xff]   ;;  %v16208_v56 = vld [vmem:[#allocation4 + $0xc8] sm:$0xff]  }
 0x514   :  { %9668 = vmatmul.mubr.bf16.gmra.mxu0 %v16142_v23  ;;  %15575 = vmatprep.subr.bf16.mxu1 %v16162_v39  ;;  %v16247_v23 = vld [vmem:[%s20176_s7 + $0x38] sm:$0xff]  }
 0x515   :  { %9675 = vmatprep.mubr.bf16.mxu0 %v16146_v43  ;;  %v19196_v43 = vpop.f32.mrf.mxu1  ;;  %15349 = vmatprep.subr.bf16.mxu0 %v16246_v52  ;;  %v9429_v52 = vadd.f32 %v19152_v20, %v19157_v61 }
 0x517   :  { %15576 = vmatpush3.bf16.msra.mxu1 %v16162_v39  ;;  %v16206_v39 = vld [vmem:[#allocation4 + $0xd0] sm:$0xff]  }
 0x518   :  { %15577 = vmatprep.subr.bf16.mxu1 %v16174_v62 }
 0x51a   :  { %9733 = vmatmul.mubr.bf16.gmra.mxu1 %v16152_v36  ;;  %v19198_v36 = vpop.f32.mrf.mxu1 }
 0x51b   :  { %9740 = vmatprep.mubr.bf16.mxu1 %v16155_v1  ;;  %15578 = vmatpush3.bf16.msra.mxu1 %v16174_v62  ;;  %v16211_v62 = vld [vmem:[#allocation4 + $0xd8] sm:$0xff]  }
 0x51c   :  { %9676 = vmatmul.mubr.bf16.gmra.mxu0 %v16151_v46  ;;  %15579 = vmatprep.subr.bf16.mxu1 %v16183_v14  ;;  %v16212_v1 = vld [vmem:[#allocation4 + $0xd8] sm:$0xff]  }
 0x51d   :  { %9683 = vmatprep.mubr.bf16.mxu0 %v16154_v49 }
 0x51f   :  { %15580 = vmatpush3.bf16.msra.mxu1 %v16183_v14  ;;  %v16209_v14 = vld [vmem:[#allocation4 + $0xc8] sm:$0xff]  }
 0x520   :  { %15581 = vmatprep.subr.bf16.mxu1 %v16192_v8 }
 0x522   :  { %9741 = vmatmul.mubr.bf16.gmra.mxu1 %v16160_v40 }
 0x523   :  { %9748 = vmatprep.mubr.bf16.mxu1 %v16167_v0  ;;  %15582 = vmatpush3.bf16.msra.mxu1 %v16192_v8 }
 0x524   :  { %9684 = vmatmul.mubr.bf16.gmra.mxu0 %v16159_v50  ;;  %15583 = vmatprep.subr.bf16.mxu1 %v16201_v45 }
 0x525   :  { %9885 = vmatprep.mubr.bf16.mxu0 %v16164_v63  ;;  %v9413_v63 = vadd.f32 %v19140_v29, %v19157_v61  ;;  %v16216_v29 = vld [vmem:[#allocation4 + $0xe0] sm:$0xff]  }
 0x527   :  { %15584 = vmatpush3.bf16.msra.mxu1 %v16201_v45  ;;  %v16213_v45 = vld [vmem:[#allocation4 + $0xd0] sm:$0xff]  }
 0x528   :  { %15585 = vmatprep.subr.bf16.mxu1 %v16210_v7 }
 0x52a   :  { %9749 = vmatmul.mubr.bf16.gmra.mxu1 %v16168_v22 }
 0x52b   :  { %9756 = vmatprep.mubr.bf16.mxu1 %v16170_v51  ;;  %15586 = vmatpush3.bf16.msra.mxu1 %v16210_v7  ;;  %v14904_v7 = vadd.f32 %v19144_v13, %v19142_v58 }
 0x52c   :  { %9886 = vmatmul.mubr.bf16.vlgmr.msra.gmra.mxu0 %v16169_v57  ;;  %15587 = vmatprep.subr.bf16.mxu1 %v16219_v37  ;;  %v16215_v57 = vld [vmem:[#allocation4 + $0xe0] sm:$0xff]  }
 0x52d   :  { %9893 = vmatprep.mubr.bf16.mxu0 %v16171_v38  ;;  %15350 = vmatpush3.bf16.msra.mxu0 %v16247_v23  ;;  %v16214_v38 = vld [vmem:[#allocation4 + $0xd0] sm:$0xff]   ;;  %v9416_v13 = vadd.f32 %v14904_v7, %v19157_v61  ;;  %v14916_v23 = vadd.f32 %v19198_v36, %v19196_v43 }
 0x52f   :  { %15588 = vmatpush3.bf16.msra.mxu1 %v16219_v37  ;;  %v9432_v43 = vadd.f32 %v14916_v23, %v19157_v61 }
 0x532   :  { %9757 = vmatmul.mubr.bf16.gmra.mxu1 %v16172_v5  ;;  %v16248_v5 = vld [vmem:[%s20176_s7 + $0x70] sm:$0xff]  }
 0x533   :  { %9764 = vmatprep.mubr.bf16.mxu1 %v16175_v21  ;;  %v16249_v21 = vld [vmem:[%s20176_s7 + $0x30] sm:$0xff]   ;;  %15351 = vmatprep.subr.bf16.mxu0 %v16248_v5  ;;  %v16227_v5 = vld [vmem:[#allocation4 + $0x78] sm:$0xff]  }
 0x534   :  { %9894 = vmatmul.mubr.bf16.gmra.mxu0 %v16173_v60 }
 0x535   :  { %9901 = vmatprep.mubr.bf16.mxu0 %v16176_v48  ;;  %15352 = vmatpush3.bf16.msra.mxu0 %v16249_v21 }
 0x53a   :  { %9765 = vmatmul.mubr.bf16.gmra.mxu1 %v16177_v30 }
 0x53b   :  { %9772 = vmatprep.mubr.bf16.mxu1 %v16179_v17 }
 0x53c   :  { %9902 = vmatmul.mubr.bf16.gmra.mxu0 %v16178_v3 }
 0x53d   :  { %9909 = vmatprep.mubr.bf16.mxu0 %v16180_v31 }
 0x542   :  { %9773 = vmatmul.mubr.bf16.gmra.mxu1 %v16181_v19 }
 0x543   :  { %9780 = vmatprep.mubr.bf16.mxu1 %v16185_v2 }
 0x544   :  { %9910 = vmatmul.mubr.bf16.gmra.mxu0 %v16182_v11  ;;  %v16220_v11 = vld [vmem:[#allocation4 + $0xe8] sm:$0xff]  }
 0x545   :  { %9917 = vmatprep.mubr.bf16.mxu0 %v16184_v12 }
 0x54a   :  { %9781 = vmatmul.mubr.bf16.gmra.mxu1 %v16186_v25 }
 0x54b   :  { %9788 = vmatprep.mubr.bf16.mxu1 %v16188_v4  ;;  %v9421_v4 = vadd.f32 %v19146_v15, %v19157_v61 }
 0x54c   :  { %9918 = vmatmul.mubr.bf16.gmra.mxu0 %v16187_v18  ;;  %v16217_v18 = vld [vmem:[#allocation4 + $0xd8] sm:$0xff]  }
 0x54d   :  { %9925 = vmatprep.mubr.bf16.mxu0 %v16189_v44  ;;  %v14910_v44 = vadd.f32 %v19150_v59, %v19148_v16 }
 0x552   :  { %9789 = vmatmul.mubr.bf16.gmra.mxu1 %v16190_v32 }
 0x553   :  { %9796 = vmatprep.mubr.bf16.mxu1 %v16193_v42  ;;  %v16221_v42 = vld [vmem:[#allocation4 + $0xf8] sm:$0xff]  }
 0x554   :  { %9926 = vmatmul.mubr.bf16.gmra.mxu0 %v16191_v10 }
 0x555   :  { %9933 = vmatprep.mubr.bf16.mxu0 %v16194_v27 }
 0x55a   :  { %9797 = vmatmul.mubr.bf16.gmra.mxu1 %v16195_v9  ;;  %v16218_v9 = vld [vmem:[#allocation4 + $0xd8] sm:$0xff]  }
 0x55b   :  { %9804 = vmatprep.mubr.bf16.mxu1 %v16197_v54 }
 0x55c   :  { %9934 = vmatmul.mubr.bf16.gmra.mxu0 %v16196_v53 }
 0x55d   :  { %9941 = vmatprep.mubr.bf16.mxu0 %v16198_v55 }
 0x562   :  { %9805 = vmatmul.mubr.bf16.gmra.mxu1 %v16199_v47  ;;  %v9424_v47 = vadd.f32 %v14910_v44, %v19157_v61  ;;  %v16231_v44 = vld [vmem:[#allocation4 + $0x88] sm:$0xff]  }
 0x563   :  { %9812 = vmatprep.mubr.bf16.mxu1 %v16203_v34 }
 0x564   :  { %9942 = vmatmul.mubr.bf16.gmra.mxu0 %v16200_v33 }
 0x565   :  { %9949 = vmatprep.mubr.bf16.mxu0 %v16202_v26 }
 0x56a   :  { %9813 = vmatmul.mubr.bf16.gmra.mxu1 %v16204_v41 }
 0x56b   :  { %9820 = vmatprep.mubr.bf16.mxu1 %v16206_v39  ;;  %v16222_v39 = vld [vmem:[#allocation4 + $0xe0] sm:$0xff]  }
 0x56c   :  { %9950 = vmatmul.mubr.bf16.gmra.mxu0 %v16205_v6 }
 0x56d   :  { %9957 = vmatprep.mubr.bf16.mxu0 %v16207_v28  ;;  %v16223_v28 = vld [vmem:[#allocation4 + $0xf0] sm:$0xff]  }
 0x572   :  { %v14917_v46 = vpop.f32.mrf.mxu1  ;;  %9821 = vmatmul.mubr.bf16.gmra.mxu1 %v16208_v56 }
 0x573   :  { %9828 = vmatprep.mubr.bf16.mxu1 %v16211_v62  ;;  %v15011_v49 = vpop.f32.mrf.mxu0  ;;  %v16224_v62 = vld [vmem:[#allocation4 + $0x70] sm:$0xff]  }
 0x574   :  { %9958 = vmatmul.mubr.bf16.gmra.mxu0 %v16209_v14  ;;  %v14918_v8 = vpop.f32.mrf.mxu1  ;;  %v16225_v14 = vld [vmem:[#allocation4 + $0x100] sm:$0xff]  }
 0x575   :  { %9965 = vmatprep.mubr.bf16.mxu0 %v16212_v1  ;;  %v19200_v0 = vadd.f32 %v14918_v8, %v14917_v46  ;;  %v15012_v50 = vpop.f32.mrf.mxu0  ;;  %v16251_v8 = vld [vmem:[%s20176_s7 + $0x28] sm:$0xff]  }
 0x576   :  { %v14920_v40 = vpop.f32.mrf.mxu1  ;;  %v15013_v22 = vadd.f32 %v15012_v50, %v15011_v49  ;;  %v16250_v49 = vld [vmem:[%s20176_s7 + $0x68] sm:$0xff]  }
 0x577   :  { %v15014_v37 = vpop.f32.mrf.mxu0  ;;  %15353 = vmatprep.subr.bf16.mxu0 %v16250_v49  ;;  %v9437_v21 = vadd.f32 %v19200_v0, %v19157_v61 }
 0x578   :  { %v14921_v51 = vpop.f32.mrf.mxu1  ;;  %v19212_v60 = vadd.f32 %v15013_v22, %v9413_v63  ;;  %15354 = vmatpush3.bf16.msra.mxu0 %v16251_v8  ;;  %v16234_v8 = vld [vmem:[#allocation4 + $0x108] sm:$0xff]  }
 0x579   :  { %v19214_v48 = vadd.f32 %v14921_v51, %v14920_v40  ;;  %v15015_v30 = vpop.f32.mrf.mxu0 }
 0x57a   :  { %v14923_v58 = vpop.f32.mrf.mxu1  ;;  %9829 = vmatmul.mubr.bf16.gmra.mxu1 %v16213_v45  ;;  %v15016_v17 = vadd.f32 %v15015_v30, %v15014_v37  ;;  %v16228_v30 = vld [vmem:[#allocation4 + $0x80] sm:$0xff]  }
 0x57b   :  { %9836 = vmatprep.mubr.bf16.mxu1 %v16215_v57  ;;  %v15017_v3 = vpop.f32.mrf.mxu0 }
 0x57c   :  { %9966 = vmatmul.mubr.bf16.gmra.mxu0 %v16214_v38  ;;  %v14924_v31 = vpop.f32.mrf.mxu1  ;;  %v19217_v2 = vadd.f32 %v15016_v17, %v9416_v13  ;;  %v16226_v38 = vld [vmem:[#allocation4 + $0xf8] sm:$0xff]  }
 0x57d   :  { %9973 = vmatprep.mubr.bf16.mxu0 %v16216_v29  ;;  %v19219_v19 = vadd.f32 %v14924_v31, %v14923_v58  ;;  %v15018_v12 = vpop.f32.mrf.mxu0  ;;  %v16229_v58 = vld [vmem:[#allocation4 + $0x108] sm:$0xff]  }
 0x57e   :  { %v14926_v25 = vpop.f32.mrf.mxu1  ;;  %v15019_v32 = vadd.f32 %v15018_v12, %v15017_v3 }
 0x57f   :  { %v15020_v10 = vpop.f32.mrf.mxu0 }
 0x580   :  { %v14927_v27 = vpop.f32.mrf.mxu1  ;;  %v19225_v54 = vadd.f32 %v15019_v32, %v9421_v4 }
 0x581   :  { %v19227_v53 = vadd.f32 %v14927_v27, %v14926_v25  ;;  %v15021_v55 = vpop.f32.mrf.mxu0  ;;  %v9440_v25 = vadd.f32 %v19214_v48, %v19157_v61  ;;  %v16233_v48 = vld [vmem:[#allocation4 + $0x110] sm:$0xff]  }
 0x582   :  { %v14929_v34 = vpop.f32.mrf.mxu1  ;;  %9837 = vmatmul.mubr.bf16.gmra.mxu1 %v16217_v18  ;;  %v15022_v33 = vadd.f32 %v15021_v55, %v15020_v10  ;;  %v9445_v55 = vadd.f32 %v19219_v19, %v19157_v61 }
 0x583   :  { %9844 = vmatprep.mubr.bf16.mxu1 %v16220_v11  ;;  %v15023_v15 = vpop.f32.mrf.mxu0  ;;  %v9448_v19 = vadd.f32 %v19227_v53, %v19157_v61 }
 0x584   :  { %9974 = vmatmul.mubr.bf16.gmra.mxu0 %v16218_v9  ;;  %v14930_v26 = vpop.f32.mrf.mxu1  ;;  %v19230_v16 = vadd.f32 %v15022_v33, %v9424_v47  ;;  %v16230_v9 = vld [vmem:[#allocation4 + $0x100] sm:$0xff]  }
 0x585   :  { %v19232_v59 = vadd.f32 %v14930_v26, %v14929_v34  ;;  %9981 = vmatprep.mubr.bf16.mxu0 %v16221_v42  ;;  %v15024_v41 = vpop.f32.mrf.mxu0  ;;  %v16232_v47 = vld [vmem:[#allocation4 + $0xa0] sm:$0xff]  }
 0x586   :  { %v14932_v6 = vpop.f32.mrf.mxu1  ;;  %v15025_v56 = vadd.f32 %v15024_v41, %v15023_v15  ;;  %v16252_v26 = vld [vmem:[%s20176_s7 + $0x60] sm:$0xff]  }
 0x587   :  { %v15026_v1 = vpop.f32.mrf.mxu0  ;;  %v16253_v41 = vld [vmem:[%s20176_s7 + $0x20] sm:$0xff]   ;;  %15355 = vmatprep.subr.bf16.mxu0 %v16252_v26 }
 0x588   :  { %v14933_v46 = vpop.f32.mrf.mxu1  ;;  %v19244_v50 = vadd.f32 %v15025_v56, %v9429_v52  ;;  %15356 = vmatpush3.bf16.msra.mxu0 %v16253_v41 }
 0x589   :  { %v19246_v40 = vadd.f32 %v14933_v46, %v14932_v6  ;;  %v15027_v20 = vpop.f32.mrf.mxu0 }
 0x58a   :  { %v14935_v45 = vpop.f32.mrf.mxu1  ;;  %9845 = vmatmul.mubr.bf16.gmra.mxu1 %v16222_v39  ;;  %v15028_v36 = vadd.f32 %v15027_v20, %v15026_v1  ;;  %v16235_v20 = vld [vmem:[#allocation4 + $0xa8] sm:$0xff]  }
 0x58b   :  { %15589 = vmatprep.mubr.bf16.mxu1 %v16224_v62  ;;  %v15029_v63 = vpop.f32.mrf.mxu0 }
 0x58c   :  { %9982 = vmatmul.mubr.bf16.gmra.mxu0 %v16223_v28  ;;  %v14936_v7 = vpop.f32.mrf.mxu1  ;;  %v19249_v22 = vadd.f32 %v15028_v36, %v9432_v43  ;;  %v16236_v43 = vld [vmem:[#allocation4 + $0xb0] sm:$0xff]  }
 0x58d   :  { %v19251_v57 = vadd.f32 %v14936_v7, %v14935_v45  ;;  %9989 = vmatprep.mubr.bf16.mxu0 %v16225_v14  ;;  %v15030_v37 = vpop.f32.mrf.mxu0  ;;  %v19286_v45 = vld [vmem:[%s20175_s6] ss:$0 sm:$0xff] }
 0x58e   :  { %v14938_v51 = vpop.f32.mrf.mxu1  ;;  %v15031_v29 = vadd.f32 %v15030_v37, %v15029_v63  ;;  %v9453_v61 = vadd.f32 %v19286_v45, %v19232_v59  ;;  %v16237_v59 = vld [vmem:[#allocation4 + $0xb8] sm:$0xff]  }
 0x58f   :  { %v15032_v13 = vpop.f32.mrf.mxu0 }
 0x590   :  { %v14939_v17 = vpop.f32.mrf.mxu1  ;;  %v19255_v3 = vadd.f32 %v15031_v29, %v9437_v21 }
 0x591   :  { %v19257_v31 = vadd.f32 %v14939_v17, %v14938_v51  ;;  %v15033_v11 = vpop.f32.mrf.mxu0 }
 0x592   :  { %v14941_v12 = vpop.f32.mrf.mxu1  ;;  %15590 = vmatmul.mubr.bf16.vlgmr.msra.gmra.mxu1 %v16227_v5  ;;  %v15034_v18 = vadd.f32 %v15033_v11, %v15032_v13  ;;  %v9456_v5 = vadd.f32 %v19286_v45, %v19246_v40  ;;  %v16254_v40 = vld [vmem:[%s20176_s7 + $0x58] sm:$0xff]  }
 0x593   :  { %15593 = vmatprep.mubr.bf16.mxu1 %v16228_v30  ;;  %v15035_v4 = vpop.f32.mrf.mxu0  ;;  %15357 = vmatprep.subr.bf16.mxu0 %v16254_v40 }
 0x594   :  { %9990 = vmatmul.mubr.bf16.gmra.mxu0 %v16226_v38  ;;  %v14942_v0 = vpop.f32.mrf.mxu1  ;;  %v19261_v32 = vadd.f32 %v15034_v18, %v9440_v25  ;;  %v16238_v18 = vld [vmem:[#allocation4 + $0xd0] sm:$0xff]  }
 0x595   :  { %v19263_v42 = vadd.f32 %v14942_v0, %v14941_v12  ;;  %9997 = vmatprep.mubr.bf16.mxu0 %v16229_v58  ;;  %v15036_v10 = vpop.f32.mrf.mxu0  ;;  %v9461_v12 = vadd.f32 %v19286_v45, %v19251_v57  ;;  %v9464_v57 = vadd.f32 %v19286_v45, %v19257_v31 }
 0x596   :  { %v14944_v27 = vpop.f32.mrf.mxu1  ;;  %v15037_v34 = vadd.f32 %v15036_v10, %v15035_v4 }
 0x597   :  { %v15038_v33 = vpop.f32.mrf.mxu0 }
 0x598   :  { %v14945_v15 = vpop.f32.mrf.mxu1  ;;  %v19273_v6 = vadd.f32 %v15037_v34, %v9445_v55 }
 0x599   :  { %v19275_v39 = vadd.f32 %v14945_v15, %v14944_v27  ;;  %v15039_v28 = vpop.f32.mrf.mxu0 }
 0x59a   :  { %v14947_v52 = vpop.f32.mrf.mxu1  ;;  %15594 = vmatmul.mubr.bf16.gmra.mxu1 %v16231_v44  ;;  %v15040_v23 = vadd.f32 %v15039_v28, %v15038_v33  ;;  %v16255_v44 = vld [vmem:[%s20176_s7 + $0x18] sm:$0xff]  }
 0x59b   :  { %15597 = vmatprep.mubr.bf16.mxu1 %v16232_v47  ;;  %v15041_v56 = vpop.f32.mrf.mxu0  ;;  %15358 = vmatpush3.bf16.msra.mxu0 %v16255_v44  ;;  %v16256_v47 = vld [vmem:[%s20176_s7 + $0xf8] sm:$0xff]  }
 0x59c   :  { %9998 = vmatmul.mubr.bf16.gmra.mxu0 %v16230_v9  ;;  %v14948_v62 = vpop.f32.mrf.mxu1  ;;  %v19279_v14 = vadd.f32 %v15040_v23, %v9448_v19  ;;  %15371 = vmatprep.subr.bf16.mxu1 %v16256_v47  ;;  %v9469_v19 = vadd.f32 %v19286_v45, %v19263_v42  ;;  %v16258_v42 = vld [vmem:[%s20176_s7 + $0xf0] sm:$0xff]   ;;  %v16243_v47 = vld [vmem:[#allocation4 + $0x108] sm:$0xff]  }
 0x59d   :  { %v19281_v1 = vadd.f32 %v14948_v62, %v14947_v52  ;;  %10005 = vmatprep.mubr.bf16.mxu0 %v16233_v48  ;;  %v15042_v46 = vpop.f32.mrf.mxu0  ;;  %v16257_v48 = vld [vmem:[%s20176_s7 + $0xb8] sm:$0xff]  }
 0x59e   :  { %v14950_v49 = vpop.f32.mrf.mxu1  ;;  %v15043_v53 = vadd.f32 %v15042_v46, %v15041_v56  ;;  %v16239_v52 = vld [vmem:[#allocation4 + $0xd8] sm:$0xff]   ;;  %15372 = vmatpush3.bf16.msra.mxu1 %v16257_v48  ;;  %v16240_v56 = vld [vmem:[#allocation4 + $0xe0] sm:$0xff]  }
 0x59f   :  { %v15044_v36 = vpop.f32.mrf.mxu0  ;;  %15373 = vmatprep.subr.bf16.mxu1 %v16258_v42 }
 0x5a0   :  { %v14951_v63 = vpop.f32.mrf.mxu1  ;;  %v19290_v7 = vadd.f32 %v15043_v53, %v9453_v61  ;;  %v9472_v53 = vadd.f32 %v19286_v45, %v19275_v39 }
 0x5a1   :  { %v19292_v37 = vadd.f32 %v14951_v63, %v14950_v49  ;;  %v15045_v51 = vpop.f32.mrf.mxu0 }
 0x5a2   :  { %v14953_v38 = vpop.f32.mrf.mxu1  ;;  %15598 = vmatmul.mubr.bf16.gmra.mxu1 %v16235_v20  ;;  %v15046_v21 = vadd.f32 %v15045_v51, %v15044_v36  ;;  %v16259_v36 = vld [vmem:[%s20176_s7 + $0xb0] sm:$0xff]  }
 0x5a3   :  { %15601 = vmatprep.mubr.bf16.mxu1 %v16236_v43  ;;  %v15047_v29 = vpop.f32.mrf.mxu0  ;;  %15374 = vmatpush3.bf16.msra.mxu1 %v16259_v36 }
 0x5a4   :  { %10006 = vmatmul.mubr.bf16.gmra.mxu0 %v16234_v8  ;;  %v14954_v30 = vpop.f32.mrf.mxu1  ;;  %v19296_v58 = vadd.f32 %v15046_v21, %v9456_v5 }
 0x5a5   :  { %v19298_v13 = vadd.f32 %v14954_v30, %v14953_v38  ;;  %v15048_v17 = vpop.f32.mrf.mxu0  ;;  %v16241_v38 = vld [vmem:[#allocation4 + $0xe8] sm:$0xff]  }
 0x5a6   :  { %v14956_v11 = vpop.f32.mrf.mxu1  ;;  %v15049_v25 = vadd.f32 %v15048_v17, %v15047_v29  ;;  %v16242_v29 = vld [vmem:[#allocation4 + $0x100] sm:$0xff]  }
 0x5a7   :  { %v15050_v4 = vpop.f32.mrf.mxu0 }
 0x5a8   :  { %v14957_v0 = vpop.f32.mrf.mxu1  ;;  %v19308_v10 = vadd.f32 %v15049_v25, %v9461_v12  ;;  %v16260_v25 = vld [vmem:[%s20176_s7 + $0x50] sm:$0xff]  }
 0x5a9   :  { %v19310_v27 = vadd.f32 %v14957_v0, %v14956_v11  ;;  %v15051_v9 = vpop.f32.mrf.mxu0  ;;  %15359 = vmatprep.subr.bf16.mxu0 %v16260_v25  ;;  %v16267_v25 = vld [vmem:[%s20176_s7 + $0x8] sm:$0xff]  }
 0x5aa   :  { %v14959_v55 = vpop.f32.mrf.mxu1  ;;  %15602 = vmatmul.mubr.bf16.gmra.mxu1 %v16237_v59  ;;  %v15052_v34 = vadd.f32 %v15051_v9, %v15050_v4  ;;  %v9477_v59 = vadd.f32 %v19286_v45, %v19281_v1  ;;  %v9480_v1 = vadd.f32 %v19286_v45, %v19292_v37  ;;  %v16262_v9 = vld [vmem:[%s20176_s7 + $0xe8] sm:$0xff]  }
 0x5ab   :  { %15605 = vmatprep.mubr.bf16.mxu1 %v16238_v18  ;;  %v15053_v33 = vpop.f32.mrf.mxu0  ;;  %v16261_v18 = vld [vmem:[%s20176_s7 + $0x10] sm:$0xff]   ;;  %15375 = vmatprep.subr.bf16.mxu1 %v16262_v9  ;;  %v16269_v9 = vld [vmem:[%s20176_s7 + $0x98] sm:$0xff]  }
 0x5ac   :  { %v14960_v15 = vpop.f32.mrf.mxu1  ;;  %v19320_v26 = vadd.f32 %v15052_v34, %v9464_v57  ;;  %15360 = vmatpush3.bf16.msra.mxu0 %v16261_v18 }
 0x5ad   :  { %v19322_v41 = vadd.f32 %v14960_v15, %v14959_v55  ;;  %v15054_v28 = vpop.f32.mrf.mxu0  ;;  %v16263_v55 = vld [vmem:[%s20176_s7 + $0xa8] sm:$0xff]   ;;  %v16244_v15 = vld [vmem:[#allocation4 + $0x110] sm:$0xff]  }
 0x5ae   :  { %v14962_v31 = vpop.f32.mrf.mxu1  ;;  %v15055_v23 = vadd.f32 %v15054_v28, %v15053_v33  ;;  %15376 = vmatpush3.bf16.msra.mxu1 %v16263_v55 }
 0x5af   :  { %v15056_v62 = vpop.f32.mrf.mxu0 }
 0x5b0   :  { %v14963_v46 = vpop.f32.mrf.mxu1  ;;  %v19326_v49 = vadd.f32 %v15055_v23, %v9469_v19 }
 0x5b1   :  { %v19328_v8 = vadd.f32 %v14963_v46, %v14962_v31  ;;  %v15057_v20 = vpop.f32.mrf.mxu0  ;;  %v9485_v31 = vadd.f32 %v19286_v45, %v19298_v13  ;;  %v16265_v13 = vld [vmem:[%s20176_s7 + $0xa0] sm:$0xff]  }
 0x5b2   :  { %v14965_v61 = vpop.f32.mrf.mxu1  ;;  %15606 = vmatmul.mubr.bf16.gmra.mxu1 %v16239_v52  ;;  %v15058_v43 = vadd.f32 %v15057_v20, %v15056_v62  ;;  %v9488_v20 = vadd.f32 %v19286_v45, %v19310_v27  ;;  %v16245_v27 = vld [vmem:[#allocation4 + $0x118] sm:$0xff]  }
 0x5b3   :  { %15609 = vmatprep.mubr.bf16.mxu1 %v16240_v56  ;;  %v15059_v63 = vpop.f32.mrf.mxu0 }
 0x5b4   :  { %v14966_v51 = vpop.f32.mrf.mxu1  ;;  %v19338_v5 = vadd.f32 %v15058_v43, %v9472_v53  ;;  %v16264_v53 = vld [vmem:[%s20176_s7 + $0xe0] sm:$0xff]  }
 0x5b5   :  { %v19340_v21 = vadd.f32 %v14966_v51, %v14965_v61  ;;  %v15060_v39 = vpop.f32.mrf.mxu0  ;;  %15377 = vmatprep.subr.bf16.mxu1 %v16264_v53 }
 0x5b6   :  { %v19342_v30 = vpop.f32.mrf.mxu1  ;;  %v15061_v17 = vadd.f32 %v15060_v39, %v15059_v63  ;;  %15378 = vmatpush3.bf16.msra.mxu1 %v16265_v13 }
 0x5b7   :  { %v15062_v11 = vpop.f32.mrf.mxu0 }
 0x5b8   :  { %v19346_v12 = vpop.f32.mrf.mxu1  ;;  %v19354_v4 = vadd.f32 %v15061_v17, %v9477_v59 }
 0x5b9   :  { %v15063_v0 = vpop.f32.mrf.mxu0 }
 0x5ba   :  { %v14971_v40 = vpop.f32.mrf.mxu1  ;;  %15610 = vmatmul.mubr.bf16.gmra.mxu1 %v16241_v38  ;;  %v15064_v44 = vadd.f32 %v15063_v0, %v15062_v11  ;;  %v16266_v11 = vld [vmem:[%s20176_s7 + $0x48] sm:$0xff]  }
 0x5bb   :  { %15613 = vmatprep.mubr.bf16.mxu1 %v16242_v29  ;;  %v15065_v57 = vpop.f32.mrf.mxu0  ;;  %v9493_v29 = vadd.f32 %v19286_v45, %v19322_v41  ;;  %15361 = vmatprep.subr.bf16.mxu0 %v16266_v11  ;;  %v9496_v41 = vadd.f32 %v19286_v45, %v19328_v8  ;;  %v9501_v8 = vadd.f32 %v19286_v45, %v19340_v21  ;;  %v16271_v21 = vld [vmem:[%s20176_s7 + $0x90] sm:$0xff]  }
 0x5bc   :  { %v14972_v34 = vpop.f32.mrf.mxu1  ;;  %v19364_v48 = vadd.f32 %v15064_v44, %v9480_v1  ;;  %15362 = vmatpush3.bf16.msra.mxu0 %v16267_v25  ;;  %v16268_v44 = vld [vmem:[%s20176_s7 + $0xd8] sm:$0xff]  }
 0x5bd   :  { %v19366_v33 = vadd.f32 %v14972_v34, %v14971_v40  ;;  %v15066_v37 = vpop.f32.mrf.mxu0  ;;  %15379 = vmatprep.subr.bf16.mxu1 %v16268_v44  ;;  %v16272_v44 = vld [vmem:[%s20176_s7 + $0x40] sm:$0xff]  }
 0x5be   :  { %v19368_v28 = vpop.f32.mrf.mxu1  ;;  %v15067_v52 = vadd.f32 %v15066_v37, %v15065_v57  ;;  %15380 = vmatpush3.bf16.msra.mxu1 %v16269_v9  ;;  %15363 = vmatprep.subr.bf16.mxu0 %v16272_v44  ;;  %v16277_v44 = vld [vmem:[%s20176_s7 + $0xc0] sm:$0xff]  }
 0x5bf   :  { %v15068_v19 = vpop.f32.mrf.mxu0 }
 0x5c0   :  { %v19372_v23 = vpop.f32.mrf.mxu1  ;;  %v19374_v56 = vadd.f32 %v15067_v52, %v9485_v31  ;;  %v14970_v31 = vadd.f32 %v19346_v12, %v19342_v30 }
 0x5c1   :  { %v15069_v62 = vpop.f32.mrf.mxu0 }
 0x5c2   :  { %v14977_v46 = vpop.f32.mrf.mxu1  ;;  %15614 = vmatmul.mubr.bf16.gmra.mxu1 %v16243_v47  ;;  %v15070_v61 = vadd.f32 %v15069_v62, %v15068_v19  ;;  %v9504_v53 = vadd.f32 %v19286_v45, %v14970_v31 }
 0x5c3   :  { %15617 = vmatprep.mubr.bf16.mxu1 %v16244_v15  ;;  %v15071_v43 = vpop.f32.mrf.mxu0 }
 0x5c4   :  { %v14978_v42 = vpop.f32.mrf.mxu1  ;;  %v19384_v36 = vadd.f32 %v15070_v61, %v9488_v20 }
 0x5c5   :  { %v19386_v63 = vadd.f32 %v14978_v42, %v14977_v46  ;;  %v15072_v51 = vpop.f32.mrf.mxu0 }
 0x5c6   :  { %v19388_v38 = vpop.f32.mrf.mxu1  ;;  %v15073_v39 = vadd.f32 %v15072_v51, %v15071_v43  ;;  %v16270_v43 = vld [vmem:[%s20176_s7 + $0xd0] sm:$0xff]  }
 0x5c7   :  { %v15074_v59 = vpop.f32.mrf.mxu0  ;;  %15381 = vmatprep.subr.bf16.mxu1 %v16270_v43 }
 0x5c8   :  { %v19392_v17 = vpop.f32.mrf.mxu1  ;;  %v19400_v18 = vadd.f32 %v15073_v39, %v9493_v29  ;;  %15382 = vmatpush3.bf16.msra.mxu1 %v16271_v21  ;;  %v9509_v39 = vadd.f32 %v19286_v45, %v19366_v33  ;;  %v16273_v33 = vld [vmem:[%s20176_s7] sm:$0xff]  }
 0x5c9   :  { %v15075_v0 = vpop.f32.mrf.mxu0  ;;  %15364 = vmatpush3.bf16.msra.mxu0 %v16273_v33  ;;  %v16279_v33 = vld [vmem:[%s20176_s7 + $0x80] sm:$0xff]  }
 0x5ca   :  { %v14983_v40 = vpop.f32.mrf.mxu1  ;;  %15618 = vmatmul.mubr.bf16.gmra.mxu1 %v16245_v27  ;;  %v15076_v1 = vadd.f32 %v15075_v0, %v15074_v59  ;;  %v14976_v59 = vadd.f32 %v19372_v23, %v19368_v28 }
 0x5cb   :  { %v15077_v55 = vpop.f32.mrf.mxu0 }
 0x5cc   :  { %v14984_v57 = vpop.f32.mrf.mxu1  ;;  %v19410_v34 = vadd.f32 %v15076_v1, %v9496_v41  ;;  %v9512_v28 = vadd.f32 %v19286_v45, %v14976_v59 }
 0x5cd   :  { %v19412_v47 = vadd.f32 %v14984_v57, %v14983_v40  ;;  %v15078_v15 = vpop.f32.mrf.mxu0 }
 0x5ce   :  { %v19414_v37 = vpop.f32.mrf.mxu1  ;;  %v15079_v52 = vadd.f32 %v15078_v15, %v15077_v55 }
 0x5cf   :  { %v15080_v19 = vpop.f32.mrf.mxu0 }
 0x5d0   :  { %v19420_v62 = vpop.f32.mrf.mxu1  ;;  %v19422_v46 = vadd.f32 %v15079_v52, %v9501_v8 }
 0x5d1   :  { %v15081_v20 = vpop.f32.mrf.mxu0 }
 0x5d2   :  { %v15117_v61 = vpop.f32.mrf.mxu1  ;;  %v15082_v13 = vadd.f32 %v15081_v20, %v15080_v19  ;;  %v16274_v20 = vld [vmem:[%s20176_s7 + $0xc8] sm:$0xff]  }
 0x5d3   :  { %15383 = vmatprep.subr.bf16.mxu1 %v16274_v20 }
 0x5d4   :  { %v15083_v30 = vpop.f32.mrf.mxu0  ;;  %v15118_v12 = vpop.f32.mrf.mxu1  ;;  %v19431_v42 = vadd.f32 %v15082_v13, %v9504_v53  ;;  %v14982_v53 = vadd.f32 %v19392_v17, %v19388_v38 }
 0x5d5   :  { %v15119_v51 = vadd.f32 %v15118_v12, %v15117_v61  ;;  %v16275_v61 = vld [vmem:[%s20176_s7 + $0x88] sm:$0xff]  }
 0x5d6   :  { %v15084_v27 = vpop.f32.mrf.mxu0  ;;  %v15120_v29 = vpop.f32.mrf.mxu1  ;;  %15384 = vmatpush3.bf16.msra.mxu1 %v16275_v61 }
 0x5d7   :  { %v15085_v11 = vadd.f32 %v15084_v27, %v15083_v30  ;;  %v19438_v25 = vadd.f32 %v15119_v51, %v19162_v35  ;;  %v16276_v27 = vld [vmem:[%s20176_s7 + $0x178] sm:$0xff]   ;;  %15385 = vmatprep.subr.bf16.mxu1 %v16277_v44 }
 0x5d8   :  { %v15086_v0 = vpop.f32.mrf.mxu0  ;;  %v15121_v40 = vpop.f32.mrf.mxu1  ;;  %15393 = vmatprep.subr.bf16.mxu0 %v16276_v27 }
 0x5d9   :  { %v19440_v41 = vadd.f32 %v15085_v11, %v9509_v39  ;;  %v15122_v1 = vadd.f32 %v15121_v40, %v15120_v29  ;;  %v9520_v39 = vadd.f32 %v19286_v45, %v14982_v53 }
 0x5da   :  { %v15087_v9 = vpop.f32.mrf.mxu0  ;;  %v15123_v55 = vpop.f32.mrf.mxu1  ;;  %15386 = vmatpush3.bf16.msra.mxu1 %v16279_v33 }
 0x5db   :  { %v15088_v23 = vadd.f32 %v15087_v9, %v15086_v0  ;;  %v19450_v35 = vadd.f32 %v15122_v1, %v19164_v24  ;;  %v9517_v24 = vadd.f32 %v19286_v45, %v19386_v63  ;;  %v14988_v9 = vadd.f32 %v19420_v62, %v19414_v37 }
 0x5dc   :  { %v15089_v57 = vpop.f32.mrf.mxu0  ;;  %v15124_v15 = vpop.f32.mrf.mxu1 }
 0x5dd   :  { %v19452_v8 = vadd.f32 %v15088_v23, %v9512_v28  ;;  %v15125_v31 = vadd.f32 %v15124_v15, %v15123_v55  ;;  %v9528_v20 = vadd.f32 %v19286_v45, %v14988_v9 }
 0x5de   :  { %v15090_v52 = vpop.f32.mrf.mxu0  ;;  %v15126_v19 = vpop.f32.mrf.mxu1 }
 0x5df   :  { %v15091_v13 = vadd.f32 %v15090_v52, %v15089_v57  ;;  %v19465_v43 = vadd.f32 %v15125_v31, %v19212_v60  ;;  %v16283_v52 = vld [vmem:[%s20176_s7 + $0x1f8] sm:$0xff]  }
 0x5e0   :  { %v15092_v21 = vpop.f32.mrf.mxu0  ;;  %v15127_v30 = vpop.f32.mrf.mxu1  ;;  %15415 = vmatprep.subr.bf16.mxu1 %v16283_v52 }
 0x5e1   :  { %v19467_v12 = vadd.f32 %v15091_v13, %v9517_v24  ;;  %v15128_v51 = vadd.f32 %v15127_v30, %v15126_v19 }
 0x5e2   :  { %v15093_v29 = vpop.f32.mrf.mxu0  ;;  %v15129_v63 = vpop.f32.mrf.mxu1 }
 0x5e3   :  { %v15094_v38 = vadd.f32 %v15093_v29, %v15092_v21  ;;  %v19474_v17 = vadd.f32 %v15128_v51, %v19217_v2  ;;  %v9525_v2 = vadd.f32 %v19286_v45, %v19412_v47 }
 0x5e4   :  { %v15095_v60 = vpop.f32.mrf.mxu0  ;;  %v15130_v59 = vpop.f32.mrf.mxu1 }
 0x5e5   :  { %v19476_v11 = vadd.f32 %v15094_v38, %v9520_v39  ;;  %v15131_v0 = vadd.f32 %v15130_v59, %v15129_v63 }
 0x5e6   :  { %v15096_v40 = vpop.f32.mrf.mxu0  ;;  %v15132_v1 = vpop.f32.mrf.mxu1 }
 0x5e7   :  { %v15097_v55 = vadd.f32 %v15096_v40, %v15095_v60  ;;  %v19489_v28 = vadd.f32 %v15131_v0, %v19225_v54 }
 0x5e8   :  { %v15098_v23 = vpop.f32.mrf.mxu0  ;;  %v15133_v57 = vpop.f32.mrf.mxu1 }
 0x5e9   :  { %v19491_v15 = vadd.f32 %v15097_v55, %v9525_v2  ;;  %v15134_v31 = vadd.f32 %v15133_v57, %v15132_v1 }
 0x5ea   :  { %v15099_v19 = vpop.f32.mrf.mxu0  ;;  %v15135_v47 = vpop.f32.mrf.mxu1 }
 0x5eb   :  { %v15100_v37 = vadd.f32 %v15099_v19, %v15098_v23  ;;  %v19498_v62 = vadd.f32 %v15134_v31, %v19230_v16 }
 0x5ec   :  { %v19500_v54 = vpop.f32.mrf.mxu0  ;;  %v15136_v61 = vpop.f32.mrf.mxu1 }
 0x5ed   :  { %v19502_v24 = vadd.f32 %v15100_v37, %v9528_v20  ;;  %v15137_v53 = vadd.f32 %v15136_v61, %v15135_v47 }
 0x5ee   :  { %v19504_v13 = vpop.f32.mrf.mxu0  ;;  %v15138_v21 = vpop.f32.mrf.mxu1 }
 0x5ef   :  { %v19507_v30 = vadd.f32 %v15137_v53, %v19244_v50 }
 0x5f0   :  { %v19509_v51 = vpop.f32.mrf.mxu0  ;;  %v15139_v45 = vpop.f32.mrf.mxu1 }
 0x5f1   :  { %v15140_v27 = vadd.f32 %v15139_v45, %v15138_v21 }
 0x5f2   :  { %v19511_v29 = vpop.f32.mrf.mxu0  ;;  %v15141_v16 = vpop.f32.mrf.mxu1 }
 0x5f3   :  { %v19514_v63 = vadd.f32 %v15140_v27, %v19249_v22 }
 0x5f4   :  { %v19516_v39 = vpop.f32.mrf.mxu0  ;;  %v15142_v38 = vpop.f32.mrf.mxu1 }
 0x5f5   :  { %v15143_v60 = vadd.f32 %v15142_v38, %v15141_v16 }
 0x5f6   :  { %v19518_v59 = vpop.f32.mrf.mxu0  ;;  %v15144_v0 = vpop.f32.mrf.mxu1 }
 0x5f7   :  { %v19521_v50 = vadd.f32 %v15143_v60, %v19255_v3 }
 0x5f8   :  { %v19523_v40 = vpop.f32.mrf.mxu0  ;;  %v15145_v1 = vpop.f32.mrf.mxu1 }
 0x5f9   :  { %v15146_v44 = vadd.f32 %v15145_v1, %v15144_v0 }
 0x5fa   :  { %v19525_v33 = vpop.f32.mrf.mxu0  ;;  %v15147_v2 = vpop.f32.mrf.mxu1 }
 0x5fb   :  { %v19528_v22 = vadd.f32 %v15146_v44, %v19261_v32 }
 0x5fc   :  { %v19530_v9 = vpop.f32.mrf.mxu0  ;;  %v15148_v55 = vpop.f32.mrf.mxu1 }
 0x5fd   :  { %20315 = vst [vmem:[#allocation34_spill] sm:$0xff] %v19528_v22  ;;  %v15149_v23 = vadd.f32 %v15148_v55, %v15147_v2 }
 0x5fe   :  { %v19532_v57 = vpop.f32.mrf.mxu0  ;;  %v15150_v31 = vpop.f32.mrf.mxu1 }
 0x5ff   :  { %v19535_v3 = vadd.f32 %v15149_v23, %v19273_v6 }
 0x600   :  { %v19537_v52 = vpop.f32.mrf.mxu0  ;;  %v15151_v19 = vpop.f32.mrf.mxu1 }
 0x601   :  { %v15152_v47 = vadd.f32 %v15151_v19, %v15150_v31 }
 0x602   :  { %v19539_v20 = vpop.f32.mrf.mxu0  ;;  %v15153_v37 = vpop.f32.mrf.mxu1 }
 0x603   :  { %v19542_v32 = vadd.f32 %v15152_v47, %v19279_v14 }
 0x604   :  { %v19544_v61 = vpop.f32.mrf.mxu0  ;;  %v15154_v53 = vpop.f32.mrf.mxu1 }
 0x605   :  { %v15155_v21 = vadd.f32 %v15154_v53, %v15153_v37 }
 0x606   :  { %v19546_v45 = vpop.f32.mrf.mxu0  ;;  %v15156_v27 = vpop.f32.mrf.mxu1 }
 0x607   :  { %v19549_v6 = vadd.f32 %v15155_v21, %v19290_v7 }
 0x608   :  { %v19551_v16 = vpop.f32.mrf.mxu0  ;;  %v15157_v38 = vpop.f32.mrf.mxu1 }
 0x609   :  { %20316 = vst [vmem:[#allocation35_spill] sm:$0xff] %v19549_v6  ;;  %v15158_v60 = vadd.f32 %v15157_v38, %v15156_v27 }
 0x60a   :  { %v19553_v0 = vpop.f32.mrf.mxu0  ;;  %v15159_v1 = vpop.f32.mrf.mxu1 }
 0x60b   :  { %v19556_v14 = vadd.f32 %v15158_v60, %v19296_v58 }
 0x60c   :  { %v19558_v44 = vpop.f32.mrf.mxu0  ;;  %v15160_v2 = vpop.f32.mrf.mxu1 }
 0x60d   :  { %20317 = vst [vmem:[#allocation36_spill] sm:$0xff] %v19556_v14  ;;  %v15161_v55 = vadd.f32 %v15160_v2, %v15159_v1 }
 0x60e   :  { %v19560_v23 = vpop.f32.mrf.mxu0  ;;  %v15162_v31 = vpop.f32.mrf.mxu1 }
 0x60f   :  { %v19563_v7 = vadd.f32 %v15161_v55, %v19308_v10 }
 0x610   :  { %v19565_v19 = vpop.f32.mrf.mxu0  ;;  %v15163_v47 = vpop.f32.mrf.mxu1 }
 0x611   :  { %20318 = vst [vmem:[#allocation37_spill] sm:$0xff] %v19563_v7  ;;  %v15164_v37 = vadd.f32 %v15163_v47, %v15162_v31 }
 0x612   :  { %v19567_v53 = vpop.f32.mrf.mxu0  ;;  %v15165_v21 = vpop.f32.mrf.mxu1 }
 0x613   :  { %v19570_v58 = vadd.f32 %v15164_v37, %v19320_v26 }
 0x614   :  { %v19572_v27 = vpop.f32.mrf.mxu0  ;;  %v15166_v38 = vpop.f32.mrf.mxu1 }
 0x615   :  { %20319 = vst [vmem:[#allocation15_spill] sm:$0xff] %v19570_v58  ;;  %v15167_v60 = vadd.f32 %v15166_v38, %v15165_v21 }
 0x616   :  { %v19574_v1 = vpop.f32.mrf.mxu0  ;;  %v15168_v2 = vpop.f32.mrf.mxu1 }
 0x617   :  { %v19577_v10 = vadd.f32 %v15167_v60, %v19326_v49 }
 0x618   :  { %v19579_v55 = vpop.f32.mrf.mxu0  ;;  %v15169_v14 = vpop.f32.mrf.mxu1 }
 0x619   :  { %20320 = vst [vmem:[#allocation8_spill] sm:$0xff] %v19577_v10  ;;  %v15170_v31 = vadd.f32 %v15169_v14, %v15168_v2 }
 0x61a   :  { %v19581_v47 = vpop.f32.mrf.mxu0  ;;  %v15171_v6 = vpop.f32.mrf.mxu1 }
 0x61b   :  { %v19584_v26 = vadd.f32 %v15170_v31, %v19338_v5 }
 0x61c   :  { %v19586_v37 = vpop.f32.mrf.mxu0  ;;  %v15172_v58 = vpop.f32.mrf.mxu1 }
 0x61d   :  { %20321 = vst [vmem:[#allocation22_spill] sm:$0xff] %v19584_v26  ;;  %v15173_v21 = vadd.f32 %v15172_v58, %v15171_v6 }
 0x61e   :  { %v19588_v38 = vpop.f32.mrf.mxu0  ;;  %v15174_v7 = vpop.f32.mrf.mxu1 }
 0x61f   :  { %20322 = vst [vmem:[#allocation11_spill] sm:$0xff] %v19588_v38  ;;  %v19591_v49 = vadd.f32 %v15173_v21, %v19354_v4 }
 0x620   :  { %v19593_v60 = vpop.f32.mrf.mxu0  ;;  %v15175_v10 = vpop.f32.mrf.mxu1 }
 0x621   :  { %20323 = vst [vmem:[#allocation17_spill] sm:$0xff] %v19591_v49  ;;  %20324 = vst [vmem:[#allocation18_spill] sm:$0xff] %v19593_v60  ;;  %v15176_v14 = vadd.f32 %v15175_v10, %v15174_v7 }
 0x622   :  { %v19595_v2 = vpop.f32.mrf.mxu0  ;;  %v15177_v22 = vpop.f32.mrf.mxu1 }
 0x623   :  { %20325 = vst [vmem:[#allocation9_spill] sm:$0xff] %v19595_v2  ;;  %v19598_v5 = vadd.f32 %v15176_v14, %v19364_v48 }
 0x624   :  { %v19600_v31 = vpop.f32.mrf.mxu0  ;;  %v15178_v26 = vpop.f32.mrf.mxu1 }
 0x625   :  { %20326 = vst [vmem:[#allocation12_spill] sm:$0xff] %v19598_v5  ;;  %v15179_v6 = vadd.f32 %v15178_v26, %v15177_v22 }
 0x626   :  { %v19602_v58 = vpop.f32.mrf.mxu0  ;;  %v15180_v38 = vpop.f32.mrf.mxu1 }
 0x627   :  { %v19605_v4 = vadd.f32 %v15179_v6, %v19374_v56 }
 0x628   :  { %v19607_v21 = vpop.f32.mrf.mxu0  ;;  %v15181_v49 = vpop.f32.mrf.mxu1 }
 0x629   :  { %20327 = vst [vmem:[#allocation23_spill] sm:$0xff] %v19605_v4  ;;  %v15182_v7 = vadd.f32 %v15181_v49, %v15180_v38 }
 0x62a   :  { %v19609_v10 = vpop.f32.mrf.mxu0  ;;  %v15183_v2 = vpop.f32.mrf.mxu1 }
 0x62b   :  { %20328 = vst [vmem:[#allocation10_spill] sm:$0xff] %v19609_v10  ;;  %v19612_v48 = vadd.f32 %v15182_v7, %v19384_v36 }
 0x62c   :  { %v19614_v14 = vpop.f32.mrf.mxu0  ;;  %v15184_v5 = vpop.f32.mrf.mxu1 }
 0x62d   :  { %20329 = vst [vmem:[#allocation16_spill] sm:$0xff] %v19612_v48  ;;  %v15185_v22 = vadd.f32 %v15184_v5, %v15183_v2 }
 0x62e   :  { %v19616_v26 = vpop.f32.mrf.mxu0  ;;  %v15186_v60 = vpop.f32.mrf.mxu1 }
 0x62f   :  { %20330 = vst [vmem:[#allocation24_spill] sm:$0xff] %v19616_v26  ;;  %v19619_v56 = vadd.f32 %v15185_v22, %v19400_v18 }
 0x630   :  { %v19621_v6 = vpop.f32.mrf.mxu0  ;;  %v15187_v4 = vpop.f32.mrf.mxu1 }
 0x631   :  { %20331 = vst [vmem:[#allocation14_spill] sm:$0xff] %v19619_v56  ;;  %20332 = vst [vmem:[#allocation19_spill] sm:$0xff] %v19621_v6  ;;  %v15188_v38 = vadd.f32 %v15187_v4, %v15186_v60 }
 0x632   :  { %v19623_v49 = vpop.f32.mrf.mxu0  ;;  %v15189_v10 = vpop.f32.mrf.mxu1 }
 0x633   :  { %20333 = vst [vmem:[#allocation13_spill] sm:$0xff] %v19623_v49  ;;  %v19626_v36 = vadd.f32 %v15188_v38, %v19410_v34 }
 0x634   :  { %v19628_v7 = vpop.f32.mrf.mxu0  ;;  %v15190_v48 = vpop.f32.mrf.mxu1 }
 0x635   :  { %20334 = vst [vmem:[#allocation28_spill] sm:$0xff] %v19626_v36  ;;  %v15191_v2 = vadd.f32 %v15190_v48, %v15189_v10 }
 0x636   :  { %v19630_v5 = vpop.f32.mrf.mxu0  ;;  %v15192_v26 = vpop.f32.mrf.mxu1 }
 0x637   :  { %v19633_v18 = vadd.f32 %v15191_v2, %v19422_v46 }
 0x638   :  { %v19635_v22 = vpop.f32.mrf.mxu0  ;;  %v15193_v56 = vpop.f32.mrf.mxu1 }
 0x639   :  { %20335 = vst [vmem:[#allocation25_spill] sm:$0xff] %v19633_v18  ;;  %v15194_v60 = vadd.f32 %v15193_v56, %v15192_v26 }
 0x63a   :  { %v19637_v4 = vpop.f32.mrf.mxu0  ;;  %v15195_v49 = vpop.f32.mrf.mxu1 }
 0x63b   :  { %20336 = vst [vmem:[#allocation31_spill] sm:$0xff] %v19637_v4  ;;  %v19640_v34 = vadd.f32 %v15194_v60, %v19431_v42 }
 0x63c   :  { %v19642_v38 = vpop.f32.mrf.mxu0  ;;  %v15196_v36 = vpop.f32.mrf.mxu1 }
 0x63d   :  { %20337 = vst [vmem:[#allocation32_spill] sm:$0xff] %v19640_v34  ;;  %v15197_v10 = vadd.f32 %v15196_v36, %v15195_v49 }
 0x63e   :  { %v19644_v48 = vpop.f32.mrf.mxu0  ;;  %v15198_v6 = vpop.f32.mrf.mxu1 }
 0x63f   :  { %20338 = vst [vmem:[#allocation21_spill] sm:$0xff] %v19644_v48  ;;  %v19647_v46 = vadd.f32 %v15197_v10, %v19440_v41 }
 0x640   :  { %v19649_v2 = vpop.f32.mrf.mxu0  ;;  %v15199_v18 = vpop.f32.mrf.mxu1 }
 0x641   :  { %20339 = vst [vmem:[#allocation26_spill] sm:$0xff] %v19647_v46  ;;  %20340 = vst [vmem:[#allocation6_spill] sm:$0xff] %v19649_v2  ;;  %v15200_v26 = vadd.f32 %v15199_v18, %v15198_v6 }
 0x642   :  { %v19651_v56 = vpop.f32.mrf.mxu0  ;;  %v15201_v4 = vpop.f32.mrf.mxu1 }
 0x643   :  { %20341 = vst [vmem:[#allocation33_spill] sm:$0xff] %v19651_v56  ;;  %v19654_v42 = vadd.f32 %v15200_v26, %v19452_v8 }
 0x644   :  { %v19656_v60 = vpop.f32.mrf.mxu0  ;;  %v15202_v34 = vpop.f32.mrf.mxu1 }
 0x645   :  { %20342 = vst [vmem:[#allocation30_spill] sm:$0xff] %v19654_v42  ;;  %v15203_v49 = vadd.f32 %v15202_v34, %v15201_v4  ;;  %v15237_v34 = vadd.f32 %v19518_v59, %v19516_v39  ;;  %v15234_v39 = vadd.f32 %v19511_v29, %v19509_v51 }
 0x646   :  { %v19658_v36 = vpop.f32.mrf.mxu0  ;;  %v15204_v48 = vpop.f32.mrf.mxu1 }
 0x647   :  { %v19661_v41 = vadd.f32 %v15203_v49, %v19467_v12  ;;  %v15231_v49 = vadd.f32 %v19504_v13, %v19500_v54 }
 0x648   :  { %v19663_v10 = vpop.f32.mrf.mxu0  ;;  %v15205_v46 = vpop.f32.mrf.mxu1 }
 0x649   :  { %20343 = vst [vmem:[#allocation20_spill] sm:$0xff] %v19661_v41  ;;  %v15206_v6 = vadd.f32 %v15205_v46, %v15204_v48  ;;  %v9888_v54 = vadd.f32 %v15231_v49, %v19438_v25  ;;  %v15252_v25 = vadd.f32 %v19553_v0, %v19551_v16 }
 0x64a   :  { %v19665_v18 = vpop.f32.mrf.mxu0  ;;  %v15207_v56 = vpop.f32.mrf.mxu1 }
 0x64b   :  { %v19668_v8 = vadd.f32 %v15206_v6, %v19476_v11  ;;  %v15240_v11 = vadd.f32 %v19525_v33, %v19523_v40  ;;  %v15249_v33 = vadd.f32 %v19546_v45, %v19544_v61 }
 0x64c   :  { %v19670_v26 = vpop.f32.mrf.mxu0  ;;  %v15208_v42 = vpop.f32.mrf.mxu1 }
 0x64d   :  { %20344 = vst [vmem:[#allocation7_spill] sm:$0xff] %v19668_v8  ;;  %v15209_v4 = vadd.f32 %v15208_v42, %v15207_v56  ;;  %v9896_v56 = vadd.f32 %v15237_v34, %v19465_v43  ;;  %v9899_v40 = vadd.f32 %v15240_v11, %v19474_v17  ;;  %v15243_v34 = vadd.f32 %v19532_v57, %v19530_v9 }
 0x64e   :  { %v19674_v2 = vpop.f32.mrf.mxu0  ;;  %v15210_v12 = vpop.f32.mrf.mxu1  ;;  %v9912_v61 = vadd.f32 %v15249_v33, %v19507_v30  ;;  %v15246_v9 = vadd.f32 %v19539_v20, %v19537_v52  ;;  %v9915_v11 = vadd.f32 %v15252_v25, %v19514_v63  ;;  %v15255_v63 = vadd.f32 %v19560_v23, %v19558_v44  ;;  %v16281_v23 = vld [vmem:[%s20176_s7 + $0x130] sm:$0xff]  }
 0x64f   :  { %v19679_v48 = vadd.f32 %v15209_v4, %v19491_v15  ;;  %v9904_v57 = vadd.f32 %v15243_v34, %v19489_v28  ;;  %v16278_v28 = vld [vmem:[%s20176_s7 + $0x138] sm:$0xff]  }
 0x650   :  { %v15211_v46 = vpop.f32.mrf.mxu1  ;;  %v19683_v6 = vpop.f32.mrf.mxu0 }
 0x651   :  { %v15212_v8 = vadd.f32 %v15211_v46, %v15210_v12 }
 0x652   :  { %v15591_v42 = vpop.f32.mrf.mxu1  ;;  %v19692_v4 = vpop.f32.mrf.mxu0 }
 0x653   :  { %v19689_v59 = vadd.f32 %v15212_v8, %v19502_v24  ;;  %v10057_v15 = vadd.f32 %v15591_v42, %v9896_v56  ;;  %v9891_v24 = vadd.f32 %v15234_v39, %v19450_v35 }
 0x654   :  { %v10048_v13 = vpop.f32.mrf.mxu1  ;;  %v19702_v12 = vpop.f32.mrf.mxu0 }
 0x655   :  { %v10049_v41 = vadd.f32 %v10048_v13, %v9888_v54  ;;  %v10209_v29 = vmul.f32 0.2, %v10057_v15  ;;  %vm10177_vm1 = vcmp.ge.f32.partialorder %v10057_v15, 0.0 }
 0x656   :  { %v15592_v43 = vpop.f32.mrf.mxu1  ;;  %v19709_v42 = vpop.f32.mrf.mxu0 }
 0x657   :  { %v10060_v51 = vadd.f32 %v15592_v43, %v9899_v40  ;;  %v10207_v49 = vmul.f32 0.2, %v10049_v41  ;;  %vm10175_vm2 = vcmp.ge.f32.partialorder %v10049_v41, 0.0  ;;  %v10241_v30 = vsel %vm10177_vm1, %v10057_v15, %v10209_v29  ;;  %v16280_v15 = vld [vmem:[%s20176_s7 + $0x170] sm:$0xff]  }
 0x658   :  { %v10051_v8 = vpop.f32.mrf.mxu1  ;;  %v15261_v40 = vadd.f32 %v19574_v1, %v19572_v27  ;;  %v15264_v27 = vadd.f32 %v19581_v47, %v19579_v55  ;;  %v15258_v55 = vadd.f32 %v19567_v53, %v19565_v19 }
 0x659   :  { %vm10178_vm0 = vcmp.ge.f32.partialorder %v10060_v51, 0.0  ;;  %v10210_v17 = vmul.f32 0.2, %v10060_v51  ;;  %v10052_v46 = vadd.f32 %v10051_v8, %v9891_v24  ;;  %v10239_v39 = vsel %vm10175_vm2, %v10049_v41, %v10207_v49  ;;  %v16282_v49 = vld [vmem:[%s20176_s7 + $0x168] sm:$0xff]  }
 0x65a   :  { %v15595_v45 = vpop.f32.mrf.mxu1  ;;  %v9907_v41 = vadd.f32 %v15246_v9, %v19498_v62  ;;  %v9928_v62 = vadd.f32 %v15261_v40, %v19535_v3  ;;  %v9920_v8 = vadd.f32 %v15255_v63, %v19521_v50  ;;  %v15273_v3 = vadd.f32 %v19602_v58, %v19600_v31 }
 0x65b   :  { %vm10176_vm3 = vcmp.ge.f32.partialorder %v10052_v46, 0.0  ;;  %v10208_v35 = vmul.f32 0.2, %v10052_v46  ;;  %v10073_v16 = vadd.f32 %v15595_v45, %v9912_v61  ;;  %v10242_v56 = vsel %vm10178_vm0, %v10060_v51, %v10210_v17  ;;  %v19725_v51 = vpop.f32.mrf.mxu0 }
 0x65c   :  { %v10064_v0 = vpop.f32.mrf.mxu1  ;;  %v13382_v33 = vpack.c.bf16 %v10242_v56, %v10241_v30  ;;  %v9931_v61 = vadd.f32 %v15264_v27, %v19542_v32  ;;  %v16284_v32 = vld [vmem:[%s20176_s7 + $0x128] sm:$0xff]   ;;  %v16285_v56 = vld [vmem:[%s20176_s7 + $0x1b8] sm:$0xff]   ;;  %v20347_v30 = vld [vmem:[#allocation10_spill] sm:$0xff] }
 0x65d   :  { %v10240_v54 = vsel %vm10176_vm3, %v10052_v46, %v10208_v35  ;;  %v10065_v13 = vadd.f32 %v10064_v0, %v9904_v57  ;;  %v10213_v1 = vmul.f32 0.2, %v10073_v16  ;;  %vm10181_vm5 = vcmp.ge.f32.partialorder %v10073_v16, 0.0  ;;  %v19741_v9 = vpop.f32.mrf.mxu0  ;;  %v20345_v57 = vld [vmem:[#allocation11_spill] sm:$0xff] }
 0x65e   :  { %v13381_v52 = vpack.c.bf16 %v10240_v54, %v10239_v39  ;;  %v15596_v20 = vpop.f32.mrf.mxu1  ;;  %11590 = vmatprep.mubr.bf16.mxu0 %v13382_v33  ;;  %v15267_v0 = vadd.f32 %v20345_v57, %v19586_v37  ;;  %v20346_v54 = vld [vmem:[#allocation34_spill] sm:$0xff]  ;;  %v15276_v40 = vadd.f32 %v20347_v30, %v19607_v21  ;;  %v20348_v33 = vld [vmem:[#allocation37_spill] sm:$0xff] }
 0x65f   :  { %v10076_v43 = vadd.f32 %v15596_v20, %v9915_v11  ;;  %v10211_v24 = vmul.f32 0.2, %v10065_v13  ;;  %vm10179_vm6 = vcmp.ge.f32.partialorder %v10065_v13, 0.0  ;;  %v10245_v50 = vsel %vm10181_vm5, %v10073_v16, %v10213_v1  ;;  %v16286_v37 = vld [vmem:[%s20176_s7 + $0x160] sm:$0xff]   ;;  %v16287_v16 = vld [vmem:[%s20176_s7 + $0x1f0] sm:$0xff]   ;;  %v19763_v63 = vpop.f32.mrf.mxu0  ;;  %v20349_v1 = vld [vmem:[#allocation35_spill] sm:$0xff] }
 0x660   :  { %v10067_v34 = vpop.f32.mrf.mxu1  ;;  %11591 = vmatmul.mubr.bf16.vlgmr.msra.gmra.mxu0 %v13381_v52  ;;  %v16288_v21 = vld [vmem:[%s20176_s7 + $0x120] sm:$0xff]   ;;  %v20356_v30 = vld [vmem:[#allocation17_spill] sm:$0xff] }
 0x661   :  { %vm10182_vm4 = vcmp.ge.f32.partialorder %v10076_v43, 0.0  ;;  %v10214_v25 = vmul.f32 0.2, %v10076_v43  ;;  %v10068_v29 = vadd.f32 %v10067_v34, %v9907_v41  ;;  %15394 = vmatpush3.bf16.msra.mxu0 %v16278_v28  ;;  %v10243_v19 = vsel %vm10179_vm6, %v10065_v13, %v10211_v24  ;;  %v16289_v24 = vld [vmem:[%s20176_s7 + $0x1b0] sm:$0xff]  }
 0x662   :  { %v15599_v44 = vpop.f32.mrf.mxu1  ;;  %15395 = vmatprep.subr.bf16.mxu0 %v16280_v15  ;;  %v9923_v13 = vadd.f32 %v15258_v55, %v20346_v54  ;;  %v9944_v28 = vadd.f32 %v15273_v3, %v20348_v33  ;;  %v9936_v34 = vadd.f32 %v15267_v0, %v20349_v1  ;;  %v16290_v55 = vld [vmem:[%s20176_s7 + $0x158] sm:$0xff]   ;;  %v20352_v3 = vld [vmem:[#allocation15_spill] sm:$0xff]  ;;  %v20353_v0 = vld [vmem:[#allocation24_spill] sm:$0xff] }
 0x663   :  { %vm10180_vm7 = vcmp.ge.f32.partialorder %v10068_v29, 0.0  ;;  %v10212_v47 = vmul.f32 0.2, %v10068_v29  ;;  %v10089_v17 = vadd.f32 %v15599_v44, %v9928_v62  ;;  %v10246_v45 = vsel %vm10182_vm4, %v10076_v43, %v10214_v25  ;;  %v20350_v25 = vld [vmem:[#allocation18_spill] sm:$0xff]  ;;  %v20359_v1 = vld [vmem:[#allocation8_spill] sm:$0xff] }
 0x664   :  { %v10080_v46 = vpop.f32.mrf.mxu1  ;;  %v13384_v58 = vpack.c.bf16 %v10246_v45, %v10245_v50  ;;  %v19784_v45 = vpop.f32.mrf.mxu0  ;;  %v16295_v54 = vld [vmem:[%s20176_s7 + $0x1e0] sm:$0xff]  }
 0x665   :  { %v10244_v53 = vsel %vm10180_vm7, %v10068_v29, %v10212_v47  ;;  %v10081_v35 = vadd.f32 %v10080_v46, %v9920_v8  ;;  %15396 = vmatpush3.bf16.msra.mxu0 %v16281_v23  ;;  %v10217_v52 = vmul.f32 0.2, %v10089_v17  ;;  %vm10185_vm9 = vcmp.ge.f32.partialorder %v10089_v17, 0.0  ;;  %v20351_v29 = vld [vmem:[#allocation9_spill] sm:$0xff]  ;;  %v16291_v47 = vld [vmem:[%s20176_s7 + $0x1e8] sm:$0xff]  }
 0x666   :  { %v13383_v11 = vpack.c.bf16 %v10244_v53, %v10243_v19  ;;  %v15600_v31 = vpop.f32.mrf.mxu1  ;;  %15397 = vmatprep.subr.bf16.mxu0 %v16282_v49  ;;  %11631 = vmatprep.mubr.bf16.mxu1 %v13384_v58  ;;  %v15270_v62 = vadd.f32 %v20351_v29, %v20350_v25  ;;  %v15285_v8 = vadd.f32 %v19630_v5, %v19628_v7 }
 0x667   :  { %v10092_v39 = vadd.f32 %v15600_v31, %v9931_v61  ;;  %v10215_v43 = vmul.f32 0.2, %v10081_v35  ;;  %vm10183_vm10 = vcmp.ge.f32.partialorder %v10081_v35, 0.0  ;;  %v9947_v46 = vadd.f32 %v15276_v40, %v20352_v3 }
 0x668   :  { %v10083_v20 = vpop.f32.mrf.mxu1  ;;  %11632 = vmatmul.mubr.bf16.vlgmr.msra.gmra.mxu1 %v13383_v11  ;;  %v10249_v57 = vsel %vm10185_vm9, %v10089_v17, %v10217_v52  ;;  %v15279_v11 = vadd.f32 %v20353_v0, %v19614_v14  ;;  %v20354_v14 = vld [vmem:[#allocation36_spill] sm:$0xff]  ;;  %v9960_v40 = vadd.f32 %v15285_v8, %v20356_v30  ;;  %v19812_v52 = vpop.f32.mrf.mxu0 }
 0x669   :  { %vm10186_vm8 = vcmp.ge.f32.partialorder %v10092_v39, 0.0  ;;  %v10218_v41 = vmul.f32 0.2, %v10092_v39  ;;  %v10084_v15 = vadd.f32 %v10083_v20, %v9923_v13  ;;  %15398 = vmatpush3.bf16.msra.mxu0 %v16284_v32  ;;  %15416 = vmatpush3.bf16.msra.mxu1 %v16285_v56  ;;  %v19787_v19 = vsel %vm10183_vm10, %v10081_v35, %v10215_v43  ;;  %v16292_v35 = vld [vmem:[%s20176_s7 + $0x118] sm:$0xff]   ;;  %v16293_v32 = vld [vmem:[%s20176_s7 + $0x1a8] sm:$0xff]  }
 0x66a   :  { %v15603_v27 = vpop.f32.mrf.mxu1  ;;  %15399 = vmatprep.subr.bf16.mxu0 %v16286_v37  ;;  %15417 = vmatprep.subr.bf16.mxu1 %v16287_v16  ;;  %v9939_v56 = vadd.f32 %v15270_v62, %v20354_v14  ;;  %v20355_v13 = vld [vmem:[#allocation31_spill] sm:$0xff]  ;;  %v16303_v14 = vld [vmem:[%s20176_s7 + $0x1d0] sm:$0xff]  }
 0x66b   :  { %vm10184_vm11 = vcmp.ge.f32.partialorder %v10084_v15, 0.0  ;;  %v10216_v44 = vmul.f32 0.2, %v10084_v15  ;;  %v10105_v23 = vadd.f32 %v15603_v27, %v9944_v28  ;;  %v10250_v61 = vsel %vm10186_vm8, %v10092_v39, %v10218_v41  ;;  %v16294_v39 = vld [vmem:[%s20176_s7 + $0x150] sm:$0xff]   ;;  %v20357_v43 = vld [vmem:[#allocation19_spill] sm:$0xff]  ;;  %v20358_v41 = vld [vmem:[#allocation13_spill] sm:$0xff] }
 0x66c   :  { %v10096_v49 = vpop.f32.mrf.mxu1  ;;  %v13386_v58 = vpack.c.bf16 %v10250_v61, %v10249_v57  ;;  %v15288_v37 = vadd.f32 %v20355_v13, %v19635_v22  ;;  %v16296_v22 = vld [vmem:[%s20176_s7 + $0x110] sm:$0xff]  }
 0x66d   :  { %v19789_v53 = vsel %vm10184_vm11, %v10084_v15, %v10216_v44  ;;  %v10097_v50 = vadd.f32 %v10096_v49, %v9936_v34  ;;  %v10221_v5 = vmul.f32 0.2, %v10105_v23  ;;  %15400 = vmatpush3.bf16.msra.mxu0 %v16288_v21  ;;  %15418 = vmatpush3.bf16.msra.mxu1 %v16289_v24  ;;  %vm10189_vm12 = vcmp.ge.f32.partialorder %v10105_v23, 0.0  ;;  %v16297_v21 = vld [vmem:[%s20176_s7 + $0x1a0] sm:$0xff]   ;;  %v16298_v44 = vld [vmem:[%s20176_s7 + $0x148] sm:$0xff]   ;;  %v19833_v49 = vpop.f32.mrf.mxu0  ;;  %v20360_v57 = vld [vmem:[#allocation12_spill] sm:$0xff] }
 0x66e   :  { %v13385_v7 = vpack.c.bf16 %v19789_v53, %v19787_v19  ;;  %v15604_v31 = vpop.f32.mrf.mxu1  ;;  %15401 = vmatprep.subr.bf16.mxu0 %v16290_v55  ;;  %15419 = vmatprep.subr.bf16.mxu1 %v16291_v47  ;;  %v15282_v15 = vadd.f32 %v20358_v41, %v20357_v43  ;;  %v9952_v34 = vadd.f32 %v15279_v11, %v20359_v1  ;;  %v20361_v11 = vld [vmem:[#allocation21_spill] sm:$0xff]  ;;  %v20366_v41 = vld [vmem:[#allocation23_spill] sm:$0xff] }
 0x66f   :  { %v10108_v17 = vadd.f32 %v15604_v31, %v9947_v46  ;;  %11672 = vmatprep.mubr.bf16.mxu0 %v13386_v58  ;;  %v10219_v20 = vmul.f32 0.2, %v10097_v50  ;;  %vm10187_vm14 = vcmp.ge.f32.partialorder %v10097_v50, 0.0  ;;  %v10253_v24 = vsel %vm10189_vm12, %v10105_v23, %v10221_v5  ;;  %v16299_v23 = vld [vmem:[%s20176_s7 + $0x1d8] sm:$0xff]  }
 0x670   :  { %v10099_v16 = vpop.f32.mrf.mxu1  ;;  %v15297_v55 = vadd.f32 %v19658_v36, %v19656_v60  ;;  %v9963_v0 = vadd.f32 %v15288_v37, %v20360_v57  ;;  %v15291_v5 = vadd.f32 %v20361_v11, %v19642_v38  ;;  %v16301_v58 = vld [vmem:[%s20176_s7 + $0x198] sm:$0xff]   ;;  %v20362_v38 = vld [vmem:[#allocation22_spill] sm:$0xff]  ;;  %v19861_v37 = vpop.f32.mrf.mxu0 }
 0x671   :  { %vm10190_vm13 = vcmp.ge.f32.partialorder %v10108_v17, 0.0  ;;  %v10222_v33 = vmul.f32 0.2, %v10108_v17  ;;  %v10100_v28 = vadd.f32 %v10099_v16, %v9939_v56  ;;  %15402 = vmatpush3.bf16.msra.mxu0 %v16292_v35  ;;  %15420 = vmatpush3.bf16.msra.mxu1 %v16293_v32  ;;  %v19836_v3 = vsel %vm10187_vm14, %v10097_v50, %v10219_v20  ;;  %v16300_v50 = vld [vmem:[%s20176_s7 + $0x108] sm:$0xff]   ;;  %v20364_v20 = vld [vmem:[#allocation6_spill] sm:$0xff] }
 0x672   :  { %v15607_v27 = vpop.f32.mrf.mxu1  ;;  %15403 = vmatprep.subr.bf16.mxu0 %v16294_v39  ;;  %15421 = vmatprep.subr.bf16.mxu1 %v16295_v54  ;;  %v9955_v32 = vadd.f32 %v15282_v15, %v20362_v38  ;;  %v15300_v56 = vadd.f32 %v19665_v18, %v19663_v10  ;;  %v20363_v54 = vld [vmem:[#allocation14_spill] sm:$0xff]  ;;  %v9968_v15 = vadd.f32 %v15291_v5, %v20366_v41  ;;  %v16305_v18 = vld [vmem:[%s20176_s7 + $0x190] sm:$0xff]  }
 0x673   :  { %vm10188_vm15 = vcmp.ge.f32.partialorder %v10100_v28, 0.0  ;;  %v10220_v25 = vmul.f32 0.2, %v10100_v28  ;;  %v10121_v29 = vadd.f32 %v15607_v27, %v9960_v40  ;;  %v10254_v62 = vsel %vm10190_vm13, %v10108_v17, %v10222_v33  ;;  %v16302_v17 = vld [vmem:[%s20176_s7 + $0x140] sm:$0xff]   ;;  %v20365_v33 = vld [vmem:[#allocation33_spill] sm:$0xff] }
 0x674   :  { %v10112_v47 = vpop.f32.mrf.mxu1  ;;  %v13388_v8 = vpack.c.bf16 %v10254_v62, %v10253_v24  ;;  %v9976_v13 = vadd.f32 %v15297_v55, %v20363_v54  ;;  %v16304_v10 = vld [vmem:[%s20176_s7 + $0x100] sm:$0xff]   ;;  %v15306_v54 = vadd.f32 %v19692_v4, %v19683_v6  ;;  %v16314_v4 = vld [vmem:[%s20176_s7 + $0x268] sm:$0xff]  }
 0x675   :  { %v19838_v46 = vsel %vm10188_vm15, %v10100_v28, %v10220_v25  ;;  %v10113_v61 = vadd.f32 %v10112_v47, %v9952_v34  ;;  %v10225_v36 = vmul.f32 0.2, %v10121_v29  ;;  %15404 = vmatpush3.bf16.msra.mxu0 %v16296_v22  ;;  %15422 = vmatpush3.bf16.msra.mxu1 %v16297_v21  ;;  %vm10193_vm0 = vcmp.ge.f32.partialorder %v10121_v29, 0.0  ;;  %v16306_v22 = vld [vmem:[%s20176_s7 + $0x1c8] sm:$0xff]   ;;  %v16307_v21 = vld [vmem:[%s20176_s7 + $0x278] sm:$0xff]  }
 0x676   :  { %v13387_v60 = vpack.c.bf16 %v19838_v46, %v19836_v3  ;;  %v15608_v31 = vpop.f32.mrf.mxu1  ;;  %11713 = vmatprep.mubr.bf16.mxu1 %v13388_v8  ;;  %15405 = vmatprep.subr.bf16.mxu0 %v16298_v44  ;;  %v15294_v28 = vadd.f32 %v20365_v33, %v20364_v20  ;;  %v15309_v25 = vadd.f32 %v19709_v42, %v19702_v12  ;;  %v15320_v44 = vpop.f32.mrf.mxu0  ;;  %v16308_v42 = vld [vmem:[%s20176_s7 + $0x188] sm:$0xff]  }
 0x677   :  { %v10124_v35 = vadd.f32 %v15608_v31, %v9963_v0  ;;  %15423 = vmatprep.subr.bf16.mxu1 %v16299_v23  ;;  %v10223_v16 = vmul.f32 0.2, %v10113_v61  ;;  %vm10191_vm2 = vcmp.ge.f32.partialorder %v10113_v61, 0.0  ;;  %v10257_v27 = vsel %vm10193_vm0, %v10121_v29, %v10225_v36  ;;  %v20367_v23 = vld [vmem:[#allocation28_spill] sm:$0xff]  ;;  %v16310_v31 = vld [vmem:[%s20176_s7 + $0x1c0] sm:$0xff]  }
 0x678   :  { %v10115_v39 = vpop.f32.mrf.mxu1  ;;  %v9979_v57 = vadd.f32 %v15300_v56, %v20367_v23  ;;  %v15303_v0 = vadd.f32 %v19674_v2, %v19670_v26  ;;  %v20368_v2 = vld [vmem:[#allocation16_spill] sm:$0xff]  ;;  %v15321_v20 = vadd.f32 %v15320_v44, %v19861_v37 }
 0x679   :  { %vm10194_vm1 = vcmp.ge.f32.partialorder %v10124_v35, 0.0  ;;  %v10226_v30 = vmul.f32 0.2, %v10124_v35  ;;  %v10116_v40 = vadd.f32 %v10115_v39, %v9955_v32  ;;  %15406 = vmatpush3.bf16.msra.mxu0 %v16300_v50  ;;  %15424 = vmatpush3.bf16.msra.mxu1 %v16301_v58  ;;  %v19883_v55 = vsel %vm10191_vm2, %v10113_v61, %v10223_v16  ;;  %v16309_v61 = vld [vmem:[%s20176_s7 + $0x238] sm:$0xff]   ;;  %v16311_v32 = vld [vmem:[%s20176_s7 + $0x270] sm:$0xff]   ;;  %v16312_v16 = vld [vmem:[%s20176_s7 + $0x180] sm:$0xff]  }
 0x67a   :  { %v15611_v43 = vpop.f32.mrf.mxu1  ;;  %15407 = vmatprep.subr.bf16.mxu0 %v16302_v17  ;;  %15425 = vmatprep.subr.bf16.mxu1 %v16303_v14  ;;  %v9971_v26 = vadd.f32 %v15294_v28, %v20368_v2  ;;  %v15312_v50 = vadd.f32 %v19741_v9, %v19725_v51  ;;  %v15322_v17 = vpop.f32.mrf.mxu0  ;;  %v20370_v9 = vld [vmem:[#allocation25_spill] sm:$0xff]  ;;  %v16319_v23 = vld [vmem:[%s20176_s7 + $0x2f0] sm:$0xff]  }
 0x67b   :  { %vm10192_vm3 = vcmp.ge.f32.partialorder %v10116_v40, 0.0  ;;  %v10224_v1 = vmul.f32 0.2, %v10116_v40  ;;  %v10137_v34 = vadd.f32 %v15611_v43, %v9976_v13  ;;  %v10258_v24 = vsel %vm10194_vm1, %v10124_v35, %v10226_v30  ;;  %v20369_v35 = vld [vmem:[#allocation26_spill] sm:$0xff]  ;;  %v16313_v30 = vld [vmem:[%s20176_s7 + $0x230] sm:$0xff]  }
 0x67c   :  { %v10128_v62 = vpop.f32.mrf.mxu1  ;;  %v13390_v29 = vpack.c.bf16 %v10258_v24, %v10257_v27  ;;  %v9992_v38 = vadd.f32 %v15309_v25, %v20369_v35  ;;  %v9984_v13 = vadd.f32 %v15303_v0, %v20370_v9  ;;  %v15323_v43 = vpop.f32.mrf.mxu0  ;;  %v16317_v24 = vld [vmem:[%s20176_s7 + $0x2b8] sm:$0xff]   ;;  %v16321_v2 = vld [vmem:[%s20176_s7 + $0x2b0] sm:$0xff]   ;;  %v20374_v9 = vld [vmem:[#allocation7_spill] sm:$0xff] }
 0x67d   :  { %v19885_v47 = vsel %vm10192_vm3, %v10116_v40, %v10224_v1  ;;  %v10129_v8 = vadd.f32 %v10128_v62, %v9968_v15  ;;  %v10229_v5 = vmul.f32 0.2, %v10137_v34  ;;  %15408 = vmatpush3.bf16.msra.mxu0 %v16304_v10  ;;  %15426 = vmatpush3.bf16.msra.mxu1 %v16305_v18  ;;  %vm10197_vm4 = vcmp.ge.f32.partialorder %v10137_v34, 0.0  ;;  %v20371_v18 = vld [vmem:[#allocation30_spill] sm:$0xff] }
 0x67e   :  { %v13389_v11 = vpack.c.bf16 %v19885_v47, %v19883_v55  ;;  %v15612_v12 = vpop.f32.mrf.mxu1  ;;  %15427 = vmatprep.subr.bf16.mxu1 %v16306_v22  ;;  %15437 = vmatprep.subr.bf16.mxu0 %v16307_v21  ;;  %v9995_v27 = vadd.f32 %v15312_v50, %v20371_v18  ;;  %v15315_v1 = vadd.f32 %v19784_v45, %v19763_v63  ;;  %v16316_v21 = vld [vmem:[%s20176_s7 + $0x228] sm:$0xff]   ;;  %v20372_v63 = vld [vmem:[#allocation32_spill] sm:$0xff]  ;;  %v16318_v62 = vld [vmem:[%s20176_s7 + $0x260] sm:$0xff]  }
 0x67f   :  { %v10140_v36 = vadd.f32 %v15612_v12, %v9979_v57  ;;  %v10227_v14 = vmul.f32 0.2, %v10129_v8  ;;  %vm10195_vm6 = vcmp.ge.f32.partialorder %v10129_v8, 0.0  ;;  %v10261_v19 = vsel %vm10197_vm4, %v10137_v34, %v10229_v5  ;;  %v16346_v55 = vld [vmem:[%s20176_s7 + $0x368] sm:$0xff]   ;;  %v16347_v47 = vld [vmem:[%s20176_s7 + $0x3f8] sm:$0xff]  }
 0x680   :  { %v10131_v58 = vpop.f32.mrf.mxu1  ;;  %11673 = vmatmul.mubr.bf16.vlgmr.msra.gmra.mxu0 %v13385_v7  ;;  %v16315_v7 = vld [vmem:[%s20176_s7 + $0x2f8] sm:$0xff]   ;;  %v9987_v45 = vadd.f32 %v15306_v54, %v20372_v63  ;;  %v15318_v12 = vadd.f32 %v19833_v49, %v19812_v52  ;;  %v16337_v63 = vld [vmem:[%s20176_s7 + $0x290] sm:$0xff]  }
 0x681   :  { %vm10198_vm5 = vcmp.ge.f32.partialorder %v10140_v36, 0.0  ;;  %v10230_v56 = vmul.f32 0.2, %v10140_v36  ;;  %v10132_v39 = vadd.f32 %v10131_v58, %v9971_v26  ;;  %15428 = vmatpush3.bf16.msra.mxu1 %v16308_v42  ;;  %15438 = vmatpush3.bf16.msra.mxu0 %v16309_v61  ;;  %v19930_v41 = vsel %vm10195_vm6, %v10129_v8, %v10227_v14  ;;  %v16322_v49 = vld [vmem:[%s20176_s7 + $0x258] sm:$0xff]  }
 0x682   :  { %v15615_v51 = vpop.f32.mrf.mxu1  ;;  %11754 = vmatprep.mubr.bf16.mxu0 %v13390_v29  ;;  %15429 = vmatprep.subr.bf16.mxu1 %v16310_v31  ;;  %v15324_v29 = vadd.f32 %v15323_v43, %v15322_v17  ;;  %v10008_v8 = vadd.f32 %v15321_v20, %v19679_v48  ;;  %v20373_v48 = vld [vmem:[#allocation20_spill] sm:$0xff]  ;;  %v16330_v20 = vld [vmem:[%s20176_s7 + $0x248] sm:$0xff]  }
 0x683   :  { %vm10196_vm7 = vcmp.ge.f32.partialorder %v10132_v39, 0.0  ;;  %v10228_v53 = vmul.f32 0.2, %v10132_v39  ;;  %v10153_v6 = vadd.f32 %v15615_v51, %v9992_v38  ;;  %v10262_v40 = vsel %vm10198_vm5, %v10140_v36, %v10230_v56  ;;  %15439 = vmatprep.subr.bf16.mxu0 %v16311_v32  ;;  %v16320_v36 = vld [vmem:[%s20176_s7 + $0x220] sm:$0xff]   ;;  %v16324_v56 = vld [vmem:[%s20176_s7 + $0x218] sm:$0xff]  }
 0x684   :  { %v10144_v33 = vpop.f32.mrf.mxu1  ;;  %v13392_v28 = vpack.c.bf16 %v10262_v40, %v10261_v19  ;;  %v10000_v61 = vadd.f32 %v15315_v1, %v20373_v48  ;;  %v10011_v32 = vadd.f32 %v15324_v29, %v19689_v59  ;;  %v10003_v59 = vadd.f32 %v15318_v12, %v20374_v9  ;;  %v16340_v29 = vld [vmem:[%s20176_s7 + $0x288] sm:$0xff]   ;;  %v16350_v12 = vld [vmem:[%s20176_s7 + $0x360] sm:$0xff]  }
 0x685   :  { %v19932_v15 = vsel %vm10196_vm7, %v10132_v39, %v10228_v53  ;;  %v10145_v10 = vadd.f32 %v10144_v33, %v9984_v13  ;;  %v10233_v22 = vmul.f32 0.2, %v10153_v6  ;;  %15430 = vmatpush3.bf16.msra.mxu1 %v16312_v16  ;;  %15440 = vmatpush3.bf16.msra.mxu0 %v16313_v30  ;;  %vm10201_vm8 = vcmp.ge.f32.partialorder %v10153_v6, 0.0  ;;  %v16325_v39 = vld [vmem:[%s20176_s7 + $0x2a8] sm:$0xff]   ;;  %v16326_v13 = vld [vmem:[%s20176_s7 + $0x250] sm:$0xff]   ;;  %v16327_v16 = vld [vmem:[%s20176_s7 + $0x2e0] sm:$0xff]  }
 0x686   :  { %v13391_v34 = vpack.c.bf16 %v19932_v15, %v19930_v41  ;;  %v15616_v37 = vpop.f32.mrf.mxu1  ;;  %15441 = vmatprep.subr.bf16.mxu0 %v16314_v4  ;;  %15459 = vmatprep.subr.bf16.mxu1 %v16315_v7  ;;  %v16328_v4 = vld [vmem:[%s20176_s7 + $0x210] sm:$0xff]   ;;  %v16329_v7 = vld [vmem:[%s20176_s7 + $0x2a0] sm:$0xff]   ;;  %v16331_v33 = vld [vmem:[%s20176_s7 + $0x2d8] sm:$0xff]  }
 0x687   :  { %v10156_v25 = vadd.f32 %v15616_v37, %v9995_v27  ;;  %v10231_v57 = vmul.f32 0.2, %v10145_v10  ;;  %vm10199_vm10 = vcmp.ge.f32.partialorder %v10145_v10, 0.0  ;;  %v19966_v3 = vsel %vm10201_vm8, %v10153_v6, %v10233_v22  ;;  %v16332_v22 = vld [vmem:[%s20176_s7 + $0x208] sm:$0xff]   ;;  %v16333_v37 = vld [vmem:[%s20176_s7 + $0x298] sm:$0xff]   ;;  %v16352_v48 = vld [vmem:[%s20176_s7 + $0x320] sm:$0xff]  }
 0x688   :  { %v10147_v44 = vpop.f32.mrf.mxu1  ;;  %11714 = vmatmul.mubr.bf16.vlgmr.msra.gmra.mxu1 %v13387_v60  ;;  %v16323_v60 = vld [vmem:[%s20176_s7 + $0x2e8] sm:$0xff]   ;;  %v16356_v15 = vld [vmem:[%s20176_s7 + $0x318] sm:$0xff]  }
 0x689   :  { %vm10202_vm9 = vcmp.ge.f32.partialorder %v10156_v25, 0.0  ;;  %v10234_v0 = vmul.f32 0.2, %v10156_v25  ;;  %v10148_v5 = vadd.f32 %v10147_v44, %v9987_v45  ;;  %15442 = vmatpush3.bf16.msra.mxu0 %v16316_v21  ;;  %15460 = vmatpush3.bf16.msra.mxu1 %v16317_v24  ;;  %v19980_v58 = vsel %vm10199_vm10, %v10145_v10, %v10231_v57  ;;  %v16334_v21 = vld [vmem:[%s20176_s7 + $0x240] sm:$0xff]   ;;  %v16335_v24 = vld [vmem:[%s20176_s7 + $0x2d0] sm:$0xff]   ;;  %v16338_v45 = vld [vmem:[%s20176_s7 + $0x2c8] sm:$0xff]  }
 0x68a   :  { %v15619_v42 = vpop.f32.mrf.mxu1  ;;  %11795 = vmatprep.mubr.bf16.mxu1 %v13392_v28  ;;  %15443 = vmatprep.subr.bf16.mxu0 %v16318_v62  ;;  %v16339_v62 = vld [vmem:[%s20176_s7 + $0x378] sm:$0xff]   ;;  %v16344_v57 = vld [vmem:[%s20176_s7 + $0x280] sm:$0xff]   ;;  %v16355_v41 = vld [vmem:[%s20176_s7 + $0x3e8] sm:$0xff]  }
 0x68b   :  { %vm10200_vm11 = vcmp.ge.f32.partialorder %v10148_v5, 0.0  ;;  %v10232_v46 = vmul.f32 0.2, %v10148_v5  ;;  %v10169_v52 = vadd.f32 %v15619_v42, %v10008_v8  ;;  %v19975_v26 = vsel %vm10202_vm9, %v10156_v25, %v10234_v0  ;;  %15461 = vmatprep.subr.bf16.mxu1 %v16319_v23  ;;  %v16336_v25 = vld [vmem:[%s20176_s7 + $0x200] sm:$0xff]   ;;  %v16341_v44 = vld [vmem:[%s20176_s7 + $0x338] sm:$0xff]   ;;  %v16343_v23 = vld [vmem:[%s20176_s7 + $0x370] sm:$0xff]  }
 0x68c   :  { %v10160_v31 = vpop.f32.mrf.mxu1  ;;  %v13394_v50 = vpack.c.bf16 %v19975_v26, %v19966_v3  ;;  %v16342_v8 = vld [vmem:[%s20176_s7 + $0x2c0] sm:$0xff]   ;;  %v16345_v0 = vld [vmem:[%s20176_s7 + $0x330] sm:$0xff]   ;;  %v16364_v26 = vld [vmem:[%s20176_s7 + $0x308] sm:$0xff]  }
 0x68d   :  { %v19982_v35 = vsel %vm10200_vm11, %v10148_v5, %v10232_v46  ;;  %v10161_v38 = vadd.f32 %v10160_v31, %v10000_v61  ;;  %15444 = vmatpush3.bf16.msra.mxu0 %v16320_v36  ;;  %15462 = vmatpush3.bf16.msra.mxu1 %v16321_v2  ;;  %v10237_v54 = vmul.f32 0.2, %v10169_v52  ;;  %vm10205_vm12 = vcmp.ge.f32.partialorder %v10169_v52, 0.0  ;;  %v16349_v5 = vld [vmem:[%s20176_s7 + $0x3b8] sm:$0xff]   ;;  %v16351_v42 = vld [vmem:[%s20176_s7 + $0x3f0] sm:$0xff]   ;;  %v16359_v3 = vld [vmem:[%s20176_s7 + $0x3e0] sm:$0xff]  }
 0x68e   :  { %v13393_v17 = vpack.c.bf16 %v19982_v35, %v19980_v58  ;;  %v15620_v14 = vpop.f32.mrf.mxu1  ;;  %15445 = vmatprep.subr.bf16.mxu0 %v16322_v49  ;;  %15463 = vmatprep.subr.bf16.mxu1 %v16323_v60  ;;  %v16353_v61 = vld [vmem:[%s20176_s7 + $0x3b0] sm:$0xff]   ;;  %v16354_v36 = vld [vmem:[%s20176_s7 + $0x358] sm:$0xff]   ;;  %v16362_v49 = vld [vmem:[%s20176_s7 + $0x348] sm:$0xff]  }
 0x68f   :  { %v10172_v51 = vadd.f32 %v15620_v14, %v10011_v32  ;;  %v10235_v19 = vmul.f32 0.2, %v10161_v38  ;;  %vm10203_vm14 = vcmp.ge.f32.partialorder %v10161_v38, 0.0  ;;  %v10269_v28 = vsel %vm10205_vm12, %v10169_v52, %v10237_v54  ;;  %v16358_v2 = vld [vmem:[%s20176_s7 + $0x350] sm:$0xff]   ;;  %v16361_v52 = vld [vmem:[%s20176_s7 + $0x3a0] sm:$0xff]   ;;  %v16363_v60 = vld [vmem:[%s20176_s7 + $0x3d8] sm:$0xff]  }
 0x690   :  { %v10163_v30 = vpop.f32.mrf.mxu1  ;;  %v16360_v46 = vld [vmem:[%s20176_s7 + $0x310] sm:$0xff]   ;;  %v16365_v31 = vld [vmem:[%s20176_s7 + $0x398] sm:$0xff]   ;;  %v16368_v32 = vld [vmem:[%s20176_s7 + $0x300] sm:$0xff]  }
 0x691   :  { %vm10206_vm13 = vcmp.ge.f32.partialorder %v10172_v51, 0.0  ;;  %v10238_v53 = vmul.f32 0.2, %v10172_v51  ;;  %v10164_v6 = vadd.f32 %v10163_v30, %v10003_v59  ;;  %15446 = vmatpush3.bf16.msra.mxu0 %v16324_v56  ;;  %15464 = vmatpush3.bf16.msra.mxu1 %v16325_v39  ;;  %v20013_v18 = vsel %vm10203_vm14, %v10161_v38, %v10235_v19  ;;  %v16367_v38 = vld [vmem:[%s20176_s7 + $0x3d0] sm:$0xff]   ;;  %v16370_v56 = vld [vmem:[%s20176_s7 + $0x3c8] sm:$0xff]   ;;  %v16372_v54 = vld [vmem:[%s20176_s7 + $0x3c0] sm:$0xff]  }
 0x692   :  { %15447 = vmatprep.subr.bf16.mxu0 %v16326_v13  ;;  %15465 = vmatprep.subr.bf16.mxu1 %v16327_v16  ;;  %v16369_v14 = vld [vmem:[%s20176_s7 + $0x390] sm:$0xff]   ;;  %v16371_v39 = vld [vmem:[%s20176_s7 + $0x388] sm:$0xff]  }
 0x693   :  { %vm10204_vm15 = vcmp.ge.f32.partialorder %v10164_v6, 0.0  ;;  %v10236_v40 = vmul.f32 0.2, %v10164_v6  ;;  %v10270_v43 = vsel %vm10206_vm13, %v10172_v51, %v10238_v53  ;;  %v16373_v51 = vld [vmem:[%s20176_s7 + $0x380] sm:$0xff]  }
 0x694   :  { %v13396_v10 = vpack.c.bf16 %v10270_v43, %v10269_v28 }
 0x695   :  { %v20015_v27 = vsel %vm10204_vm15, %v10164_v6, %v10236_v40  ;;  %15448 = vmatpush3.bf16.msra.mxu0 %v16328_v4  ;;  %15466 = vmatpush3.bf16.msra.mxu1 %v16329_v7 }
 0x696   :  { %v13395_v1 = vpack.c.bf16 %v20015_v27, %v20013_v18  ;;  %15449 = vmatprep.subr.bf16.mxu0 %v16330_v20  ;;  %15467 = vmatprep.subr.bf16.mxu1 %v16331_v33 }
 0x699   :  { %15450 = vmatpush3.bf16.msra.mxu0 %v16332_v22  ;;  %15468 = vmatpush3.bf16.msra.mxu1 %v16333_v37 }
 0x69a   :  { %15451 = vmatprep.subr.bf16.mxu0 %v16334_v21  ;;  %15469 = vmatprep.subr.bf16.mxu1 %v16335_v24 }
 0x69d   :  { %15452 = vmatpush3.bf16.msra.mxu0 %v16336_v25  ;;  %15470 = vmatpush3.bf16.msra.mxu1 %v16337_v63 }
 0x69e   :  { %15471 = vmatprep.subr.bf16.mxu1 %v16338_v45  ;;  %15481 = vmatprep.subr.bf16.mxu0 %v16339_v62 }
 0x6a0   :  { %11755 = vmatmul.mubr.bf16.vlgmr.msra.gmra.mxu0 %v13389_v11  ;;  %v16348_v11 = vld [vmem:[%s20176_s7 + $0x328] sm:$0xff]  }
 0x6a1   :  { %15472 = vmatpush3.bf16.msra.mxu1 %v16340_v29  ;;  %15482 = vmatpush3.bf16.msra.mxu0 %v16341_v44 }
 0x6a2   :  { %11836 = vmatprep.mubr.bf16.mxu0 %v13394_v50  ;;  %15473 = vmatprep.subr.bf16.mxu1 %v16342_v8  ;;  %v16366_v50 = vld [vmem:[%s20176_s7 + $0x340] sm:$0xff]  }
 0x6a3   :  { %15483 = vmatprep.subr.bf16.mxu0 %v16343_v23 }
 0x6a5   :  { %15474 = vmatpush3.bf16.msra.mxu1 %v16344_v57  ;;  %15484 = vmatpush3.bf16.msra.mxu0 %v16345_v0 }
 0x6a6   :  { %15485 = vmatprep.subr.bf16.mxu0 %v16346_v55  ;;  %15503 = vmatprep.subr.bf16.mxu1 %v16347_v47 }
 0x6a8   :  { %11796 = vmatmul.mubr.bf16.vlgmr.msra.gmra.mxu1 %v13391_v34  ;;  %v16357_v34 = vld [vmem:[%s20176_s7 + $0x3a8] sm:$0xff]  }
 0x6a9   :  { %15486 = vmatpush3.bf16.msra.mxu0 %v16348_v11  ;;  %15504 = vmatpush3.bf16.msra.mxu1 %v16349_v5 }
 0x6aa   :  { %11877 = vmatprep.mubr.bf16.mxu1 %v13396_v10  ;;  %15487 = vmatprep.subr.bf16.mxu0 %v16350_v12 }
 0x6ab   :  { %15505 = vmatprep.subr.bf16.mxu1 %v16351_v42 }
 0x6ad   :  { %15488 = vmatpush3.bf16.msra.mxu0 %v16352_v48  ;;  %15506 = vmatpush3.bf16.msra.mxu1 %v16353_v61 }
 0x6ae   :  { %15489 = vmatprep.subr.bf16.mxu0 %v16354_v36  ;;  %15507 = vmatprep.subr.bf16.mxu1 %v16355_v41 }
 0x6b1   :  { %15490 = vmatpush3.bf16.msra.mxu0 %v16356_v15  ;;  %15508 = vmatpush3.bf16.msra.mxu1 %v16357_v34 }
 0x6b2   :  { %15491 = vmatprep.subr.bf16.mxu0 %v16358_v2  ;;  %15509 = vmatprep.subr.bf16.mxu1 %v16359_v3 }
 0x6b5   :  { %15492 = vmatpush3.bf16.msra.mxu0 %v16360_v46  ;;  %15510 = vmatpush3.bf16.msra.mxu1 %v16361_v52 }
 0x6b6   :  { %15493 = vmatprep.subr.bf16.mxu0 %v16362_v49  ;;  %15511 = vmatprep.subr.bf16.mxu1 %v16363_v60 }
 0x6b9   :  { %15494 = vmatpush3.bf16.msra.mxu0 %v16364_v26  ;;  %15512 = vmatpush3.bf16.msra.mxu1 %v16365_v31 }
 0x6ba   :  { %15495 = vmatprep.subr.bf16.mxu0 %v16366_v50  ;;  %15513 = vmatprep.subr.bf16.mxu1 %v16367_v38 }
 0x6bd   :  { %15496 = vmatpush3.bf16.msra.mxu0 %v16368_v32  ;;  %15514 = vmatpush3.bf16.msra.mxu1 %v16369_v14 }
 0x6be   :  { %15515 = vmatprep.subr.bf16.mxu1 %v16370_v56 }
 0x6c0   :  { %11837 = vmatmul.mubr.bf16.vlgmr.msra.gmra.mxu0 %v13393_v17 }
 0x6c1   :  { %15516 = vmatpush3.bf16.msra.mxu1 %v16371_v39 }
 0x6c2   :  { %15517 = vmatprep.subr.bf16.mxu1 %v16372_v54 }
 0x6c5   :  { %15518 = vmatpush3.bf16.msra.mxu1 %v16373_v51 }
 0x6c8   :  { %11878 = vmatmul.mubr.bf16.vlgmr.msra.gmra.mxu1 %v13395_v1  ;;  %v12855_v1 = vld [vmem:[%s20177_s8] ss:$0 sm:$0xff] }
 0x720   :  { %v15365_v9 = vpop.f32.mrf.mxu0 }
 0x722   :  { %v15366_v59 = vpop.f32.mrf.mxu0 }
 0x723   :  { %v15367_v27 = vadd.f32 %v15366_v59, %v15365_v9 }
 0x724   :  { %v15368_v13 = vpop.f32.mrf.mxu0 }
 0x725   :  { %v11593_v24 = vadd.f32 %v15367_v27, %v12855_v1 }
 0x726   :  { %v15369_v30 = vpop.f32.mrf.mxu0 }
 0x727   :  { %v15370_v25 = vadd.f32 %v15369_v30, %v15368_v13 }
 0x728   :  { %v15387_v16 = vpop.f32.mrf.mxu1 }
 0x729   :  { %v11596_v57 = vadd.f32 %v15370_v25, %v12855_v1 }
 0x72a   :  { %v15388_v19 = vpop.f32.mrf.mxu1 }
 0x72b   :  { %v15389_v22 = vadd.f32 %v15388_v19, %v15387_v16 }
 0x72c   :  { %v15390_v58 = vpop.f32.mrf.mxu1 }
 0x72d   :  { %v11634_v62 = vadd.f32 %v15389_v22, %v11593_v24 }
 0x72e   :  { %v15391_v17 = vpop.f32.mrf.mxu1 }
 0x72f   :  { %v15392_v29 = vadd.f32 %v15391_v17, %v15390_v58 }
 0x731   :  { %v11637_v5 = vadd.f32 %v15392_v29, %v11596_v57 }
 0x740   :  { %v15409_v53 = vpop.f32.mrf.mxu0 }
 0x742   :  { %v15410_v35 = vpop.f32.mrf.mxu0 }
 0x743   :  { %v15411_v63 = vadd.f32 %v15410_v35, %v15409_v53 }
 0x744   :  { %v15412_v6 = vpop.f32.mrf.mxu0 }
 0x745   :  { %v11675_v0 = vadd.f32 %v15411_v63, %v11634_v62 }
 0x746   :  { %v15413_v7 = vpop.f32.mrf.mxu0 }
 0x747   :  { %v15414_v55 = vadd.f32 %v15413_v7, %v15412_v6 }
 0x748   :  { %v15431_v4 = vpop.f32.mrf.mxu1 }
 0x749   :  { %v11678_v36 = vadd.f32 %v15414_v55, %v11637_v5 }
 0x74a   :  { %v15432_v40 = vpop.f32.mrf.mxu1 }
 0x74b   :  { %v15433_v44 = vadd.f32 %v15432_v40, %v15431_v4 }
 0x74c   :  { %v15434_v33 = vpop.f32.mrf.mxu1 }
 0x74d   :  { %v11716_v12 = vadd.f32 %v15433_v44, %v11675_v0 }
 0x74e   :  { %v15435_v43 = vpop.f32.mrf.mxu1 }
 0x74f   :  { %v15436_v42 = vadd.f32 %v15435_v43, %v15434_v33 }
 0x751   :  { %v11719_v46 = vadd.f32 %v15436_v42, %v11678_v36 }
 0x760   :  { %v15453_v20 = vpop.f32.mrf.mxu0 }
 0x762   :  { %v15454_v28 = vpop.f32.mrf.mxu0 }
 0x763   :  { %v15455_v47 = vadd.f32 %v15454_v28, %v15453_v20 }
 0x764   :  { %v15456_v10 = vpop.f32.mrf.mxu0 }
 0x765   :  { %v11757_v41 = vadd.f32 %v15455_v47, %v11716_v12 }
 0x766   :  { %v15457_v37 = vpop.f32.mrf.mxu0 }
 0x767   :  { %v15458_v15 = vadd.f32 %v15457_v37, %v15456_v10 }
 0x768   :  { %v15475_v18 = vpop.f32.mrf.mxu1 }
 0x769   :  { %v11760_v26 = vadd.f32 %v15458_v15, %v11719_v46 }
 0x76a   :  { %v15476_v21 = vpop.f32.mrf.mxu1 }
 0x76b   :  { %v15477_v48 = vadd.f32 %v15476_v21, %v15475_v18 }
 0x76c   :  { %v15478_v8 = vpop.f32.mrf.mxu1 }
 0x76d   :  { %v11798_v52 = vadd.f32 %v15477_v48, %v11757_v41 }
 0x76e   :  { %v15479_v61 = vpop.f32.mrf.mxu1 }
 0x76f   :  { %v15480_v49 = vadd.f32 %v15479_v61, %v15478_v8 }
 0x771   :  { %v11801_v14 = vadd.f32 %v15480_v49, %v11760_v26 }
 0x780   :  { %v15497_v45 = vpop.f32.mrf.mxu0 }
 0x782   :  { %v15498_v23 = vpop.f32.mrf.mxu0 }
 0x783   :  { %v15499_v34 = vadd.f32 %v15498_v23, %v15497_v45 }
 0x784   :  { %v15500_v11 = vpop.f32.mrf.mxu0 }
 0x785   :  { %v11839_v31 = vadd.f32 %v15499_v34, %v11798_v52 }
 0x786   :  { %v15501_v2 = vpop.f32.mrf.mxu0 }
 0x787   :  { %v15502_v50 = vadd.f32 %v15501_v2, %v15500_v11 }
 0x788   :  { %v15519_v3 = vpop.f32.mrf.mxu1 }
 0x789   :  { %v11842_v54 = vadd.f32 %v15502_v50, %v11801_v14 }
 0x78a   :  { %v15520_v60 = vpop.f32.mrf.mxu1 }
 0x78b   :  { %v15521_v38 = vadd.f32 %v15520_v60, %v15519_v3 }
 0x78c   :  { %v15522_v32 = vpop.f32.mrf.mxu1 }
 0x78d   :  { %v11880_v56 = vadd.f32 %v15521_v38, %v11839_v31 }
 0x78e   :  { %v15523_v39 = vpop.f32.mrf.mxu1 }
 0x78f   :  { %11886 = vst [vmem:[%s20178_s9] sm:$0xff] %v11880_v56  ;;  %v15524_v51 = vadd.f32 %v15523_v39, %v15522_v32 }
 0x791   :  { %v11883_v9 = vadd.f32 %v15524_v51, %v11842_v54 }
 0x793   :  { %11887 = vst [vmem:[%s20178_s9 + $0x8] sm:$0xff] %v11883_v9 }

</bundles_post_ra>
